<compile_context>
chip_gen: v7x
topology: tpu7x:2x2x1
jax: 0.10.0
libtpu: 0.0.40
codegen_flags: <defaults>
</compile_context>

<pallas_src>
import jax
import jax.numpy as jnp
from jax.experimental import pallas as pl
from jax.experimental.pallas import tpu as pltpu


# ----------------------------------------------------------------------------
# Fused kernel: point-wise MLP 3->64->128->1024 (+BN+ReLU), running max over
# points, and the FC head 1024->512->256->9(+identity) on the last tile.
# ----------------------------------------------------------------------------
def _stn3d_kernel(x_ref,
                  w1_ref, b1_ref, w2_ref, b2_ref, w3_ref, b3_ref,
                  w4_ref, b4_ref, w5_ref, b5_ref, w6_ref, b6_ref,
                  out_ref, acc_ref):
    n = pl.program_id(1)

    @pl.when(n == 0)
    def _init():
        acc_ref[...] = jnp.full((1024, 1), -jnp.inf, dtype=jnp.float32)

    # ---- per-point MLP, channels-major: activations are (C, Nt) ------------
    x = x_ref[0]                                            # (3, Nt)  f32
    w1 = w1_ref[...]                                        # (64, 3)  f32
    # layer 1 has K=3: three broadcast FMAs on the VPU (MXU left free).
    h = (w1[:, 0:1] * x[0:1, :]
         + w1[:, 1:2] * x[1:2, :]
         + w1[:, 2:3] * x[2:3, :])                          # (64, Nt)
    h = jnp.maximum(h + b1_ref[...], 0.0)

    h = jnp.dot(w2_ref[...], h.astype(jnp.bfloat16),
                preferred_element_type=jnp.float32)         # (128, Nt)
    h = jnp.maximum(h + b2_ref[...], 0.0)

    h = jnp.dot(w3_ref[...], h.astype(jnp.bfloat16),
                preferred_element_type=jnp.float32)         # (1024, Nt)
    h = jnp.maximum(h + b3_ref[...], 0.0)

    # running max over the point (lane) axis
    acc_ref[...] = jnp.maximum(acc_ref[...],
                               jnp.max(h, axis=1, keepdims=True))

    # ---- FC head, fused into the final point tile of each batch row --------
    @pl.when(n == pl.num_programs(1) - 1)
    def _head():
        f = acc_ref[...].astype(jnp.bfloat16)               # (1024, 1)
        g = jnp.dot(w4_ref[...], f,
                    preferred_element_type=jnp.float32)     # (512, 1)
        g = jnp.maximum(g + b4_ref[...], 0.0)
        g = jnp.dot(w5_ref[...], g.astype(jnp.bfloat16),
                    preferred_element_type=jnp.float32)     # (256, 1)
        g = jnp.maximum(g + b5_ref[...], 0.0)
        g = jnp.dot(w6_ref[...], g.astype(jnp.bfloat16),
                    preferred_element_type=jnp.float32)     # (128, 1) padded
        out_ref[0] = g + b6_ref[...]


def _resident(shape):
    # weights/biases: same block for every grid step -> no re-DMA.
    return pl.BlockSpec(shape, lambda b, n, _s=shape: (0,) * len(_s))


def _round_up(x, m):
    return (x + m - 1) // m * m


@jax.jit
def stn3d_forward(x_b3n, p):
    """x_b3n: (B, 3, N) exactly like the PyTorch module's input."""
    B, C, N = x_b3n.shape
    assert C == 3
    x = x_b3n.astype(jnp.float32)

    # lane-dense point tiles; cap the tile to bound VMEM (v7x-safe).
    nt = min(512, _round_up(N, 128))
    n_pad = _round_up(N, nt)
    if n_pad != N:
        # replicate the last point: max over points is unchanged.
        last = x[:, :, N - 1:N]
        x = jnp.concatenate(
            [x, jnp.broadcast_to(last, (B, 3, n_pad - N))], axis=-1)
    n_tiles = n_pad // nt

    grid_spec = pltpu.PrefetchScalarGridSpec(
        num_scalar_prefetch=0,
        grid=(B, n_tiles),
        in_specs=[
            pl.BlockSpec((1, 3, nt), lambda b, n: (b, 0, n)),
            _resident((64, 3)),     _resident((64, 1)),
            _resident((128, 64)),   _resident((128, 1)),
            _resident((1024, 128)), _resident((1024, 1)),
            _resident((512, 1024)), _resident((512, 1)),
            _resident((256, 512)),  _resident((256, 1)),
            _resident((128, 256)),  _resident((128, 1)),
        ],
        out_specs=pl.BlockSpec((1, 128, 1), lambda b, n: (b, 0, 0)),
        scratch_shapes=[pltpu.VMEM((1024, 1), jnp.float32)],
    )

    out = pl.pallas_call(
        _stn3d_kernel,
        out_shape=jax.ShapeDtypeStruct((B, 128, 1), jnp.float32),
        grid_spec=grid_spec,
        compiler_params=pltpu.CompilerParams(
            dimension_semantics=("parallel", "arbitrary"),
            vmem_limit_bytes=32 * 1024 * 1024),
    )(x,
      p["w1"], p["b1"], p["w2"], p["b2"], p["w3"], p["b3"],
      p["w4"], p["b4"], p["w5"], p["b5"], p["w6"], p["b6"])

    return out[:, :9, 0].reshape(B, 3, 3)


# ----------------------------------------------------------------------------
# Parameters: PyTorch-equivalent shapes, eval-mode BatchNorm folded into the
# weights (scale) and biases (shift), identity folded into the last bias,
# MXU weights stored in bfloat16, last layer zero-padded to 128 channels.
# ----------------------------------------------------------------------------
def _fold_bn(w, b, gamma, beta, mean, var, eps=1e-5):
    scale = gamma / jnp.sqrt(var + eps)
    shift = beta - mean * scale
    return w * scale[:, None], b * scale + shift


def make_params(key):
    dims = [(3, 64), (64, 128), (128, 1024), (1024, 512), (512, 256), (256, 9)]
    keys = jax.random.split(key, 2 * 6 + 4 * 5)
    it = iter(keys)

    lin = []
    for cin, cout in dims:
        bound = 1.0 / (cin ** 0.5)
        w = jax.random.uniform(next(it), (cout, cin), jnp.float32, -bound, bound)
        b = jax.random.uniform(next(it), (cout,), jnp.float32, -bound, bound)
        lin.append((w, b))

    bns = []
    for c in (64, 128, 1024, 512, 256):
        gamma = 1.0 + 0.1 * jax.random.normal(next(it), (c,), jnp.float32)
        beta = 0.1 * jax.random.normal(next(it), (c,), jnp.float32)
        mean = 0.1 * jax.random.normal(next(it), (c,), jnp.float32)
        var = jax.random.uniform(next(it), (c,), jnp.float32, 0.5, 1.5)
        bns.append((gamma, beta, mean, var))

    p = {}
    for i in range(5):
        wf, bf = _fold_bn(lin[i][0], lin[i][1], *bns[i])
        wdtype = jnp.float32 if i == 0 else jnp.bfloat16   # layer 1 stays on VPU
        p[f"w{i + 1}"] = wf.astype(wdtype)
        p[f"b{i + 1}"] = bf[:, None].astype(jnp.float32)

    w6, b6 = lin[5]
    iden = jnp.eye(3, dtype=jnp.float32).reshape(9)
    w6p = jnp.zeros((128, 256), jnp.float32).at[:9, :].set(w6)
    b6p = jnp.zeros((128,), jnp.float32).at[:9].set(b6 + iden)
    p["w6"] = w6p.astype(jnp.bfloat16)
    p["b6"] = b6p[:, None]
    return p


# ----------------------------------------------------------------------------
# Plain-JAX reference (same folded params, bf16 matmuls like the kernel).
# ----------------------------------------------------------------------------
def stn3d_reference(x_b3n, p):
    x = jnp.transpose(x_b3n, (0, 2, 1)).astype(jnp.float32)   # (B, N, 3)

    def dense(h, w, b, *, relu, bf16):
        wt = w.astype(jnp.float32).T                           # (K, O)
        if bf16:
            y = jnp.dot(h.astype(jnp.bfloat16), wt.astype(jnp.bfloat16),
                        preferred_element_type=jnp.float32)
        else:
            y = jnp.dot(h, wt)
        y = y + b[:, 0].astype(jnp.float32)
        return jnp.maximum(y, 0.0) if relu else y

    h = dense(x, p["w1"], p["b1"], relu=True, bf16=False)      # (B, N, 64)
    h = dense(h, p["w2"], p["b2"], relu=True, bf16=True)       # (B, N, 128)
    h = dense(h, p["w3"], p["b3"], relu=True, bf16=True)       # (B, N, 1024)
    f = jnp.max(h, axis=1)                                     # (B, 1024)
    h = dense(f, p["w4"], p["b4"], relu=True, bf16=True)       # (B, 512)
    h = dense(h, p["w5"], p["b5"], relu=True, bf16=True)       # (B, 256)
    o = dense(h, p["w6"], p["b6"], relu=False, bf16=True)      # (B, 128)
    return o[:, :9].reshape(-1, 3, 3)


if __name__ == "__main__":
    key = jax.random.PRNGKey(0)
    k_param, k_x = jax.random.split(key)
    B, N = 2, 1000                      # exercises N padding + multi-tile max
    params = make_params(k_param)
    x = jax.random.normal(k_x, (B, 3, N), jnp.float32)  # NCW like PyTorch

    out = jax.block_until_ready(stn3d_forward(x, params))
    ref = stn3d_reference(x, params)

    assert out.shape == (B, 3, 3), out.shape
    assert jnp.allclose(out, ref, rtol=2e-2, atol=2e-2), (out, ref)
    print("KERNEL_OK")
</pallas_src>

<mosaic_0001>
module attributes {stable_mosaic.version = 11 : i64} {
  func.func @_stn3d_kernel(%arg0: i32, %arg1: i32, %arg2: memref<1x3x512xf32, #tpu.memory_space<vmem>>, %arg3: memref<64x3xf32, #tpu.memory_space<vmem>>, %arg4: memref<64x1xf32, #tpu.memory_space<vmem>>, %arg5: memref<128x64xbf16, #tpu.memory_space<vmem>>, %arg6: memref<128x1xf32, #tpu.memory_space<vmem>>, %arg7: memref<1024x128xbf16, #tpu.memory_space<vmem>>, %arg8: memref<1024x1xf32, #tpu.memory_space<vmem>>, %arg9: memref<512x1024xbf16, #tpu.memory_space<vmem>>, %arg10: memref<512x1xf32, #tpu.memory_space<vmem>>, %arg11: memref<256x512xbf16, #tpu.memory_space<vmem>>, %arg12: memref<256x1xf32, #tpu.memory_space<vmem>>, %arg13: memref<128x256xbf16, #tpu.memory_space<vmem>>, %arg14: memref<128x1xf32, #tpu.memory_space<vmem>>, %arg15: memref<1x128x1xf32, #tpu.memory_space<vmem>>, %arg16: memref<1024x1xf32, #tpu.memory_space<vmem>>) attributes {dimension_semantics = [#tpu.dimension_semantics<parallel>, #tpu.dimension_semantics<arbitrary>], iteration_bounds = array<i64: 2, 2>, scalar_prefetch = 0 : i64, scratch_operands = 1 : i64, tpu.core_type = #tpu.core_type<tc>, window_params = [{transform_indices = @transform_0, window_bounds = array<i64: 1, 3, 512>}, {pipeline_mode = #tpu.pipeline_mode<synchronous>, transform_indices = @transform_1, window_bounds = array<i64: 64, 3>}, {pipeline_mode = #tpu.pipeline_mode<synchronous>, transform_indices = @transform_2, window_bounds = array<i64: 64, 1>}, {pipeline_mode = #tpu.pipeline_mode<synchronous>, transform_indices = @transform_3, window_bounds = array<i64: 128, 64>}, {pipeline_mode = #tpu.pipeline_mode<synchronous>, transform_indices = @transform_4, window_bounds = array<i64: 128, 1>}, {pipeline_mode = #tpu.pipeline_mode<synchronous>, transform_indices = @transform_5, window_bounds = array<i64: 1024, 128>}, {pipeline_mode = #tpu.pipeline_mode<synchronous>, transform_indices = @transform_6, window_bounds = array<i64: 1024, 1>}, {pipeline_mode = #tpu.pipeline_mode<synchronous>, transform_indices = @transform_7, window_bounds = array<i64: 512, 1024>}, {pipeline_mode = #tpu.pipeline_mode<synchronous>, transform_indices = @transform_8, window_bounds = array<i64: 512, 1>}, {pipeline_mode = #tpu.pipeline_mode<synchronous>, transform_indices = @transform_9, window_bounds = array<i64: 256, 512>}, {pipeline_mode = #tpu.pipeline_mode<synchronous>, transform_indices = @transform_10, window_bounds = array<i64: 256, 1>}, {pipeline_mode = #tpu.pipeline_mode<synchronous>, transform_indices = @transform_11, window_bounds = array<i64: 128, 256>}, {pipeline_mode = #tpu.pipeline_mode<synchronous>, transform_indices = @transform_12, window_bounds = array<i64: 128, 1>}, {transform_indices = @transform_13, window_bounds = array<i64: 1, 128, 1>}]} {
    %c0_i32 = arith.constant 0 : i32
    %0 = arith.cmpi eq, %arg1, %c0_i32 : i32
    %1 = arith.extui %0 : i1 to i32
    %c0_i32_0 = arith.constant 0 : i32
    %2 = arith.cmpi ne, %1, %c0_i32_0 : i32
    scf.if %2 {
      %cst_25 = arith.constant 0xFF800000 : f32
      %52 = vector.broadcast %cst_25 : f32 to vector<1024x1xf32>
      %c0_26 = arith.constant 0 : index
      %c0_27 = arith.constant 0 : index
      %53 = vector.load %arg16[%c0_26, %c0_27] : memref<1024x1xf32, #tpu.memory_space<vmem>>, vector<1024x1xf32>
      tpu.vector_store %arg16[%c0_26, %c0_27], %52 {strides = array<i32>} : memref<1024x1xf32, #tpu.memory_space<vmem>>, vector<1024x1xf32>,
    } else {
    }
    %c0 = arith.constant 0 : index
    %c0_1 = arith.constant 0 : index
    %c0_2 = arith.constant 0 : index
    %3 = vector.load %arg2[%c0, %c0_1, %c0_2] : memref<1x3x512xf32, #tpu.memory_space<vmem>>, vector<1x3x512xf32>
    %4 = vector.shape_cast %3 : vector<1x3x512xf32> to vector<3x512xf32>
    %c0_3 = arith.constant 0 : index
    %c0_4 = arith.constant 0 : index
    %5 = vector.load %arg3[%c0_3, %c0_4] : memref<64x3xf32, #tpu.memory_space<vmem>>, vector<64x3xf32>
    %6 = vector.extract_strided_slice %5 {offsets = [0, 0], sizes = [64, 1], strides = [1, 1]} : vector<64x3xf32> to vector<64x1xf32>
    %7 = vector.extract_strided_slice %4 {offsets = [0, 0], sizes = [1, 512], strides = [1, 1]} : vector<3x512xf32> to vector<1x512xf32>
    %8 = vector.broadcast %6 : vector<64x1xf32> to vector<64x512xf32>
    %9 = vector.broadcast %7 : vector<1x512xf32> to vector<64x512xf32>
    %10 = arith.mulf %8, %9 : vector<64x512xf32>
    %11 = vector.extract_strided_slice %5 {offsets = [0, 1], sizes = [64, 1], strides = [1, 1]} : vector<64x3xf32> to vector<64x1xf32>
    %12 = vector.extract_strided_slice %4 {offsets = [1, 0], sizes = [1, 512], strides = [1, 1]} : vector<3x512xf32> to vector<1x512xf32>
    %13 = vector.broadcast %11 : vector<64x1xf32> to vector<64x512xf32>
    %14 = vector.broadcast %12 : vector<1x512xf32> to vector<64x512xf32>
    %15 = arith.mulf %13, %14 : vector<64x512xf32>
    %16 = arith.addf %10, %15 : vector<64x512xf32>
    %17 = vector.extract_strided_slice %5 {offsets = [0, 2], sizes = [64, 1], strides = [1, 1]} : vector<64x3xf32> to vector<64x1xf32>
    %18 = vector.extract_strided_slice %4 {offsets = [2, 0], sizes = [1, 512], strides = [1, 1]} : vector<3x512xf32> to vector<1x512xf32>
    %19 = vector.broadcast %17 : vector<64x1xf32> to vector<64x512xf32>
    %20 = vector.broadcast %18 : vector<1x512xf32> to vector<64x512xf32>
    %21 = arith.mulf %19, %20 : vector<64x512xf32>
    %22 = arith.addf %16, %21 : vector<64x512xf32>
    %c0_5 = arith.constant 0 : index
    %c0_6 = arith.constant 0 : index
    %23 = vector.load %arg4[%c0_5, %c0_6] : memref<64x1xf32, #tpu.memory_space<vmem>>, vector<64x1xf32>
    %24 = vector.broadcast %23 : vector<64x1xf32> to vector<64x512xf32>
    %25 = arith.addf %22, %24 : vector<64x512xf32>
    %cst = arith.constant 0.000000e+00 : f32
    %26 = vector.broadcast %cst : f32 to vector<64x512xf32>
    %27 = arith.maximumf %25, %26 : vector<64x512xf32>
    %c0_7 = arith.constant 0 : index
    %c0_8 = arith.constant 0 : index
    %28 = vector.load %arg5[%c0_7, %c0_8] : memref<128x64xbf16, #tpu.memory_space<vmem>>, vector<128x64xbf16>
    %29 = arith.truncf %27 : vector<64x512xf32> to vector<64x512xbf16>
    %cst_9 = arith.constant dense<0.000000e+00> : vector<128x512xf32>
    %30 = tpu.matmul %28, %29, %cst_9 {dimension_numbers = #tpu.dot_dimension_numbers<[1], [0], [0], [1], [0, 0, 1, 1], [], []>} : vector<128x64xbf16>, vector<64x512xbf16>, vector<128x512xf32> -> vector<128x512xf32>
    %c0_10 = arith.constant 0 : index
    %c0_11 = arith.constant 0 : index
    %31 = vector.load %arg6[%c0_10, %c0_11] : memref<128x1xf32, #tpu.memory_space<vmem>>, vector<128x1xf32>
    %32 = vector.broadcast %31 : vector<128x1xf32> to vector<128x512xf32>
    %33 = arith.addf %30, %32 : vector<128x512xf32>
    %cst_12 = arith.constant 0.000000e+00 : f32
    %34 = vector.broadcast %cst_12 : f32 to vector<128x512xf32>
    %35 = arith.maximumf %33, %34 : vector<128x512xf32>
    %c0_13 = arith.constant 0 : index
    %c0_14 = arith.constant 0 : index
    %36 = vector.load %arg7[%c0_13, %c0_14] : memref<1024x128xbf16, #tpu.memory_space<vmem>>, vector<1024x128xbf16>
    %37 = arith.truncf %35 : vector<128x512xf32> to vector<128x512xbf16>
    %cst_15 = arith.constant dense<0.000000e+00> : vector<1024x512xf32>
    %38 = tpu.matmul %36, %37, %cst_15 {dimension_numbers = #tpu.dot_dimension_numbers<[1], [0], [0], [1], [0, 0, 1, 1], [], []>} : vector<1024x128xbf16>, vector<128x512xbf16>, vector<1024x512xf32> -> vector<1024x512xf32>
    %c0_16 = arith.constant 0 : index
    %c0_17 = arith.constant 0 : index
    %39 = vector.load %arg8[%c0_16, %c0_17] : memref<1024x1xf32, #tpu.memory_space<vmem>>, vector<1024x1xf32>
    %40 = vector.broadcast %39 : vector<1024x1xf32> to vector<1024x512xf32>
    %41 = arith.addf %38, %40 : vector<1024x512xf32>
    %cst_18 = arith.constant 0.000000e+00 : f32
    %42 = vector.broadcast %cst_18 : f32 to vector<1024x512xf32>
    %43 = arith.maximumf %41, %42 : vector<1024x512xf32>
    %c0_19 = arith.constant 0 : index
    %c0_20 = arith.constant 0 : index
    %44 = vector.load %arg16[%c0_19, %c0_20] : memref<1024x1xf32, #tpu.memory_space<vmem>>, vector<1024x1xf32>
    %cst_21 = arith.constant dense<0xFF800000> : vector<1024xf32>
    %45 = vector.multi_reduction <maximumf>, %43, %cst_21 [1] : vector<1024x512xf32> to vector<1024xf32>
    %46 = vector.shape_cast %45 : vector<1024xf32> to vector<1024x1xf32>
    %47 = arith.maximumf %44, %46 : vector<1024x1xf32>
    %c0_22 = arith.constant 0 : index
    %c0_23 = arith.constant 0 : index
    %48 = vector.load %arg16[%c0_22, %c0_23] : memref<1024x1xf32, #tpu.memory_space<vmem>>, vector<1024x1xf32>
    tpu.vector_store %arg16[%c0_22, %c0_23], %47 {strides = array<i32>} : memref<1024x1xf32, #tpu.memory_space<vmem>>, vector<1024x1xf32>,
    %c1_i32 = arith.constant 1 : i32
    %49 = arith.cmpi eq, %arg1, %c1_i32 : i32
    %50 = arith.extui %49 : i1 to i32
    %c0_i32_24 = arith.constant 0 : i32
    %51 = arith.cmpi ne, %50, %c0_i32_24 : i32
    scf.if %51 {
      %c0_25 = arith.constant 0 : index
      %c0_26 = arith.constant 0 : index
      %52 = vector.load %arg16[%c0_25, %c0_26] : memref<1024x1xf32, #tpu.memory_space<vmem>>, vector<1024x1xf32>
      %53 = arith.truncf %52 : vector<1024x1xf32> to vector<1024x1xbf16>
      %c0_27 = arith.constant 0 : index
      %c0_28 = arith.constant 0 : index
      %54 = vector.load %arg9[%c0_27, %c0_28] : memref<512x1024xbf16, #tpu.memory_space<vmem>>, vector<512x1024xbf16>
      %cst_29 = arith.constant dense<0.000000e+00> : vector<512x1xf32>
      %55 = tpu.matmul %54, %53, %cst_29 {dimension_numbers = #tpu.dot_dimension_numbers<[1], [0], [0], [1], [0, 0, 1, 1], [], []>} : vector<512x1024xbf16>, vector<1024x1xbf16>, vector<512x1xf32> -> vector<512x1xf32>
      %c0_30 = arith.constant 0 : index
      %c0_31 = arith.constant 0 : index
      %56 = vector.load %arg10[%c0_30, %c0_31] : memref<512x1xf32, #tpu.memory_space<vmem>>, vector<512x1xf32>
      %57 = arith.addf %55, %56 : vector<512x1xf32>
      %cst_32 = arith.constant 0.000000e+00 : f32
      %58 = vector.broadcast %cst_32 : f32 to vector<512x1xf32>
      %59 = arith.maximumf %57, %58 : vector<512x1xf32>
      %c0_33 = arith.constant 0 : index
      %c0_34 = arith.constant 0 : index
      %60 = vector.load %arg11[%c0_33, %c0_34] : memref<256x512xbf16, #tpu.memory_space<vmem>>, vector<256x512xbf16>
      %61 = arith.truncf %59 : vector<512x1xf32> to vector<512x1xbf16>
      %cst_35 = arith.constant dense<0.000000e+00> : vector<256x1xf32>
      %62 = tpu.matmul %60, %61, %cst_35 {dimension_numbers = #tpu.dot_dimension_numbers<[1], [0], [0], [1], [0, 0, 1, 1], [], []>} : vector<256x512xbf16>, vector<512x1xbf16>, vector<256x1xf32> -> vector<256x1xf32>
      %c0_36 = arith.constant 0 : index
      %c0_37 = arith.constant 0 : index
      %63 = vector.load %arg12[%c0_36, %c0_37] : memref<256x1xf32, #tpu.memory_space<vmem>>, vector<256x1xf32>
      %64 = arith.addf %62, %63 : vector<256x1xf32>
      %cst_38 = arith.constant 0.000000e+00 : f32
      %65 = vector.broadcast %cst_38 : f32 to vector<256x1xf32>
      %66 = arith.maximumf %64, %65 : vector<256x1xf32>
      %c0_39 = arith.constant 0 : index
      %c0_40 = arith.constant 0 : index
      %67 = vector.load %arg13[%c0_39, %c0_40] : memref<128x256xbf16, #tpu.memory_space<vmem>>, vector<128x256xbf16>
      %68 = arith.truncf %66 : vector<256x1xf32> to vector<256x1xbf16>
      %cst_41 = arith.constant dense<0.000000e+00> : vector<128x1xf32>
      %69 = tpu.matmul %67, %68, %cst_41 {dimension_numbers = #tpu.dot_dimension_numbers<[1], [0], [0], [1], [0, 0, 1, 1], [], []>} : vector<128x256xbf16>, vector<256x1xbf16>, vector<128x1xf32> -> vector<128x1xf32>
      %c0_42 = arith.constant 0 : index
      %c0_43 = arith.constant 0 : index
      %70 = vector.load %arg14[%c0_42, %c0_43] : memref<128x1xf32, #tpu.memory_space<vmem>>, vector<128x1xf32>
      %71 = arith.addf %69, %70 : vector<128x1xf32>
      %c0_44 = arith.constant 0 : index
      %c0_45 = arith.constant 0 : index
      %c0_46 = arith.constant 0 : index
      %72 = vector.load %arg15[%c0_44, %c0_45, %c0_46] : memref<1x128x1xf32, #tpu.memory_space<vmem>>, vector<1x128x1xf32>
      %73 = vector.shape_cast %72 : vector<1x128x1xf32> to vector<128x1xf32>
      %74 = vector.shape_cast %71 : vector<128x1xf32> to vector<1x128x1xf32>
      tpu.vector_store %arg15[%c0_44, %c0_45, %c0_46], %74 {strides = array<i32>} : memref<1x128x1xf32, #tpu.memory_space<vmem>>, vector<1x128x1xf32>,
    } else {
    }
    return
  }
  func.func @transform_0(%arg0: i32, %arg1: i32) -> (i32, i32, i32) {
    %c0_i32 = arith.constant 0 : i32
    %c0_i32_0 = arith.constant 0 : i32
    return %arg0, %c0_i32, %arg1 : i32, i32, i32
  }
  func.func @transform_1(%arg0: i32, %arg1: i32) -> (i32, i32) {
    %c0_i32 = arith.constant 0 : i32
    %c0_i32_0 = arith.constant 0 : i32
    %c0_i32_1 = arith.constant 0 : i32
    return %c0_i32, %c0_i32_0 : i32, i32
  }
  func.func @transform_2(%arg0: i32, %arg1: i32) -> (i32, i32) {
    %c0_i32 = arith.constant 0 : i32
    %c0_i32_0 = arith.constant 0 : i32
    %c0_i32_1 = arith.constant 0 : i32
    return %c0_i32, %c0_i32_0 : i32, i32
  }
  func.func @transform_3(%arg0: i32, %arg1: i32) -> (i32, i32) {
    %c0_i32 = arith.constant 0 : i32
    %c0_i32_0 = arith.constant 0 : i32
    %c0_i32_1 = arith.constant 0 : i32
    return %c0_i32, %c0_i32_0 : i32, i32
  }
  func.func @transform_4(%arg0: i32, %arg1: i32) -> (i32, i32) {
    %c0_i32 = arith.constant 0 : i32
    %c0_i32_0 = arith.constant 0 : i32
    %c0_i32_1 = arith.constant 0 : i32
    return %c0_i32, %c0_i32_0 : i32, i32
  }
  func.func @transform_5(%arg0: i32, %arg1: i32) -> (i32, i32) {
    %c0_i32 = arith.constant 0 : i32
    %c0_i32_0 = arith.constant 0 : i32
    %c0_i32_1 = arith.constant 0 : i32
    return %c0_i32, %c0_i32_0 : i32, i32
  }
  func.func @transform_6(%arg0: i32, %arg1: i32) -> (i32, i32) {
    %c0_i32 = arith.constant 0 : i32
    %c0_i32_0 = arith.constant 0 : i32
    %c0_i32_1 = arith.constant 0 : i32
    return %c0_i32, %c0_i32_0 : i32, i32
  }
  func.func @transform_7(%arg0: i32, %arg1: i32) -> (i32, i32) {
    %c0_i32 = arith.constant 0 : i32
    %c0_i32_0 = arith.constant 0 : i32
    %c0_i32_1 = arith.constant 0 : i32
    return %c0_i32, %c0_i32_0 : i32, i32
  }
  func.func @transform_8(%arg0: i32, %arg1: i32) -> (i32, i32) {
    %c0_i32 = arith.constant 0 : i32
    %c0_i32_0 = arith.constant 0 : i32
    %c0_i32_1 = arith.constant 0 : i32
    return %c0_i32, %c0_i32_0 : i32, i32
  }
  func.func @transform_9(%arg0: i32, %arg1: i32) -> (i32, i32) {
    %c0_i32 = arith.constant 0 : i32
    %c0_i32_0 = arith.constant 0 : i32
    %c0_i32_1 = arith.constant 0 : i32
    return %c0_i32, %c0_i32_0 : i32, i32
  }
  func.func @transform_10(%arg0: i32, %arg1: i32) -> (i32, i32) {
    %c0_i32 = arith.constant 0 : i32
    %c0_i32_0 = arith.constant 0 : i32
    %c0_i32_1 = arith.constant 0 : i32
    return %c0_i32, %c0_i32_0 : i32, i32
  }
  func.func @transform_11(%arg0: i32, %arg1: i32) -> (i32, i32) {
    %c0_i32 = arith.constant 0 : i32
    %c0_i32_0 = arith.constant 0 : i32
    %c0_i32_1 = arith.constant 0 : i32
    return %c0_i32, %c0_i32_0 : i32, i32
  }
  func.func @transform_12(%arg0: i32, %arg1: i32) -> (i32, i32) {
    %c0_i32 = arith.constant 0 : i32
    %c0_i32_0 = arith.constant 0 : i32
    %c0_i32_1 = arith.constant 0 : i32
    return %c0_i32, %c0_i32_0 : i32, i32
  }
  func.func @transform_13(%arg0: i32, %arg1: i32) -> (i32, i32, i32) {
    %c0_i32 = arith.constant 0 : i32
    %c0_i32_0 = arith.constant 0 : i32
    %c0_i32_1 = arith.constant 0 : i32
    return %arg0, %c0_i32, %c0_i32_0 : i32, i32, i32
  }
}

</mosaic_0001>

<bundles_post_ra>
// kernel: squeeze.1
= control target key start
LH: loop header
LB: loop body
LE: loop exit
PB: predicated region body
PF: predicated region fallthrough
CT: control target
= control target key end

     0   :  { %vm7_vm0 = vcmask 23552   ;;  %s36_s8 = smov 122   ;;  %s56_s0 = inlined_call_operand.vmem [shape: f32[2,9], index: 0, kind: input, shape index: {}]   ;;  %s57_s1 = inlined_call_operand.vmem [shape: f32[2,3,3], index: 1, kind: output, shape index: {}]  }
   0x1   :  { %v4_v0 = vld [vmem:[%s56_s0] sm:$0x3]  ;;  %s35_s0 = smov 125  }
   0x2   :  { %5 = vst [vmem:[#allocation1] sm:$0x3] %v4_v0 }
   0x9   :  { %v9_v1 = vld [vmem:[#allocation1] sm:$0x3]  }
   0xa   :  { %v6_v2 = vld [vmem:[#allocation1] sm:$0x3]   ;;  %10 = vrot.lane.b32.xlu0 %v9_v1, %s35_s0 }
   0xb   :  { %8 = vst.msk [vmem:[#allocation0] ss:$8 sm:$0x3] %vm7_vm0, %v6_v2   ;;  %v15_v3 = vld [vmem:[#allocation1] sm:$0x3]  }
   0xe   :  { %16 = vrot.lane.b32.xlu0 %v15_v3, %s36_s8 }
  0x7c   :  { %v11_v4 = vpop.permute.xlu0 %10  }
  0x7d   :  { %14 = vst.msk [vmem:[#allocation0 + $0x1] ss:$8 sm:$0x3] %vm7_vm0, %v11_v4  }
  0x80   :  { %v17_v5 = vpop.permute.xlu0 %16  }
  0x81   :  { %20 = vst.msk [vmem:[#allocation0 + $0x2] ss:$8 sm:$0x3] %vm7_vm0, %v17_v5  }
  0x88   :  { %v24_v6 = vld [vmem:[#allocation0] sm:$0xf]  ;;  %v28_v7 = vld [vmem:[#allocation0 + $0x8] sm:$0xf] }
  0x89   :  { %26 = vst [vmem:[%s57_s1] sm:$0xf] %v24_v6  ;;  %32 = vst [vmem:[%s57_s1 + $0x4] sm:$0xf] %v28_v7 }

// kernel: stn3d_forward.1
= control target key start
LH: loop header
LB: loop body
LE: loop exit
PB: predicated region body
PF: predicated region fallthrough
CT: control target
= control target key end

     0   :  { %s15760_s0 = inlined_call_operand.vmem [shape: f32[2,3,1024], index: 0, kind: input, shape index: {}]   ;;  %s15761_s1 = inlined_call_operand.vmem [shape: f32[64,3], index: 1, kind: input, shape index: {}]   ;;  %s15762_s2 = inlined_call_operand.vmem [shape: f32[64,1], index: 2, kind: input, shape index: {}]   ;;  %s15763_s3 = inlined_call_operand.vmem [shape: bf16[128,64], index: 3, kind: input, shape index: {}]   ;;  %s15764_s4 = inlined_call_operand.vmem [shape: f32[128,1], index: 4, kind: input, shape index: {}]   ;;  %s15765_s5 = inlined_call_operand.vmem [shape: bf16[1024,128], index: 5, kind: input, shape index: {}]   ;;  %s15766_s6 = inlined_call_operand.vmem [shape: f32[1024,1], index: 6, kind: input, shape index: {}]   ;;  %s15767_s7 = inlined_call_operand.vmem [shape: bf16[512,1024], index: 7, kind: input, shape index: {}]   ;;  %s15768_s8 = inlined_call_operand.vmem [shape: f32[512,1], index: 8, kind: input, shape index: {}]   ;;  %s15769_s9 = inlined_call_operand.hbm [shape: bf16[256,512], index: 9, kind: input, shape index: {}]   ;;  %s15770_s10 = inlined_call_operand.vmem [shape: f32[256,1], index: 10, kind: input, shape index: {}]   ;;  %s15771_s11 = inlined_call_operand.hbm [shape: bf16[128,256], index: 11, kind: input, shape index: {}]   ;;  %s15772_s12 = inlined_call_operand.vmem [shape: f32[128,1], index: 12, kind: input, shape index: {}]   ;;  %s15773_s13 = inlined_call_operand.vmem [shape: f32[2,128,1], index: 13, kind: output, shape index: {}]  }
   0x1   :  { %15845 = sst [smem:[#allocation84_spill]] %s15770_s10 }
   0x2   :  { %15846 = sst [smem:[#allocation85_spill]] %s15772_s12 }
   0x3   :  { %18 = vsyncpa [#allocation4], 0 }
   0x4   :  { %19 = vsyncpa [#allocation6], 0  ;;  %s11570_s25 = smov 0   ;;  %s11572_s26 = smov 0  }
   0x5   :  { %s11574_s27 = smov 0   ;;  %s11576_s28 = smov 0  }
   0x6   :  { %s11578_s29 = smov 0  }
   0x7 LB: > { %15847 = sst [smem:[#allocation9_spill]] %s11479_s27  ;;  %s9961_s30 = sadd.s32 4294967295, %s11487_s29   ;;  %s11487_s29 = sphi %s11578_s29, %s25_s29   ;;  %s11483_s28 = sphi %s11576_s28, %s16018_s28   ;;  %s11479_s27 = sphi %s11574_s27, %s16017_s27   ;;  %s11475_s26 = sphi %s11572_s26, %s16016_s26   ;;  %s11471_s25 = sphi %s11570_s25, %s16015_s25  }
   0x8   : > { %15848 = sst [smem:[#allocation10_spill]] %s11483_s28  ;;  %s34_s14 = sadd.s32 1, %s11479_s27 }
   0x9   : > { %15849 = sst [smem:[#allocation11_spill]] %s11487_s29  ;;  %p35_p0 = scmp.ge.s32.totalorder %s34_s14, 2 }
   0xa   : > { %s37_s15 = sadd.s32 1, %s11483_s28  ;;  %p9963_p1 = scmp.ge.s32.totalorder %s11487_s29, 1 }
   0xb   : > { %p348_p2 = scmp.lt.s32.totalorder %s11487_s29, 5  ;;  %s16020_s14 = smov (%p35_p0, %s34_s14), 0 }
   0xc   : > { %15850 = sst [smem:[#allocation12_spill]] %s16020_s14  ;;  %s16022_s15 = smov (!%p35_p0, %s37_s15), %s11483_s28 }
   0xd   : > { %p11603_p3 = pnand %p9963_p1, %p348_p2  ;;  %p39_p4 = scmp.ge.s32.totalorder %s16022_s15, 2 }
   0xe   : > { %p11607_p5 = scmp.eq.s32.totalorder %s9961_s30, 0  ;;  %s11489_s18 = smov [#allocation3]  }
   0xf   : > { %s15851_s16 = scalar_select %p11603_p3, 1, 0 }
  0x10   : > { %s15852_s17 = scalar_select %p11607_p5, 1, 0 }
  0x11   : > { %p11116_p6 = pneg %p11603_p3  ;;  %s16024_s15 = smov (%p39_p4, %s16022_s15), 0 }
  0x12   : > { %15853 = sst [smem:[#allocation13_spill]] %s16024_s15  ;;  %s384_s19 = sshll.u32 %s11489_s18, 4  ;;  %s385_s19 = int_to_ptr.vmem [resolvable:$true] %s384_s19 }
  0x13   : > { %p11617_p7 = pnand %p11607_p5, %p11116_p6  ;;  %s11385_s23 = scalar_lea.hbm %s15769_s9, 8192 }
  0x14   : > { %p11386_p8 = scmp.ne.s32.totalorder %s15769_s9, %s11385_s23  ;;  %p11392_p12 = scmp.lt.u32.totalorder %s11385_s23, %s15769_s9 }
  0x15   : > { %p11387_p9 = pneg %p11617_p7 }
  0x17   : > { %p11388_p10 = pnand %p11387_p9, %p11386_p8 }
  0x19   : > { %p11389_p11 = pneg %p11388_p10 }
  0x1b   : > { %p11394_p13 = pnand %p11392_p12, %p11389_p11 }
  0x1d   : > { %11397 = shalt.err (!%p11394_p13)
}
  0x1e   : > { %s11398_s14 = scalar_lea.vmem %s385_s19, 8192  ;;  %p11406_p4 = scmp.lt.s32.totalorder %s385_s19, %s385_s19 }
  0x1f   : > { %p11399_p0 = scmp.ne.s32.totalorder %s385_s19, %s11398_s14  ;;  %p11407_p6 = scmp.lt.s32.totalorder %s11398_s14, %s11398_s14 }
  0x21   : > { %p11401_p1 = pnand %p11399_p0, %p11387_p9  ;;  %p11408_p5 = por %p11407_p6, %p11406_p4 }
  0x23   : > { %p11402_p2 = pneg %p11401_p1 }
  0x25   : > { %p11409_p3 = pnand %p11408_p5, %p11402_p2 }
  0x27   : > { %11412 = shalt.err (!%p11409_p3)
}
  0x28   : > { %s11490_s21 = smov 256   ;;  %s11491_s22 = smov 16  }
  0x29   : > { %11119 = dma.hbm_to_vmem [thread:$0]  (!%p11617_p7), %s15769_s9, 8192, %s385_s19, [#allocation4], %s11490_s21, %s11490_s21, %s11491_s22  }
  0x2a   : > { %s11492_s24 = smov [#allocation5]   ;;  %s11413_s27 = scalar_lea.hbm %s15771_s11, 2048 }
  0x2b   : > { %s400_s30 = sshll.u32 %s11492_s24, 4  ;;  %p11414_p3 = scmp.ne.s32.totalorder %s15771_s11, %s11413_s27  ;;  %s401_s30 = int_to_ptr.vmem [resolvable:$true] %s400_s30 }
  0x2c   : > { %p11420_p10 = scmp.lt.u32.totalorder %s11413_s27, %s15771_s11 }
  0x2d   : > { %p11416_p5 = pnand %p11414_p3, %p11387_p9 }
  0x2f   : > { %p11417_p8 = pneg %p11416_p5 }
  0x31   : > { %p11422_p11 = pnand %p11420_p10, %p11417_p8 }
  0x33   : > { %11425 = shalt.err (!%p11422_p11)
}
  0x34   : > { %s11426_s19 = scalar_lea.vmem %s401_s30, 2048  ;;  %p11434_p1 = scmp.lt.s32.totalorder %s401_s30, %s401_s30 }
  0x35   : > { %p11427_p12 = scmp.ne.s32.totalorder %s401_s30, %s11426_s19  ;;  %p11435_p2 = scmp.lt.s32.totalorder %s11426_s19, %s11426_s19 }
  0x37   : > { %p11429_p13 = pnand %p11427_p12, %p11387_p9  ;;  %p11436_p4 = por %p11435_p2, %p11434_p1 }
  0x39   : > { %p11430_p0 = pneg %p11429_p13 }
  0x3b   : > { %p11437_p6 = pnand %p11436_p4, %p11430_p0 }
  0x3d   : > { %11440 = shalt.err (!%p11437_p6)
}
  0x3e   : > { %s11493_s28 = smov 128   ;;  %s11494_s29 = smov 8  }
  0x3f   : > { %11122 = dma.hbm_to_vmem [thread:$0]  (!%p11617_p7), %s15771_s11, 2048, %s401_s30, [#allocation6], %s11493_s28, %s11493_s28, %s11494_s29  }
  0x40   : > { %p15855_p3 = scmp.ne.s32.totalorder %s15851_s16, 0 }
  0x42   : > { %432 = sbr.rel (%p15855_p3) target bundleno = 3106 (0xc22), region = 72 }
  0x49   : > { %p15856_p5 = scmp.ne.s32.totalorder %s15852_s17, 0 }
  0x4b   : > { %11462 = dma.done.wait (%p15856_p5), [#allocation4], 8192  }
  0x4c   : > { %11464 = vsyncadd (%p15856_p5), [#allocation4], 4294959104 }
  0x4d   : > { %11466 = dma.done.wait (%p15856_p5), [#allocation6], 2048  }
  0x4e   : > { %11468 = vsyncadd (%p15856_p5), [#allocation6], 4294965248  ;;  %s9970_s27 = sshll.u32 %s11471_s25, 2  ;;  %p485_p7 = scmp.lt.s32.totalorder %s11475_s26, 1 }
  0x4f   : > { %p487_p9 = scmp.lt.s32.totalorder %s9970_s27, 7  ;;  %p9975_p8 = scmp.ne.s32.totalorder %s11471_s25, 0 }
  0x50   : > { %s16026_s26 = smov (!%p485_p7, %s11475_s26), 1  ;;  %vm504_vm0 = vcmask (!%p9975_p8), 7168   ;;  %v11495_v0 = vmov (!%p9975_p8), -inf  }
  0x51   : > { %s16028_s27 = smov (!%p487_p9, %s9970_s27), 7  ;;  %s9971_s16 = sshll.u32 %s16026_s26, 3  ;;  %505 = vst.msk [vmem:[#allocation2] sm:$0xff] (!%p9975_p8), %vm504_vm0, %v11495_v0  ;;  %506 = vst.msk [vmem:[#allocation2 + $0x8] sm:$0xff] (!%p9975_p8), %vm504_vm0, %v11495_v0 }
  0x52   : > { %s10403_s20 = sshll.u32 %s16026_s26, 7  ;;  %s490_s21 = sadd.s32 %s9971_s16, %s16028_s27  ;;  %507 = vst.msk [vmem:[#allocation2 + $0x10] sm:$0xff] (!%p9975_p8), %vm504_vm0, %v11495_v0  ;;  %508 = vst.msk [vmem:[#allocation2 + $0x18] sm:$0xff] (!%p9975_p8), %vm504_vm0, %v11495_v0 }
  0x53   : > { %s11679_s23 = scalar_lea.vmem %s15773_s13, %s10403_s20  ;;  %s9972_s24 = sshll.u32 %s490_s21, 2  ;;  %509 = vst.msk [vmem:[#allocation2 + $0x20] sm:$0xff] (!%p9975_p8), %vm504_vm0, %v11495_v0  ;;  %510 = vst.msk [vmem:[#allocation2 + $0x28] sm:$0xff] (!%p9975_p8), %vm504_vm0, %v11495_v0 }
  0x54   : > { %s11684_s18 = scalar_lea.vmem %s15760_s0, %s9972_s24  ;;  %503 = sbr.rel (%p9975_p8) target bundleno = 145 (0x91), region = 84  ;;  %511 = vst.msk [vmem:[#allocation2 + $0x30] sm:$0xff] (!%p9975_p8), %vm504_vm0, %v11495_v0  ;;  %512 = vst.msk [vmem:[#allocation2 + $0x38] sm:$0xff] (!%p9975_p8), %vm504_vm0, %v11495_v0 }
  0x55   : > { %513 = vst.msk [vmem:[#allocation2 + $0x40] sm:$0xff] (!%p9975_p8), %vm504_vm0, %v11495_v0  ;;  %514 = vst.msk [vmem:[#allocation2 + $0x48] sm:$0xff] (!%p9975_p8), %vm504_vm0, %v11495_v0 }
  0x56   : > { %515 = vst.msk [vmem:[#allocation2 + $0x50] sm:$0xff] (!%p9975_p8), %vm504_vm0, %v11495_v0  ;;  %516 = vst.msk [vmem:[#allocation2 + $0x58] sm:$0xff] (!%p9975_p8), %vm504_vm0, %v11495_v0 }
  0x57   : > { %517 = vst.msk [vmem:[#allocation2 + $0x60] sm:$0xff] (!%p9975_p8), %vm504_vm0, %v11495_v0  ;;  %518 = vst.msk [vmem:[#allocation2 + $0x68] sm:$0xff] (!%p9975_p8), %vm504_vm0, %v11495_v0 }
  0x58   : > { %519 = vst.msk [vmem:[#allocation2 + $0x70] sm:$0xff] (!%p9975_p8), %vm504_vm0, %v11495_v0  ;;  %520 = vst.msk [vmem:[#allocation2 + $0x78] sm:$0xff] (!%p9975_p8), %vm504_vm0, %v11495_v0 }
  0x59   : > { %521 = vst.msk [vmem:[#allocation2 + $0x80] sm:$0xff] (!%p9975_p8), %vm504_vm0, %v11495_v0  ;;  %522 = vst.msk [vmem:[#allocation2 + $0x88] sm:$0xff] (!%p9975_p8), %vm504_vm0, %v11495_v0 }
  0x5a   : > { %523 = vst.msk [vmem:[#allocation2 + $0x90] sm:$0xff] (!%p9975_p8), %vm504_vm0, %v11495_v0  ;;  %524 = vst.msk [vmem:[#allocation2 + $0x98] sm:$0xff] (!%p9975_p8), %vm504_vm0, %v11495_v0 }
  0x5b   : > { %525 = vst.msk [vmem:[#allocation2 + $0xa0] sm:$0xff] %vm504_vm0, %v11495_v0  ;;  %526 = vst.msk [vmem:[#allocation2 + $0xa8] sm:$0xff] %vm504_vm0, %v11495_v0 }
  0x5c   : > { %527 = vst.msk [vmem:[#allocation2 + $0xb0] sm:$0xff] %vm504_vm0, %v11495_v0  ;;  %528 = vst.msk [vmem:[#allocation2 + $0xb8] sm:$0xff] %vm504_vm0, %v11495_v0 }
  0x5d   : > { %529 = vst.msk [vmem:[#allocation2 + $0xc0] sm:$0xff] %vm504_vm0, %v11495_v0  ;;  %530 = vst.msk [vmem:[#allocation2 + $0xc8] sm:$0xff] %vm504_vm0, %v11495_v0 }
  0x5e   : > { %531 = vst.msk [vmem:[#allocation2 + $0xd0] sm:$0xff] %vm504_vm0, %v11495_v0  ;;  %532 = vst.msk [vmem:[#allocation2 + $0xd8] sm:$0xff] %vm504_vm0, %v11495_v0 }
  0x5f   : > { %533 = vst.msk [vmem:[#allocation2 + $0xe0] sm:$0xff] %vm504_vm0, %v11495_v0  ;;  %534 = vst.msk [vmem:[#allocation2 + $0xe8] sm:$0xff] %vm504_vm0, %v11495_v0 }
  0x60   : > { %535 = vst.msk [vmem:[#allocation2 + $0xf0] sm:$0xff] %vm504_vm0, %v11495_v0  ;;  %536 = vst.msk [vmem:[#allocation2 + $0xf8] sm:$0xff] %vm504_vm0, %v11495_v0 }
  0x61   : > { %537 = vst.msk [vmem:[#allocation2 + $0x100] sm:$0xff] %vm504_vm0, %v11495_v0  ;;  %538 = vst.msk [vmem:[#allocation2 + $0x108] sm:$0xff] %vm504_vm0, %v11495_v0 }
  0x62   : > { %539 = vst.msk [vmem:[#allocation2 + $0x110] sm:$0xff] %vm504_vm0, %v11495_v0  ;;  %540 = vst.msk [vmem:[#allocation2 + $0x118] sm:$0xff] %vm504_vm0, %v11495_v0 }
  0x63   : > { %541 = vst.msk [vmem:[#allocation2 + $0x120] sm:$0xff] %vm504_vm0, %v11495_v0  ;;  %542 = vst.msk [vmem:[#allocation2 + $0x128] sm:$0xff] %vm504_vm0, %v11495_v0 }
  0x64   : > { %543 = vst.msk [vmem:[#allocation2 + $0x130] sm:$0xff] %vm504_vm0, %v11495_v0  ;;  %544 = vst.msk [vmem:[#allocation2 + $0x138] sm:$0xff] %vm504_vm0, %v11495_v0 }
  0x65   : > { %545 = vst.msk [vmem:[#allocation2 + $0x140] sm:$0xff] %vm504_vm0, %v11495_v0  ;;  %546 = vst.msk [vmem:[#allocation2 + $0x148] sm:$0xff] %vm504_vm0, %v11495_v0 }
  0x66   : > { %547 = vst.msk [vmem:[#allocation2 + $0x150] sm:$0xff] %vm504_vm0, %v11495_v0  ;;  %548 = vst.msk [vmem:[#allocation2 + $0x158] sm:$0xff] %vm504_vm0, %v11495_v0 }
  0x67   : > { %549 = vst.msk [vmem:[#allocation2 + $0x160] sm:$0xff] %vm504_vm0, %v11495_v0  ;;  %550 = vst.msk [vmem:[#allocation2 + $0x168] sm:$0xff] %vm504_vm0, %v11495_v0 }
  0x68   : > { %551 = vst.msk [vmem:[#allocation2 + $0x170] sm:$0xff] %vm504_vm0, %v11495_v0  ;;  %552 = vst.msk [vmem:[#allocation2 + $0x178] sm:$0xff] %vm504_vm0, %v11495_v0 }
  0x69   : > { %553 = vst.msk [vmem:[#allocation2 + $0x180] sm:$0xff] %vm504_vm0, %v11495_v0  ;;  %554 = vst.msk [vmem:[#allocation2 + $0x188] sm:$0xff] %vm504_vm0, %v11495_v0 }
  0x6a   : > { %555 = vst.msk [vmem:[#allocation2 + $0x190] sm:$0xff] %vm504_vm0, %v11495_v0  ;;  %556 = vst.msk [vmem:[#allocation2 + $0x198] sm:$0xff] %vm504_vm0, %v11495_v0 }
  0x6b   : > { %557 = vst.msk [vmem:[#allocation2 + $0x1a0] sm:$0xff] %vm504_vm0, %v11495_v0  ;;  %558 = vst.msk [vmem:[#allocation2 + $0x1a8] sm:$0xff] %vm504_vm0, %v11495_v0 }
  0x6c   : > { %559 = vst.msk [vmem:[#allocation2 + $0x1b0] sm:$0xff] %vm504_vm0, %v11495_v0  ;;  %560 = vst.msk [vmem:[#allocation2 + $0x1b8] sm:$0xff] %vm504_vm0, %v11495_v0 }
  0x6d   : > { %561 = vst.msk [vmem:[#allocation2 + $0x1c0] sm:$0xff] %vm504_vm0, %v11495_v0  ;;  %562 = vst.msk [vmem:[#allocation2 + $0x1c8] sm:$0xff] %vm504_vm0, %v11495_v0 }
  0x6e   : > { %563 = vst.msk [vmem:[#allocation2 + $0x1d0] sm:$0xff] %vm504_vm0, %v11495_v0  ;;  %564 = vst.msk [vmem:[#allocation2 + $0x1d8] sm:$0xff] %vm504_vm0, %v11495_v0 }
  0x6f   : > { %565 = vst.msk [vmem:[#allocation2 + $0x1e0] sm:$0xff] %vm504_vm0, %v11495_v0  ;;  %566 = vst.msk [vmem:[#allocation2 + $0x1e8] sm:$0xff] %vm504_vm0, %v11495_v0 }
  0x70   : > { %567 = vst.msk [vmem:[#allocation2 + $0x1f0] sm:$0xff] %vm504_vm0, %v11495_v0  ;;  %568 = vst.msk [vmem:[#allocation2 + $0x1f8] sm:$0xff] %vm504_vm0, %v11495_v0 }
  0x71   : > { %569 = vst.msk [vmem:[#allocation2 + $0x200] sm:$0xff] %vm504_vm0, %v11495_v0  ;;  %570 = vst.msk [vmem:[#allocation2 + $0x208] sm:$0xff] %vm504_vm0, %v11495_v0 }
  0x72   : > { %571 = vst.msk [vmem:[#allocation2 + $0x210] sm:$0xff] %vm504_vm0, %v11495_v0  ;;  %572 = vst.msk [vmem:[#allocation2 + $0x218] sm:$0xff] %vm504_vm0, %v11495_v0 }
  0x73   : > { %573 = vst.msk [vmem:[#allocation2 + $0x220] sm:$0xff] %vm504_vm0, %v11495_v0  ;;  %574 = vst.msk [vmem:[#allocation2 + $0x228] sm:$0xff] %vm504_vm0, %v11495_v0 }
  0x74   : > { %575 = vst.msk [vmem:[#allocation2 + $0x230] sm:$0xff] %vm504_vm0, %v11495_v0  ;;  %576 = vst.msk [vmem:[#allocation2 + $0x238] sm:$0xff] %vm504_vm0, %v11495_v0 }
  0x75   : > { %577 = vst.msk [vmem:[#allocation2 + $0x240] sm:$0xff] %vm504_vm0, %v11495_v0  ;;  %578 = vst.msk [vmem:[#allocation2 + $0x248] sm:$0xff] %vm504_vm0, %v11495_v0 }
  0x76   : > { %579 = vst.msk [vmem:[#allocation2 + $0x250] sm:$0xff] %vm504_vm0, %v11495_v0  ;;  %580 = vst.msk [vmem:[#allocation2 + $0x258] sm:$0xff] %vm504_vm0, %v11495_v0 }
  0x77   : > { %581 = vst.msk [vmem:[#allocation2 + $0x260] sm:$0xff] %vm504_vm0, %v11495_v0  ;;  %582 = vst.msk [vmem:[#allocation2 + $0x268] sm:$0xff] %vm504_vm0, %v11495_v0 }
  0x78   : > { %583 = vst.msk [vmem:[#allocation2 + $0x270] sm:$0xff] %vm504_vm0, %v11495_v0  ;;  %584 = vst.msk [vmem:[#allocation2 + $0x278] sm:$0xff] %vm504_vm0, %v11495_v0 }
  0x79   : > { %585 = vst.msk [vmem:[#allocation2 + $0x280] sm:$0xff] %vm504_vm0, %v11495_v0  ;;  %586 = vst.msk [vmem:[#allocation2 + $0x288] sm:$0xff] %vm504_vm0, %v11495_v0 }
  0x7a   : > { %587 = vst.msk [vmem:[#allocation2 + $0x290] sm:$0xff] %vm504_vm0, %v11495_v0  ;;  %588 = vst.msk [vmem:[#allocation2 + $0x298] sm:$0xff] %vm504_vm0, %v11495_v0 }
  0x7b   : > { %589 = vst.msk [vmem:[#allocation2 + $0x2a0] sm:$0xff] %vm504_vm0, %v11495_v0  ;;  %590 = vst.msk [vmem:[#allocation2 + $0x2a8] sm:$0xff] %vm504_vm0, %v11495_v0 }
  0x7c   : > { %591 = vst.msk [vmem:[#allocation2 + $0x2b0] sm:$0xff] %vm504_vm0, %v11495_v0  ;;  %592 = vst.msk [vmem:[#allocation2 + $0x2b8] sm:$0xff] %vm504_vm0, %v11495_v0 }
  0x7d   : > { %593 = vst.msk [vmem:[#allocation2 + $0x2c0] sm:$0xff] %vm504_vm0, %v11495_v0  ;;  %594 = vst.msk [vmem:[#allocation2 + $0x2c8] sm:$0xff] %vm504_vm0, %v11495_v0 }
  0x7e   : > { %595 = vst.msk [vmem:[#allocation2 + $0x2d0] sm:$0xff] %vm504_vm0, %v11495_v0  ;;  %596 = vst.msk [vmem:[#allocation2 + $0x2d8] sm:$0xff] %vm504_vm0, %v11495_v0 }
  0x7f   : > { %597 = vst.msk [vmem:[#allocation2 + $0x2e0] sm:$0xff] %vm504_vm0, %v11495_v0  ;;  %598 = vst.msk [vmem:[#allocation2 + $0x2e8] sm:$0xff] %vm504_vm0, %v11495_v0 }
  0x80   : > { %599 = vst.msk [vmem:[#allocation2 + $0x2f0] sm:$0xff] %vm504_vm0, %v11495_v0  ;;  %600 = vst.msk [vmem:[#allocation2 + $0x2f8] sm:$0xff] %vm504_vm0, %v11495_v0 }
  0x81   : > { %601 = vst.msk [vmem:[#allocation2 + $0x300] sm:$0xff] %vm504_vm0, %v11495_v0  ;;  %602 = vst.msk [vmem:[#allocation2 + $0x308] sm:$0xff] %vm504_vm0, %v11495_v0 }
  0x82   : > { %603 = vst.msk [vmem:[#allocation2 + $0x310] sm:$0xff] %vm504_vm0, %v11495_v0  ;;  %604 = vst.msk [vmem:[#allocation2 + $0x318] sm:$0xff] %vm504_vm0, %v11495_v0 }
  0x83   : > { %605 = vst.msk [vmem:[#allocation2 + $0x320] sm:$0xff] %vm504_vm0, %v11495_v0  ;;  %606 = vst.msk [vmem:[#allocation2 + $0x328] sm:$0xff] %vm504_vm0, %v11495_v0 }
  0x84   : > { %607 = vst.msk [vmem:[#allocation2 + $0x330] sm:$0xff] %vm504_vm0, %v11495_v0  ;;  %608 = vst.msk [vmem:[#allocation2 + $0x338] sm:$0xff] %vm504_vm0, %v11495_v0 }
  0x85   : > { %609 = vst.msk [vmem:[#allocation2 + $0x340] sm:$0xff] %vm504_vm0, %v11495_v0  ;;  %610 = vst.msk [vmem:[#allocation2 + $0x348] sm:$0xff] %vm504_vm0, %v11495_v0 }
  0x86   : > { %611 = vst.msk [vmem:[#allocation2 + $0x350] sm:$0xff] %vm504_vm0, %v11495_v0  ;;  %612 = vst.msk [vmem:[#allocation2 + $0x358] sm:$0xff] %vm504_vm0, %v11495_v0 }
  0x87   : > { %613 = vst.msk [vmem:[#allocation2 + $0x360] sm:$0xff] %vm504_vm0, %v11495_v0  ;;  %614 = vst.msk [vmem:[#allocation2 + $0x368] sm:$0xff] %vm504_vm0, %v11495_v0 }
  0x88   : > { %615 = vst.msk [vmem:[#allocation2 + $0x370] sm:$0xff] %vm504_vm0, %v11495_v0  ;;  %616 = vst.msk [vmem:[#allocation2 + $0x378] sm:$0xff] %vm504_vm0, %v11495_v0 }
  0x89   : > { %617 = vst.msk [vmem:[#allocation2 + $0x380] sm:$0xff] %vm504_vm0, %v11495_v0  ;;  %618 = vst.msk [vmem:[#allocation2 + $0x388] sm:$0xff] %vm504_vm0, %v11495_v0 }
  0x8a   : > { %619 = vst.msk [vmem:[#allocation2 + $0x390] sm:$0xff] %vm504_vm0, %v11495_v0  ;;  %620 = vst.msk [vmem:[#allocation2 + $0x398] sm:$0xff] %vm504_vm0, %v11495_v0 }
  0x8b   : > { %621 = vst.msk [vmem:[#allocation2 + $0x3a0] sm:$0xff] %vm504_vm0, %v11495_v0  ;;  %622 = vst.msk [vmem:[#allocation2 + $0x3a8] sm:$0xff] %vm504_vm0, %v11495_v0 }
  0x8c   : > { %623 = vst.msk [vmem:[#allocation2 + $0x3b0] sm:$0xff] %vm504_vm0, %v11495_v0  ;;  %624 = vst.msk [vmem:[#allocation2 + $0x3b8] sm:$0xff] %vm504_vm0, %v11495_v0 }
  0x8d   : > { %625 = vst.msk [vmem:[#allocation2 + $0x3c0] sm:$0xff] %vm504_vm0, %v11495_v0  ;;  %626 = vst.msk [vmem:[#allocation2 + $0x3c8] sm:$0xff] %vm504_vm0, %v11495_v0 }
  0x8e   : > { %627 = vst.msk [vmem:[#allocation2 + $0x3d0] sm:$0xff] %vm504_vm0, %v11495_v0  ;;  %628 = vst.msk [vmem:[#allocation2 + $0x3d8] sm:$0xff] %vm504_vm0, %v11495_v0 }
  0x8f   : > { %629 = vst.msk [vmem:[#allocation2 + $0x3e0] sm:$0xff] %vm504_vm0, %v11495_v0  ;;  %630 = vst.msk [vmem:[#allocation2 + $0x3e8] sm:$0xff] %vm504_vm0, %v11495_v0 }
  0x90   : > { %631 = vst.msk [vmem:[#allocation2 + $0x3f0] sm:$0xff] %vm504_vm0, %v11495_v0  ;;  %632 = vst.msk [vmem:[#allocation2 + $0x3f8] sm:$0xff] %vm504_vm0, %v11495_v0 }
  0x91 PF: > { %v635_v1 = vld [vmem:[%s15761_s1] sm:$0xff]  ;;  %v11496_v2 = vmov 2   ;;  %v11497_v3 = vmov 1   ;;  %v637_v4 = vld [vmem:[%s15761_s1 + $0x10] sm:$0xff]  ;;  %v636_v5 = vld [vmem:[%s15761_s1 + $0x8] sm:$0xff]  ;;  %v15782_v6 = vmov 0   ;;  %v685_v54 = vlaneseq }
  0x92   : > { %11179 = vset.pattern.permute.xlu0 %v11496_v2  ;;  %11178 = vset.pattern.permute.xlu1 %v11497_v3  ;;  %v640_v7 = vld [vmem:[%s15761_s1 + $0x28] sm:$0xff]  ;;  %v639_v8 = vld [vmem:[%s15761_s1 + $0x20] sm:$0xff]  ;;  %v642_v9 = vld [vmem:[%s15761_s1 + $0x38] sm:$0xff]  ;;  %vm1297_vm1 = vcmask 523264   ;;  %vm5678_vm2 = vcmask 7168   ;;  %p10064_p10 = scmp.ne.s32.totalorder %s11471_s25, 1 }
  0x93   : > { %886 = vperm.xlu0 %11179, %v635_v1   ;;  %754 = vperm.xlu1 %11178, %v635_v1   ;;  %v638_v10 = vld [vmem:[%s15761_s1 + $0x18] sm:$0xff]  ;;  %v1017_v11 = vld [vmem:[%s15762_s2] sm:$0xff]  ;;  %v1018_v12 = vld [vmem:[%s15762_s2 + $0x8] sm:$0xff]  ;;  %v686_v59 = vshrl.u32 %v685_v54, 7 }
  0x94   : > { %1354 = vmatprep.mubr.bf16.mxu0 %v15782_v6  ;;  %1467 = vmatprep.mubr.bf16.mxu1 %v15782_v6  ;;  %v641_v13 = vld [vmem:[%s15761_s1 + $0x30] sm:$0xff]  ;;  %v1021_v14 = vld [vmem:[%s15762_s2 + $0x20] sm:$0xff]  ;;  %v1024_v15 = vld [vmem:[%s15762_s2 + $0x38] sm:$0xff] }
  0x95   : > { %v1162_v16 = vld [vmem:[%s15764_s4 + $0x8] sm:$0xff]  ;;  %v1164_v17 = vld [vmem:[%s15764_s4 + $0x18] sm:$0xff]  ;;  %v1019_v18 = vld [vmem:[%s15762_s2 + $0x10] sm:$0xff]  ;;  %v787_v0 = vsub.s32 1, %v686_v59 }
  0x96   : > { %v1166_v19 = vld [vmem:[%s15764_s4 + $0x28] sm:$0xff]  ;;  %v1020_v20 = vld [vmem:[%s15762_s2 + $0x18] sm:$0xff]  ;;  %v1023_v29 = vld [vmem:[%s15762_s2 + $0x30] sm:$0xff] }
  0x97   : > { %894 = vperm.xlu0 %11179, %v637_v4   ;;  %758 = vperm.xlu1 %11178, %v636_v5   ;;  %v1168_v21 = vld [vmem:[%s15764_s4 + $0x38] sm:$0xff]  ;;  %v1170_v22 = vld [vmem:[%s15764_s4 + $0x48] sm:$0xff]  ;;  %v1161_v31 = vld [vmem:[%s15764_s4] sm:$0xff] }
  0x98   : > { %v1172_v23 = vld [vmem:[%s15764_s4 + $0x58] sm:$0xff]  ;;  %v1174_v24 = vld [vmem:[%s15764_s4 + $0x68] sm:$0xff]  ;;  %v1163_v33 = vld [vmem:[%s15764_s4 + $0x10] sm:$0xff] }
  0x99   : > { %v1176_v25 = vld [vmem:[%s15764_s4 + $0x78] sm:$0xff]  ;;  %v1773_v26 = vld [vmem:[%s15766_s6 + $0x8] sm:$0xff]  ;;  %v1165_v35 = vld [vmem:[%s15764_s4 + $0x20] sm:$0xff] }
  0x9a   : > { %v1022_v27 = vld [vmem:[%s15762_s2 + $0x28] sm:$0xff]  ;;  %v1775_v28 = vld [vmem:[%s15766_s6 + $0x18] sm:$0xff]  ;;  %v1167_v37 = vld [vmem:[%s15764_s4 + $0x30] sm:$0xff] }
  0x9b   : > { %906 = vperm.xlu0 %11179, %v640_v7   ;;  %11180 = vset.pattern.permute.xlu1 %v11496_v2  ;;  %v1777_v30 = vld [vmem:[%s15766_s6 + $0x28] sm:$0xff]  ;;  %v1779_v32 = vld [vmem:[%s15766_s6 + $0x38] sm:$0xff]  ;;  %v1169_v39 = vld [vmem:[%s15764_s4 + $0x40] sm:$0xff] }
  0x9c   : > { %890 = vperm.xlu1 %11180, %v636_v5   ;;  %v1781_v34 = vld [vmem:[%s15766_s6 + $0x48] sm:$0xff]  ;;  %v1783_v36 = vld [vmem:[%s15766_s6 + $0x58] sm:$0xff]  ;;  %v1171_v41 = vld [vmem:[%s15764_s4 + $0x50] sm:$0xff] }
  0x9d   : > { %v1785_v38 = vld [vmem:[%s15766_s6 + $0x68] sm:$0xff]  ;;  %v1787_v40 = vld [vmem:[%s15766_s6 + $0x78] sm:$0xff]  ;;  %v1173_v43 = vld [vmem:[%s15764_s4 + $0x60] sm:$0xff] }
  0x9e   : > { %v1789_v42 = vld [vmem:[%s15766_s6 + $0x88] sm:$0xff]  ;;  %v1791_v44 = vld [vmem:[%s15766_s6 + $0x98] sm:$0xff]  ;;  %v1175_v45 = vld [vmem:[%s15764_s4 + $0x70] sm:$0xff] }
  0x9f   : > { %11187 = vset.pattern.permute.xlu0 %v11497_v3  ;;  %v1793_v46 = vld [vmem:[%s15766_s6 + $0xa8] sm:$0xff]  ;;  %v1772_v47 = vld [vmem:[%s15766_s6] sm:$0xff]  ;;  %v1795_v48 = vld [vmem:[%s15766_s6 + $0xb8] sm:$0xff] }
  0xa0   : > { %770 = vperm.xlu0 %11187, %v639_v8   ;;  %11181 = vset.pattern.permute.xlu1 %v15782_v6  ;;  %v1774_v49 = vld [vmem:[%s15766_s6 + $0x10] sm:$0xff]  ;;  %v1797_v52 = vld [vmem:[%s15766_s6 + $0xc8] sm:$0xff]  ;;  %v1776_v53 = vld [vmem:[%s15766_s6 + $0x20] sm:$0xff] }
  0xa1   : > { %655 = vperm.xlu1 %11181, %v637_v4   ;;  %v1799_v57 = vld [vmem:[%s15766_s6 + $0xd8] sm:$0xff]  ;;  %v1778_v58 = vld [vmem:[%s15766_s6 + $0x30] sm:$0xff]  ;;  %v1801_v61 = vld [vmem:[%s15766_s6 + $0xe8] sm:$0xff] }
  0xa2   : > { %v1780_v63 = vld [vmem:[%s15766_s6 + $0x40] sm:$0xff] }
  0xa4   : > { %782 = vperm.xlu0 %11187, %v642_v9  }
  0xa5   : > { %11182 = vset.pattern.permute.xlu1 %v11497_v3 }
  0xa6   : > { %762 = vperm.xlu1 %11182, %v637_v4   ;;  %v919_v4 = vsub.s32 2, %v686_v59 }
  0xa8   : > { %11190 = vset.pattern.permute.xlu0 %v15782_v6 }
  0xa9   : > { %645 = vperm.xlu0 %11190, %v635_v1   ;;  %v791_v1 = vsub.s32 5, %v686_v59 }
  0xaa   : > { %766 = vperm.xlu1 %11182, %v638_v10  }
  0xad   : > { %650 = vperm.xlu0 %11190, %v636_v5   ;;  %v1803_v5 = vld [vmem:[%s15766_s6 + $0xf8] sm:$0xff] }
  0xae   : > { %11183 = vset.pattern.permute.xlu1 %v11496_v2 }
  0xaf   : > { %898 = vperm.xlu1 %11183, %v638_v10  }
  0xb1   : > { %660 = vperm.xlu0 %11190, %v638_v10   ;;  %v1782_v10 = vld [vmem:[%s15766_s6 + $0x50] sm:$0xff] }
  0xb3   : > { %11184 = vset.pattern.permute.xlu1 %v15782_v6 }
  0xb4   : > { %1027 = vperm.xlu1 %11184, %v1017_v11   ;;  %v687_v11 = vsub.s32 0, %v686_v59 }
  0xb5   : > { %1032 = vperm.xlu0 %11190, %v1018_v12  }
  0xb8   : > { %665 = vperm.xlu1 %11184, %v639_v8  }
  0xb9   : > { %675 = vperm.xlu0 %11190, %v641_v13  }
  0xbc   : > { %670 = vperm.xlu1 %11184, %v640_v7  }
  0xbd   : > { %1047 = vperm.xlu0 %11190, %v1021_v14  }
  0xc0   : > { %11185 = vset.pattern.permute.xlu1 %v11497_v3 }
  0xc1   : > { %1062 = vperm.xlu0 %11190, %v1024_v15   ;;  %774 = vperm.xlu1 %11185, %v640_v7   ;;  %v923_v7 = vsub.s32 6, %v686_v59 }
  0xc5   : > { %1184 = vperm.xlu0 %11190, %v1162_v16   ;;  %11186 = vset.pattern.permute.xlu1 %v11496_v2 }
  0xc6   : > { %902 = vperm.xlu1 %11186, %v639_v8  }
  0xc9   : > { %1194 = vperm.xlu0 %11190, %v1164_v17   ;;  %v1805_v17 = vld [vmem:[%s15766_s6 + $0x108] sm:$0xff] }
  0xca   : > { %11188 = vset.pattern.permute.xlu1 %v15782_v6 }
  0xcb   : > { %1037 = vperm.xlu1 %11188, %v1019_v18  }
  0xcd   : > { %1204 = vperm.xlu0 %11190, %v1166_v19  }
  0xcf   : > { %1042 = vperm.xlu1 %11188, %v1020_v20  }
  0xd1   : > { %1214 = vperm.xlu0 %11190, %v1168_v21  }
  0xd3   : > { %680 = vperm.xlu1 %11188, %v642_v9  }
  0xd5   : > { %1224 = vperm.xlu0 %11190, %v1170_v22  }
  0xd7   : > { %11189 = vset.pattern.permute.xlu1 %v11497_v3  ;;  %v634_v3 = vld [vmem:[%s11684_s18 + $0x8] sm:$0x77] }
  0xd8   : > { %778 = vperm.xlu1 %11189, %v641_v13   ;;  %v796_v14 = vrot.slane %v634_v3, %v787_v0  ;;  %v928_v19 = vrot.slane %v634_v3, %v919_v4  ;;  %v800_v20 = vrot.slane %v634_v3, %v791_v1 }
  0xd9   : > { %1234 = vperm.xlu0 %11190, %v1172_v23   ;;  %v1784_v23 = vld [vmem:[%s15766_s6 + $0x60] sm:$0xff] }
  0xdc   : > { %11191 = vset.pattern.permute.xlu1 %v11496_v2  ;;  %v633_v2 = vld [vmem:[%s11684_s18] sm:$0x77] }
  0xdd   : > { %1244 = vperm.xlu0 %11190, %v1174_v24   ;;  %910 = vperm.xlu1 %11191, %v641_v13   ;;  %v788_v13 = vrot.slane %v633_v2, %v787_v0  ;;  %v792_v15 = vrot.slane %v633_v2, %v791_v1  ;;  %v920_v16 = vrot.slane %v633_v2, %v919_v4 }
  0xde   : > { %v924_v18 = vrot.slane %v633_v2, %v923_v7  ;;  %v932_v24 = vrot.slane %v634_v3, %v923_v7 }
  0xe1   : > { %1254 = vperm.xlu0 %11190, %v1176_v25   ;;  %914 = vperm.xlu1 %11191, %v642_v9   ;;  %v691_v9 = vsub.s32 4, %v686_v59  ;;  %v688_v25 = vrot.slane %v633_v2, %v687_v11 }
  0xe3   : > { %v692_v21 = vrot.slane %v633_v2, %v691_v9 }
  0xe5   : > { %1907 = vperm.xlu0 %11190, %v1773_v26   ;;  %11192 = vset.pattern.permute.xlu1 %v15782_v6  ;;  %v696_v26 = vrot.slane %v634_v3, %v687_v11 }
  0xe6   : > { %1052 = vperm.xlu1 %11192, %v1022_v27   ;;  %v700_v27 = vrot.slane %v634_v3, %v691_v9 }
  0xe9   : > { %1917 = vperm.xlu0 %11190, %v1775_v28   ;;  %v12148_v28 = vrot.slane %v788_v13, %v787_v0 }
  0xea   : > { %1057 = vperm.xlu1 %11192, %v1023_v29   ;;  %v12150_v29 = vrot.slane %v796_v14, %v787_v0 }
  0xed   : > { %1927 = vperm.xlu0 %11190, %v1777_v30   ;;  %v12152_v30 = vrot.slane %v792_v15, %v787_v0 }
  0xee   : > { %1179 = vperm.xlu1 %11192, %v1161_v31  }
  0xf1   : > { %1937 = vperm.xlu0 %11190, %v1779_v32   ;;  %v12156_v32 = vrot.slane %v920_v16, %v919_v4  ;;  %v1790_v16 = vld [vmem:[%s15766_s6 + $0x90] sm:$0xff] }
  0xf2   : > { %1189 = vperm.xlu1 %11192, %v1163_v33   ;;  %v1807_v33 = vld [vmem:[%s15766_s6 + $0x118] sm:$0xff] }
  0xf5   : > { %1947 = vperm.xlu0 %11190, %v1781_v34   ;;  %v12161_v34 = vrot.slane %v924_v18, %v919_v4 }
  0xf6   : > { %1199 = vperm.xlu1 %11192, %v1165_v35   ;;  %v12163_v35 = vrot.slane %v928_v19, %v919_v4 }
  0xf9   : > { %1957 = vperm.xlu0 %11190, %v1783_v36   ;;  %v12165_v36 = vrot.slane %v800_v20, %v787_v0 }
  0xfa   : > { %1209 = vperm.xlu1 %11192, %v1167_v37   ;;  %v12167_v37 = vrot.slane %v692_v21, %v687_v11 }
  0xfd   : > { %1967 = vperm.xlu0 %11190, %v1785_v38   ;;  %v1786_v38 = vld [vmem:[%s15766_s6 + $0x70] sm:$0xff] }
  0xfe   : > { %1219 = vperm.xlu1 %11192, %v1169_v39   ;;  %v12172_v39 = vrot.slane %v932_v24, %v919_v4 }
 0x101   : > { %1977 = vperm.xlu0 %11190, %v1787_v40   ;;  %v12174_v40 = vrot.slane %v688_v25, %v687_v11 }
 0x102   : > { %1229 = vperm.xlu1 %11192, %v1171_v41   ;;  %v12176_v41 = vrot.slane %v696_v26, %v687_v11 }
 0x105   : > { %1987 = vperm.xlu0 %11190, %v1789_v42   ;;  %v12178_v42 = vrot.slane %v700_v27, %v687_v11  ;;  %v1811_v11 = vld [vmem:[%s15766_s6 + $0x138] sm:$0xff]  ;;  %v1813_v27 = vld [vmem:[%s15766_s6 + $0x148] sm:$0xff] }
 0x106   : > { %1239 = vperm.xlu1 %11192, %v1173_v43  }
 0x109   : > { %1997 = vperm.xlu0 %11190, %v1791_v44  }
 0x10a   : > { %1249 = vperm.xlu1 %11192, %v1175_v45  }
 0x10d   : > { %2007 = vperm.xlu0 %11190, %v1793_v46  }
 0x10e   : > { %1902 = vperm.xlu1 %11192, %v1772_v47  }
 0x111   : > { %2017 = vperm.xlu0 %11190, %v1795_v48  }
 0x112   : > { %1912 = vperm.xlu1 %11192, %v1774_v49   ;;  %v12098_v50 = vpop.permute.xlu1 %754  ;;  %v12100_v51 = vpop.permute.xlu0 %886 }
 0x113   : > { %v821_v44 = vmul.f32 %v12148_v28, %v12098_v50  ;;  %v823_v45 = vmul.f32 %v12150_v29, %v12098_v50  ;;  %v822_v48 = vmul.f32 %v12152_v30, %v12098_v50  ;;  %v954_v54 = vmul.f32 %v12161_v34, %v12100_v51 }
 0x114   : > { %v824_v59 = vmul.f32 %v12165_v36, %v12098_v50  ;;  %v955_v0 = vmul.f32 %v12163_v35, %v12100_v51 }
 0x115   : > { %2027 = vperm.xlu0 %11190, %v1797_v52  }
 0x116   : > { %1922 = vperm.xlu1 %11192, %v1776_v53   ;;  %v12108_v55 = vpop.permute.xlu1 %758  ;;  %v12110_v56 = vpop.permute.xlu0 %894  ;;  %v1809_v53 = vld [vmem:[%s15766_s6 + $0x128] sm:$0xff] }
 0x117   : > { %v825_v1 = vmul.f32 %v12148_v28, %v12108_v55  ;;  %v827_v2 = vmul.f32 %v12150_v29, %v12108_v55  ;;  %v826_v4 = vmul.f32 %v12152_v30, %v12108_v55  ;;  %v828_v50 = vmul.f32 %v12165_v36, %v12108_v55 }
 0x119   : > { %2037 = vperm.xlu0 %11190, %v1799_v57  }
 0x11a   : > { %1932 = vperm.xlu1 %11192, %v1778_v58   ;;  %v12118_v60 = vpop.permute.xlu0 %906  ;;  %v1788_v58 = vld [vmem:[%s15766_s6 + $0x80] sm:$0xff] }
 0x11b   : > { %v12123_v62 = vpop.permute.xlu1 %890 }
 0x11c   : > { %v960_v24 = vmul.f32 %v12172_v39, %v12123_v62  ;;  %v957_v25 = vmul.f32 %v12156_v32, %v12123_v62  ;;  %v959_v26 = vmul.f32 %v12163_v35, %v12123_v62 }
 0x11d   : > { %2047 = vperm.xlu0 %11190, %v1801_v61   ;;  %v956_v61 = vmul.f32 %v12172_v39, %v12100_v51 }
 0x11e   : > { %1942 = vperm.xlu1 %11192, %v1780_v63   ;;  %v953_v63 = vmul.f32 %v12156_v32, %v12100_v51 }
 0x11f   : > { %v12133_v8 = vpop.permute.xlu0 %770 }
 0x120   : > { %v12138_v12 = vpop.permute.xlu1 %655 }
 0x121   : > { %2057 = vperm.xlu0 %11190, %v1803_v5  }
 0x122   : > { %1952 = vperm.xlu1 %11192, %v1782_v10  }
 0x123   : > { %v12143_v22 = vpop.permute.xlu0 %782 }
 0x125   : > { %2067 = vperm.xlu0 %11190, %v1805_v17   ;;  %v12154_v31 = vpop.permute.xlu1 %762 }
 0x126   : > { %1962 = vperm.xlu1 %11192, %v1784_v23   ;;  %v958_v23 = vmul.f32 %v12161_v34, %v12123_v62 }
 0x128   : > { %v646_v43 = vpop.permute.xlu0 %645 }
 0x129   : > { %2077 = vperm.xlu0 %11190, %v1807_v33   ;;  %v12184_v46 = vpop.permute.xlu1 %766  ;;  %v722_v47 = vmul.f32 %v12167_v37, %v646_v43  ;;  %v721_v49 = vmul.f32 %v12174_v40, %v646_v43  ;;  %v723_v52 = vmul.f32 %v12176_v41, %v646_v43  ;;  %v724_v57 = vmul.f32 %v12178_v42, %v646_v43 }
 0x12a   : > { %1972 = vperm.xlu1 %11192, %v1786_v38  }
 0x12b   : > { %v854_v9 = vadd.f32 %v822_v48, %v722_v47  ;;  %v856_v14 = vadd.f32 %v824_v59, %v724_v57  ;;  %v853_v15 = vadd.f32 %v821_v44, %v721_v49  ;;  %v855_v55 = vadd.f32 %v823_v45, %v723_v52  ;;  %v1792_v47 = vld [vmem:[%s15766_s6 + $0xa0] sm:$0xff] }
 0x12c   : > { %v651_v3 = vpop.permute.xlu0 %650 }
 0x12d   : > { %v725_v5 = vmul.f32 %v12174_v40, %v651_v3  ;;  %v727_v7 = vmul.f32 %v12176_v41, %v651_v3  ;;  %2087 = vperm.xlu0 %11190, %v1809_v53   ;;  %v726_v51 = vmul.f32 %v12167_v37, %v651_v3  ;;  %v728_v13 = vmul.f32 %v12178_v42, %v651_v3 }
 0x12e   : > { %1982 = vperm.xlu1 %11192, %v1788_v58   ;;  %v12219_v10 = vpop.permute.xlu1 %898  ;;  %v986_v33 = vadd.f32 %v954_v54, %v854_v9  ;;  %v988_v38 = vadd.f32 %v956_v61, %v856_v14  ;;  %v985_v43 = vadd.f32 %v953_v63, %v853_v15  ;;  %v987_v44 = vadd.f32 %v955_v0, %v855_v55  ;;  %v1815_v0 = vld [vmem:[%s15766_s6 + $0x158] sm:$0xff] }
 0x12f   : > { %v858_v18 = vadd.f32 %v826_v4, %v726_v51  ;;  %v860_v19 = vadd.f32 %v828_v50, %v728_v13  ;;  %v857_v20 = vadd.f32 %v825_v1, %v725_v5  ;;  %v859_v21 = vadd.f32 %v827_v2, %v727_v7  ;;  %v1794_v51 = vld [vmem:[%s15766_s6 + $0xb0] sm:$0xff] }
 0x130   : > { %v12228_v17 = vpop.permute.xlu0 %660 }
 0x131   : > { %2097 = vperm.xlu0 %11190, %v1811_v11   ;;  %v990_v48 = vadd.f32 %v958_v23, %v858_v18  ;;  %v992_v49 = vadd.f32 %v960_v24, %v860_v19  ;;  %v989_v52 = vadd.f32 %v957_v25, %v857_v20  ;;  %v991_v53 = vadd.f32 %v959_v26, %v859_v21  ;;  %v1817_v20 = vld [vmem:[%s15766_s6 + $0x168] sm:$0xff]  ;;  %v1796_v21 = vld [vmem:[%s15766_s6 + $0xc0] sm:$0xff]  ;;  %v1819_v23 = vld [vmem:[%s15766_s6 + $0x178] sm:$0xff] }
 0x132   : > { %1992 = vperm.xlu1 %11192, %v1790_v16   ;;  %v1798_v25 = vld [vmem:[%s15766_s6 + $0xd0] sm:$0xff]  ;;  %v961_v26 = vmul.f32 %v12156_v32, %v12110_v56 }
 0x133   : > { %v1028_v45 = vpop.permute.xlu1 %1027 }
 0x134   : > { %v1033_v57 = vpop.permute.xlu0 %1032  ;;  %v1066_v62 = vadd.f32 %v1028_v45, %v986_v33  ;;  %v1068_v58 = vadd.f32 %v1028_v45, %v988_v38  ;;  %v1065_v59 = vadd.f32 %v1028_v45, %v985_v43  ;;  %v1067_v1 = vadd.f32 %v1028_v45, %v987_v44 }
 0x135   : > { %2107 = vperm.xlu0 %11190, %v1813_v27   ;;  %v1070_v2 = vadd.f32 %v1033_v57, %v990_v48  ;;  %v1072_v54 = vadd.f32 %v1033_v57, %v992_v49  ;;  %v1069_v61 = vadd.f32 %v1033_v57, %v989_v52  ;;  %v1071_v63 = vadd.f32 %v1033_v57, %v991_v53  ;;  %v1821_v52 = vld [vmem:[%s15766_s6 + $0x188] sm:$0xff] }
 0x136   : > { %2002 = vperm.xlu1 %11192, %v1792_v47   ;;  %v1098_v3 = vmax.f32 %v1066_v62, 0.0  ;;  %v1100_v4 = vmax.f32 %v1068_v58, 0.0  ;;  %v1097_v50 = vmax.f32 %v1065_v59, 0.0  ;;  %v1099_v5 = vmax.f32 %v1067_v1, 0.0  ;;  %v1800_v58 = vld [vmem:[%s15766_s6 + $0xe0] sm:$0xff] }
 0x137   : > { %v12247_v7 = vpop.permute.xlu1 %665  ;;  %v1102_v9 = vmax.f32 %v1070_v2, 0.0  ;;  %v1104_v11 = vmax.f32 %v1072_v54, 0.0  ;;  %v1101_v13 = vmax.f32 %v1069_v61, 0.0  ;;  %v1103_v14 = vmax.f32 %v1071_v63, 0.0 }
 0x138   : > { %v962_v27 = vmul.f32 %v12161_v34, %v12110_v56  ;;  %v963_v33 = vmul.f32 %v12163_v35, %v12110_v56  ;;  %v964_v38 = vmul.f32 %v12172_v39, %v12110_v56  ;;  %v12278_v43 = vmul.f32 %v12156_v32, %v12118_v60 }
 0x139   : > { %2117 = vperm.xlu0 %11190, %v1815_v0   ;;  %v1146_v15 = vpack.c.bf16 %v1102_v9, %v1098_v3  ;;  %v1148_v55 = vpack.c.bf16 %v1104_v11, %v1100_v4  ;;  %v1145_v16 = vpack.c.bf16 %v1101_v13, %v1097_v50  ;;  %v1147_v18 = vpack.c.bf16 %v1103_v14, %v1099_v5 }
 0x13a   : > { %2012 = vperm.xlu1 %11192, %v1794_v51   ;;  %v12282_v44 = vmul.f32 %v12161_v34, %v12118_v60  ;;  %v12286_v45 = vmul.f32 %v12163_v35, %v12118_v60  ;;  %v12290_v47 = vmul.f32 %v12172_v39, %v12118_v60  ;;  %v12294_v56 = vmul.f32 %v12148_v28, %v12133_v8  ;;  %v1823_v51 = vld [vmem:[%s15766_s6 + $0x198] sm:$0xff] }
 0x13b   : > { %v12252_v19 = vpop.permute.xlu1 %670  ;;  %1322 = vmatprep.subr.bf16.mxu0 %v1146_v15  ;;  %1435 = vmatprep.subr.bf16.mxu1 %v1148_v55  ;;  %v12298_v48 = vmul.f32 %v12152_v30, %v12133_v8  ;;  %v12302_v49 = vmul.f32 %v12150_v29, %v12133_v8  ;;  %v829_v60 = vmul.f32 %v12148_v28, %v12154_v31 }
 0x13c   : > { %1323 = vmatpush1.bf16.msra.mxu0 %v1145_v16  ;;  %1436 = vmatpush1.bf16.msra.mxu1 %v1147_v18  ;;  %v830_v53 = vmul.f32 %v12152_v30, %v12154_v31  ;;  %v831_v57 = vmul.f32 %v12150_v29, %v12154_v31  ;;  %v832_v62 = vmul.f32 %v12165_v36, %v12154_v31 }
 0x13d   : > { %2127 = vperm.xlu0 %11190, %v1817_v20   ;;  %v733_v59 = vmul.f32 %v12174_v40, %v12228_v17  ;;  %v734_v1 = vmul.f32 %v12167_v37, %v12228_v17  ;;  %v735_v2 = vmul.f32 %v12176_v41, %v12228_v17  ;;  %v736_v54 = vmul.f32 %v12178_v42, %v12228_v17 }
 0x13e   : > { %2022 = vperm.xlu1 %11192, %v1796_v21   ;;  %v729_v31 = vmul.f32 %v12174_v40, %v12138_v12  ;;  %v730_v63 = vmul.f32 %v12167_v37, %v12138_v12  ;;  %v731_v0 = vmul.f32 %v12176_v41, %v12138_v12  ;;  %v732_v3 = vmul.f32 %v12178_v42, %v12138_v12  ;;  %v1802_v12 = vld [vmem:[%s15766_s6 + $0xf0] sm:$0xff] }
 0x13f   : > { %v833_v4 = vmul.f32 %v12148_v28, %v12184_v46  ;;  %v834_v17 = vmul.f32 %v12152_v30, %v12184_v46  ;;  %v835_v50 = vmul.f32 %v12150_v29, %v12184_v46  ;;  %v836_v5 = vmul.f32 %v12165_v36, %v12184_v46 }
 0x140   : > { %v12263_v24 = vpop.permute.xlu1 %774  ;;  %v862_v9 = vadd.f32 %v830_v53, %v730_v63  ;;  %v864_v11 = vadd.f32 %v832_v62, %v732_v3  ;;  %v861_v13 = vadd.f32 %v829_v60, %v729_v31  ;;  %v863_v14 = vadd.f32 %v831_v57, %v731_v0  ;;  %v1825_v57 = vld [vmem:[%s15766_s6 + $0x1a8] sm:$0xff]  ;;  %v12377_v62 = vpop.permute.xlu0 %675 }
 0x141   : > { %2137 = vperm.xlu0 %11190, %v1819_v23   ;;  %v866_v15 = vadd.f32 %v834_v17, %v734_v1  ;;  %v868_v55 = vadd.f32 %v836_v5, %v736_v54  ;;  %v865_v16 = vadd.f32 %v833_v4, %v733_v59  ;;  %v867_v18 = vadd.f32 %v835_v50, %v735_v2 }
 0x142   : > { %2032 = vperm.xlu1 %11192, %v1798_v25   ;;  %v12352_v46 = vmul.f32 %v12165_v36, %v12133_v8  ;;  %v12356_v20 = vmul.f32 %v12148_v28, %v12143_v22  ;;  %v12360_v21 = vmul.f32 %v12152_v30, %v12143_v22  ;;  %v12364_v23 = vmul.f32 %v12150_v29, %v12143_v22 }
 0x143   : > { %v966_v8 = vmul.f32 %v12161_v34, %v12219_v10  ;;  %v967_v60 = vmul.f32 %v12163_v35, %v12219_v10  ;;  %v968_v53 = vmul.f32 %v12172_v39, %v12219_v10  ;;  %v994_v59 = vadd.f32 %v962_v27, %v862_v9 }
 0x144   : > { %v996_v1 = vadd.f32 %v964_v38, %v864_v11  ;;  %v993_v2 = vadd.f32 %v961_v26, %v861_v13  ;;  %v995_v54 = vadd.f32 %v963_v33, %v863_v14  ;;  %v12387_v33 = vmul.f32 %v12165_v36, %v12143_v22  ;;  %v1806_v14 = vld [vmem:[%s15766_s6 + $0x110] sm:$0xff] }
 0x145   : > { %v12326_v61 = vpop.permute.xlu1 %902  ;;  %2147 = vperm.xlu0 %11190, %v1821_v52   ;;  %v965_v52 = vmul.f32 %v12156_v32, %v12219_v10  ;;  %v998_v31 = vadd.f32 %v966_v8, %v866_v15  ;;  %v1000_v63 = vadd.f32 %v968_v53, %v868_v55  ;;  %v999_v3 = vadd.f32 %v967_v60, %v867_v18 }
 0x146   : > { %2042 = vperm.xlu1 %11192, %v1800_v58   ;;  %v1804_v58 = vld [vmem:[%s15766_s6 + $0x100] sm:$0xff]  ;;  %v737_v9 = vmul.f32 %v12174_v40, %v12247_v7  ;;  %v738_v11 = vmul.f32 %v12167_v37, %v12247_v7  ;;  %v739_v13 = vmul.f32 %v12176_v41, %v12247_v7 }
 0x147   : > { %v997_v0 = vadd.f32 %v965_v52, %v865_v16 }
 0x149   : > { %2157 = vperm.xlu0 %11190, %v1823_v51   ;;  %v1827_v51 = vld [vmem:[%s15766_s6 + $0x1b8] sm:$0xff] }
 0x14a   : > { %v1038_v25 = vpop.permute.xlu1 %1037  ;;  %2052 = vperm.xlu1 %11192, %v1802_v12  }
 0x14b   : > { %v1074_v4 = vadd.f32 %v1038_v25, %v994_v59  ;;  %v1076_v17 = vadd.f32 %v1038_v25, %v996_v1  ;;  %v1073_v50 = vadd.f32 %v1038_v25, %v993_v2  ;;  %v1075_v5 = vadd.f32 %v1038_v25, %v995_v54  ;;  %v12398_v25 = vpop.permute.xlu0 %1047  ;;  %v1829_v2 = vld [vmem:[%s15766_s6 + $0x1c8] sm:$0xff] }
 0x14c   : > { %v742_v59 = vmul.f32 %v12167_v37, %v12252_v19  ;;  %v841_v1 = vmul.f32 %v12148_v28, %v12263_v24 }
 0x14d   : > { %2167 = vperm.xlu0 %11190, %v1825_v57   ;;  %v1106_v52 = vmax.f32 %v1074_v4, 0.0  ;;  %v1108_v8 = vmax.f32 %v1076_v17, 0.0  ;;  %v1105_v60 = vmax.f32 %v1073_v50, 0.0  ;;  %v1107_v53 = vmax.f32 %v1075_v5, 0.0 }
 0x14e   : > { %v1043_v10 = vpop.permute.xlu1 %1042  ;;  %2062 = vperm.xlu1 %11192, %v1804_v58   ;;  %v740_v57 = vmul.f32 %v12178_v42, %v12247_v7  ;;  %v741_v58 = vmul.f32 %v12174_v40, %v12252_v19  ;;  %v1808_v7 = vld [vmem:[%s15766_s6 + $0x120] sm:$0xff]  ;;  %v844_v4 = vmul.f32 %v12165_v36, %v12263_v24  ;;  %v969_v17 = vmul.f32 %v12156_v32, %v12326_v61 }
 0x14f   : > { %v1078_v12 = vadd.f32 %v1043_v10, %v998_v31  ;;  %v1080_v27 = vadd.f32 %v1043_v10, %v1000_v63  ;;  %v1077_v38 = vadd.f32 %v1043_v10, %v997_v0  ;;  %v1079_v26 = vadd.f32 %v1043_v10, %v999_v3 }
 0x150   : > { %v842_v3 = vmul.f32 %v12152_v30, %v12263_v24  ;;  %v843_v10 = vmul.f32 %v12150_v29, %v12263_v24  ;;  %v970_v50 = vmul.f32 %v12161_v34, %v12326_v61  ;;  %v971_v5 = vmul.f32 %v12163_v35, %v12326_v61 }
 0x151   : > { %v1110_v15 = vmax.f32 %v1078_v12, 0.0  ;;  %v1112_v55 = vmax.f32 %v1080_v27, 0.0  ;;  %v1109_v16 = vmax.f32 %v1077_v38, 0.0  ;;  %v1111_v18 = vmax.f32 %v1079_v26, 0.0  ;;  %2177 = vperm.xlu0 %11190, %v1827_v51   ;;  %v1831_v38 = vld [vmem:[%s15766_s6 + $0x1d8] sm:$0xff] }
 0x152   : > { %v681_v22 = vpop.permute.xlu1 %680  ;;  %2072 = vperm.xlu1 %11192, %v1806_v14   ;;  %v972_v51 = vmul.f32 %v12172_v39, %v12326_v61  ;;  %v743_v12 = vmul.f32 %v12176_v41, %v12252_v19  ;;  %v744_v24 = vmul.f32 %v12178_v42, %v12252_v19  ;;  %v870_v26 = vadd.f32 %v12298_v48, %v738_v11  ;;  %v12436_v14 = vpop.permute.xlu0 %1062  ;;  %v1810_v61 = vld [vmem:[%s15766_s6 + $0x130] sm:$0xff] }
 0x153   : > { %v1150_v54 = vpack.c.bf16 %v1110_v15, %v1106_v52  ;;  %v1152_v31 = vpack.c.bf16 %v1112_v55, %v1108_v8  ;;  %v1149_v63 = vpack.c.bf16 %v1109_v16, %v1105_v60  ;;  %v1151_v0 = vpack.c.bf16 %v1111_v18, %v1107_v53 }
 0x154   : > { %v872_v15 = vadd.f32 %v12352_v46, %v740_v57  ;;  %v869_v19 = vadd.f32 %v12294_v56, %v737_v9  ;;  %v871_v55 = vadd.f32 %v12302_v49, %v739_v13  ;;  %v874_v16 = vadd.f32 %v842_v3, %v742_v59  ;;  %v1833_v56 = vld [vmem:[%s15766_s6 + $0x1e8] sm:$0xff] }
 0x155   : > { %2187 = vperm.xlu0 %11190, %v1829_v2   ;;  %1324 = vmatprep.subr.bf16.mxu0 %v1150_v54  ;;  %v876_v18 = vadd.f32 %v844_v4, %v744_v24  ;;  %v873_v52 = vadd.f32 %v841_v1, %v741_v58  ;;  %v875_v8 = vadd.f32 %v843_v10, %v743_v12 }
 0x156   : > { %1437 = vmatprep.subr.bf16.mxu1 %v1152_v31  ;;  %2082 = vperm.xlu1 %11192, %v1808_v7   ;;  %v1002_v48 = vadd.f32 %v970_v50, %v870_v26  ;;  %v1004_v11 = vadd.f32 %v972_v51, %v872_v15  ;;  %v1001_v60 = vadd.f32 %v969_v17, %v869_v19  ;;  %v1814_v50 = vld [vmem:[%s15766_s6 + $0x150] sm:$0xff]  ;;  %v1816_v26 = vld [vmem:[%s15766_s6 + $0x160] sm:$0xff] }
 0x157   : > { %v779_v27 = vpop.permute.xlu1 %778  ;;  %1325 = vmatpush1.bf16.msra.mxu0 %v1149_v63  ;;  %1438 = vmatpush1.bf16.msra.mxu1 %v1151_v0  ;;  %v1003_v53 = vadd.f32 %v971_v5, %v871_v55  ;;  %v749_v2 = vmul.f32 %v12174_v40, %v681_v22  ;;  %v750_v54 = vmul.f32 %v12167_v37, %v681_v22  ;;  %v1837_v5 = vld [vmem:[%s15766_s6 + $0x208] sm:$0xff] }
 0x158   : > { %v751_v31 = vmul.f32 %v12176_v41, %v681_v22  ;;  %v752_v46 = vmul.f32 %v12178_v42, %v681_v22  ;;  %v745_v49 = vmul.f32 %v12174_v40, %v12377_v62  ;;  %v746_v9 = vmul.f32 %v12167_v37, %v12377_v62  ;;  %v1812_v22 = vld [vmem:[%s15766_s6 + $0x140] sm:$0xff]  ;;  %v12466_v37 = vpop.permute.xlu0 %1184 }
 0x159   : > { %2197 = vperm.xlu0 %11190, %v1831_v38   ;;  %v747_v13 = vmul.f32 %v12176_v41, %v12377_v62  ;;  %v748_v57 = vmul.f32 %v12178_v42, %v12377_v62  ;;  %v1006_v59 = vadd.f32 %v12282_v44, %v874_v16  ;;  %v1008_v1 = vadd.f32 %v12290_v47, %v876_v18 }
 0x15a   : > { %2092 = vperm.xlu1 %11192, %v1810_v61   ;;  %v1005_v40 = vadd.f32 %v12278_v43, %v873_v52  ;;  %v1007_v7 = vadd.f32 %v12286_v45, %v875_v8  ;;  %v12469_v41 = vadd.f32 %v12398_v25, %v1002_v48  ;;  %v12472_v42 = vadd.f32 %v12398_v25, %v1004_v11  ;;  %v1835_v43 = vld [vmem:[%s15766_s6 + $0x1f8] sm:$0xff] }
 0x15b   : > { %v12475_v62 = vadd.f32 %v12398_v25, %v1001_v60  ;;  %v12478_v44 = vadd.f32 %v12398_v25, %v1003_v53  ;;  %v882_v45 = vadd.f32 %v12360_v21, %v750_v54  ;;  %v884_v47 = vadd.f32 %v12387_v33, %v752_v46  ;;  %v1839_v54 = vld [vmem:[%s15766_s6 + $0x218] sm:$0xff] }
 0x15c   : > { %v911_v58 = vpop.permute.xlu1 %910  ;;  %v881_v63 = vadd.f32 %v12356_v20, %v749_v2  ;;  %v883_v0 = vadd.f32 %v12364_v23, %v751_v31  ;;  %v845_v3 = vmul.f32 %v12148_v28, %v779_v27  ;;  %v846_v10 = vmul.f32 %v12152_v30, %v779_v27  ;;  %v12505_v38 = vpop.permute.xlu0 %1194 }
 0x15d   : > { %2207 = vperm.xlu0 %11190, %v1833_v56   ;;  %v847_v25 = vmul.f32 %v12150_v29, %v779_v27  ;;  %v848_v4 = vmul.f32 %v12165_v36, %v779_v27  ;;  %v1114_v28 = vmax.f32 %v12469_v41, 0.0  ;;  %v1116_v29 = vmax.f32 %v12472_v42, 0.0  ;;  %v1841_v42 = vld [vmem:[%s15766_s6 + $0x228] sm:$0xff] }
 0x15e   : > { %2102 = vperm.xlu1 %11192, %v1812_v22   ;;  %v1113_v30 = vmax.f32 %v12475_v62, 0.0  ;;  %v1115_v36 = vmax.f32 %v12478_v44, 0.0  ;;  %v878_v61 = vadd.f32 %v846_v10, %v746_v9  ;;  %v877_v19 = vadd.f32 %v845_v3, %v745_v49 }
 0x15f   : > { %v880_v15 = vadd.f32 %v848_v4, %v748_v57  ;;  %v879_v55 = vadd.f32 %v847_v25, %v747_v13  ;;  %v977_v16 = vmul.f32 %v12156_v32, %v911_v58  ;;  %v978_v18 = vmul.f32 %v12161_v34, %v911_v58 }
 0x160   : > { %v915_v17 = vpop.permute.xlu1 %914  ;;  %v979_v52 = vmul.f32 %v12163_v35, %v911_v58  ;;  %v980_v8 = vmul.f32 %v12172_v39, %v911_v58 }
 0x161   : > { %v981_v21 = vmul.f32 %v12156_v32, %v915_v17  ;;  %v982_v33 = vmul.f32 %v12161_v34, %v915_v17  ;;  %v983_v20 = vmul.f32 %v12163_v35, %v915_v17  ;;  %v984_v23 = vmul.f32 %v12172_v39, %v915_v17  ;;  %2217 = vperm.xlu0 %11190, %v1835_v43   ;;  %v1818_v39 = vld [vmem:[%s15766_s6 + $0x170] sm:$0xff] }
 0x162   : > { %2112 = vperm.xlu1 %11192, %v1814_v50   ;;  %v1010_v57 = vadd.f32 %v978_v18, %v878_v61  ;;  %v1012_v58 = vadd.f32 %v980_v8, %v880_v15  ;;  %v1009_v22 = vadd.f32 %v977_v16, %v877_v19  ;;  %v1849_v61 = vld [vmem:[%s15766_s6 + $0x268] sm:$0xff]  ;;  %v1828_v19 = vld [vmem:[%s15766_s6 + $0x1c0] sm:$0xff]  ;;  %v1830_v16 = vld [vmem:[%s15766_s6 + $0x1d0] sm:$0xff] }
 0x163   : > { %v1014_v51 = vadd.f32 %v982_v33, %v882_v45  ;;  %v1016_v12 = vadd.f32 %v984_v23, %v884_v47  ;;  %v1013_v24 = vadd.f32 %v981_v21, %v881_v63  ;;  %v1015_v27 = vadd.f32 %v983_v20, %v883_v0  ;;  %v1820_v47 = vld [vmem:[%s15766_s6 + $0x180] sm:$0xff]  ;;  %v1843_v20 = vld [vmem:[%s15766_s6 + $0x238] sm:$0xff]  ;;  %v11195_v18 = vld [vmem:[%s15763_s3 + $0x10] sm:$0xff]  }
 0x164   : > { %v1853_v8 = vld [vmem:[%s15766_s6 + $0x288] sm:$0xff] }
 0x165   : > { %v1053_v48 = vpop.permute.xlu1 %1052  ;;  %2227 = vperm.xlu0 %11190, %v1837_v5   ;;  %v1094_v31 = vadd.f32 %v12436_v14, %v1014_v51  ;;  %v1096_v32 = vadd.f32 %v12436_v14, %v1016_v12  ;;  %v1093_v34 = vadd.f32 %v12436_v14, %v1013_v24  ;;  %v1095_v35 = vadd.f32 %v12436_v14, %v1015_v27  ;;  %v1845_v5 = vld [vmem:[%s15766_s6 + $0x248] sm:$0xff]  ;;  %v1824_v51 = vld [vmem:[%s15766_s6 + $0x1a0] sm:$0xff]  ;;  %v1847_v24 = vld [vmem:[%s15766_s6 + $0x258] sm:$0xff] }
 0x166   : > { %v1086_v11 = vadd.f32 %v1053_v48, %v1006_v59  ;;  %v1088_v60 = vadd.f32 %v1053_v48, %v1008_v1  ;;  %v1085_v53 = vadd.f32 %v1053_v48, %v1005_v40  ;;  %v1087_v2 = vadd.f32 %v1053_v48, %v1007_v7  ;;  %2122 = vperm.xlu1 %11192, %v1816_v26   ;;  %v12524_v1 = vpop.permute.xlu0 %1204  ;;  %v1826_v27 = vld [vmem:[%s15766_s6 + $0x1b0] sm:$0xff]  ;;  %v11194_v26 = vld [vmem:[%s15763_s3 + $0x8] sm:$0xff]   ;;  %v1832_v48 = vld [vmem:[%s15766_s6 + $0x1e0] sm:$0xff] }
 0x167   : > { %v1011_v59 = vadd.f32 %v979_v52, %v879_v55  ;;  %v1126_v63 = vmax.f32 %v1094_v31, 0.0  ;;  %v1128_v0 = vmax.f32 %v1096_v32, 0.0  ;;  %v1125_v3 = vmax.f32 %v1093_v34, 0.0  ;;  %v1851_v55 = vld [vmem:[%s15766_s6 + $0x278] sm:$0xff]  ;;  %v1857_v31 = vld [vmem:[%s15766_s6 + $0x2a8] sm:$0xff]  ;;  %v1836_v32 = vld [vmem:[%s15766_s6 + $0x200] sm:$0xff] }
 0x168   : > { %v1118_v46 = vmax.f32 %v1086_v11, 0.0  ;;  %v1120_v56 = vmax.f32 %v1088_v60, 0.0  ;;  %v1117_v49 = vmax.f32 %v1085_v53, 0.0  ;;  %v1119_v9 = vmax.f32 %v1087_v2, 0.0  ;;  %v1855_v60 = vld [vmem:[%s15766_s6 + $0x298] sm:$0xff]  ;;  %v1834_v2 = vld [vmem:[%s15766_s6 + $0x1f0] sm:$0xff] }
 0x169   : > { %v1058_v13 = vpop.permute.xlu1 %1057  ;;  %2237 = vperm.xlu0 %11190, %v1839_v54   ;;  %v1127_v10 = vmax.f32 %v1095_v35, 0.0  ;;  %v11196_v54 = vld [vmem:[%s15763_s3 + $0x18] sm:$0xff]  }
 0x16a   : > { %v1154_v40 = vpack.c.bf16 %v1118_v46, %v1114_v28  ;;  %v1156_v7 = vpack.c.bf16 %v1120_v56, %v1116_v29  ;;  %v1153_v41 = vpack.c.bf16 %v1117_v49, %v1113_v30  ;;  %v1155_v14 = vpack.c.bf16 %v1119_v9, %v1115_v36  ;;  %2132 = vperm.xlu1 %11192, %v1818_v39   ;;  %v12535_v29 = vpop.permute.xlu0 %1214  ;;  %v1822_v30 = vld [vmem:[%s15766_s6 + $0x190] sm:$0xff]  ;;  %v11193_v36 = vld [vmem:[%s15763_s3] sm:$0xff]   ;;  %v1859_v39 = vld [vmem:[%s15766_s6 + $0x2b8] sm:$0xff] }
 0x16b   : > { %v1090_v62 = vadd.f32 %v1058_v13, %v1010_v57  ;;  %v1092_v44 = vadd.f32 %v1058_v13, %v1012_v58  ;;  %v1089_v43 = vadd.f32 %v1058_v13, %v1009_v22  ;;  %v1091_v45 = vadd.f32 %v1058_v13, %v1011_v59  ;;  %v1838_v46 = vld [vmem:[%s15766_s6 + $0x210] sm:$0xff]  ;;  %v11197_v56 = vld [vmem:[%s15763_s3 + $0x20] sm:$0xff]   ;;  %v1861_v9 = vld [vmem:[%s15766_s6 + $0x2c8] sm:$0xff] }
 0x16c   : > { %1326 = vmatprep.subr.bf16.mxu0 %v1154_v40  ;;  %1439 = vmatprep.subr.bf16.mxu1 %v1156_v7  ;;  %v1840_v57 = vld [vmem:[%s15766_s6 + $0x220] sm:$0xff]  ;;  %v1863_v58 = vld [vmem:[%s15766_s6 + $0x2d8] sm:$0xff]  ;;  %v1842_v22 = vld [vmem:[%s15766_s6 + $0x230] sm:$0xff] }
 0x16d   : > { %1327 = vmatpush1.bf16.msra.mxu0 %v1153_v41  ;;  %1440 = vmatpush1.bf16.msra.mxu1 %v1155_v14  ;;  %v1122_v25 = vmax.f32 %v1090_v62, 0.0  ;;  %v1124_v4 = vmax.f32 %v1092_v44, 0.0  ;;  %v1121_v17 = vmax.f32 %v1089_v43, 0.0  ;;  %v1123_v50 = vmax.f32 %v1091_v45, 0.0  ;;  %v12595_v11 = vpop.permute.xlu1 %1179  ;;  %v11198_v40 = vld [vmem:[%s15763_s3 + $0x28] sm:$0xff]   ;;  %v1844_v14 = vld [vmem:[%s15766_s6 + $0x240] sm:$0xff] }
 0x16e   : > { %2247 = vperm.xlu0 %11190, %v1841_v42   ;;  %2142 = vperm.xlu1 %11192, %v1820_v47   ;;  %v12550_v12 = vpop.permute.xlu0 %1224  ;;  %v1865_v41 = vld [vmem:[%s15766_s6 + $0x2e8] sm:$0xff]  ;;  %v1867_v62 = vld [vmem:[%s15766_s6 + $0x2f8] sm:$0xff]  ;;  %v1846_v43 = vld [vmem:[%s15766_s6 + $0x250] sm:$0xff] }
 0x16f   : > { %v1158_v21 = vpack.c.bf16 %v1126_v63, %v1122_v25  ;;  %v1160_v33 = vpack.c.bf16 %v1128_v0, %v1124_v4  ;;  %v1157_v23 = vpack.c.bf16 %v1125_v3, %v1121_v17  ;;  %v1159_v28 = vpack.c.bf16 %v1127_v10, %v1123_v50  ;;  %v11199_v45 = vld [vmem:[%s15763_s3 + $0x30] sm:$0xff]   ;;  %v1869_v47 = vld [vmem:[%s15766_s6 + $0x308] sm:$0xff]  ;;  %v1848_v63 = vld [vmem:[%s15766_s6 + $0x260] sm:$0xff] }
 0x170   : > { %v1871_v10 = vld [vmem:[%s15766_s6 + $0x318] sm:$0xff]  ;;  %v1850_v25 = vld [vmem:[%s15766_s6 + $0x270] sm:$0xff]  ;;  %v1873_v50 = vld [vmem:[%s15766_s6 + $0x328] sm:$0xff] }
 0x171   : > { %1328 = vmatprep.subr.bf16.mxu0 %v1158_v21  ;;  %1441 = vmatprep.subr.bf16.mxu1 %v1160_v33  ;;  %v12616_v34 = vpop.permute.xlu1 %1189  ;;  %v11200_v4 = vld [vmem:[%s15763_s3 + $0x38] sm:$0xff]   ;;  %v1852_v33 = vld [vmem:[%s15766_s6 + $0x280] sm:$0xff] }
 0x172   : > { %2257 = vperm.xlu0 %11190, %v1843_v20   ;;  %1329 = vmatpush1.bf16.msra.mxu0 %v1157_v23  ;;  %v12567_v15 = vpop.permute.xlu0 %1234  ;;  %v1875_v20 = vld [vmem:[%s15766_s6 + $0x338] sm:$0xff]  ;;  %v1854_v23 = vld [vmem:[%s15766_s6 + $0x290] sm:$0xff] }
 0x173   : > { %1442 = vmatpush1.bf16.msra.mxu1 %v1159_v28  ;;  %2152 = vperm.xlu1 %11192, %v1822_v30  }
 0x175   : > { %9984 = vmatmul.mubr.msk.bf16.vlgmr.msra.gmra.mrb[0].mxu0 %vm1297_vm1, %v11193_v36  ;;  %v12633_v49 = vpop.permute.xlu1 %1199 }
 0x176   : > { %9992 = vmatmul.mubr.msk.bf16.vlgmr.msra.gmra.mrb[0].mxu1 %vm1297_vm1, %v11193_v36  ;;  %2267 = vperm.xlu0 %11190, %v1845_v5   ;;  %v12585_v52 = vpop.permute.xlu0 %1244  ;;  %v1877_v36 = vld [vmem:[%s15766_s6 + $0x348] sm:$0xff]  ;;  %v1856_v5 = vld [vmem:[%s15766_s6 + $0x2a0] sm:$0xff] }
 0x177   : > { %2162 = vperm.xlu1 %11192, %v1824_v51   ;;  %1364 = vmatprep.mubr.bf16.mxu0 %v15782_v6 }
 0x178   : > { %1477 = vmatprep.mubr.bf16.mxu1 %v15782_v6 }
 0x179   : > { %v12653_v59 = vpop.permute.xlu1 %1209 }
 0x17a   : > { %2277 = vperm.xlu0 %11190, %v1847_v24   ;;  %v12601_v53 = vpop.permute.xlu0 %1254  ;;  %v1879_v24 = vld [vmem:[%s15766_s6 + $0x358] sm:$0xff] }
 0x17b   : > { %2172 = vperm.xlu1 %11192, %v1826_v27  }
 0x17d   : > { %9985 = vmatmul.mubr.msk.bf16.gmra.mrb[4].mxu0 %vm1297_vm1, %v11194_v26  ;;  %v12668_v42 = vpop.permute.xlu1 %1219 }
 0x17e   : > { %9993 = vmatmul.mubr.msk.bf16.gmra.mrb[4].mxu1 %vm1297_vm1, %v11194_v26  ;;  %2287 = vperm.xlu0 %11190, %v1849_v61   ;;  %v12619_v35 = vpop.permute.xlu0 %1907  ;;  %v1858_v26 = vld [vmem:[%s15766_s6 + $0x2b0] sm:$0xff]  ;;  %v1881_v61 = vld [vmem:[%s15766_s6 + $0x368] sm:$0xff] }
 0x17f   : > { %2182 = vperm.xlu1 %11192, %v1828_v19   ;;  %1374 = vmatprep.mubr.bf16.mxu0 %v15782_v6  ;;  %v1860_v19 = vld [vmem:[%s15766_s6 + $0x2c0] sm:$0xff] }
 0x180   : > { %1487 = vmatprep.mubr.bf16.mxu1 %v15782_v6 }
 0x181   : > { %v12689_v0 = vpop.permute.xlu1 %1229 }
 0x182   : > { %2297 = vperm.xlu0 %11190, %v1851_v55   ;;  %v12638_v13 = vpop.permute.xlu0 %1917 }
 0x183   : > { %2192 = vperm.xlu1 %11192, %v1830_v16  }
 0x185   : > { %9986 = vmatmul.mubr.msk.bf16.gmra.mrb[8].mxu0 %vm1297_vm1, %v11195_v18  ;;  %v12706_v17 = vpop.permute.xlu1 %1239 }
 0x186   : > { %9994 = vmatmul.mubr.msk.bf16.gmra.mrb[8].mxu1 %vm1297_vm1, %v11195_v18  ;;  %2307 = vperm.xlu0 %11190, %v1853_v8   ;;  %v12658_v7 = vpop.permute.xlu0 %1927  ;;  %v1883_v18 = vld [vmem:[%s15766_s6 + $0x378] sm:$0xff]  ;;  %v1862_v8 = vld [vmem:[%s15766_s6 + $0x2d0] sm:$0xff] }
 0x187   : > { %2202 = vperm.xlu1 %11192, %v1832_v48   ;;  %1384 = vmatprep.mubr.bf16.mxu0 %v15782_v6 }
 0x188   : > { %1497 = vmatprep.mubr.bf16.mxu1 %v15782_v6 }
 0x189   : > { %v12726_v28 = vpop.permute.xlu1 %1249 }
 0x18a   : > { %2317 = vperm.xlu0 %11190, %v1855_v60   ;;  %v12674_v44 = vpop.permute.xlu0 %1937  ;;  %v1885_v60 = vld [vmem:[%s15766_s6 + $0x388] sm:$0xff] }
 0x18b   : > { %2212 = vperm.xlu1 %11192, %v1834_v2  }
 0x18d   : > { %9987 = vmatmul.mubr.msk.bf16.gmra.mrb[12].mxu0 %vm1297_vm1, %v11196_v54  ;;  %v12736_v51 = vpop.permute.xlu1 %1902 }
 0x18e   : > { %9995 = vmatmul.mubr.msk.bf16.gmra.mrb[12].mxu1 %vm1297_vm1, %v11196_v54  ;;  %2327 = vperm.xlu0 %11190, %v1857_v31   ;;  %v12692_v3 = vpop.permute.xlu0 %1947  ;;  %v1864_v54 = vld [vmem:[%s15766_s6 + $0x2e0] sm:$0xff]  ;;  %v1887_v31 = vld [vmem:[%s15766_s6 + $0x398] sm:$0xff] }
 0x18f   : > { %2222 = vperm.xlu1 %11192, %v1836_v32   ;;  %1394 = vmatprep.mubr.bf16.mxu0 %v15782_v6  ;;  %v1866_v32 = vld [vmem:[%s15766_s6 + $0x2f0] sm:$0xff] }
 0x190   : > { %1507 = vmatprep.mubr.bf16.mxu1 %v15782_v6 }
 0x191   : > { %v12752_v55 = vpop.permute.xlu1 %1912 }
 0x192   : > { %2337 = vperm.xlu0 %11190, %v1859_v39   ;;  %v12711_v21 = vpop.permute.xlu0 %1957 }
 0x193   : > { %2232 = vperm.xlu1 %11192, %v1838_v46  }
 0x195   : > { %9988 = vmatmul.mubr.msk.bf16.gmra.mrb[16].mxu0 %vm1297_vm1, %v11197_v56  ;;  %v12762_v48 = vpop.permute.xlu1 %1922 }
 0x196   : > { %9996 = vmatmul.mubr.msk.bf16.gmra.mrb[16].mxu1 %vm1297_vm1, %v11197_v56  ;;  %2347 = vperm.xlu0 %11190, %v1861_v9   ;;  %v12728_v30 = vpop.permute.xlu0 %1967  ;;  %v1889_v56 = vld [vmem:[%s15766_s6 + $0x3a8] sm:$0xff]  ;;  %v1868_v9 = vld [vmem:[%s15766_s6 + $0x300] sm:$0xff] }
 0x197   : > { %2242 = vperm.xlu1 %11192, %v1840_v57   ;;  %1404 = vmatprep.mubr.bf16.mxu0 %v15782_v6 }
 0x198   : > { %1517 = vmatprep.mubr.bf16.mxu1 %v15782_v6 }
 0x199   : > { %v12778_v39 = vpop.permute.xlu1 %1932 }
 0x19a   : > { %2357 = vperm.xlu0 %11190, %v1863_v58   ;;  %v12741_v27 = vpop.permute.xlu0 %1977  ;;  %v1891_v58 = vld [vmem:[%s15766_s6 + $0x3b8] sm:$0xff] }
 0x19b   : > { %2252 = vperm.xlu1 %11192, %v1842_v22  }
 0x19d   : > { %9989 = vmatmul.mubr.msk.bf16.gmra.mrb[20].mxu0 %vm1297_vm1, %v11198_v40  ;;  %v12788_v57 = vpop.permute.xlu1 %1942 }
 0x19e   : > { %9997 = vmatmul.mubr.msk.bf16.gmra.mrb[20].mxu1 %vm1297_vm1, %v11198_v40  ;;  %2367 = vperm.xlu0 %11190, %v1865_v41   ;;  %v12754_v16 = vpop.permute.xlu0 %1987  ;;  %v1870_v40 = vld [vmem:[%s15766_s6 + $0x310] sm:$0xff]  ;;  %v1893_v41 = vld [vmem:[%s15766_s6 + $0x3c8] sm:$0xff] }
 0x19f   : > { %2262 = vperm.xlu1 %11192, %v1844_v14   ;;  %1414 = vmatprep.mubr.bf16.mxu0 %v15782_v6  ;;  %v1872_v14 = vld [vmem:[%s15766_s6 + $0x320] sm:$0xff] }
 0x1a0   : > { %1527 = vmatprep.mubr.bf16.mxu1 %v15782_v6 }
 0x1a2   : > { %2377 = vperm.xlu0 %11190, %v1867_v62   ;;  %v12767_v2 = vpop.permute.xlu0 %1997  ;;  %v12804_v62 = vpop.permute.xlu1 %1952 }
 0x1a3   : > { %2272 = vperm.xlu1 %11192, %v1846_v43  }
 0x1a5   : > { %9990 = vmatmul.mubr.msk.bf16.gmra.mrb[24].mxu0 %vm1297_vm1, %v11199_v45 }
 0x1a6   : > { %9998 = vmatmul.mubr.msk.bf16.gmra.mrb[24].mxu1 %vm1297_vm1, %v11199_v45  ;;  %2387 = vperm.xlu0 %11190, %v1869_v47   ;;  %v12780_v46 = vpop.permute.xlu0 %2007  ;;  %v1895_v45 = vld [vmem:[%s15766_s6 + $0x3d8] sm:$0xff]  ;;  %v1874_v47 = vld [vmem:[%s15766_s6 + $0x330] sm:$0xff] }
 0x1a7   : > { %2282 = vperm.xlu1 %11192, %v1848_v63   ;;  %1424 = vmatprep.mubr.bf16.mxu0 %v15782_v6  ;;  %v12814_v63 = vpop.permute.xlu1 %1962 }
 0x1a8   : > { %1537 = vmatprep.mubr.bf16.mxu1 %v15782_v6 }
 0x1aa   : > { %2397 = vperm.xlu0 %11190, %v1871_v10   ;;  %v12793_v22 = vpop.permute.xlu0 %2017  ;;  %v1897_v10 = vld [vmem:[%s15766_s6 + $0x3e8] sm:$0xff] }
 0x1ab   : > { %2292 = vperm.xlu1 %11192, %v1850_v25   ;;  %15857 = vst [vmem:[#allocation14_spill] sm:$0xff] %v12793_v22 }
 0x1ad   : > { %9991 = vmatmul.mubr.msk.bf16.gmra.mrb[28].mxu0 %vm1297_vm1, %v11200_v4 }
 0x1ae   : > { %9999 = vmatmul.mubr.msk.bf16.gmra.mrb[28].mxu1 %vm1297_vm1, %v11200_v4  ;;  %2407 = vperm.xlu0 %11190, %v1873_v50   ;;  %v12806_v43 = vpop.permute.xlu0 %2027  ;;  %v1876_v4 = vld [vmem:[%s15766_s6 + $0x340] sm:$0xff]  ;;  %v1899_v50 = vld [vmem:[%s15766_s6 + $0x3f8] sm:$0xff] }
 0x1af   : > { %2302 = vperm.xlu1 %11192, %v1852_v33   ;;  %2956 = vmatprep.mubr.bf16.mxu0 %v15782_v6  ;;  %15858 = vst [vmem:[#allocation15_spill] sm:$0xff] %v12806_v43  ;;  %v1878_v33 = vld [vmem:[%s15766_s6 + $0x350] sm:$0xff] }
 0x1b0   : > { %3629 = vmatprep.mubr.bf16.mxu1 %v15782_v6 }
 0x1b2   : > { %2417 = vperm.xlu0 %11190, %v1875_v20   ;;  %v12819_v25 = vpop.permute.xlu0 %2037  ;;  %v12830_v20 = vpop.permute.xlu1 %1972 }
 0x1b3   : > { %2312 = vperm.xlu1 %11192, %v1854_v23   ;;  %15859 = vst [vmem:[#allocation16_spill] sm:$0xff] %v12819_v25 }
 0x1b6   : > { %2427 = vperm.xlu0 %11190, %v1877_v36   ;;  %v12832_v23 = vpop.permute.xlu0 %2047  ;;  %v1880_v36 = vld [vmem:[%s15766_s6 + $0x360] sm:$0xff] }
 0x1b7   : > { %2322 = vperm.xlu1 %11192, %v1856_v5   ;;  %15860 = vst [vmem:[#allocation17_spill] sm:$0xff] %v12832_v23  ;;  %v12837_v5 = vpop.permute.xlu1 %1982 }
 0x1ba   : > { %2437 = vperm.xlu0 %11190, %v1879_v24   ;;  %v1882_v24 = vld [vmem:[%s15766_s6 + $0x370] sm:$0xff] }
 0x1bb   : > { %2332 = vperm.xlu1 %11192, %v1858_v26   ;;  %v1884_v26 = vld [vmem:[%s15766_s6 + $0x380] sm:$0xff] }
 0x1be   : > { %2447 = vperm.xlu0 %11190, %v1881_v61   ;;  %v12845_v61 = vpop.permute.xlu1 %1992 }
 0x1bf   : > { %2342 = vperm.xlu1 %11192, %v1860_v19   ;;  %v1886_v19 = vld [vmem:[%s15766_s6 + $0x390] sm:$0xff] }
 0x1c2   : > { %2457 = vperm.xlu0 %11190, %v1883_v18   ;;  %v12850_v18 = vpop.permute.xlu1 %2002 }
 0x1c3   : > { %2352 = vperm.xlu1 %11192, %v1862_v8   ;;  %v1888_v8 = vld [vmem:[%s15766_s6 + $0x3a0] sm:$0xff] }
 0x1c6   : > { %2467 = vperm.xlu0 %11190, %v1885_v60   ;;  %v1890_v60 = vld [vmem:[%s15766_s6 + $0x3b0] sm:$0xff] }
 0x1c7   : > { %2362 = vperm.xlu1 %11192, %v1864_v54   ;;  %v12858_v54 = vpop.permute.xlu1 %2012 }
 0x1ca   : > { %2477 = vperm.xlu0 %11190, %v1887_v31   ;;  %v1892_v31 = vld [vmem:[%s15766_s6 + $0x3c0] sm:$0xff] }
 0x1cb   : > { %2372 = vperm.xlu1 %11192, %v1866_v32   ;;  %v12863_v32 = vpop.permute.xlu1 %2022 }
 0x1cc   : > { %15861 = vst [vmem:[#allocation18_spill] sm:$0xff] %v12863_v32 }
 0x1ce   : > { %2487 = vperm.xlu0 %11190, %v1889_v56   ;;  %v1894_v56 = vld [vmem:[%s15766_s6 + $0x3d0] sm:$0xff] }
 0x1cf   : > { %2382 = vperm.xlu1 %11192, %v1868_v9   ;;  %v1896_v9 = vld [vmem:[%s15766_s6 + $0x3e0] sm:$0xff] }
 0x1d2   : > { %2497 = vperm.xlu0 %11190, %v1891_v58   ;;  %v12871_v58 = vpop.permute.xlu1 %2032 }
 0x1d3   : > { %2392 = vperm.xlu1 %11192, %v1870_v40   ;;  %15862 = vst [vmem:[#allocation19_spill] sm:$0xff] %v12871_v58  ;;  %v1898_v40 = vld [vmem:[%s15766_s6 + $0x3f0] sm:$0xff] }
 0x1d6   : > { %2507 = vperm.xlu0 %11190, %v1893_v41   ;;  %v12876_v41 = vpop.permute.xlu1 %2042 }
 0x1d7   : > { %2402 = vperm.xlu1 %11192, %v1872_v14   ;;  %15863 = vst [vmem:[#allocation20_spill] sm:$0xff] %v12876_v41 }
 0x1da   : > { %2517 = vperm.xlu0 %11190, %v1895_v45  }
 0x1db   : > { %2412 = vperm.xlu1 %11192, %v1874_v47  }
 0x1de   : > { %2527 = vperm.xlu0 %11190, %v1897_v10  }
 0x1df   : > { %2422 = vperm.xlu1 %11192, %v1876_v4  }
 0x1e2   : > { %2537 = vperm.xlu0 %11190, %v1899_v50  }
 0x1e3   : > { %2432 = vperm.xlu1 %11192, %v1878_v33  }
 0x1e7   : > { %2442 = vperm.xlu1 %11192, %v1880_v36  }
 0x1eb   : > { %2452 = vperm.xlu1 %11192, %v1882_v24  }
 0x1ef   : > { %2462 = vperm.xlu1 %11192, %v1884_v26  }
 0x1f3   : > { %2472 = vperm.xlu1 %11192, %v1886_v19  }
 0x1f7   : > { %2482 = vperm.xlu1 %11192, %v1888_v8  }
 0x1fb   : > { %2492 = vperm.xlu1 %11192, %v1890_v60  }
 0x1ff   : > { %2502 = vperm.xlu1 %11192, %v1892_v31  }
 0x203   : > { %2512 = vperm.xlu1 %11192, %v1894_v56  }
 0x207   : > { %2522 = vperm.xlu1 %11192, %v1896_v9  }
 0x20b   : > { %2532 = vperm.xlu1 %11192, %v1898_v40  }
 0x248   : > { %v1356_v14 = vpop.f32.mrb[0].mxu0 }
 0x249   : > { %v1469_v45 = vpop.f32.mrb[0].mxu1  ;;  %v1357_v47 = vadd.f32 %v1356_v14, %v12595_v11  ;;  %v1358_v10 = vpop.f32.mrb[1].mxu0 }
 0x24a   : > { %v1471_v4 = vpop.f32.mrb[1].mxu1  ;;  %v1470_v50 = vadd.f32 %v1469_v45, %v12595_v11  ;;  %v1359_v33 = vadd.f32 %v1358_v10, %v12595_v11  ;;  %v1360_v36 = vpop.f32.mrb[2].mxu0 }
 0x24b   : > { %v1472_v24 = vadd.f32 %v1471_v4, %v12595_v11  ;;  %v1361_v26 = vadd.f32 %v1360_v36, %v12466_v37  ;;  %v1473_v19 = vpop.f32.mrb[2].mxu1  ;;  %v1362_v8 = vpop.f32.mrb[3].mxu0  ;;  %v1548_v9 = vmax.f32 %v1357_v47, 0.0 }
 0x24c   : > { %v1474_v60 = vadd.f32 %v1473_v19, %v12466_v37  ;;  %v1363_v31 = vadd.f32 %v1362_v8, %v12466_v37  ;;  %v1475_v56 = vpop.f32.mrb[3].mxu1  ;;  %v1550_v6 = vmax.f32 %v1470_v50, 0.0  ;;  %v1549_v45 = vmax.f32 %v1359_v33, 0.0 }
 0x24d   : > { %v1552_v40 = vmax.f32 %v1361_v26, 0.0  ;;  %v1476_v14 = vadd.f32 %v1475_v56, %v12466_v37  ;;  %v1551_v41 = vmax.f32 %v1472_v24, 0.0 }
 0x24e   : > { %v1554_v23 = vmax.f32 %v1474_v60, 0.0  ;;  %v1553_v10 = vmax.f32 %v1363_v31, 0.0 }
 0x24f   : > { %v1740_v25 = vpack.c.bf16 %v1552_v40, %v1548_v9  ;;  %v1555_v11 = vmax.f32 %v1476_v14, 0.0 }
 0x250   : > { %v1366_v4 = vpop.f32.mrb[4].mxu0  ;;  %v1742_v36 = vpack.c.bf16 %v1554_v23, %v1550_v6  ;;  %v1741_v43 = vpack.c.bf16 %v1553_v10, %v1549_v45 }
 0x251   : > { %v1479_v58 = vpop.f32.mrb[4].mxu1  ;;  %v1367_v19 = vadd.f32 %v1366_v4, %v12616_v34  ;;  %v1368_v32 = vpop.f32.mrb[5].mxu0  ;;  %v1743_v22 = vpack.c.bf16 %v1555_v11, %v1551_v41 }
 0x252   : > { %v1481_v8 = vpop.f32.mrb[5].mxu1  ;;  %v1480_v47 = vadd.f32 %v1479_v58, %v12616_v34  ;;  %v1369_v37 = vadd.f32 %v1368_v32, %v12616_v34  ;;  %v1370_v50 = vpop.f32.mrb[6].mxu0  ;;  %2924 = vmatprep.subr.bf16.mxu0 %v1741_v43 }
 0x253   : > { %v1482_v33 = vadd.f32 %v1481_v8, %v12616_v34  ;;  %v1371_v24 = vadd.f32 %v1370_v50, %v12505_v38  ;;  %v1483_v26 = vpop.f32.mrb[6].mxu1  ;;  %3597 = vmatprep.subr.bf16.mxu1 %v1743_v22  ;;  %v1372_v6 = vpop.f32.mrb[7].mxu0  ;;  %2925 = vmatpush1.bf16.msra.mxu0 %v1740_v25  ;;  %v1556_v41 = vmax.f32 %v1367_v19, 0.0 }
 0x254   : > { %v1484_v23 = vadd.f32 %v1483_v26, %v12505_v38  ;;  %v1373_v60 = vadd.f32 %v1372_v6, %v12505_v38  ;;  %v1485_v31 = vpop.f32.mrb[7].mxu1  ;;  %3598 = vmatpush1.bf16.msra.mxu1 %v1742_v36  ;;  %v1558_v56 = vmax.f32 %v1480_v47, 0.0  ;;  %v1557_v43 = vmax.f32 %v1369_v37, 0.0 }
 0x255   : > { %v1560_v58 = vmax.f32 %v1371_v24, 0.0  ;;  %v1486_v32 = vadd.f32 %v1485_v31, %v12505_v38  ;;  %v1559_v40 = vmax.f32 %v1482_v33, 0.0 }
 0x256   : > { %v1562_v9 = vmax.f32 %v1484_v23, 0.0  ;;  %v1561_v34 = vmax.f32 %v1373_v60, 0.0 }
 0x257   : > { %v1744_v14 = vpack.c.bf16 %v1560_v58, %v1556_v41  ;;  %v1563_v45 = vmax.f32 %v1486_v32, 0.0 }
 0x258   : > { %v1376_v22 = vpop.f32.mrb[8].mxu0  ;;  %v1746_v10 = vpack.c.bf16 %v1562_v9, %v1558_v56  ;;  %v1745_v11 = vpack.c.bf16 %v1561_v34, %v1557_v43 }
 0x259   : > { %v1489_v25 = vpop.f32.mrb[8].mxu1  ;;  %v1377_v4 = vadd.f32 %v1376_v22, %v12633_v49  ;;  %v1378_v8 = vpop.f32.mrb[9].mxu0  ;;  %v1747_v36 = vpack.c.bf16 %v1563_v45, %v1559_v40 }
 0x25a   : > { %v1491_v50 = vpop.f32.mrb[9].mxu1  ;;  %v1490_v19 = vadd.f32 %v1489_v25, %v12633_v49  ;;  %v1379_v38 = vadd.f32 %v1378_v8, %v12633_v49  ;;  %v1380_v47 = vpop.f32.mrb[10].mxu0  ;;  %2926 = vmatprep.subr.bf16.mxu0 %v1745_v11 }
 0x25b   : > { %v1492_v37 = vadd.f32 %v1491_v50, %v12633_v49  ;;  %v1381_v33 = vadd.f32 %v1380_v47, %v12524_v1  ;;  %v1493_v24 = vpop.f32.mrb[10].mxu1  ;;  %3599 = vmatprep.subr.bf16.mxu1 %v1747_v36  ;;  %v1382_v26 = vpop.f32.mrb[11].mxu0  ;;  %2927 = vmatpush1.bf16.msra.mxu0 %v1744_v14  ;;  %v1564_v31 = vmax.f32 %v1377_v4, 0.0 }
 0x25c   : > { %v1494_v6 = vadd.f32 %v1493_v24, %v12524_v1  ;;  %v1383_v23 = vadd.f32 %v1382_v26, %v12524_v1  ;;  %v1495_v60 = vpop.f32.mrb[11].mxu1  ;;  %3600 = vmatpush1.bf16.msra.mxu1 %v1746_v10  ;;  %v1566_v32 = vmax.f32 %v1490_v19, 0.0  ;;  %v1565_v56 = vmax.f32 %v1379_v38, 0.0 }
 0x25d   : > { %v1568_v41 = vmax.f32 %v1381_v33, 0.0  ;;  %v1496_v58 = vadd.f32 %v1495_v60, %v12524_v1  ;;  %v1567_v9 = vmax.f32 %v1492_v37, 0.0 }
 0x25e   : > { %v1570_v43 = vmax.f32 %v1494_v6, 0.0  ;;  %v1569_v49 = vmax.f32 %v1383_v23, 0.0 }
 0x25f   : > { %v1748_v34 = vpack.c.bf16 %v1568_v41, %v1564_v31  ;;  %v1571_v40 = vmax.f32 %v1496_v58, 0.0 }
 0x260   : > { %v1386_v45 = vpop.f32.mrb[12].mxu0  ;;  %v1750_v22 = vpack.c.bf16 %v1570_v43, %v1566_v32  ;;  %v1749_v25 = vpack.c.bf16 %v1569_v49, %v1565_v56 }
 0x261   : > { %v1499_v14 = vpop.f32.mrb[12].mxu1  ;;  %v1387_v11 = vadd.f32 %v1386_v45, %v12653_v59  ;;  %v1388_v8 = vpop.f32.mrb[13].mxu0  ;;  %v1751_v10 = vpack.c.bf16 %v1571_v40, %v1567_v9 }
 0x262   : > { %v1501_v50 = vpop.f32.mrb[13].mxu1  ;;  %v1500_v4 = vadd.f32 %v1499_v14, %v12653_v59  ;;  %v1389_v1 = vadd.f32 %v1388_v8, %v12653_v59  ;;  %v1390_v36 = vpop.f32.mrb[14].mxu0  ;;  %2928 = vmatprep.subr.bf16.mxu0 %v1749_v25 }
 0x263   : > { %v1502_v19 = vadd.f32 %v1501_v50, %v12653_v59  ;;  %v1391_v38 = vadd.f32 %v1390_v36, %v12535_v29  ;;  %v1503_v47 = vpop.f32.mrb[14].mxu1  ;;  %3601 = vmatprep.subr.bf16.mxu1 %v1751_v10  ;;  %v1392_v37 = vpop.f32.mrb[15].mxu0  ;;  %2929 = vmatpush1.bf16.msra.mxu0 %v1748_v34  ;;  %v1572_v6 = vmax.f32 %v1387_v11, 0.0 }
 0x264   : > { %v1504_v33 = vadd.f32 %v1503_v47, %v12535_v29  ;;  %v1393_v24 = vadd.f32 %v1392_v37, %v12535_v29  ;;  %v1505_v26 = vpop.f32.mrb[15].mxu1  ;;  %3602 = vmatpush1.bf16.msra.mxu1 %v1750_v22  ;;  %v1574_v31 = vmax.f32 %v1500_v4, 0.0  ;;  %v1573_v41 = vmax.f32 %v1389_v1, 0.0 }
 0x265   : > { %v1576_v23 = vmax.f32 %v1391_v38, 0.0  ;;  %v1506_v60 = vadd.f32 %v1505_v26, %v12535_v29  ;;  %v1575_v32 = vmax.f32 %v1502_v19, 0.0 }
 0x266   : > { %v1578_v58 = vmax.f32 %v1504_v33, 0.0  ;;  %v1577_v59 = vmax.f32 %v1393_v24, 0.0 }
 0x267   : > { %v1752_v56 = vpack.c.bf16 %v1576_v23, %v1572_v6  ;;  %v1579_v43 = vmax.f32 %v1506_v60, 0.0 }
 0x268   : > { %v1396_v49 = vpop.f32.mrb[16].mxu0  ;;  %v1754_v9 = vpack.c.bf16 %v1578_v58, %v1574_v31  ;;  %v1753_v14 = vpack.c.bf16 %v1577_v59, %v1573_v41 }
 0x269   : > { %v1397_v34 = vadd.f32 %v1396_v49, %v12668_v42  ;;  %v1509_v40 = vpop.f32.mrb[16].mxu1  ;;  %v1398_v45 = vpop.f32.mrb[17].mxu0  ;;  %v1755_v8 = vpack.c.bf16 %v1579_v43, %v1575_v32 }
 0x26a   : > { %v1510_v22 = vadd.f32 %v1509_v40, %v12668_v42  ;;  %v1399_v25 = vadd.f32 %v1398_v45, %v12668_v42  ;;  %v1511_v11 = vpop.f32.mrb[17].mxu1  ;;  %v1400_v29 = vpop.f32.mrb[18].mxu0  ;;  %2930 = vmatprep.subr.bf16.mxu0 %v1753_v14 }
 0x26b   : > { %v1512_v50 = vadd.f32 %v1511_v11, %v12668_v42  ;;  %v1401_v10 = vadd.f32 %v1400_v29, %v12550_v12  ;;  %v1513_v4 = vpop.f32.mrb[18].mxu1  ;;  %3603 = vmatprep.subr.bf16.mxu1 %v1755_v8  ;;  %v1402_v36 = vpop.f32.mrb[19].mxu0  ;;  %2931 = vmatpush1.bf16.msra.mxu0 %v1752_v56  ;;  %v1580_v38 = vmax.f32 %v1397_v34, 0.0 }
 0x26c   : > { %v1514_v1 = vadd.f32 %v1513_v4, %v12550_v12  ;;  %v1515_v19 = vpop.f32.mrb[19].mxu1  ;;  %v1403_v37 = vadd.f32 %v1402_v36, %v12550_v12  ;;  %3604 = vmatpush1.bf16.msra.mxu1 %v1754_v9  ;;  %v1582_v24 = vmax.f32 %v1510_v22, 0.0  ;;  %v1581_v26 = vmax.f32 %v1399_v25, 0.0 }
 0x26d   : > { %v1584_v47 = vmax.f32 %v1401_v10, 0.0  ;;  %v1516_v33 = vadd.f32 %v1515_v19, %v12550_v12  ;;  %v1583_v6 = vmax.f32 %v1512_v50, 0.0 }
 0x26e   : > { %v1586_v42 = vmax.f32 %v1514_v1, 0.0  ;;  %v1585_v60 = vmax.f32 %v1403_v37, 0.0 }
 0x26f   : > { %v1756_v23 = vpack.c.bf16 %v1584_v47, %v1580_v38  ;;  %v1587_v31 = vmax.f32 %v1516_v33, 0.0 }
 0x270   : > { %v1758_v41 = vpack.c.bf16 %v1586_v42, %v1582_v24  ;;  %v1406_v58 = vpop.f32.mrb[20].mxu0  ;;  %v1757_v43 = vpack.c.bf16 %v1585_v60, %v1581_v26 }
 0x271   : > { %v1407_v59 = vadd.f32 %v1406_v58, %v12689_v0  ;;  %v1519_v32 = vpop.f32.mrb[20].mxu1  ;;  %v1408_v56 = vpop.f32.mrb[21].mxu0  ;;  %v1759_v49 = vpack.c.bf16 %v1587_v31, %v1583_v6 }
 0x272   : > { %v1520_v34 = vadd.f32 %v1519_v32, %v12689_v0  ;;  %v1409_v12 = vadd.f32 %v1408_v56, %v12689_v0  ;;  %v1521_v9 = vpop.f32.mrb[21].mxu1  ;;  %v1410_v40 = vpop.f32.mrb[22].mxu0  ;;  %2932 = vmatprep.subr.bf16.mxu0 %v1757_v43 }
 0x273   : > { %v1522_v45 = vadd.f32 %v1521_v9, %v12689_v0  ;;  %v1411_v14 = vadd.f32 %v1410_v40, %v12567_v15  ;;  %v1523_v22 = vpop.f32.mrb[22].mxu1  ;;  %3605 = vmatprep.subr.bf16.mxu1 %v1759_v49  ;;  %v1412_v11 = vpop.f32.mrb[23].mxu0  ;;  %2933 = vmatpush1.bf16.msra.mxu0 %v1756_v23  ;;  %v1588_v8 = vmax.f32 %v1407_v59, 0.0 }
 0x274   : > { %v1524_v25 = vadd.f32 %v1523_v22, %v12567_v15  ;;  %v1525_v29 = vpop.f32.mrb[23].mxu1  ;;  %3606 = vmatpush1.bf16.msra.mxu1 %v1758_v41  ;;  %v1413_v10 = vadd.f32 %v1412_v11, %v12567_v15  ;;  %v1590_v1 = vmax.f32 %v1520_v34, 0.0  ;;  %v1589_v36 = vmax.f32 %v1409_v12, 0.0 }
 0x275   : > { %v1592_v50 = vmax.f32 %v1411_v14, 0.0  ;;  %v1526_v4 = vadd.f32 %v1525_v29, %v12567_v15  ;;  %v1591_v19 = vmax.f32 %v1522_v45, 0.0 }
 0x276   : > { %v1594_v0 = vmax.f32 %v1524_v25, 0.0  ;;  %v1593_v47 = vmax.f32 %v1413_v10, 0.0 }
 0x277   : > { %v1760_v38 = vpack.c.bf16 %v1592_v50, %v1588_v8  ;;  %v1595_v37 = vmax.f32 %v1526_v4, 0.0 }
 0x278   : > { %v1762_v33 = vpack.c.bf16 %v1594_v0, %v1590_v1  ;;  %v1416_v24 = vpop.f32.mrb[24].mxu0  ;;  %v1761_v23 = vpack.c.bf16 %v1593_v47, %v1589_v36 }
 0x279   : > { %v1417_v26 = vadd.f32 %v1416_v24, %v12706_v17  ;;  %v1529_v42 = vpop.f32.mrb[24].mxu1  ;;  %v1418_v6 = vpop.f32.mrb[25].mxu0  ;;  %v1763_v60 = vpack.c.bf16 %v1595_v37, %v1591_v19 }
 0x27a   : > { %v1530_v31 = vadd.f32 %v1529_v42, %v12706_v17  ;;  %v1419_v41 = vadd.f32 %v1418_v6, %v12706_v17  ;;  %v1531_v15 = vpop.f32.mrb[25].mxu1  ;;  %v1420_v58 = vpop.f32.mrb[26].mxu0  ;;  %2934 = vmatprep.subr.bf16.mxu0 %v1761_v23 }
 0x27b   : > { %v1532_v59 = vadd.f32 %v1531_v15, %v12706_v17  ;;  %v1421_v32 = vadd.f32 %v1420_v58, %v12585_v52  ;;  %v1533_v56 = vpop.f32.mrb[26].mxu1  ;;  %3607 = vmatprep.subr.bf16.mxu1 %v1763_v60  ;;  %v1422_v49 = vpop.f32.mrb[27].mxu0  ;;  %2935 = vmatpush1.bf16.msra.mxu0 %v1760_v38  ;;  %v1596_v12 = vmax.f32 %v1417_v26, 0.0 }
 0x27c   : > { %v1534_v43 = vadd.f32 %v1533_v56, %v12585_v52  ;;  %v1535_v34 = vpop.f32.mrb[27].mxu1  ;;  %3608 = vmatpush1.bf16.msra.mxu1 %v1762_v33  ;;  %v1423_v40 = vadd.f32 %v1422_v49, %v12585_v52  ;;  %v1598_v14 = vmax.f32 %v1530_v31, 0.0  ;;  %v1597_v22 = vmax.f32 %v1419_v41, 0.0 }
 0x27d   : > { %v1600_v9 = vmax.f32 %v1421_v32, 0.0  ;;  %v1536_v45 = vadd.f32 %v1535_v34, %v12585_v52  ;;  %v1599_v25 = vmax.f32 %v1532_v59, 0.0 }
 0x27e   : > { %v1602_v17 = vmax.f32 %v1534_v43, 0.0  ;;  %v1601_v29 = vmax.f32 %v1423_v40, 0.0  ;;  %v11201_v40 = vld [vmem:[%s15765_s5] sm:$0xff]  }
 0x27f   : > { %v1764_v11 = vpack.c.bf16 %v1600_v9, %v1596_v12  ;;  %v1603_v8 = vmax.f32 %v1536_v45, 0.0  ;;  %v11202_v45 = vld [vmem:[%s15765_s5 + $0x8] sm:$0xff]  }
 0x280   : > { %v1766_v50 = vpack.c.bf16 %v1602_v17, %v1598_v14  ;;  %v1426_v10 = vpop.f32.mrb[28].mxu0  ;;  %v1765_v0 = vpack.c.bf16 %v1601_v29, %v1597_v22  ;;  %v11203_v14 = vld [vmem:[%s15765_s5 + $0x10] sm:$0xff]   ;;  %v11204_v22 = vld [vmem:[%s15765_s5 + $0x18] sm:$0xff]   ;;  %v11205_v17 = vld [vmem:[%s15765_s5 + $0x20] sm:$0xff]  }
 0x281   : > { %v1427_v4 = vadd.f32 %v1426_v10, %v12726_v28  ;;  %v1539_v1 = vpop.f32.mrb[28].mxu1  ;;  %v1428_v36 = vpop.f32.mrb[29].mxu0  ;;  %v1767_v19 = vpack.c.bf16 %v1603_v8, %v1599_v25  ;;  %v11206_v29 = vld [vmem:[%s15765_s5 + $0x28] sm:$0xff]   ;;  %v11207_v10 = vld [vmem:[%s15765_s5 + $0x30] sm:$0xff]  }
 0x282   : > { %v1540_v38 = vadd.f32 %v1539_v1, %v12726_v28  ;;  %v1429_v47 = vadd.f32 %v1428_v36, %v12726_v28  ;;  %v1541_v52 = vpop.f32.mrb[29].mxu1  ;;  %v1430_v37 = vpop.f32.mrb[30].mxu0  ;;  %2936 = vmatprep.subr.bf16.mxu0 %v1765_v0  ;;  %v11208_v36 = vld [vmem:[%s15765_s5 + $0x38] sm:$0xff]  }
 0x283   : > { %v1542_v33 = vadd.f32 %v1541_v52, %v12726_v28  ;;  %v1431_v24 = vadd.f32 %v1430_v37, %v12601_v53  ;;  %v1543_v26 = vpop.f32.mrb[30].mxu1  ;;  %3609 = vmatprep.subr.bf16.mxu1 %v1767_v19  ;;  %v1432_v6 = vpop.f32.mrb[31].mxu0  ;;  %2937 = vmatpush1.bf16.msra.mxu0 %v1764_v11  ;;  %v1604_v60 = vmax.f32 %v1427_v4, 0.0  ;;  %v11209_v52 = vld [vmem:[%s15765_s5 + $0x40] sm:$0xff]  }
 0x284   : > { %v1544_v42 = vadd.f32 %v1543_v26, %v12601_v53  ;;  %v1545_v23 = vpop.f32.mrb[31].mxu1  ;;  %3610 = vmatpush1.bf16.msra.mxu1 %v1766_v50  ;;  %v1433_v41 = vadd.f32 %v1432_v6, %v12601_v53  ;;  %v1606_v58 = vmax.f32 %v1540_v38, 0.0  ;;  %v1605_v59 = vmax.f32 %v1429_v47, 0.0  ;;  %v12967_v25 = vpop.permute.xlu0 %2057  ;;  %v11211_v6 = vld [vmem:[%s15765_s5 + $0x50] sm:$0xff]  }
 0x285   : > { %v1608_v31 = vmax.f32 %v1431_v24, 0.0  ;;  %v1546_v15 = vadd.f32 %v1545_v23, %v12601_v53  ;;  %v1607_v32 = vmax.f32 %v1542_v33, 0.0  ;;  %v15864_v53 = vmov 0   ;;  %v12969_v11 = vpop.permute.xlu1 %2052  ;;  %v11210_v24 = vld [vmem:[%s15765_s5 + $0x48] sm:$0xff]  }
 0x286   : > { %v1610_v28 = vmax.f32 %v1544_v42, 0.0  ;;  %v1609_v43 = vmax.f32 %v1433_v41, 0.0 }
 0x287   : > { %v1768_v56 = vpack.c.bf16 %v1608_v31, %v1604_v60  ;;  %v1611_v49 = vmax.f32 %v1546_v15, 0.0  ;;  %v11212_v15 = vld [vmem:[%s15765_s5 + $0x58] sm:$0xff]  }
 0x288   : > { %v1770_v34 = vpack.c.bf16 %v1610_v28, %v1606_v58  ;;  %v1769_v12 = vpack.c.bf16 %v1609_v43, %v1605_v59  ;;  %v12976_v8 = vpop.permute.xlu0 %2067  ;;  %v11213_v28 = vld [vmem:[%s15765_s5 + $0x60] sm:$0xff]   ;;  %v11214_v43 = vld [vmem:[%s15765_s5 + $0x68] sm:$0xff]  }
 0x289   : > { %v1771_v9 = vpack.c.bf16 %v1611_v49, %v1607_v32  ;;  %v12978_v50 = vpop.permute.xlu1 %2062 }
 0x28a   : > { %2938 = vmatprep.subr.bf16.mxu0 %v1769_v12 }
 0x28b   : > { %3611 = vmatprep.subr.bf16.mxu1 %v1771_v9  ;;  %2939 = vmatpush1.bf16.msra.mxu0 %v1768_v56 }
 0x28c   : > { %3612 = vmatpush1.bf16.msra.mxu1 %v1770_v34  ;;  %v12983_v4 = vpop.permute.xlu0 %2077 }
 0x28d   : > { %v12985_v1 = vpop.permute.xlu1 %2072 }
 0x28e   : > { %2957 = vmatmul.mubr.bf16.vlgmr.msra.gmra.mrb[32].mxu0 %v11201_v40 }
 0x28f   : > { %3630 = vmatmul.mubr.bf16.vlgmr.msra.gmra.mrb[32].mxu1 %v11201_v40  ;;  %2966 = vmatprep.mubr.bf16.mxu0 %v15864_v53  ;;  %v11215_v40 = vld [vmem:[%s15765_s5 + $0x70] sm:$0xff]  }
 0x290   : > { %3639 = vmatprep.mubr.bf16.mxu1 %v15864_v53  ;;  %v12992_v0 = vpop.permute.xlu0 %2087 }
 0x291   : > { %v12994_v19 = vpop.permute.xlu1 %2082 }
 0x294   : > { %v12998_v38 = vpop.permute.xlu0 %2097 }
 0x295   : > { %v13000_v47 = vpop.permute.xlu1 %2092 }
 0x296   : > { %2967 = vmatmul.mubr.bf16.gmra.mrb[36].mxu0 %v11202_v45 }
 0x297   : > { %3640 = vmatmul.mubr.bf16.gmra.mrb[36].mxu1 %v11202_v45  ;;  %2976 = vmatprep.mubr.bf16.mxu0 %v15864_v53 }
 0x298   : > { %3649 = vmatprep.mubr.bf16.mxu1 %v15864_v53  ;;  %v13007_v37 = vpop.permute.xlu0 %2107 }
 0x299   : > { %v13009_v33 = vpop.permute.xlu1 %2102 }
 0x29c   : > { %v13014_v26 = vpop.permute.xlu0 %2117 }
 0x29d   : > { %v13016_v42 = vpop.permute.xlu1 %2112 }
 0x29e   : > { %2977 = vmatmul.mubr.bf16.gmra.mrb[40].mxu0 %v11203_v14 }
 0x29f   : > { %3650 = vmatmul.mubr.bf16.gmra.mrb[40].mxu1 %v11203_v14  ;;  %2986 = vmatprep.mubr.bf16.mxu0 %v15864_v53 }
 0x2a0   : > { %3659 = vmatprep.mubr.bf16.mxu1 %v15864_v53  ;;  %v13023_v23 = vpop.permute.xlu0 %2127 }
 0x2a1   : > { %v13025_v60 = vpop.permute.xlu1 %2122 }
 0x2a4   : > { %v13029_v31 = vpop.permute.xlu0 %2137 }
 0x2a5   : > { %v13031_v41 = vpop.permute.xlu1 %2132 }
 0x2a6   : > { %2987 = vmatmul.mubr.bf16.gmra.mrb[44].mxu0 %v11204_v22 }
 0x2a7   : > { %3660 = vmatmul.mubr.bf16.gmra.mrb[44].mxu1 %v11204_v22  ;;  %2996 = vmatprep.mubr.bf16.mxu0 %v15864_v53  ;;  %v11216_v22 = vld [vmem:[%s15765_s5 + $0x78] sm:$0xff]  }
 0x2a8   : > { %3669 = vmatprep.mubr.bf16.mxu1 %v15864_v53  ;;  %v13038_v58 = vpop.permute.xlu0 %2147 }
 0x2a9   : > { %15865 = vst [vmem:[#allocation21_spill] sm:$0xff] %v13038_v58  ;;  %v13040_v59 = vpop.permute.xlu1 %2142 }
 0x2aa   : > { %15866 = vst [vmem:[#allocation22_spill] sm:$0xff] %v13040_v59 }
 0x2ac   : > { %v13045_v32 = vpop.permute.xlu0 %2157 }
 0x2ad   : > { %15867 = vst [vmem:[#allocation23_spill] sm:$0xff] %v13045_v32  ;;  %v13047_v56 = vpop.permute.xlu1 %2152 }
 0x2ae   : > { %2997 = vmatmul.mubr.bf16.gmra.mrb[48].mxu0 %v11205_v17  ;;  %15868 = vst [vmem:[#allocation24_spill] sm:$0xff] %v13047_v56 }
 0x2af   : > { %3670 = vmatmul.mubr.bf16.gmra.mrb[48].mxu1 %v11205_v17  ;;  %3006 = vmatprep.mubr.bf16.mxu0 %v15864_v53 }
 0x2b0   : > { %3679 = vmatprep.mubr.bf16.mxu1 %v15864_v53  ;;  %v13054_v49 = vpop.permute.xlu0 %2167 }
 0x2b1   : > { %15869 = vst [vmem:[#allocation25_spill] sm:$0xff] %v13054_v49  ;;  %v13056_v34 = vpop.permute.xlu1 %2162 }
 0x2b2   : > { %15870 = vst [vmem:[#allocation26_spill] sm:$0xff] %v13056_v34 }
 0x2b4   : > { %v13060_v12 = vpop.permute.xlu0 %2177 }
 0x2b5   : > { %15871 = vst [vmem:[#allocation27_spill] sm:$0xff] %v13060_v12  ;;  %v13062_v9 = vpop.permute.xlu1 %2172 }
 0x2b6   : > { %3007 = vmatmul.mubr.bf16.gmra.mrb[52].mxu0 %v11206_v29  ;;  %15872 = vst [vmem:[#allocation28_spill] sm:$0xff] %v13062_v9 }
 0x2b7   : > { %3680 = vmatmul.mubr.bf16.gmra.mrb[52].mxu1 %v11206_v29  ;;  %3016 = vmatprep.mubr.bf16.mxu0 %v15864_v53 }
 0x2b8   : > { %3689 = vmatprep.mubr.bf16.mxu1 %v15864_v53  ;;  %v13069_v45 = vpop.permute.xlu0 %2187 }
 0x2b9   : > { %15873 = vst [vmem:[#allocation29_spill] sm:$0xff] %v13069_v45  ;;  %v13071_v14 = vpop.permute.xlu1 %2182 }
 0x2ba   : > { %15874 = vst [vmem:[#allocation30_spill] sm:$0xff] %v13071_v14 }
 0x2bc   : > { %v13076_v17 = vpop.permute.xlu0 %2197 }
 0x2bd   : > { %15875 = vst [vmem:[#allocation31_spill] sm:$0xff] %v13076_v17  ;;  %v13078_v29 = vpop.permute.xlu1 %2192 }
 0x2be   : > { %3017 = vmatmul.mubr.bf16.gmra.mrb[56].mxu0 %v11207_v10  ;;  %15876 = vst [vmem:[#allocation32_spill] sm:$0xff] %v13078_v29 }
 0x2bf   : > { %3690 = vmatmul.mubr.bf16.gmra.mrb[56].mxu1 %v11207_v10  ;;  %3026 = vmatprep.mubr.bf16.mxu0 %v15864_v53  ;;  %v11217_v10 = vld [vmem:[%s15765_s5 + $0x80] sm:$0xff]  }
 0x2c0   : > { %3699 = vmatprep.mubr.bf16.mxu1 %v15864_v53 }
 0x2c6   : > { %3027 = vmatmul.mubr.bf16.gmra.mrb[60].mxu0 %v11208_v36 }
 0x2c7   : > { %3700 = vmatmul.mubr.bf16.gmra.mrb[60].mxu1 %v11208_v36  ;;  %3036 = vmatprep.mubr.bf16.mxu0 %v15864_v53  ;;  %v13085_v36 = vpop.permute.xlu0 %2207 }
 0x2c8   : > { %3709 = vmatprep.mubr.bf16.mxu1 %v15864_v53  ;;  %15877 = vst [vmem:[#allocation33_spill] sm:$0xff] %v13085_v36  ;;  %v11228_v36 = vld [vmem:[%s15765_s5 + $0xd8] sm:$0xff]  }
 0x2ce   : > { %3037 = vmatmul.mubr.bf16.gmra.mrb[64].mxu0 %v11209_v52 }
 0x2cf   : > { %3710 = vmatmul.mubr.bf16.gmra.mrb[64].mxu1 %v11209_v52  ;;  %3046 = vmatprep.mubr.bf16.mxu0 %v15864_v53  ;;  %v13087_v52 = vpop.permute.xlu1 %2202 }
 0x2d0   : > { %3719 = vmatprep.mubr.bf16.mxu1 %v15864_v53  ;;  %15878 = vst [vmem:[#allocation34_spill] sm:$0xff] %v13087_v52 }
 0x2d6   : > { %3047 = vmatmul.mubr.bf16.gmra.mrb[68].mxu0 %v11210_v24 }
 0x2d7   : > { %3720 = vmatmul.mubr.bf16.gmra.mrb[68].mxu1 %v11210_v24  ;;  %3056 = vmatprep.mubr.bf16.mxu0 %v15864_v53  ;;  %v13091_v24 = vpop.permute.xlu0 %2217 }
 0x2d8   : > { %3729 = vmatprep.mubr.bf16.mxu1 %v15864_v53  ;;  %15879 = vst [vmem:[#allocation35_spill] sm:$0xff] %v13091_v24 }
 0x2de   : > { %3057 = vmatmul.mubr.bf16.gmra.mrb[72].mxu0 %v11211_v6 }
 0x2df   : > { %3730 = vmatmul.mubr.bf16.gmra.mrb[72].mxu1 %v11211_v6  ;;  %3066 = vmatprep.mubr.bf16.mxu0 %v15864_v53  ;;  %v13093_v6 = vpop.permute.xlu1 %2212 }
 0x2e0   : > { %3739 = vmatprep.mubr.bf16.mxu1 %v15864_v53  ;;  %15880 = vst [vmem:[#allocation36_spill] sm:$0xff] %v13093_v6 }
 0x2e6   : > { %3067 = vmatmul.mubr.bf16.gmra.mrb[76].mxu0 %v11212_v15 }
 0x2e7   : > { %3740 = vmatmul.mubr.bf16.gmra.mrb[76].mxu1 %v11212_v15  ;;  %3076 = vmatprep.mubr.bf16.mxu0 %v15864_v53  ;;  %v11218_v15 = vld [vmem:[%s15765_s5 + $0x88] sm:$0xff]  }
 0x2e8   : > { %3749 = vmatprep.mubr.bf16.mxu1 %v15864_v53 }
 0x2ee   : > { %3077 = vmatmul.mubr.bf16.gmra.mrb[80].mxu0 %v11213_v28 }
 0x2ef   : > { %3750 = vmatmul.mubr.bf16.gmra.mrb[80].mxu1 %v11213_v28  ;;  %3086 = vmatprep.mubr.bf16.mxu0 %v15864_v53  ;;  %v13100_v28 = vpop.permute.xlu0 %2227 }
 0x2f0   : > { %3759 = vmatprep.mubr.bf16.mxu1 %v15864_v53  ;;  %15881 = vst [vmem:[#allocation37_spill] sm:$0xff] %v13100_v28 }
 0x2f6   : > { %3087 = vmatmul.mubr.bf16.gmra.mrb[84].mxu0 %v11214_v43 }
 0x2f7   : > { %3760 = vmatmul.mubr.bf16.gmra.mrb[84].mxu1 %v11214_v43  ;;  %3096 = vmatprep.mubr.bf16.mxu0 %v15864_v53  ;;  %v13102_v43 = vpop.permute.xlu1 %2222 }
 0x2f8   : > { %3769 = vmatprep.mubr.bf16.mxu1 %v15864_v53  ;;  %15882 = vst [vmem:[#allocation38_spill] sm:$0xff] %v13102_v43 }
 0x2fe   : > { %3097 = vmatmul.mubr.bf16.gmra.mrb[88].mxu0 %v11215_v40 }
 0x2ff   : > { %3770 = vmatmul.mubr.bf16.gmra.mrb[88].mxu1 %v11215_v40  ;;  %3106 = vmatprep.mubr.bf16.mxu0 %v15864_v53  ;;  %v11219_v40 = vld [vmem:[%s15765_s5 + $0x90] sm:$0xff]  }
 0x300   : > { %3779 = vmatprep.mubr.bf16.mxu1 %v15864_v53 }
 0x306   : > { %3107 = vmatmul.mubr.bf16.gmra.mrb[92].mxu0 %v11216_v22 }
 0x307   : > { %3780 = vmatmul.mubr.bf16.gmra.mrb[92].mxu1 %v11216_v22  ;;  %3116 = vmatprep.mubr.bf16.mxu0 %v15864_v53  ;;  %v13107_v22 = vpop.permute.xlu0 %2237 }
 0x308   : > { %3789 = vmatprep.mubr.bf16.mxu1 %v15864_v53  ;;  %15883 = vst [vmem:[#allocation39_spill] sm:$0xff] %v13107_v22 }
 0x30b   : > { %v13116_v28 = vpop.permute.xlu0 %2247 }
 0x30c   : > { %15885 = vst [vmem:[#allocation41_spill] sm:$0xff] %v13116_v28 }
 0x30e   : > { %3117 = vmatmul.mubr.bf16.gmra.mrb[96].mxu0 %v11217_v10 }
 0x30f   : > { %3790 = vmatmul.mubr.bf16.gmra.mrb[96].mxu1 %v11217_v10  ;;  %3126 = vmatprep.mubr.bf16.mxu0 %v15864_v53  ;;  %v13109_v10 = vpop.permute.xlu1 %2232  ;;  %v13122_v22 = vpop.permute.xlu0 %2257 }
 0x310   : > { %3799 = vmatprep.mubr.bf16.mxu1 %v15864_v53  ;;  %15884 = vst [vmem:[#allocation40_spill] sm:$0xff] %v13109_v10  ;;  %15887 = vst [vmem:[#allocation43_spill] sm:$0xff] %v13122_v22  ;;  %v11221_v10 = vld [vmem:[%s15765_s5 + $0xa0] sm:$0xff]   ;;  %v11222_v22 = vld [vmem:[%s15765_s5 + $0xa8] sm:$0xff]  }
 0x313   : > { %v13118_v43 = vpop.permute.xlu1 %2242  ;;  %v13131_v28 = vpop.permute.xlu0 %2267 }
 0x314   : > { %15886 = vst [vmem:[#allocation42_spill] sm:$0xff] %v13118_v43  ;;  %15889 = vst [vmem:[#allocation45_spill] sm:$0xff] %v13131_v28 }
 0x316   : > { %3127 = vmatmul.mubr.bf16.gmra.mrb[100].mxu0 %v11218_v15 }
 0x317   : > { %3800 = vmatmul.mubr.bf16.gmra.mrb[100].mxu1 %v11218_v15  ;;  %3136 = vmatprep.mubr.bf16.mxu0 %v15864_v53  ;;  %v11220_v15 = vld [vmem:[%s15765_s5 + $0x98] sm:$0xff]   ;;  %v13138_v43 = vpop.permute.xlu0 %2277 }
 0x318   : > { %3809 = vmatprep.mubr.bf16.mxu1 %v15864_v53  ;;  %15891 = vst [vmem:[#allocation47_spill] sm:$0xff] %v13138_v43 }
 0x31b   : > { %v13147_v28 = vpop.permute.xlu0 %2287 }
 0x31c   : > { %15893 = vst [vmem:[#allocation49_spill] sm:$0xff] %v13147_v28 }
 0x31e   : > { %3137 = vmatmul.mubr.bf16.gmra.mrb[104].mxu0 %v11219_v40 }
 0x31f   : > { %3810 = vmatmul.mubr.bf16.gmra.mrb[104].mxu1 %v11219_v40  ;;  %3146 = vmatprep.mubr.bf16.mxu0 %v15864_v53  ;;  %v13124_v40 = vpop.permute.xlu1 %2252  ;;  %v13153_v43 = vpop.permute.xlu0 %2297 }
 0x320   : > { %3819 = vmatprep.mubr.bf16.mxu1 %v15864_v53  ;;  %15888 = vst [vmem:[#allocation44_spill] sm:$0xff] %v13124_v40  ;;  %15895 = vst [vmem:[#allocation51_spill] sm:$0xff] %v13153_v43  ;;  %v11225_v43 = vld [vmem:[%s15765_s5 + $0xc0] sm:$0xff]  }
 0x323   : > { %v13162_v28 = vpop.permute.xlu0 %2307 }
 0x324   : > { %15897 = vst [vmem:[#allocation53_spill] sm:$0xff] %v13162_v28 }
 0x326   : > { %3147 = vmatmul.mubr.bf16.gmra.mrb[108].mxu0 %v11220_v15 }
 0x327   : > { %3820 = vmatmul.mubr.bf16.gmra.mrb[108].mxu1 %v11220_v15  ;;  %3156 = vmatprep.mubr.bf16.mxu0 %v15864_v53  ;;  %v13133_v15 = vpop.permute.xlu1 %2262 }
 0x328   : > { %3829 = vmatprep.mubr.bf16.mxu1 %v15864_v53  ;;  %15890 = vst [vmem:[#allocation46_spill] sm:$0xff] %v13133_v15 }
 0x32b   : > { %v13140_v40 = vpop.permute.xlu1 %2272 }
 0x32c   : > { %15892 = vst [vmem:[#allocation48_spill] sm:$0xff] %v13140_v40  ;;  %v11224_v40 = vld [vmem:[%s15765_s5 + $0xb8] sm:$0xff]  }
 0x32e   : > { %3157 = vmatmul.mubr.bf16.gmra.mrb[112].mxu0 %v11221_v10 }
 0x32f   : > { %3830 = vmatmul.mubr.bf16.gmra.mrb[112].mxu1 %v11221_v10  ;;  %3166 = vmatprep.mubr.bf16.mxu0 %v15864_v53  ;;  %v11223_v10 = vld [vmem:[%s15765_s5 + $0xb0] sm:$0xff]   ;;  %v13149_v15 = vpop.permute.xlu1 %2282 }
 0x330   : > { %3839 = vmatprep.mubr.bf16.mxu1 %v15864_v53  ;;  %15894 = vst [vmem:[#allocation50_spill] sm:$0xff] %v13149_v15  ;;  %v13169_v15 = vpop.permute.xlu0 %2317 }
 0x331   : > { %15899 = vst [vmem:[#allocation55_spill] sm:$0xff] %v13169_v15 }
 0x334   : > { %v13178_v28 = vpop.permute.xlu0 %2327 }
 0x335   : > { %15901 = vst [vmem:[#allocation57_spill] sm:$0xff] %v13178_v28 }
 0x336   : > { %3167 = vmatmul.mubr.bf16.gmra.mrb[116].mxu0 %v11222_v22 }
 0x337   : > { %3840 = vmatmul.mubr.bf16.gmra.mrb[116].mxu1 %v11222_v22  ;;  %3176 = vmatprep.mubr.bf16.mxu0 %v15864_v53  ;;  %v13155_v22 = vpop.permute.xlu1 %2292 }
 0x338   : > { %3849 = vmatprep.mubr.bf16.mxu1 %v15864_v53  ;;  %15896 = vst [vmem:[#allocation52_spill] sm:$0xff] %v13155_v22  ;;  %v13184_v15 = vpop.permute.xlu0 %2337 }
 0x339   : > { %15903 = vst [vmem:[#allocation59_spill] sm:$0xff] %v13184_v15 }
 0x33c   : > { %v13193_v28 = vpop.permute.xlu0 %2347 }
 0x33d   : > { %15905 = vst [vmem:[#allocation61_spill] sm:$0xff] %v13193_v28 }
 0x33e   : > { %3177 = vmatmul.mubr.bf16.gmra.mrb[120].mxu0 %v11223_v10 }
 0x33f   : > { %3850 = vmatmul.mubr.bf16.gmra.mrb[120].mxu1 %v11223_v10  ;;  %3186 = vmatprep.mubr.bf16.mxu0 %v15864_v53  ;;  %v13164_v10 = vpop.permute.xlu1 %2302 }
 0x340   : > { %3859 = vmatprep.mubr.bf16.mxu1 %v15864_v53  ;;  %15898 = vst [vmem:[#allocation54_spill] sm:$0xff] %v13164_v10 }
 0x343   : > { %v13171_v22 = vpop.permute.xlu1 %2312 }
 0x344   : > { %15900 = vst [vmem:[#allocation56_spill] sm:$0xff] %v13171_v22  ;;  %v11227_v22 = vld [vmem:[%s15765_s5 + $0xd0] sm:$0xff]  }
 0x346   : > { %3187 = vmatmul.mubr.bf16.gmra.mrb[124].mxu0 %v11224_v40 }
 0x347   : > { %3860 = vmatmul.mubr.bf16.gmra.mrb[124].mxu1 %v11224_v40  ;;  %3196 = vmatprep.mubr.bf16.mxu0 %v15864_v53  ;;  %v11226_v40 = vld [vmem:[%s15765_s5 + $0xc8] sm:$0xff]   ;;  %v13180_v10 = vpop.permute.xlu1 %2322 }
 0x348   : > { %3869 = vmatprep.mubr.bf16.mxu1 %v15864_v53  ;;  %15902 = vst [vmem:[#allocation58_spill] sm:$0xff] %v13180_v10 }
 0x34e   : > { %3197 = vmatmul.mubr.bf16.gmra.mrb[128].mxu0 %v11225_v43 }
 0x34f   : > { %3870 = vmatmul.mubr.bf16.gmra.mrb[128].mxu1 %v11225_v43  ;;  %3206 = vmatprep.mubr.bf16.mxu0 %v15864_v53  ;;  %v13186_v43 = vpop.permute.xlu1 %2332 }
 0x350   : > { %3879 = vmatprep.mubr.bf16.mxu1 %v15864_v53  ;;  %15904 = vst [vmem:[#allocation60_spill] sm:$0xff] %v13186_v43 }
 0x356   : > { %3207 = vmatmul.mubr.bf16.gmra.mrb[132].mxu0 %v11226_v40 }
 0x357   : > { %3880 = vmatmul.mubr.bf16.gmra.mrb[132].mxu1 %v11226_v40  ;;  %3216 = vmatprep.mubr.bf16.mxu0 %v15864_v53  ;;  %v13195_v40 = vpop.permute.xlu1 %2342 }
 0x358   : > { %3889 = vmatprep.mubr.bf16.mxu1 %v15864_v53  ;;  %15906 = vst [vmem:[#allocation62_spill] sm:$0xff] %v13195_v40 }
 0x35e   : > { %3217 = vmatmul.mubr.bf16.gmra.mrb[136].mxu0 %v11227_v22 }
 0x35f   : > { %3890 = vmatmul.mubr.bf16.gmra.mrb[136].mxu1 %v11227_v22  ;;  %3226 = vmatprep.mubr.bf16.mxu0 %v15864_v53 }
 0x360   : > { %3899 = vmatprep.mubr.bf16.mxu1 %v15864_v53 }
 0x361   : > { %v2958_v10 = vpop.f32.mrb[32].mxu0 }
 0x362   : > { %v3631_v24 = vpop.f32.mrb[32].mxu1  ;;  %v2959_v15 = vadd.f32 %v2958_v10, %v12736_v51  ;;  %v2960_v6 = vpop.f32.mrb[33].mxu0 }
 0x363   : > { %v3633_v43 = vpop.f32.mrb[33].mxu1  ;;  %v3632_v22 = vadd.f32 %v3631_v24, %v12736_v51  ;;  %v2961_v52 = vadd.f32 %v2960_v6, %v12736_v51  ;;  %v2962_v17 = vpop.f32.mrb[34].mxu0 }
 0x364   : > { %v3635_v29 = vpop.f32.mrb[34].mxu1  ;;  %v4270_v45 = vmax.f32 %v2959_v15, 0.0  ;;  %v2963_v28 = vadd.f32 %v2962_v17, %v12619_v35  ;;  %v2964_v40 = vpop.f32.mrb[35].mxu0  ;;  %v3634_v10 = vadd.f32 %v3633_v43, %v12736_v51 }
 0x365   : > { %v3637_v14 = vpop.f32.mrb[35].mxu1  ;;  %v4271_v12 = vmax.f32 %v2961_v52, 0.0  ;;  %v3636_v9 = vadd.f32 %v3635_v29, %v12619_v35  ;;  %v2965_v49 = vadd.f32 %v2964_v40, %v12619_v35  ;;  %v4272_v24 = vmax.f32 %v3632_v22, 0.0  ;;  %v13210_v17 = vpop.permute.xlu0 %2357 }
 0x366   : > { %v4274_v34 = vmax.f32 %v2963_v28, 0.0  ;;  %v3638_v32 = vadd.f32 %v3637_v14, %v12619_v35  ;;  %3227 = vmatmul.mubr.bf16.gmra.mrb[140].mxu0 %v11228_v36  ;;  %15907 = vst [vmem:[#allocation63_spill] sm:$0xff] %v13210_v17  ;;  %v13212_v52 = vpop.permute.xlu1 %2352  ;;  %v4273_v51 = vmax.f32 %v3634_v10, 0.0 }
 0x367   : > { %3900 = vmatmul.mubr.bf16.gmra.mrb[140].mxu1 %v11228_v36  ;;  %v4910_v6 = vmax.f32 %v4270_v45, %v4271_v12  ;;  %v4275_v56 = vmax.f32 %v2965_v49, 0.0  ;;  %3236 = vmatprep.mubr.bf16.mxu0 %v15864_v53  ;;  %15908 = vst [vmem:[#allocation64_spill] sm:$0xff] %v13212_v52  ;;  %v4276_v15 = vmax.f32 %v3636_v9, 0.0  ;;  %v11229_v49 = vld [vmem:[%s15765_s5 + $0xe0] sm:$0xff]  }
 0x368   : > { %3909 = vmatprep.mubr.bf16.mxu1 %v15864_v53  ;;  %v4277_v35 = vmax.f32 %v3638_v32, 0.0 }
 0x369   : > { %v4911_v29 = vmax.f32 %v4910_v6, %v4272_v24  ;;  %v4915_v43 = vmax.f32 %v4274_v34, %v4275_v56  ;;  %v2968_v28 = vpop.f32.mrb[36].mxu0 }
 0x36a   : > { %v3641_v40 = vpop.f32.mrb[36].mxu1  ;;  %v2969_v14 = vadd.f32 %v2968_v28, %v12752_v55  ;;  %v2970_v36 = vpop.f32.mrb[37].mxu0 }
 0x36b   : > { %v3643_v12 = vpop.f32.mrb[37].mxu1  ;;  %v4912_v45 = vmax.f32 %v4911_v29, %v4273_v51  ;;  %v4916_v22 = vmax.f32 %v4915_v43, %v4276_v15  ;;  %v3642_v17 = vadd.f32 %v3641_v40, %v12752_v55  ;;  %v2971_v10 = vadd.f32 %v2970_v36, %v12752_v55  ;;  %v2972_v24 = vpop.f32.mrb[38].mxu0 }
 0x36c   : > { %v3645_v9 = vpop.f32.mrb[38].mxu1  ;;  %v4278_v56 = vmax.f32 %v2969_v14, 0.0  ;;  %v3644_v34 = vadd.f32 %v3643_v12, %v12752_v55  ;;  %v2973_v32 = vadd.f32 %v2972_v24, %v12638_v13  ;;  %v2974_v6 = vpop.f32.mrb[39].mxu0 }
 0x36d   : > { %v3647_v28 = vpop.f32.mrb[39].mxu1  ;;  %v4917_v52 = vmax.f32 %v4916_v22, %v4277_v35  ;;  %v4279_v58 = vmax.f32 %v2971_v10, 0.0  ;;  %v3646_v59 = vadd.f32 %v3645_v9, %v12638_v13  ;;  %v2975_v51 = vadd.f32 %v2974_v6, %v12638_v13  ;;  %4913 = vmax.xlane.f32.xlu1 %v4912_v45  ;;  %v13226_v55 = vpop.permute.xlu0 %2367 }
 0x36e   : > { %v4282_v29 = vmax.f32 %v2973_v32, 0.0  ;;  %v3648_v15 = vadd.f32 %v3647_v28, %v12638_v13  ;;  %3237 = vmatmul.mubr.bf16.gmra.mrb[144].mxu0 %v11229_v49  ;;  %v4280_v43 = vmax.f32 %v3642_v17, 0.0  ;;  %v13228_v35 = vpop.permute.xlu1 %2362  ;;  %v4281_v36 = vmax.f32 %v3644_v34, 0.0 }
 0x36f   : > { %3910 = vmatmul.mubr.bf16.gmra.mrb[144].mxu1 %v11229_v49  ;;  %v4920_v40 = vmax.f32 %v4278_v56, %v4279_v58  ;;  %v4283_v14 = vmax.f32 %v2975_v51, 0.0  ;;  %4918 = vmax.xlane.f32.xlu0 %v4917_v52  ;;  %v4284_v45 = vmax.f32 %v3646_v59, 0.0  ;;  %v11230_v52 = vld [vmem:[%s15765_s5 + $0xe8] sm:$0xff]  }
 0x370   : > { %3246 = vmatprep.mubr.bf16.mxu0 %v15864_v53  ;;  %3919 = vmatprep.mubr.bf16.mxu1 %v15864_v53  ;;  %v4285_v24 = vmax.f32 %v3648_v15, 0.0 }
 0x371   : > { %v4921_v12 = vmax.f32 %v4920_v40, %v4280_v43  ;;  %v4925_v22 = vmax.f32 %v4282_v29, %v4283_v14  ;;  %v2978_v10 = vpop.f32.mrb[40].mxu0 }
 0x372   : > { %v3651_v13 = vpop.f32.mrb[40].mxu1  ;;  %v2979_v17 = vadd.f32 %v2978_v10, %v12762_v48  ;;  %v2980_v58 = vpop.f32.mrb[41].mxu0 }
 0x373   : > { %v3653_v49 = vpop.f32.mrb[41].mxu1  ;;  %v4922_v9 = vmax.f32 %v4921_v12, %v4281_v36  ;;  %v4926_v56 = vmax.f32 %v4925_v22, %v4284_v45  ;;  %v3652_v32 = vadd.f32 %v3651_v13, %v12762_v48  ;;  %v2981_v34 = vadd.f32 %v2980_v58, %v12762_v48  ;;  %v2982_v6 = vpop.f32.mrb[42].mxu0 }
 0x374   : > { %v3655_v59 = vpop.f32.mrb[42].mxu1  ;;  %v4286_v28 = vmax.f32 %v2979_v17, 0.0  ;;  %v3654_v51 = vadd.f32 %v3653_v49, %v12762_v48  ;;  %v2983_v29 = vadd.f32 %v2982_v6, %v12658_v7  ;;  %v2984_v15 = vpop.f32.mrb[43].mxu0 }
 0x375   : > { %v3657_v43 = vpop.f32.mrb[43].mxu1  ;;  %v4927_v40 = vmax.f32 %v4926_v56, %v4285_v24  ;;  %v4287_v14 = vmax.f32 %v2981_v34, 0.0  ;;  %v3656_v10 = vadd.f32 %v3655_v59, %v12658_v7  ;;  %v2985_v36 = vadd.f32 %v2984_v15, %v12658_v7  ;;  %4923 = vmax.xlane.f32.xlu0 %v4922_v9  ;;  %v13243_v48 = vpop.permute.xlu0 %2377 }
 0x376   : > { %v4290_v12 = vmax.f32 %v2983_v29, 0.0  ;;  %v3658_v45 = vadd.f32 %v3657_v43, %v12658_v7  ;;  %3247 = vmatmul.mubr.bf16.gmra.mrb[148].mxu0 %v11230_v52  ;;  %v4288_v22 = vmax.f32 %v3652_v32, 0.0  ;;  %v13245_v24 = vpop.permute.xlu1 %2372  ;;  %v4289_v58 = vmax.f32 %v3654_v51, 0.0 }
 0x377   : > { %3920 = vmatmul.mubr.bf16.gmra.mrb[148].mxu1 %v11230_v52  ;;  %v4930_v13 = vmax.f32 %v4286_v28, %v4287_v14  ;;  %v4291_v17 = vmax.f32 %v2985_v36, 0.0  ;;  %4928 = vmax.xlane.f32.xlu1 %v4927_v40  ;;  %v4292_v9 = vmax.f32 %v3656_v10, 0.0  ;;  %v11231_v28 = vld [vmem:[%s15765_s5 + $0xf0] sm:$0xff]  }
 0x378   : > { %3256 = vmatprep.mubr.bf16.mxu0 %v15864_v53  ;;  %3929 = vmatprep.mubr.bf16.mxu1 %v15864_v53  ;;  %v4293_v6 = vmax.f32 %v3658_v45, 0.0 }
 0x379   : > { %v4931_v49 = vmax.f32 %v4930_v13, %v4288_v22  ;;  %v4935_v56 = vmax.f32 %v4290_v12, %v4291_v17  ;;  %v2988_v34 = vpop.f32.mrb[44].mxu0 }
 0x37a   : > { %v3661_v7 = vpop.f32.mrb[44].mxu1  ;;  %v2989_v52 = vadd.f32 %v2988_v34, %v12778_v39  ;;  %v2990_v32 = vpop.f32.mrb[45].mxu0 }
 0x37b   : > { %v3663_v59 = vpop.f32.mrb[45].mxu1  ;;  %v4932_v29 = vmax.f32 %v4931_v49, %v4289_v58  ;;  %v4936_v15 = vmax.f32 %v4935_v56, %v4292_v9  ;;  %v3662_v43 = vadd.f32 %v3661_v7, %v12778_v39  ;;  %v2991_v51 = vadd.f32 %v2990_v32, %v12778_v39  ;;  %v2992_v40 = vpop.f32.mrb[46].mxu0 }
 0x37c   : > { %v3665_v14 = vpop.f32.mrb[46].mxu1  ;;  %v4294_v10 = vmax.f32 %v2989_v52, 0.0  ;;  %v3664_v36 = vadd.f32 %v3663_v59, %v12778_v39  ;;  %v2993_v12 = vadd.f32 %v2992_v40, %v12674_v44  ;;  %v2994_v45 = vpop.f32.mrb[47].mxu0 }
 0x37d   : > { %v3667_v22 = vpop.f32.mrb[47].mxu1  ;;  %v4937_v13 = vmax.f32 %v4936_v15, %v4293_v6  ;;  %v4295_v17 = vmax.f32 %v2991_v51, 0.0  ;;  %v3666_v34 = vadd.f32 %v3665_v14, %v12674_v44  ;;  %v2995_v58 = vadd.f32 %v2994_v45, %v12674_v44  ;;  %4933 = vmax.xlane.f32.xlu0 %v4932_v29  ;;  %v13260_v39 = vpop.permute.xlu0 %2387 }
 0x37e   : > { %v4298_v49 = vmax.f32 %v2993_v12, 0.0  ;;  %v3668_v9 = vadd.f32 %v3667_v22, %v12674_v44  ;;  %3257 = vmatmul.mubr.bf16.gmra.mrb[152].mxu0 %v11231_v28  ;;  %v4296_v56 = vmax.f32 %v3662_v43, 0.0  ;;  %v13262_v6 = vpop.permute.xlu1 %2382  ;;  %v4297_v32 = vmax.f32 %v3664_v36, 0.0 }
 0x37f   : > { %3930 = vmatmul.mubr.bf16.gmra.mrb[152].mxu1 %v11231_v28  ;;  %v4940_v7 = vmax.f32 %v4294_v10, %v4295_v17  ;;  %v4299_v52 = vmax.f32 %v2995_v58, 0.0  ;;  %4938 = vmax.xlane.f32.xlu1 %v4937_v13  ;;  %v4300_v29 = vmax.f32 %v3666_v34, 0.0  ;;  %v11232_v10 = vld [vmem:[%s15765_s5 + $0xf8] sm:$0xff]  }
 0x380   : > { %3266 = vmatprep.mubr.bf16.mxu0 %v15864_v53  ;;  %3939 = vmatprep.mubr.bf16.mxu1 %v15864_v53  ;;  %v4301_v40 = vmax.f32 %v3668_v9, 0.0 }
 0x381   : > { %v4941_v59 = vmax.f32 %v4940_v7, %v4296_v56  ;;  %v4945_v15 = vmax.f32 %v4298_v49, %v4299_v52  ;;  %v2998_v51 = vpop.f32.mrb[48].mxu0 }
 0x382   : > { %v3671_v44 = vpop.f32.mrb[48].mxu1  ;;  %v2999_v28 = vadd.f32 %v2998_v51, %v12788_v57  ;;  %v3000_v43 = vpop.f32.mrb[49].mxu0 }
 0x383   : > { %v3673_v14 = vpop.f32.mrb[49].mxu1  ;;  %v4942_v12 = vmax.f32 %v4941_v59, %v4297_v32  ;;  %v4946_v45 = vmax.f32 %v4945_v15, %v4300_v29  ;;  %v3672_v22 = vadd.f32 %v3671_v44, %v12788_v57  ;;  %v3001_v36 = vadd.f32 %v3000_v43, %v12788_v57  ;;  %v3002_v13 = vpop.f32.mrb[50].mxu0 }
 0x384   : > { %v3675_v17 = vpop.f32.mrb[50].mxu1  ;;  %v4302_v34 = vmax.f32 %v2999_v28, 0.0  ;;  %v3674_v58 = vadd.f32 %v3673_v14, %v12788_v57  ;;  %v3003_v49 = vadd.f32 %v3002_v13, %v12692_v3  ;;  %v3004_v9 = vpop.f32.mrb[51].mxu0 }
 0x385   : > { %v3677_v56 = vpop.f32.mrb[51].mxu1  ;;  %v4947_v7 = vmax.f32 %v4946_v45, %v4301_v40  ;;  %v4303_v52 = vmax.f32 %v3001_v36, 0.0  ;;  %v3676_v51 = vadd.f32 %v3675_v17, %v12692_v3  ;;  %v3005_v32 = vadd.f32 %v3004_v9, %v12692_v3  ;;  %4943 = vmax.xlane.f32.xlu0 %v4942_v12  ;;  %v13277_v57 = vpop.permute.xlu0 %2397 }
 0x386   : > { %v4306_v59 = vmax.f32 %v3003_v49, 0.0  ;;  %v3678_v29 = vadd.f32 %v3677_v56, %v12692_v3  ;;  %3267 = vmatmul.mubr.bf16.gmra.mrb[156].mxu0 %v11232_v10  ;;  %v4304_v15 = vmax.f32 %v3672_v22, 0.0  ;;  %v13279_v40 = vpop.permute.xlu1 %2392  ;;  %v4305_v43 = vmax.f32 %v3674_v58, 0.0 }
 0x387   : > { %3940 = vmatmul.mubr.bf16.gmra.mrb[156].mxu1 %v11232_v10  ;;  %v4950_v44 = vmax.f32 %v4302_v34, %v4303_v52  ;;  %v4307_v28 = vmax.f32 %v3005_v32, 0.0  ;;  %4948 = vmax.xlane.f32.xlu1 %v4947_v7  ;;  %v4308_v12 = vmax.f32 %v3676_v51, 0.0  ;;  %v11233_v34 = vld [vmem:[%s15765_s5 + $0x100] sm:$0xff]  }
 0x388   : > { %3276 = vmatprep.mubr.bf16.mxu0 %v15864_v53  ;;  %3949 = vmatprep.mubr.bf16.mxu1 %v15864_v53  ;;  %v4309_v13 = vmax.f32 %v3678_v29, 0.0 }
 0x389   : > { %v4951_v14 = vmax.f32 %v4950_v44, %v4304_v15  ;;  %v4955_v45 = vmax.f32 %v4306_v59, %v4307_v28  ;;  %v3008_v36 = vpop.f32.mrb[52].mxu0 }
 0x38a   : > { %v3681_v3 = vpop.f32.mrb[52].mxu1  ;;  %v3009_v10 = vadd.f32 %v3008_v36, %v12804_v62  ;;  %v3010_v22 = vpop.f32.mrb[53].mxu0 }
 0x38b   : > { %v3683_v17 = vpop.f32.mrb[53].mxu1  ;;  %v4952_v49 = vmax.f32 %v4951_v14, %v4305_v43  ;;  %v4956_v9 = vmax.f32 %v4955_v45, %v4308_v12  ;;  %v3682_v56 = vadd.f32 %v3681_v3, %v12804_v62  ;;  %v3011_v58 = vadd.f32 %v3010_v22, %v12804_v62  ;;  %v3012_v7 = vpop.f32.mrb[54].mxu0 }
 0x38c   : > { %v3685_v52 = vpop.f32.mrb[54].mxu1  ;;  %v4310_v51 = vmax.f32 %v3009_v10, 0.0  ;;  %v3684_v32 = vadd.f32 %v3683_v17, %v12804_v62  ;;  %v3013_v59 = vadd.f32 %v3012_v7, %v12711_v21  ;;  %v3014_v29 = vpop.f32.mrb[55].mxu0 }
 0x38d   : > { %v3687_v15 = vpop.f32.mrb[55].mxu1  ;;  %v4957_v44 = vmax.f32 %v4956_v9, %v4309_v13  ;;  %v4311_v28 = vmax.f32 %v3011_v58, 0.0  ;;  %v3686_v36 = vadd.f32 %v3685_v52, %v12711_v21  ;;  %v3015_v43 = vadd.f32 %v3014_v29, %v12711_v21  ;;  %4953 = vmax.xlane.f32.xlu0 %v4952_v49  ;;  %v13294_v62 = vpop.permute.xlu0 %2407 }
 0x38e   : > { %v4314_v14 = vmax.f32 %v3013_v59, 0.0  ;;  %v3688_v12 = vadd.f32 %v3687_v15, %v12711_v21  ;;  %3277 = vmatmul.mubr.bf16.gmra.mrb[160].mxu0 %v11233_v34  ;;  %v4312_v45 = vmax.f32 %v3682_v56, 0.0  ;;  %v13296_v13 = vpop.permute.xlu1 %2402  ;;  %v4313_v22 = vmax.f32 %v3684_v32, 0.0 }
 0x38f   : > { %3950 = vmatmul.mubr.bf16.gmra.mrb[160].mxu1 %v11233_v34  ;;  %v4960_v3 = vmax.f32 %v4310_v51, %v4311_v28  ;;  %v4315_v10 = vmax.f32 %v3015_v43, 0.0  ;;  %4958 = vmax.xlane.f32.xlu1 %v4957_v44  ;;  %v4316_v49 = vmax.f32 %v3686_v36, 0.0  ;;  %v11234_v51 = vld [vmem:[%s15765_s5 + $0x108] sm:$0xff]  }
 0x390   : > { %3286 = vmatprep.mubr.bf16.mxu0 %v15864_v53  ;;  %3959 = vmatprep.mubr.bf16.mxu1 %v15864_v53  ;;  %v4317_v7 = vmax.f32 %v3688_v12, 0.0 }
 0x391   : > { %v4961_v17 = vmax.f32 %v4960_v3, %v4312_v45  ;;  %v4965_v9 = vmax.f32 %v4314_v14, %v4315_v10  ;;  %v3018_v58 = vpop.f32.mrb[56].mxu0 }
 0x392   : > { %v3691_v21 = vpop.f32.mrb[56].mxu1  ;;  %v3019_v34 = vadd.f32 %v3018_v58, %v12814_v63  ;;  %v3020_v56 = vpop.f32.mrb[57].mxu0 }
 0x393   : > { %v3693_v52 = vpop.f32.mrb[57].mxu1  ;;  %v4962_v59 = vmax.f32 %v4961_v17, %v4313_v22  ;;  %v4966_v29 = vmax.f32 %v4965_v9, %v4316_v49  ;;  %v3692_v15 = vadd.f32 %v3691_v21, %v12814_v63  ;;  %v3021_v32 = vadd.f32 %v3020_v56, %v12814_v63  ;;  %v3022_v44 = vpop.f32.mrb[58].mxu0 }
 0x394   : > { %v3695_v28 = vpop.f32.mrb[58].mxu1  ;;  %v4318_v36 = vmax.f32 %v3019_v34, 0.0  ;;  %v3694_v43 = vadd.f32 %v3693_v52, %v12814_v63  ;;  %v3023_v14 = vadd.f32 %v3022_v44, %v12728_v30  ;;  %v3024_v12 = vpop.f32.mrb[59].mxu0 }
 0x395   : > { %v3697_v45 = vpop.f32.mrb[59].mxu1  ;;  %v4967_v3 = vmax.f32 %v4966_v29, %v4317_v7  ;;  %v4319_v10 = vmax.f32 %v3021_v32, 0.0  ;;  %v3696_v58 = vadd.f32 %v3695_v28, %v12728_v30  ;;  %v3025_v22 = vadd.f32 %v3024_v12, %v12728_v30  ;;  %4963 = vmax.xlane.f32.xlu0 %v4962_v59  ;;  %v13311_v63 = vpop.permute.xlu0 %2417 }
 0x396   : > { %v4322_v17 = vmax.f32 %v3023_v14, 0.0  ;;  %v3698_v49 = vadd.f32 %v3697_v45, %v12728_v30  ;;  %3287 = vmatmul.mubr.bf16.gmra.mrb[164].mxu0 %v11234_v51  ;;  %v4320_v9 = vmax.f32 %v3692_v15, 0.0  ;;  %v13313_v7 = vpop.permute.xlu1 %2412  ;;  %v4321_v56 = vmax.f32 %v3694_v43, 0.0 }
 0x397   : > { %3960 = vmatmul.mubr.bf16.gmra.mrb[164].mxu1 %v11234_v51  ;;  %v4970_v21 = vmax.f32 %v4318_v36, %v4319_v10  ;;  %v4323_v34 = vmax.f32 %v3025_v22, 0.0  ;;  %4968 = vmax.xlane.f32.xlu1 %v4967_v3  ;;  %v4324_v59 = vmax.f32 %v3696_v58, 0.0  ;;  %v11235_v36 = vld [vmem:[%s15765_s5 + $0x110] sm:$0xff]  }
 0x398   : > { %3296 = vmatprep.mubr.bf16.mxu0 %v15864_v53  ;;  %3969 = vmatprep.mubr.bf16.mxu1 %v15864_v53  ;;  %v4325_v44 = vmax.f32 %v3698_v49, 0.0 }
 0x399   : > { %v4971_v52 = vmax.f32 %v4970_v21, %v4320_v9  ;;  %v4975_v29 = vmax.f32 %v4322_v17, %v4323_v34  ;;  %v3028_v32 = vpop.f32.mrb[60].mxu0 }
 0x39a   : > { %v3701_v30 = vpop.f32.mrb[60].mxu1  ;;  %v3029_v51 = vadd.f32 %v3028_v32, %v12830_v20  ;;  %v3030_v15 = vpop.f32.mrb[61].mxu0 }
 0x39b   : > { %v3703_v28 = vpop.f32.mrb[61].mxu1  ;;  %v4972_v14 = vmax.f32 %v4971_v52, %v4321_v56  ;;  %v4976_v12 = vmax.f32 %v4975_v29, %v4324_v59  ;;  %v3702_v45 = vadd.f32 %v3701_v30, %v12830_v20  ;;  %v3031_v43 = vadd.f32 %v3030_v15, %v12830_v20  ;;  %v3032_v3 = vpop.f32.mrb[62].mxu0 }
 0x39c   : > { %v3705_v10 = vpop.f32.mrb[62].mxu1  ;;  %v4326_v58 = vmax.f32 %v3029_v51, 0.0  ;;  %v3704_v22 = vadd.f32 %v3703_v28, %v12830_v20  ;;  %v3033_v17 = vadd.f32 %v3032_v3, %v12741_v27  ;;  %v3034_v49 = vpop.f32.mrb[63].mxu0 }
 0x39d   : > { %v3707_v9 = vpop.f32.mrb[63].mxu1  ;;  %v4977_v21 = vmax.f32 %v4976_v12, %v4325_v44  ;;  %v4327_v34 = vmax.f32 %v3031_v43, 0.0  ;;  %v3706_v32 = vadd.f32 %v3705_v10, %v12741_v27  ;;  %v3035_v56 = vadd.f32 %v3034_v49, %v12741_v27  ;;  %4973 = vmax.xlane.f32.xlu0 %v4972_v14  ;;  %v13328_v20 = vpop.permute.xlu0 %2427 }
 0x39e   : > { %v4330_v52 = vmax.f32 %v3033_v17, 0.0  ;;  %v3708_v59 = vadd.f32 %v3707_v9, %v12741_v27  ;;  %3297 = vmatmul.mubr.bf16.gmra.mrb[168].mxu0 %v11235_v36  ;;  %v4328_v29 = vmax.f32 %v3702_v45, 0.0  ;;  %v13330_v44 = vpop.permute.xlu1 %2422  ;;  %v4329_v15 = vmax.f32 %v3704_v22, 0.0 }
 0x39f   : > { %3970 = vmatmul.mubr.bf16.gmra.mrb[168].mxu1 %v11235_v36  ;;  %v4980_v30 = vmax.f32 %v4326_v58, %v4327_v34  ;;  %v4331_v51 = vmax.f32 %v3035_v56, 0.0  ;;  %4978 = vmax.xlane.f32.xlu1 %v4977_v21  ;;  %v4332_v14 = vmax.f32 %v3706_v32, 0.0  ;;  %v11236_v58 = vld [vmem:[%s15765_s5 + $0x118] sm:$0xff]  }
 0x3a0   : > { %3306 = vmatprep.mubr.bf16.mxu0 %v15864_v53  ;;  %3979 = vmatprep.mubr.bf16.mxu1 %v15864_v53  ;;  %v4333_v3 = vmax.f32 %v3708_v59, 0.0 }
 0x3a1   : > { %v4981_v28 = vmax.f32 %v4980_v30, %v4328_v29  ;;  %v4985_v12 = vmax.f32 %v4330_v52, %v4331_v51  ;;  %v3038_v43 = vpop.f32.mrb[64].mxu0 }
 0x3a2   : > { %v3711_v27 = vpop.f32.mrb[64].mxu1  ;;  %v3039_v36 = vadd.f32 %v3038_v43, %v12837_v5  ;;  %v3040_v45 = vpop.f32.mrb[65].mxu0 }
 0x3a3   : > { %v3713_v10 = vpop.f32.mrb[65].mxu1  ;;  %v4982_v17 = vmax.f32 %v4981_v28, %v4329_v15  ;;  %v4986_v49 = vmax.f32 %v4985_v12, %v4332_v14  ;;  %v3712_v9 = vadd.f32 %v3711_v27, %v12837_v5  ;;  %v3041_v22 = vadd.f32 %v3040_v45, %v12837_v5  ;;  %v3042_v21 = vpop.f32.mrb[66].mxu0 }
 0x3a4   : > { %v3715_v34 = vpop.f32.mrb[66].mxu1  ;;  %v4334_v32 = vmax.f32 %v3039_v36, 0.0  ;;  %v3714_v56 = vadd.f32 %v3713_v10, %v12837_v5  ;;  %v3043_v52 = vadd.f32 %v3042_v21, %v12754_v16  ;;  %v3044_v59 = vpop.f32.mrb[67].mxu0 }
 0x3a5   : > { %v3717_v29 = vpop.f32.mrb[67].mxu1  ;;  %v4987_v30 = vmax.f32 %v4986_v49, %v4333_v3  ;;  %v4335_v51 = vmax.f32 %v3041_v22, 0.0  ;;  %v3716_v43 = vadd.f32 %v3715_v34, %v12754_v16  ;;  %v3045_v15 = vadd.f32 %v3044_v59, %v12754_v16  ;;  %4983 = vmax.xlane.f32.xlu0 %v4982_v17  ;;  %v13345_v5 = vpop.permute.xlu0 %2437 }
 0x3a6   : > { %v4338_v28 = vmax.f32 %v3043_v52, 0.0  ;;  %v3718_v14 = vadd.f32 %v3717_v29, %v12754_v16  ;;  %3307 = vmatmul.mubr.bf16.gmra.mrb[172].mxu0 %v11236_v58  ;;  %v4336_v12 = vmax.f32 %v3712_v9, 0.0  ;;  %v13347_v3 = vpop.permute.xlu1 %2432  ;;  %v4337_v45 = vmax.f32 %v3714_v56, 0.0 }
 0x3a7   : > { %3980 = vmatmul.mubr.bf16.gmra.mrb[172].mxu1 %v11236_v58  ;;  %v4990_v27 = vmax.f32 %v4334_v32, %v4335_v51  ;;  %v4339_v36 = vmax.f32 %v3045_v15, 0.0  ;;  %4988 = vmax.xlane.f32.xlu1 %v4987_v30  ;;  %v4340_v17 = vmax.f32 %v3716_v43, 0.0  ;;  %v11237_v32 = vld [vmem:[%s15765_s5 + $0x120] sm:$0xff]  }
 0x3a8   : > { %3316 = vmatprep.mubr.bf16.mxu0 %v15864_v53  ;;  %3989 = vmatprep.mubr.bf16.mxu1 %v15864_v53  ;;  %v4341_v21 = vmax.f32 %v3718_v14, 0.0 }
 0x3a9   : > { %v4991_v10 = vmax.f32 %v4990_v27, %v4336_v12  ;;  %v4995_v49 = vmax.f32 %v4338_v28, %v4339_v36  ;;  %v3048_v22 = vpop.f32.mrb[68].mxu0 }
 0x3aa   : > { %v3721_v16 = vpop.f32.mrb[68].mxu1  ;;  %v3049_v58 = vadd.f32 %v3048_v22, %v12845_v61  ;;  %v3050_v9 = vpop.f32.mrb[69].mxu0 }
 0x3ab   : > { %v3723_v34 = vpop.f32.mrb[69].mxu1  ;;  %v4992_v52 = vmax.f32 %v4991_v10, %v4337_v45  ;;  %v4996_v59 = vmax.f32 %v4995_v49, %v4340_v17  ;;  %v3722_v29 = vadd.f32 %v3721_v16, %v12845_v61  ;;  %v3051_v56 = vadd.f32 %v3050_v9, %v12845_v61  ;;  %v3052_v30 = vpop.f32.mrb[70].mxu0 }
 0x3ac   : > { %v3725_v51 = vpop.f32.mrb[70].mxu1  ;;  %v4342_v43 = vmax.f32 %v3049_v58, 0.0  ;;  %v3724_v15 = vadd.f32 %v3723_v34, %v12845_v61  ;;  %v3053_v28 = vadd.f32 %v3052_v30, %v12767_v2  ;;  %v3054_v14 = vpop.f32.mrb[71].mxu0 }
 0x3ad   : > { %v3727_v12 = vpop.f32.mrb[71].mxu1  ;;  %v4997_v27 = vmax.f32 %v4996_v59, %v4341_v21  ;;  %v4343_v36 = vmax.f32 %v3051_v56, 0.0  ;;  %v3726_v22 = vadd.f32 %v3725_v51, %v12767_v2  ;;  %v3055_v45 = vadd.f32 %v3054_v14, %v12767_v2  ;;  %4993 = vmax.xlane.f32.xlu0 %v4992_v52  ;;  %v13362_v61 = vpop.permute.xlu0 %2447 }
 0x3ae   : > { %v4346_v10 = vmax.f32 %v3053_v28, 0.0  ;;  %v3728_v17 = vadd.f32 %v3727_v12, %v12767_v2  ;;  %3317 = vmatmul.mubr.bf16.gmra.mrb[176].mxu0 %v11237_v32  ;;  %v4344_v49 = vmax.f32 %v3722_v29, 0.0  ;;  %v13364_v21 = vpop.permute.xlu1 %2442  ;;  %v4345_v9 = vmax.f32 %v3724_v15, 0.0 }
 0x3af   : > { %3990 = vmatmul.mubr.bf16.gmra.mrb[176].mxu1 %v11237_v32  ;;  %v5000_v16 = vmax.f32 %v4342_v43, %v4343_v36  ;;  %v4347_v58 = vmax.f32 %v3055_v45, 0.0  ;;  %4998 = vmax.xlane.f32.xlu1 %v4997_v27  ;;  %v4348_v52 = vmax.f32 %v3726_v22, 0.0  ;;  %v11238_v43 = vld [vmem:[%s15765_s5 + $0x128] sm:$0xff]  }
 0x3b0   : > { %3326 = vmatprep.mubr.bf16.mxu0 %v15864_v53  ;;  %3999 = vmatprep.mubr.bf16.mxu1 %v15864_v53  ;;  %v4349_v30 = vmax.f32 %v3728_v17, 0.0 }
 0x3b1   : > { %v5001_v34 = vmax.f32 %v5000_v16, %v4344_v49  ;;  %v5005_v59 = vmax.f32 %v4346_v10, %v4347_v58  ;;  %v3058_v56 = vpop.f32.mrb[72].mxu0 }
 0x3b2   : > { %v3731_v2 = vpop.f32.mrb[72].mxu1  ;;  %v3059_v32 = vadd.f32 %v3058_v56, %v12850_v18  ;;  %v3060_v29 = vpop.f32.mrb[73].mxu0 }
 0x3b3   : > { %v3733_v51 = vpop.f32.mrb[73].mxu1  ;;  %v5002_v28 = vmax.f32 %v5001_v34, %v4345_v9  ;;  %v5006_v14 = vmax.f32 %v5005_v59, %v4348_v52  ;;  %v3732_v12 = vadd.f32 %v3731_v2, %v12850_v18  ;;  %v3061_v15 = vadd.f32 %v3060_v29, %v12850_v18  ;;  %v3062_v27 = vpop.f32.mrb[74].mxu0 }
 0x3b4   : > { %v3735_v36 = vpop.f32.mrb[74].mxu1  ;;  %v4350_v22 = vmax.f32 %v3059_v32, 0.0  ;;  %v3734_v45 = vadd.f32 %v3733_v51, %v12850_v18  ;;  %v3063_v10 = vadd.f32 %v3062_v27, %v12780_v46  ;;  %v3064_v17 = vpop.f32.mrb[75].mxu0 }
 0x3b5   : > { %v3737_v49 = vpop.f32.mrb[75].mxu1  ;;  %v5007_v16 = vmax.f32 %v5006_v14, %v4349_v30  ;;  %v4351_v58 = vmax.f32 %v3061_v15, 0.0  ;;  %v3736_v56 = vadd.f32 %v3735_v36, %v12780_v46  ;;  %v3065_v9 = vadd.f32 %v3064_v17, %v12780_v46  ;;  %5003 = vmax.xlane.f32.xlu0 %v5002_v28  ;;  %v13379_v18 = vpop.permute.xlu0 %2457 }
 0x3b6   : > { %v4354_v34 = vmax.f32 %v3063_v10, 0.0  ;;  %v3738_v52 = vadd.f32 %v3737_v49, %v12780_v46  ;;  %3327 = vmatmul.mubr.bf16.gmra.mrb[180].mxu0 %v11238_v43  ;;  %v4352_v59 = vmax.f32 %v3732_v12, 0.0  ;;  %15909 = vst [vmem:[#allocation65_spill] sm:$0xff] %v13379_v18  ;;  %v13381_v30 = vpop.permute.xlu1 %2452  ;;  %v4353_v29 = vmax.f32 %v3734_v45, 0.0 }
 0x3b7   : > { %4000 = vmatmul.mubr.bf16.gmra.mrb[180].mxu1 %v11238_v43  ;;  %v5010_v2 = vmax.f32 %v4350_v22, %v4351_v58  ;;  %v4355_v32 = vmax.f32 %v3065_v9, 0.0  ;;  %5008 = vmax.xlane.f32.xlu1 %v5007_v16  ;;  %v4356_v28 = vmax.f32 %v3736_v56, 0.0  ;;  %v11239_v22 = vld [vmem:[%s15765_s5 + $0x130] sm:$0xff]  }
 0x3b8   : > { %3336 = vmatprep.mubr.bf16.mxu0 %v15864_v53  ;;  %4009 = vmatprep.mubr.bf16.mxu1 %v15864_v53  ;;  %v4357_v27 = vmax.f32 %v3738_v52, 0.0 }
 0x3b9   : > { %v5011_v51 = vmax.f32 %v5010_v2, %v4352_v59  ;;  %v5015_v14 = vmax.f32 %v4354_v34, %v4355_v32  ;;  %v3068_v15 = vpop.f32.mrb[76].mxu0  ;;  %v15910_v34 = vld [vmem:[#allocation14_spill] sm:$0xff] }
 0x3ba   : > { %v3741_v46 = vpop.f32.mrb[76].mxu1  ;;  %v3069_v43 = vadd.f32 %v3068_v15, %v12858_v54  ;;  %v3070_v12 = vpop.f32.mrb[77].mxu0 }
 0x3bb   : > { %v3743_v36 = vpop.f32.mrb[77].mxu1  ;;  %v5012_v10 = vmax.f32 %v5011_v51, %v4353_v29  ;;  %v5016_v17 = vmax.f32 %v5015_v14, %v4356_v28  ;;  %v3742_v49 = vadd.f32 %v3741_v46, %v12858_v54  ;;  %v3071_v45 = vadd.f32 %v3070_v12, %v12858_v54  ;;  %v3072_v16 = vpop.f32.mrb[78].mxu0 }
 0x3bc   : > { %v3745_v58 = vpop.f32.mrb[78].mxu1  ;;  %v4358_v56 = vmax.f32 %v3069_v43, 0.0  ;;  %v3744_v9 = vadd.f32 %v3743_v36, %v12858_v54  ;;  %v3073_v52 = vadd.f32 %v3072_v16, %v15910_v34  ;;  %v3074_v59 = vpop.f32.mrb[79].mxu0 }
 0x3bd   : > { %v3747_v2 = vpop.f32.mrb[79].mxu1  ;;  %v5017_v32 = vmax.f32 %v5016_v17, %v4357_v27  ;;  %v4359_v15 = vmax.f32 %v3071_v45, 0.0  ;;  %v3746_v18 = vadd.f32 %v3745_v58, %v15910_v34  ;;  %v3075_v29 = vadd.f32 %v3074_v59, %v15910_v34  ;;  %5013 = vmax.xlane.f32.xlu0 %v5012_v10  ;;  %v13396_v54 = vpop.permute.xlu0 %2467 }
 0x3be   : > { %v4362_v51 = vmax.f32 %v3073_v52, 0.0  ;;  %v3748_v28 = vadd.f32 %v3747_v2, %v15910_v34  ;;  %3337 = vmatmul.mubr.bf16.gmra.mrb[184].mxu0 %v11239_v22  ;;  %v4360_v14 = vmax.f32 %v3742_v49, 0.0  ;;  %15911 = vst [vmem:[#allocation14_spill] sm:$0xff] %v13396_v54  ;;  %v13398_v27 = vpop.permute.xlu1 %2462  ;;  %v4361_v12 = vmax.f32 %v3744_v9, 0.0  ;;  %v11240_v52 = vld [vmem:[%s15765_s5 + $0x138] sm:$0xff]  }
 0x3bf   : > { %4010 = vmatmul.mubr.bf16.gmra.mrb[184].mxu1 %v11239_v22  ;;  %v5020_v46 = vmax.f32 %v4358_v56, %v4359_v15  ;;  %v4363_v43 = vmax.f32 %v3075_v29, 0.0  ;;  %5018 = vmax.xlane.f32.xlu1 %v5017_v32  ;;  %15912 = vst [vmem:[#allocation66_spill] sm:$0xff] %v13398_v27  ;;  %v4364_v10 = vmax.f32 %v3746_v18, 0.0  ;;  %v15913_v22 = vld [vmem:[#allocation18_spill] sm:$0xff] }
 0x3c0   : > { %3346 = vmatprep.mubr.bf16.mxu0 %v15864_v53  ;;  %4019 = vmatprep.mubr.bf16.mxu1 %v15864_v53  ;;  %v4365_v58 = vmax.f32 %v3748_v28, 0.0  ;;  %v15914_v28 = vld [vmem:[#allocation15_spill] sm:$0xff] }
 0x3c1   : > { %v5021_v36 = vmax.f32 %v5020_v46, %v4360_v14  ;;  %v5025_v17 = vmax.f32 %v4362_v51, %v4363_v43  ;;  %v3078_v45 = vpop.f32.mrb[80].mxu0 }
 0x3c2   : > { %v3751_v16 = vpop.f32.mrb[80].mxu1  ;;  %v3079_v49 = vadd.f32 %v3078_v45, %v15913_v22  ;;  %v3080_v56 = vpop.f32.mrb[81].mxu0 }
 0x3c3   : > { %v3753_v34 = vpop.f32.mrb[81].mxu1  ;;  %v5022_v59 = vmax.f32 %v5021_v36, %v4361_v12  ;;  %v5026_v2 = vmax.f32 %v5025_v17, %v4364_v10  ;;  %v3752_v32 = vadd.f32 %v3751_v16, %v15913_v22  ;;  %v3081_v9 = vadd.f32 %v3080_v56, %v15913_v22  ;;  %v3082_v15 = vpop.f32.mrb[82].mxu0 }
 0x3c4   : > { %v3755_v18 = vpop.f32.mrb[82].mxu1  ;;  %v4366_v29 = vmax.f32 %v3079_v49, 0.0  ;;  %v3754_v51 = vadd.f32 %v3753_v34, %v15913_v22  ;;  %v3083_v14 = vadd.f32 %v3082_v15, %v15914_v28  ;;  %v3084_v46 = vpop.f32.mrb[83].mxu0 }
 0x3c5   : > { %v3757_v43 = vpop.f32.mrb[83].mxu1  ;;  %v5027_v45 = vmax.f32 %v5026_v2, %v4365_v58  ;;  %v4367_v54 = vmax.f32 %v3081_v9, 0.0  ;;  %v3756_v27 = vadd.f32 %v3755_v18, %v15914_v28  ;;  %v3085_v12 = vadd.f32 %v3084_v46, %v15914_v28  ;;  %5023 = vmax.xlane.f32.xlu0 %v5022_v59  ;;  %v13413_v22 = vpop.permute.xlu0 %2477 }
 0x3c6   : > { %v4370_v36 = vmax.f32 %v3083_v14, 0.0  ;;  %v3758_v10 = vadd.f32 %v3757_v43, %v15914_v28  ;;  %3347 = vmatmul.mubr.bf16.gmra.mrb[188].mxu0 %v11240_v52  ;;  %v4368_v17 = vmax.f32 %v3752_v32, 0.0  ;;  %15915 = vst [vmem:[#allocation18_spill] sm:$0xff] %v13413_v22  ;;  %v13415_v58 = vpop.permute.xlu1 %2472  ;;  %v4369_v56 = vmax.f32 %v3754_v51, 0.0  ;;  %v11241_v28 = vld [vmem:[%s15765_s5 + $0x140] sm:$0xff]  }
 0x3c7   : > { %4020 = vmatmul.mubr.bf16.gmra.mrb[188].mxu1 %v11240_v52  ;;  %v5030_v16 = vmax.f32 %v4366_v29, %v4367_v54  ;;  %v4371_v49 = vmax.f32 %v3085_v12, 0.0  ;;  %5028 = vmax.xlane.f32.xlu1 %v5027_v45  ;;  %15916 = vst [vmem:[#allocation15_spill] sm:$0xff] %v13415_v58  ;;  %v4372_v59 = vmax.f32 %v3756_v27, 0.0  ;;  %v15917_v52 = vld [vmem:[#allocation19_spill] sm:$0xff] }
 0x3c8   : > { %3356 = vmatprep.mubr.bf16.mxu0 %v15864_v53  ;;  %4029 = vmatprep.mubr.bf16.mxu1 %v15864_v53  ;;  %v4373_v18 = vmax.f32 %v3758_v10, 0.0  ;;  %v15918_v10 = vld [vmem:[#allocation16_spill] sm:$0xff] }
 0x3c9   : > { %v5031_v34 = vmax.f32 %v5030_v16, %v4368_v17  ;;  %v5035_v2 = vmax.f32 %v4370_v36, %v4371_v49  ;;  %v3088_v9 = vpop.f32.mrb[84].mxu0 }
 0x3ca   : > { %v3761_v15 = vpop.f32.mrb[84].mxu1  ;;  %v3089_v32 = vadd.f32 %v3088_v9, %v15917_v52  ;;  %v3090_v54 = vpop.f32.mrb[85].mxu0 }
 0x3cb   : > { %v3763_v29 = vpop.f32.mrb[85].mxu1  ;;  %v5032_v14 = vmax.f32 %v5031_v34, %v4369_v56  ;;  %v5036_v46 = vmax.f32 %v5035_v2, %v4372_v59  ;;  %v3762_v43 = vadd.f32 %v3761_v15, %v15917_v52  ;;  %v3091_v51 = vadd.f32 %v3090_v54, %v15917_v52  ;;  %v3092_v45 = vpop.f32.mrb[86].mxu0 }
 0x3cc   : > { %v3765_v27 = vpop.f32.mrb[86].mxu1  ;;  %v4374_v12 = vmax.f32 %v3089_v32, 0.0  ;;  %v3764_v36 = vadd.f32 %v3763_v29, %v15917_v52  ;;  %v3093_v17 = vadd.f32 %v3092_v45, %v15918_v10  ;;  %v3094_v16 = vpop.f32.mrb[87].mxu0 }
 0x3cd   : > { %v3767_v49 = vpop.f32.mrb[87].mxu1  ;;  %v5037_v9 = vmax.f32 %v5036_v46, %v4373_v18  ;;  %v4375_v22 = vmax.f32 %v3091_v51, 0.0  ;;  %v3766_v58 = vadd.f32 %v3765_v27, %v15918_v10  ;;  %v3095_v56 = vadd.f32 %v3094_v16, %v15918_v10  ;;  %5033 = vmax.xlane.f32.xlu0 %v5032_v14  ;;  %v13430_v52 = vpop.permute.xlu0 %2487 }
 0x3ce   : > { %v4378_v34 = vmax.f32 %v3093_v17, 0.0  ;;  %v3768_v59 = vadd.f32 %v3767_v49, %v15918_v10  ;;  %3357 = vmatmul.mubr.bf16.gmra.mrb[192].mxu0 %v11241_v28  ;;  %v4376_v2 = vmax.f32 %v3762_v43, 0.0  ;;  %15919 = vst [vmem:[#allocation19_spill] sm:$0xff] %v13430_v52  ;;  %v13432_v18 = vpop.permute.xlu1 %2482  ;;  %v4377_v54 = vmax.f32 %v3764_v36, 0.0  ;;  %v11242_v10 = vld [vmem:[%s15765_s5 + $0x148] sm:$0xff]  }
 0x3cf   : > { %4030 = vmatmul.mubr.bf16.gmra.mrb[192].mxu1 %v11241_v28  ;;  %v5040_v15 = vmax.f32 %v4374_v12, %v4375_v22  ;;  %v4379_v32 = vmax.f32 %v3095_v56, 0.0  ;;  %5038 = vmax.xlane.f32.xlu1 %v5037_v9  ;;  %15920 = vst [vmem:[#allocation16_spill] sm:$0xff] %v13432_v18  ;;  %v4380_v14 = vmax.f32 %v3766_v58, 0.0  ;;  %v15921_v28 = vld [vmem:[#allocation20_spill] sm:$0xff] }
 0x3d0   : > { %3366 = vmatprep.mubr.bf16.mxu0 %v15864_v53  ;;  %4039 = vmatprep.mubr.bf16.mxu1 %v15864_v53  ;;  %v4381_v27 = vmax.f32 %v3768_v59, 0.0  ;;  %v15922_v59 = vld [vmem:[#allocation17_spill] sm:$0xff] }
 0x3d1   : > { %v5041_v29 = vmax.f32 %v5040_v15, %v4376_v2  ;;  %v5045_v46 = vmax.f32 %v4378_v34, %v4379_v32  ;;  %v3098_v51 = vpop.f32.mrb[88].mxu0 }
 0x3d2   : > { %v3771_v45 = vpop.f32.mrb[88].mxu1  ;;  %v3099_v43 = vadd.f32 %v3098_v51, %v15921_v28  ;;  %v3100_v22 = vpop.f32.mrb[89].mxu0 }
 0x3d3   : > { %v3773_v12 = vpop.f32.mrb[89].mxu1  ;;  %v5042_v17 = vmax.f32 %v5041_v29, %v4377_v54  ;;  %v5046_v16 = vmax.f32 %v5045_v46, %v4380_v14  ;;  %v3772_v49 = vadd.f32 %v3771_v45, %v15921_v28  ;;  %v3101_v36 = vadd.f32 %v3100_v22, %v15921_v28  ;;  %v3102_v9 = vpop.f32.mrb[90].mxu0 }
 0x3d4   : > { %v3775_v58 = vpop.f32.mrb[90].mxu1  ;;  %v4382_v56 = vmax.f32 %v3099_v43, 0.0  ;;  %v3774_v34 = vadd.f32 %v3773_v12, %v15921_v28  ;;  %v3103_v2 = vadd.f32 %v3102_v9, %v15922_v59  ;;  %v3104_v15 = vpop.f32.mrb[91].mxu0 }
 0x3d5   : > { %v3777_v32 = vpop.f32.mrb[91].mxu1  ;;  %v5047_v51 = vmax.f32 %v5046_v16, %v4381_v27  ;;  %v4383_v52 = vmax.f32 %v3101_v36, 0.0  ;;  %v3776_v18 = vadd.f32 %v3775_v58, %v15922_v59  ;;  %v3105_v54 = vadd.f32 %v3104_v15, %v15922_v59  ;;  %5043 = vmax.xlane.f32.xlu0 %v5042_v17  ;;  %v13447_v28 = vpop.permute.xlu0 %2497 }
 0x3d6   : > { %v4386_v29 = vmax.f32 %v3103_v2, 0.0  ;;  %v3778_v14 = vadd.f32 %v3777_v32, %v15922_v59  ;;  %3367 = vmatmul.mubr.bf16.gmra.mrb[196].mxu0 %v11242_v10  ;;  %v4384_v46 = vmax.f32 %v3772_v49, 0.0  ;;  %v13449_v27 = vpop.permute.xlu1 %2492  ;;  %v4385_v22 = vmax.f32 %v3774_v34, 0.0 }
 0x3d7   : > { %4040 = vmatmul.mubr.bf16.gmra.mrb[196].mxu1 %v11242_v10  ;;  %v5050_v45 = vmax.f32 %v4382_v56, %v4383_v52  ;;  %v4387_v43 = vmax.f32 %v3105_v54, 0.0  ;;  %5048 = vmax.xlane.f32.xlu1 %v5047_v51  ;;  %v4388_v17 = vmax.f32 %v3776_v18, 0.0  ;;  %v11243_v56 = vld [vmem:[%s15765_s5 + $0x150] sm:$0xff]  }
 0x3d8   : > { %3376 = vmatprep.mubr.bf16.mxu0 %v15864_v53  ;;  %4049 = vmatprep.mubr.bf16.mxu1 %v15864_v53  ;;  %v4389_v58 = vmax.f32 %v3778_v14, 0.0 }
 0x3d9   : > { %v5051_v12 = vmax.f32 %v5050_v45, %v4384_v46  ;;  %v5055_v16 = vmax.f32 %v4386_v29, %v4387_v43  ;;  %v3108_v36 = vpop.f32.mrb[92].mxu0 }
 0x3da   : > { %v3781_v9 = vpop.f32.mrb[92].mxu1  ;;  %v3109_v10 = vadd.f32 %v3108_v36, %v12969_v11  ;;  %v3110_v52 = vpop.f32.mrb[93].mxu0 }
 0x3db   : > { %v3783_v49 = vpop.f32.mrb[93].mxu1  ;;  %v5052_v59 = vmax.f32 %v5051_v12, %v4385_v22  ;;  %v5056_v2 = vmax.f32 %v5055_v16, %v4388_v17  ;;  %v3782_v15 = vadd.f32 %v3781_v9, %v12969_v11  ;;  %v3111_v34 = vadd.f32 %v3110_v52, %v12969_v11  ;;  %v3112_v32 = vpop.f32.mrb[94].mxu0 }
 0x3dc   : > { %v3785_v18 = vpop.f32.mrb[94].mxu1  ;;  %v4390_v51 = vmax.f32 %v3109_v10, 0.0  ;;  %v3784_v54 = vadd.f32 %v3783_v49, %v12969_v11  ;;  %v3113_v29 = vadd.f32 %v3112_v32, %v12967_v25  ;;  %v3114_v14 = vpop.f32.mrb[95].mxu0 }
 0x3dd   : > { %v3787_v46 = vpop.f32.mrb[95].mxu1  ;;  %v5057_v45 = vmax.f32 %v5056_v2, %v4389_v58  ;;  %v4391_v43 = vmax.f32 %v3111_v34, 0.0  ;;  %v3786_v36 = vadd.f32 %v3785_v18, %v12967_v25  ;;  %v3115_v22 = vadd.f32 %v3114_v14, %v12967_v25  ;;  %5053 = vmax.xlane.f32.xlu0 %v5052_v59  ;;  %v13464_v11 = vpop.permute.xlu0 %2507 }
 0x3de   : > { %v4394_v12 = vmax.f32 %v3113_v29, 0.0  ;;  %v3788_v17 = vadd.f32 %v3787_v46, %v12967_v25  ;;  %3377 = vmatmul.mubr.bf16.gmra.mrb[200].mxu0 %v11243_v56  ;;  %v4392_v16 = vmax.f32 %v3782_v15, 0.0  ;;  %v13466_v58 = vpop.permute.xlu1 %2502  ;;  %v4393_v52 = vmax.f32 %v3784_v54, 0.0 }
 0x3df   : > { %4050 = vmatmul.mubr.bf16.gmra.mrb[200].mxu1 %v11243_v56  ;;  %v5060_v9 = vmax.f32 %v4390_v51, %v4391_v43  ;;  %v4395_v10 = vmax.f32 %v3115_v22, 0.0  ;;  %5058 = vmax.xlane.f32.xlu1 %v5057_v45  ;;  %v4396_v59 = vmax.f32 %v3786_v36, 0.0  ;;  %v11244_v51 = vld [vmem:[%s15765_s5 + $0x158] sm:$0xff]  }
 0x3e0   : > { %3386 = vmatprep.mubr.bf16.mxu0 %v15864_v53  ;;  %4059 = vmatprep.mubr.bf16.mxu1 %v15864_v53  ;;  %v4397_v32 = vmax.f32 %v3788_v17, 0.0 }
 0x3e1   : > { %v5061_v49 = vmax.f32 %v5060_v9, %v4392_v16  ;;  %v5065_v2 = vmax.f32 %v4394_v12, %v4395_v10  ;;  %v3118_v34 = vpop.f32.mrb[96].mxu0 }
 0x3e2   : > { %v3791_v25 = vpop.f32.mrb[96].mxu1  ;;  %v3119_v56 = vadd.f32 %v3118_v34, %v12978_v50  ;;  %v3120_v15 = vpop.f32.mrb[97].mxu0 }
 0x3e3   : > { %v3793_v18 = vpop.f32.mrb[97].mxu1  ;;  %v5062_v29 = vmax.f32 %v5061_v49, %v4393_v52  ;;  %v5066_v14 = vmax.f32 %v5065_v2, %v4396_v59  ;;  %v3792_v46 = vadd.f32 %v3791_v25, %v12978_v50  ;;  %v3121_v54 = vadd.f32 %v3120_v15, %v12978_v50  ;;  %v3122_v45 = vpop.f32.mrb[98].mxu0 }
 0x3e4   : > { %v3795_v43 = vpop.f32.mrb[98].mxu1  ;;  %v4398_v36 = vmax.f32 %v3119_v56, 0.0  ;;  %v3794_v22 = vadd.f32 %v3793_v18, %v12978_v50  ;;  %v3123_v12 = vadd.f32 %v3122_v45, %v12976_v8  ;;  %v3124_v17 = vpop.f32.mrb[99].mxu0 }
 0x3e5   : > { %v3797_v16 = vpop.f32.mrb[99].mxu1  ;;  %v5067_v9 = vmax.f32 %v5066_v14, %v4397_v32  ;;  %v4399_v10 = vmax.f32 %v3121_v54, 0.0  ;;  %v3796_v34 = vadd.f32 %v3795_v43, %v12976_v8  ;;  %v3125_v52 = vadd.f32 %v3124_v17, %v12976_v8  ;;  %5063 = vmax.xlane.f32.xlu0 %v5062_v29  ;;  %v13481_v50 = vpop.permute.xlu0 %2517 }
 0x3e6   : > { %v4402_v49 = vmax.f32 %v3123_v12, 0.0  ;;  %v3798_v59 = vadd.f32 %v3797_v16, %v12976_v8  ;;  %3387 = vmatmul.mubr.bf16.gmra.mrb[204].mxu0 %v11244_v51  ;;  %v4400_v2 = vmax.f32 %v3792_v46, 0.0  ;;  %v13483_v32 = vpop.permute.xlu1 %2512  ;;  %v4401_v15 = vmax.f32 %v3794_v22, 0.0 }
 0x3e7   : > { %4060 = vmatmul.mubr.bf16.gmra.mrb[204].mxu1 %v11244_v51  ;;  %v5070_v25 = vmax.f32 %v4398_v36, %v4399_v10  ;;  %v4403_v56 = vmax.f32 %v3125_v52, 0.0  ;;  %5068 = vmax.xlane.f32.xlu1 %v5067_v9  ;;  %v4404_v29 = vmax.f32 %v3796_v34, 0.0  ;;  %v11245_v36 = vld [vmem:[%s15765_s5 + $0x160] sm:$0xff]  }
 0x3e8   : > { %3396 = vmatprep.mubr.bf16.mxu0 %v15864_v53  ;;  %4069 = vmatprep.mubr.bf16.mxu1 %v15864_v53  ;;  %v4405_v45 = vmax.f32 %v3798_v59, 0.0 }
 0x3e9   : > { %v5071_v18 = vmax.f32 %v5070_v25, %v4400_v2  ;;  %v5075_v14 = vmax.f32 %v4402_v49, %v4403_v56  ;;  %v3128_v54 = vpop.f32.mrb[100].mxu0 }
 0x3ea   : > { %v3801_v8 = vpop.f32.mrb[100].mxu1  ;;  %v3129_v51 = vadd.f32 %v3128_v54, %v12985_v1  ;;  %v3130_v46 = vpop.f32.mrb[101].mxu0 }
 0x3eb   : > { %v3803_v43 = vpop.f32.mrb[101].mxu1  ;;  %v5072_v12 = vmax.f32 %v5071_v18, %v4401_v15  ;;  %v5076_v17 = vmax.f32 %v5075_v14, %v4404_v29  ;;  %v3802_v16 = vadd.f32 %v3801_v8, %v12985_v1  ;;  %v3131_v22 = vadd.f32 %v3130_v46, %v12985_v1  ;;  %v3132_v9 = vpop.f32.mrb[102].mxu0 }
 0x3ec   : > { %v3805_v10 = vpop.f32.mrb[102].mxu1  ;;  %v4406_v34 = vmax.f32 %v3129_v51, 0.0  ;;  %v3804_v52 = vadd.f32 %v3803_v43, %v12985_v1  ;;  %v3133_v49 = vadd.f32 %v3132_v9, %v12983_v4  ;;  %v3134_v59 = vpop.f32.mrb[103].mxu0 }
 0x3ed   : > { %v3807_v2 = vpop.f32.mrb[103].mxu1  ;;  %v5077_v25 = vmax.f32 %v5076_v17, %v4405_v45  ;;  %v4407_v56 = vmax.f32 %v3131_v22, 0.0  ;;  %v3806_v54 = vadd.f32 %v3805_v10, %v12983_v4  ;;  %v3135_v15 = vadd.f32 %v3134_v59, %v12983_v4  ;;  %5073 = vmax.xlane.f32.xlu0 %v5072_v12  ;;  %v13498_v1 = vpop.permute.xlu0 %2527 }
 0x3ee   : > { %v4410_v18 = vmax.f32 %v3133_v49, 0.0  ;;  %v3808_v29 = vadd.f32 %v3807_v2, %v12983_v4  ;;  %3397 = vmatmul.mubr.bf16.gmra.mrb[208].mxu0 %v11245_v36  ;;  %v4408_v14 = vmax.f32 %v3802_v16, 0.0  ;;  %15923 = vst [vmem:[#allocation20_spill] sm:$0xff] %v13498_v1  ;;  %v13500_v45 = vpop.permute.xlu1 %2522  ;;  %v4409_v46 = vmax.f32 %v3804_v52, 0.0 }
 0x3ef   : > { %4070 = vmatmul.mubr.bf16.gmra.mrb[208].mxu1 %v11245_v36  ;;  %v5080_v8 = vmax.f32 %v4406_v34, %v4407_v56  ;;  %v4411_v51 = vmax.f32 %v3135_v15, 0.0  ;;  %5078 = vmax.xlane.f32.xlu1 %v5077_v25  ;;  %v4412_v12 = vmax.f32 %v3806_v54, 0.0  ;;  %v11246_v34 = vld [vmem:[%s15765_s5 + $0x168] sm:$0xff]  }
 0x3f0   : > { %3406 = vmatprep.mubr.bf16.mxu0 %v15864_v53  ;;  %4079 = vmatprep.mubr.bf16.mxu1 %v15864_v53  ;;  %v4413_v9 = vmax.f32 %v3808_v29, 0.0 }
 0x3f1   : > { %v5081_v43 = vmax.f32 %v5080_v8, %v4408_v14  ;;  %v5085_v17 = vmax.f32 %v4410_v18, %v4411_v51  ;;  %v3138_v22 = vpop.f32.mrb[104].mxu0 }
 0x3f2   : > { %v3811_v4 = vpop.f32.mrb[104].mxu1  ;;  %v3139_v36 = vadd.f32 %v3138_v22, %v12994_v19  ;;  %v3140_v16 = vpop.f32.mrb[105].mxu0 }
 0x3f3   : > { %v3813_v10 = vpop.f32.mrb[105].mxu1  ;;  %v5082_v49 = vmax.f32 %v5081_v43, %v4409_v46  ;;  %v5086_v59 = vmax.f32 %v5085_v17, %v4412_v12  ;;  %v3812_v2 = vadd.f32 %v3811_v4, %v12994_v19  ;;  %v3141_v52 = vadd.f32 %v3140_v16, %v12994_v19  ;;  %v3142_v25 = vpop.f32.mrb[106].mxu0 }
 0x3f4   : > { %v3815_v56 = vpop.f32.mrb[106].mxu1  ;;  %v4414_v54 = vmax.f32 %v3139_v36, 0.0  ;;  %v3814_v15 = vadd.f32 %v3813_v10, %v12994_v19  ;;  %v3143_v18 = vadd.f32 %v3142_v25, %v12992_v0  ;;  %v3144_v29 = vpop.f32.mrb[107].mxu0  ;;  %v4782_v25 = vld [vmem:[#allocation2] sm:$0xff] }
 0x3f5   : > { %v3817_v14 = vpop.f32.mrb[107].mxu1  ;;  %v5087_v8 = vmax.f32 %v5086_v59, %v4413_v9  ;;  %v4415_v51 = vmax.f32 %v3141_v52, 0.0  ;;  %v3816_v22 = vadd.f32 %v3815_v56, %v12992_v0  ;;  %v3145_v46 = vadd.f32 %v3144_v29, %v12992_v0  ;;  %5083 = vmax.xlane.f32.xlu0 %v5082_v49  ;;  %v13514_v17 = vpop.permute.xlu1 %2532 }
 0x3f6   : > { %v4418_v43 = vmax.f32 %v3143_v18, 0.0  ;;  %v3818_v12 = vadd.f32 %v3817_v14, %v12992_v0  ;;  %3407 = vmatmul.mubr.bf16.gmra.mrb[212].mxu0 %v11246_v34  ;;  %15924 = vst [vmem:[#allocation17_spill] sm:$0xff] %v13514_v17  ;;  %v4416_v4 = vmax.f32 %v3812_v2, 0.0  ;;  %v13517_v9 = vpop.permute.xlu0 %2537  ;;  %v4417_v16 = vmax.f32 %v3814_v15, 0.0  ;;  %v11247_v18 = vld [vmem:[%s15765_s5 + $0x170] sm:$0xff]  }
 0x3f7   : > { %4080 = vmatmul.mubr.bf16.gmra.mrb[212].mxu1 %v11246_v34  ;;  %v5090_v19 = vmax.f32 %v4414_v54, %v4415_v51  ;;  %v4419_v36 = vmax.f32 %v3145_v46, 0.0  ;;  %5088 = vmax.xlane.f32.xlu1 %v5087_v8  ;;  %15925 = vst [vmem:[#allocation67_spill] sm:$0xff] %v13517_v9  ;;  %v4420_v49 = vmax.f32 %v3816_v22, 0.0  ;;  %v4783_v46 = vld [vmem:[#allocation2 + $0x8] sm:$0xff] }
 0x3f8   : > { %3416 = vmatprep.mubr.bf16.mxu0 %v15864_v53  ;;  %4089 = vmatprep.mubr.bf16.mxu1 %v15864_v53  ;;  %v4421_v34 = vmax.f32 %v3818_v12, 0.0 }
 0x3f9   : > { %v5091_v10 = vmax.f32 %v5090_v19, %v4416_v4  ;;  %v5095_v59 = vmax.f32 %v4418_v43, %v4419_v36  ;;  %v3148_v52 = vpop.f32.mrb[108].mxu0 }
 0x3fa   : > { %v3821_v0 = vpop.f32.mrb[108].mxu1  ;;  %v3149_v56 = vadd.f32 %v3148_v52, %v13000_v47  ;;  %v3150_v2 = vpop.f32.mrb[109].mxu0 }
 0x3fb   : > { %v3823_v54 = vpop.f32.mrb[109].mxu1  ;;  %v5092_v29 = vmax.f32 %v5091_v10, %v4417_v16  ;;  %v5096_v14 = vmax.f32 %v5095_v59, %v4420_v49  ;;  %v3822_v15 = vadd.f32 %v3821_v0, %v13000_v47  ;;  %v3151_v8 = vadd.f32 %v3150_v2, %v13000_v47  ;;  %v4914_v51 = vpop.xlane.xlu1 %4913 }
 0x3fc   : > { %v3152_v22 = vpop.f32.mrb[110].mxu0  ;;  %v4422_v43 = vmax.f32 %v3149_v56, 0.0  ;;  %v5550_v12 = vmax.f32 %v4782_v25, %v4914_v51  ;;  %v3825_v19 = vpop.f32.mrb[110].mxu1  ;;  %v3824_v17 = vadd.f32 %v3823_v54, %v13000_v47 }
 0x3fd   : > { %v3153_v4 = vadd.f32 %v3152_v22, %v12998_v38  ;;  %v3154_v36 = vpop.f32.mrb[111].mxu0  ;;  %v5097_v52 = vmax.f32 %v5096_v14, %v4421_v34  ;;  %v4423_v9 = vmax.f32 %v3151_v8, 0.0  ;;  %v3827_v1 = vpop.f32.mrb[111].mxu1  ;;  %5093 = vmax.xlane.f32.xlu0 %v5092_v29  ;;  %v3826_v49 = vadd.f32 %v3825_v19, %v12998_v38  ;;  %v4784_v8 = vld [vmem:[#allocation2 + $0x10] sm:$0xff] }
 0x3fe   : > { %v4919_v16 = vpop.xlane.xlu0 %4918  ;;  %5679 = vst.msk [vmem:[#allocation2] sm:$0xff] %vm5678_vm2, %v5550_v12  ;;  %v3155_v59 = vadd.f32 %v3154_v36, %v12998_v38  ;;  %3417 = vmatmul.mubr.bf16.gmra.mrb[216].mxu0 %v11247_v18  ;;  %v4424_v25 = vmax.f32 %v3822_v15, 0.0  ;;  %v3828_v47 = vadd.f32 %v3827_v1, %v12998_v38  ;;  %v4425_v2 = vmax.f32 %v3824_v17, 0.0 }
 0x3ff   : > { %v4426_v10 = vmax.f32 %v3153_v4, 0.0  ;;  %v5551_v0 = vmax.f32 %v4783_v46, %v4919_v16  ;;  %4090 = vmatmul.mubr.bf16.gmra.mrb[216].mxu1 %v11247_v18  ;;  %v5100_v56 = vmax.f32 %v4422_v43, %v4423_v9  ;;  %5098 = vmax.xlane.f32.xlu1 %v5097_v52  ;;  %v4428_v51 = vmax.f32 %v3826_v49, 0.0  ;;  %v11248_v46 = vld [vmem:[%s15765_s5 + $0x178] sm:$0xff]  }
 0x400   : > { %3426 = vmatprep.mubr.bf16.mxu0 %v15864_v53  ;;  %v4427_v34 = vmax.f32 %v3155_v59, 0.0  ;;  %4099 = vmatprep.mubr.bf16.mxu1 %v15864_v53  ;;  %v4785_v4 = vld [vmem:[#allocation2 + $0x18] sm:$0xff]  ;;  %v4429_v19 = vmax.f32 %v3828_v47, 0.0 }
 0x401   : > { %5680 = vst.msk [vmem:[#allocation2 + $0x8] sm:$0xff] %vm5678_vm2, %v5551_v0  ;;  %v5101_v54 = vmax.f32 %v5100_v56, %v4424_v25  ;;  %v3158_v29 = vpop.f32.mrb[112].mxu0 }
 0x402   : > { %v3831_v14 = vpop.f32.mrb[112].mxu1  ;;  %v5105_v22 = vmax.f32 %v4426_v10, %v4427_v34  ;;  %v3159_v18 = vadd.f32 %v3158_v29, %v13009_v33  ;;  %v3160_v9 = vpop.f32.mrb[113].mxu0 }
 0x403   : > { %v3833_v15 = vpop.f32.mrb[113].mxu1  ;;  %v5102_v38 = vmax.f32 %v5101_v54, %v4425_v2  ;;  %v3832_v1 = vadd.f32 %v3831_v14, %v13009_v33  ;;  %v3161_v43 = vadd.f32 %v3160_v9, %v13009_v33  ;;  %v4924_v17 = vpop.xlane.xlu0 %4923 }
 0x404   : > { %v3162_v12 = vpop.f32.mrb[114].mxu0  ;;  %v5106_v36 = vmax.f32 %v5105_v22, %v4428_v51  ;;  %v4430_v52 = vmax.f32 %v3159_v18, 0.0  ;;  %v5552_v16 = vmax.f32 %v4784_v8, %v4924_v17  ;;  %v3835_v10 = vpop.f32.mrb[114].mxu1  ;;  %v3834_v0 = vadd.f32 %v3833_v15, %v13009_v33 }
 0x405   : > { %v3164_v49 = vpop.f32.mrb[115].mxu0  ;;  %v4431_v59 = vmax.f32 %v3161_v43, 0.0  ;;  %v3163_v25 = vadd.f32 %v3162_v12, %v13007_v37  ;;  %v3837_v56 = vpop.f32.mrb[115].mxu1  ;;  %5103 = vmax.xlane.f32.xlu0 %v5102_v38  ;;  %v3836_v54 = vadd.f32 %v3835_v10, %v13007_v37  ;;  %v4432_v14 = vmax.f32 %v3832_v1, 0.0  ;;  %v4786_v43 = vld [vmem:[#allocation2 + $0x20] sm:$0xff] }
 0x406   : > { %v4929_v34 = vpop.xlane.xlu1 %4928  ;;  %v5107_v2 = vmax.f32 %v5106_v36, %v4429_v19  ;;  %5681 = vst.msk [vmem:[#allocation2 + $0x10] sm:$0xff] %vm5678_vm2, %v5552_v16  ;;  %v3165_v47 = vadd.f32 %v3164_v49, %v13007_v37  ;;  %3427 = vmatmul.mubr.bf16.gmra.mrb[220].mxu0 %v11248_v46  ;;  %v3838_v22 = vadd.f32 %v3837_v56, %v13007_v37  ;;  %v4433_v18 = vmax.f32 %v3834_v0, 0.0  ;;  %v11249_v37 = vld [vmem:[%s15765_s5 + $0x180] sm:$0xff]   ;;  %v4787_v49 = vld [vmem:[#allocation2 + $0x28] sm:$0xff] }
 0x407   : > { %v5553_v29 = vmax.f32 %v4785_v4, %v4929_v34  ;;  %v5110_v8 = vmax.f32 %v4430_v52, %v4431_v59  ;;  %v4434_v51 = vmax.f32 %v3163_v25, 0.0  ;;  %4100 = vmatmul.mubr.bf16.gmra.mrb[220].mxu1 %v11248_v46  ;;  %3436 = vmatprep.mubr.bf16.mxu0 %v15864_v53  ;;  %v4436_v17 = vmax.f32 %v3836_v54, 0.0 }
 0x408   : > { %v4435_v33 = vmax.f32 %v3165_v47, 0.0  ;;  %5108 = vmax.xlane.f32.xlu1 %v5107_v2  ;;  %4109 = vmatprep.mubr.bf16.mxu1 %v15864_v53  ;;  %v4437_v59 = vmax.f32 %v3838_v22, 0.0 }
 0x409   : > { %5682 = vst.msk [vmem:[#allocation2 + $0x18] sm:$0xff] %vm5678_vm2, %v5553_v29  ;;  %v5111_v9 = vmax.f32 %v5110_v8, %v4432_v14  ;;  %v3168_v15 = vpop.f32.mrb[116].mxu0 }
 0x40a   : > { %v3841_v38 = vpop.f32.mrb[116].mxu1  ;;  %v5115_v1 = vmax.f32 %v4434_v51, %v4435_v33  ;;  %v3169_v12 = vadd.f32 %v3168_v15, %v13016_v42  ;;  %v3170_v46 = vpop.f32.mrb[117].mxu0 }
 0x40b   : > { %v3843_v4 = vpop.f32.mrb[117].mxu1  ;;  %v5112_v19 = vmax.f32 %v5111_v9, %v4433_v18  ;;  %v3842_v36 = vadd.f32 %v3841_v38, %v13016_v42  ;;  %v3171_v52 = vadd.f32 %v3170_v46, %v13016_v42  ;;  %v4934_v16 = vpop.xlane.xlu0 %4933 }
 0x40c   : > { %v3172_v10 = vpop.f32.mrb[118].mxu0  ;;  %v5116_v0 = vmax.f32 %v5115_v1, %v4436_v17  ;;  %v4438_v25 = vmax.f32 %v3169_v12, 0.0  ;;  %v5554_v56 = vmax.f32 %v4786_v43, %v4934_v16  ;;  %v3845_v34 = vpop.f32.mrb[118].mxu1  ;;  %v3844_v47 = vadd.f32 %v3843_v4, %v13016_v42  ;;  %v4788_v4 = vld [vmem:[#allocation2 + $0x30] sm:$0xff] }
 0x40d   : > { %v3174_v2 = vpop.f32.mrb[119].mxu0  ;;  %v4439_v54 = vmax.f32 %v3171_v52, 0.0  ;;  %v3173_v29 = vadd.f32 %v3172_v10, %v13014_v26  ;;  %v3847_v14 = vpop.f32.mrb[119].mxu1  ;;  %5113 = vmax.xlane.f32.xlu0 %v5112_v19  ;;  %v3846_v33 = vadd.f32 %v3845_v34, %v13014_v26  ;;  %v4440_v9 = vmax.f32 %v3842_v36, 0.0 }
 0x40e   : > { %v4939_v8 = vpop.xlane.xlu1 %4938  ;;  %v5117_v51 = vmax.f32 %v5116_v0, %v4437_v59  ;;  %5683 = vst.msk [vmem:[#allocation2 + $0x20] sm:$0xff] %vm5678_vm2, %v5554_v56  ;;  %v3175_v22 = vadd.f32 %v3174_v2, %v13014_v26  ;;  %3437 = vmatmul.mubr.bf16.gmra.mrb[224].mxu0 %v11249_v37  ;;  %v3848_v43 = vadd.f32 %v3847_v14, %v13014_v26  ;;  %v4441_v17 = vmax.f32 %v3844_v47, 0.0  ;;  %v11250_v26 = vld [vmem:[%s15765_s5 + $0x188] sm:$0xff]   ;;  %v4789_v56 = vld [vmem:[#allocation2 + $0x38] sm:$0xff] }
 0x40f   : > { %v5555_v18 = vmax.f32 %v4787_v49, %v4939_v8  ;;  %v5120_v15 = vmax.f32 %v4438_v25, %v4439_v54  ;;  %v4442_v38 = vmax.f32 %v3173_v29, 0.0  ;;  %4110 = vmatmul.mubr.bf16.gmra.mrb[224].mxu1 %v11249_v37  ;;  %3446 = vmatprep.mubr.bf16.mxu0 %v15864_v53  ;;  %v4444_v19 = vmax.f32 %v3846_v33, 0.0 }
 0x410   : > { %v4443_v42 = vmax.f32 %v3175_v22, 0.0  ;;  %5118 = vmax.xlane.f32.xlu1 %v5117_v51  ;;  %4119 = vmatprep.mubr.bf16.mxu1 %v15864_v53  ;;  %v4445_v34 = vmax.f32 %v3848_v43, 0.0 }
 0x411   : > { %5684 = vst.msk [vmem:[#allocation2 + $0x28] sm:$0xff] %vm5678_vm2, %v5555_v18  ;;  %v5121_v1 = vmax.f32 %v5120_v15, %v4440_v9  ;;  %v3178_v12 = vpop.f32.mrb[120].mxu0 }
 0x412   : > { %v3851_v46 = vpop.f32.mrb[120].mxu1  ;;  %v5125_v36 = vmax.f32 %v4442_v38, %v4443_v42  ;;  %v3179_v52 = vadd.f32 %v3178_v12, %v13025_v60  ;;  %v3180_v37 = vpop.f32.mrb[121].mxu0 }
 0x413   : > { %v3853_v16 = vpop.f32.mrb[121].mxu1  ;;  %v5122_v10 = vmax.f32 %v5121_v1, %v4441_v17  ;;  %v3852_v49 = vadd.f32 %v3851_v46, %v13025_v60  ;;  %v3181_v59 = vadd.f32 %v3180_v37, %v13025_v60  ;;  %v4944_v0 = vpop.xlane.xlu0 %4943 }
 0x414   : > { %v3182_v25 = vpop.f32.mrb[122].mxu0  ;;  %v5126_v2 = vmax.f32 %v5125_v36, %v4444_v19  ;;  %v4446_v54 = vmax.f32 %v3179_v52, 0.0  ;;  %v5556_v47 = vmax.f32 %v4788_v4, %v4944_v0  ;;  %v3855_v29 = vpop.f32.mrb[122].mxu1  ;;  %v3854_v51 = vadd.f32 %v3853_v16, %v13025_v60  ;;  %v4790_v52 = vld [vmem:[#allocation2 + $0x40] sm:$0xff] }
 0x415   : > { %v3184_v14 = vpop.f32.mrb[123].mxu0  ;;  %v4447_v8 = vmax.f32 %v3181_v59, 0.0  ;;  %v3183_v33 = vadd.f32 %v3182_v25, %v13023_v23  ;;  %v3857_v22 = vpop.f32.mrb[123].mxu1  ;;  %5123 = vmax.xlane.f32.xlu0 %v5122_v10  ;;  %v3856_v15 = vadd.f32 %v3855_v29, %v13023_v23  ;;  %v4448_v43 = vmax.f32 %v3852_v49, 0.0 }
 0x416   : > { %v4949_v18 = vpop.xlane.xlu1 %4948  ;;  %v5127_v9 = vmax.f32 %v5126_v2, %v4445_v34  ;;  %5685 = vst.msk [vmem:[#allocation2 + $0x30] sm:$0xff] %vm5678_vm2, %v5556_v47  ;;  %v3185_v38 = vadd.f32 %v3184_v14, %v13023_v23  ;;  %3447 = vmatmul.mubr.bf16.gmra.mrb[228].mxu0 %v11250_v26  ;;  %v3858_v12 = vadd.f32 %v3857_v22, %v13023_v23  ;;  %v4449_v46 = vmax.f32 %v3854_v51, 0.0  ;;  %v11251_v23 = vld [vmem:[%s15765_s5 + $0x190] sm:$0xff]   ;;  %v4791_v2 = vld [vmem:[#allocation2 + $0x48] sm:$0xff] }
 0x417   : > { %v5557_v42 = vmax.f32 %v4789_v56, %v4949_v18  ;;  %v5130_v17 = vmax.f32 %v4446_v54, %v4447_v8  ;;  %v4450_v1 = vmax.f32 %v3183_v33, 0.0  ;;  %4120 = vmatmul.mubr.bf16.gmra.mrb[228].mxu1 %v11250_v26  ;;  %3456 = vmatprep.mubr.bf16.mxu0 %v15864_v53  ;;  %v4452_v37 = vmax.f32 %v3856_v15, 0.0 }
 0x418   : > { %v4451_v60 = vmax.f32 %v3185_v38, 0.0  ;;  %5128 = vmax.xlane.f32.xlu1 %v5127_v9  ;;  %4129 = vmatprep.mubr.bf16.mxu1 %v15864_v53  ;;  %v4453_v54 = vmax.f32 %v3858_v12, 0.0 }
 0x419   : > { %5686 = vst.msk [vmem:[#allocation2 + $0x38] sm:$0xff] %vm5678_vm2, %v5557_v42  ;;  %v5131_v4 = vmax.f32 %v5130_v17, %v4448_v43  ;;  %v3188_v19 = vpop.f32.mrb[124].mxu0 }
 0x41a   : > { %v3861_v36 = vpop.f32.mrb[124].mxu1  ;;  %v5135_v16 = vmax.f32 %v4450_v1, %v4451_v60  ;;  %v3189_v10 = vadd.f32 %v3188_v19, %v13031_v41  ;;  %v3190_v26 = vpop.f32.mrb[125].mxu0 }
 0x41b   : > { %v3863_v49 = vpop.f32.mrb[125].mxu1  ;;  %v5132_v59 = vmax.f32 %v5131_v4, %v4449_v46  ;;  %v3862_v0 = vadd.f32 %v3861_v36, %v13031_v41  ;;  %v3191_v25 = vadd.f32 %v3190_v26, %v13031_v41  ;;  %v4954_v56 = vpop.xlane.xlu0 %4953  ;;  %v15926_v26 = vld [vmem:[#allocation22_spill] sm:$0xff] }
 0x41c   : > { %v3192_v34 = vpop.f32.mrb[126].mxu0  ;;  %v5136_v47 = vmax.f32 %v5135_v16, %v4452_v37  ;;  %v4454_v29 = vmax.f32 %v3189_v10, 0.0  ;;  %v5558_v14 = vmax.f32 %v4790_v52, %v4954_v56  ;;  %v3865_v8 = vpop.f32.mrb[126].mxu1  ;;  %v3864_v22 = vadd.f32 %v3863_v49, %v13031_v41  ;;  %v4792_v37 = vld [vmem:[#allocation2 + $0x50] sm:$0xff] }
 0x41d   : > { %v3194_v51 = vpop.f32.mrb[127].mxu0  ;;  %v4455_v33 = vmax.f32 %v3191_v25, 0.0  ;;  %v3193_v18 = vadd.f32 %v3192_v34, %v13029_v31  ;;  %v3867_v9 = vpop.f32.mrb[127].mxu1  ;;  %5133 = vmax.xlane.f32.xlu0 %v5132_v59  ;;  %v3866_v42 = vadd.f32 %v3865_v8, %v13029_v31  ;;  %v4456_v1 = vmax.f32 %v3862_v0, 0.0 }
 0x41e   : > { %v4959_v15 = vpop.xlane.xlu1 %4958  ;;  %v5137_v38 = vmax.f32 %v5136_v47, %v4453_v54  ;;  %5687 = vst.msk [vmem:[#allocation2 + $0x40] sm:$0xff] %vm5678_vm2, %v5558_v14  ;;  %v3195_v43 = vadd.f32 %v3194_v51, %v13029_v31  ;;  %3457 = vmatmul.mubr.bf16.gmra.mrb[232].mxu0 %v11251_v23  ;;  %v3868_v46 = vadd.f32 %v3867_v9, %v13029_v31  ;;  %v4457_v4 = vmax.f32 %v3864_v22, 0.0  ;;  %v11252_v31 = vld [vmem:[%s15765_s5 + $0x198] sm:$0xff]  }
 0x41f   : > { %v5559_v17 = vmax.f32 %v4791_v2, %v4959_v15  ;;  %v5140_v60 = vmax.f32 %v4454_v29, %v4455_v33  ;;  %v4458_v12 = vmax.f32 %v3193_v18, 0.0  ;;  %4130 = vmatmul.mubr.bf16.gmra.mrb[232].mxu1 %v11251_v23  ;;  %3466 = vmatprep.mubr.bf16.mxu0 %v15864_v53  ;;  %v4460_v16 = vmax.f32 %v3866_v42, 0.0  ;;  %v4793_v54 = vld [vmem:[#allocation2 + $0x58] sm:$0xff] }
 0x420   : > { %v4459_v41 = vmax.f32 %v3195_v43, 0.0  ;;  %5138 = vmax.xlane.f32.xlu1 %v5137_v38  ;;  %4139 = vmatprep.mubr.bf16.mxu1 %v15864_v53  ;;  %v4461_v47 = vmax.f32 %v3868_v46, 0.0  ;;  %v15927_v9 = vld [vmem:[#allocation21_spill] sm:$0xff] }
 0x421   : > { %5688 = vst.msk [vmem:[#allocation2 + $0x48] sm:$0xff] %vm5678_vm2, %v5559_v17  ;;  %v5141_v19 = vmax.f32 %v5140_v60, %v4456_v1  ;;  %v3198_v36 = vpop.f32.mrb[128].mxu0 }
 0x422   : > { %v3871_v52 = vpop.f32.mrb[128].mxu1  ;;  %v5145_v10 = vmax.f32 %v4458_v12, %v4459_v41  ;;  %v3199_v49 = vadd.f32 %v3198_v36, %v15926_v26  ;;  %v3200_v23 = vpop.f32.mrb[129].mxu0 }
 0x423   : > { %v3873_v59 = vpop.f32.mrb[129].mxu1  ;;  %v5142_v0 = vmax.f32 %v5141_v19, %v4457_v4  ;;  %v3872_v25 = vadd.f32 %v3871_v52, %v15926_v26  ;;  %v3201_v56 = vadd.f32 %v3200_v23, %v15926_v26  ;;  %v4964_v34 = vpop.xlane.xlu0 %4963  ;;  %v15928_v23 = vld [vmem:[#allocation24_spill] sm:$0xff] }
 0x424   : > { %v3202_v2 = vpop.f32.mrb[130].mxu0  ;;  %v5146_v29 = vmax.f32 %v5145_v10, %v4460_v16  ;;  %v4462_v14 = vmax.f32 %v3199_v49, 0.0  ;;  %v5560_v8 = vmax.f32 %v4792_v37, %v4964_v34  ;;  %v3875_v51 = vpop.f32.mrb[130].mxu1  ;;  %v3874_v18 = vadd.f32 %v3873_v59, %v15926_v26  ;;  %v4794_v10 = vld [vmem:[#allocation2 + $0x60] sm:$0xff] }
 0x425   : > { %v3204_v33 = vpop.f32.mrb[131].mxu0  ;;  %v4463_v22 = vmax.f32 %v3201_v56, 0.0  ;;  %v3203_v15 = vadd.f32 %v3202_v2, %v15927_v9  ;;  %v3877_v38 = vpop.f32.mrb[131].mxu1  ;;  %5143 = vmax.xlane.f32.xlu0 %v5142_v0  ;;  %v3876_v17 = vadd.f32 %v3875_v51, %v15927_v9  ;;  %v4464_v12 = vmax.f32 %v3872_v25, 0.0  ;;  %v11253_v25 = vld [vmem:[%s15765_s5 + $0x1a0] sm:$0xff]  }
 0x426   : > { %v4969_v42 = vpop.xlane.xlu1 %4968  ;;  %v5147_v43 = vmax.f32 %v5146_v29, %v4461_v47  ;;  %5689 = vst.msk [vmem:[#allocation2 + $0x50] sm:$0xff] %vm5678_vm2, %v5560_v8  ;;  %v3205_v1 = vadd.f32 %v3204_v33, %v15927_v9  ;;  %3467 = vmatmul.mubr.bf16.gmra.mrb[236].mxu0 %v11252_v31  ;;  %v3878_v19 = vadd.f32 %v3877_v38, %v15927_v9  ;;  %v4465_v36 = vmax.f32 %v3874_v18, 0.0  ;;  %v4795_v29 = vld [vmem:[#allocation2 + $0x68] sm:$0xff] }
 0x427   : > { %v5561_v60 = vmax.f32 %v4793_v54, %v4969_v42  ;;  %v5150_v41 = vmax.f32 %v4462_v14, %v4463_v22  ;;  %v4466_v46 = vmax.f32 %v3203_v15, 0.0  ;;  %4140 = vmatmul.mubr.bf16.gmra.mrb[236].mxu1 %v11252_v31  ;;  %3476 = vmatprep.mubr.bf16.mxu0 %v15864_v53  ;;  %v4468_v26 = vmax.f32 %v3876_v17, 0.0  ;;  %v15929_v38 = vld [vmem:[#allocation23_spill] sm:$0xff] }
 0x428   : > { %v4467_v4 = vmax.f32 %v3205_v1, 0.0  ;;  %5148 = vmax.xlane.f32.xlu1 %v5147_v43  ;;  %4149 = vmatprep.mubr.bf16.mxu1 %v15864_v53  ;;  %v4469_v14 = vmax.f32 %v3878_v19, 0.0 }
 0x429   : > { %5690 = vst.msk [vmem:[#allocation2 + $0x58] sm:$0xff] %vm5678_vm2, %v5561_v60  ;;  %v5151_v52 = vmax.f32 %v5150_v41, %v4464_v12  ;;  %v3208_v37 = vpop.f32.mrb[132].mxu0 }
 0x42a   : > { %v3881_v16 = vpop.f32.mrb[132].mxu1  ;;  %v5155_v49 = vmax.f32 %v4466_v46, %v4467_v4  ;;  %v3209_v59 = vadd.f32 %v3208_v37, %v15928_v23  ;;  %v3210_v31 = vpop.f32.mrb[133].mxu0 }
 0x42b   : > { %v3883_v0 = vpop.f32.mrb[133].mxu1  ;;  %v5152_v56 = vmax.f32 %v5151_v52, %v4465_v36  ;;  %v3882_v34 = vadd.f32 %v3881_v16, %v15928_v23  ;;  %v3211_v2 = vadd.f32 %v3210_v31, %v15928_v23  ;;  %v4974_v54 = vpop.xlane.xlu0 %4973  ;;  %v15930_v31 = vld [vmem:[#allocation26_spill] sm:$0xff] }
 0x42c   : > { %v3212_v47 = vpop.f32.mrb[134].mxu0  ;;  %v5156_v8 = vmax.f32 %v5155_v49, %v4468_v26  ;;  %v4470_v51 = vmax.f32 %v3209_v59, 0.0  ;;  %v5562_v33 = vmax.f32 %v4794_v10, %v4974_v54  ;;  %v3885_v22 = vpop.f32.mrb[134].mxu1  ;;  %v3884_v15 = vadd.f32 %v3883_v0, %v15928_v23  ;;  %v4796_v49 = vld [vmem:[#allocation2 + $0x70] sm:$0xff] }
 0x42d   : > { %v3214_v18 = vpop.f32.mrb[135].mxu0  ;;  %v4471_v9 = vmax.f32 %v3211_v2, 0.0  ;;  %v3213_v42 = vadd.f32 %v3212_v47, %v15929_v38  ;;  %v3887_v43 = vpop.f32.mrb[135].mxu1  ;;  %5153 = vmax.xlane.f32.xlu0 %v5152_v56  ;;  %v3886_v60 = vadd.f32 %v3885_v22, %v15929_v38  ;;  %v4472_v46 = vmax.f32 %v3882_v34, 0.0  ;;  %v11254_v34 = vld [vmem:[%s15765_s5 + $0x1a8] sm:$0xff]  }
 0x42e   : > { %v4979_v17 = vpop.xlane.xlu1 %4978  ;;  %v5157_v1 = vmax.f32 %v5156_v8, %v4469_v14  ;;  %5691 = vst.msk [vmem:[#allocation2 + $0x60] sm:$0xff] %vm5678_vm2, %v5562_v33  ;;  %v3215_v12 = vadd.f32 %v3214_v18, %v15929_v38  ;;  %3477 = vmatmul.mubr.bf16.gmra.mrb[240].mxu0 %v11253_v25  ;;  %v3888_v52 = vadd.f32 %v3887_v43, %v15929_v38  ;;  %v4473_v37 = vmax.f32 %v3884_v15, 0.0  ;;  %v4797_v8 = vld [vmem:[#allocation2 + $0x78] sm:$0xff] }
 0x42f   : > { %v5563_v41 = vmax.f32 %v4795_v29, %v4979_v17  ;;  %v5160_v4 = vmax.f32 %v4470_v51, %v4471_v9  ;;  %v4474_v19 = vmax.f32 %v3213_v42, 0.0  ;;  %4150 = vmatmul.mubr.bf16.gmra.mrb[240].mxu1 %v11253_v25  ;;  %3486 = vmatprep.mubr.bf16.mxu0 %v15864_v53  ;;  %v4476_v23 = vmax.f32 %v3886_v60, 0.0  ;;  %v15931_v43 = vld [vmem:[#allocation25_spill] sm:$0xff] }
 0x430   : > { %v4475_v36 = vmax.f32 %v3215_v12, 0.0  ;;  %5158 = vmax.xlane.f32.xlu1 %v5157_v1  ;;  %4159 = vmatprep.mubr.bf16.mxu1 %v15864_v53  ;;  %v4477_v51 = vmax.f32 %v3888_v52, 0.0 }
 0x431   : > { %5692 = vst.msk [vmem:[#allocation2 + $0x68] sm:$0xff] %vm5678_vm2, %v5563_v41  ;;  %v5161_v16 = vmax.f32 %v5160_v4, %v4472_v46  ;;  %v3218_v10 = vpop.f32.mrb[136].mxu0 }
 0x432   : > { %v3891_v26 = vpop.f32.mrb[136].mxu1  ;;  %v5165_v59 = vmax.f32 %v4474_v19, %v4475_v36  ;;  %v3219_v0 = vadd.f32 %v3218_v10, %v15930_v31  ;;  %v3220_v25 = vpop.f32.mrb[137].mxu0 }
 0x433   : > { %v3893_v56 = vpop.f32.mrb[137].mxu1  ;;  %v5162_v2 = vmax.f32 %v5161_v16, %v4473_v37  ;;  %v3892_v54 = vadd.f32 %v3891_v26, %v15930_v31  ;;  %v3221_v47 = vadd.f32 %v3220_v25, %v15930_v31  ;;  %v4984_v29 = vpop.xlane.xlu0 %4983  ;;  %v15932_v25 = vld [vmem:[#allocation28_spill] sm:$0xff] }
 0x434   : > { %v3222_v14 = vpop.f32.mrb[138].mxu0  ;;  %v5166_v33 = vmax.f32 %v5165_v59, %v4476_v23  ;;  %v4478_v22 = vmax.f32 %v3219_v0, 0.0  ;;  %v5564_v18 = vmax.f32 %v4796_v49, %v4984_v29  ;;  %v3895_v9 = vpop.f32.mrb[138].mxu1  ;;  %v3894_v42 = vadd.f32 %v3893_v56, %v15930_v31  ;;  %v4798_v59 = vld [vmem:[#allocation2 + $0x80] sm:$0xff] }
 0x435   : > { %v3224_v15 = vpop.f32.mrb[139].mxu0  ;;  %v4479_v38 = vmax.f32 %v3221_v47, 0.0  ;;  %v3223_v17 = vadd.f32 %v3222_v14, %v15931_v43  ;;  %v3897_v1 = vpop.f32.mrb[139].mxu1  ;;  %5163 = vmax.xlane.f32.xlu0 %v5162_v2  ;;  %v3896_v41 = vadd.f32 %v3895_v9, %v15931_v43  ;;  %v4480_v19 = vmax.f32 %v3892_v54, 0.0  ;;  %v11255_v54 = vld [vmem:[%s15765_s5 + $0x1b0] sm:$0xff]  }
 0x436   : > { %v4989_v60 = vpop.xlane.xlu1 %4988  ;;  %v5167_v12 = vmax.f32 %v5166_v33, %v4477_v51  ;;  %5693 = vst.msk [vmem:[#allocation2 + $0x70] sm:$0xff] %vm5678_vm2, %v5564_v18  ;;  %v3225_v46 = vadd.f32 %v3224_v15, %v15931_v43  ;;  %3487 = vmatmul.mubr.bf16.gmra.mrb[244].mxu0 %v11254_v34  ;;  %v3898_v16 = vadd.f32 %v3897_v1, %v15931_v43  ;;  %v4481_v10 = vmax.f32 %v3894_v42, 0.0  ;;  %v4799_v33 = vld [vmem:[#allocation2 + $0x88] sm:$0xff] }
 0x437   : > { %v5565_v4 = vmax.f32 %v4797_v8, %v4989_v60  ;;  %v5170_v36 = vmax.f32 %v4478_v22, %v4479_v38  ;;  %v4482_v52 = vmax.f32 %v3223_v17, 0.0  ;;  %4160 = vmatmul.mubr.bf16.gmra.mrb[244].mxu1 %v11254_v34  ;;  %3496 = vmatprep.mubr.bf16.mxu0 %v15864_v53  ;;  %v4484_v31 = vmax.f32 %v3896_v41, 0.0  ;;  %v15933_v1 = vld [vmem:[#allocation27_spill] sm:$0xff] }
 0x438   : > { %v4483_v37 = vmax.f32 %v3225_v46, 0.0  ;;  %5168 = vmax.xlane.f32.xlu1 %v5167_v12  ;;  %4169 = vmatprep.mubr.bf16.mxu1 %v15864_v53  ;;  %v4485_v22 = vmax.f32 %v3898_v16, 0.0 }
 0x439   : > { %5694 = vst.msk [vmem:[#allocation2 + $0x78] sm:$0xff] %vm5678_vm2, %v5565_v4  ;;  %v5171_v26 = vmax.f32 %v5170_v36, %v4480_v19  ;;  %v3228_v49 = vpop.f32.mrb[140].mxu0 }
 0x43a   : > { %v3901_v23 = vpop.f32.mrb[140].mxu1  ;;  %v5175_v0 = vmax.f32 %v4482_v52, %v4483_v37  ;;  %v3229_v56 = vadd.f32 %v3228_v49, %v15932_v25  ;;  %v3230_v34 = vpop.f32.mrb[141].mxu0 }
 0x43b   : > { %v3903_v2 = vpop.f32.mrb[141].mxu1  ;;  %v5172_v47 = vmax.f32 %v5171_v26, %v4481_v10  ;;  %v3902_v29 = vadd.f32 %v3901_v23, %v15932_v25  ;;  %v3231_v14 = vadd.f32 %v3230_v34, %v15932_v25  ;;  %v4994_v8 = vpop.xlane.xlu0 %4993  ;;  %v15934_v34 = vld [vmem:[#allocation30_spill] sm:$0xff] }
 0x43c   : > { %v3232_v51 = vpop.f32.mrb[142].mxu0  ;;  %v5176_v18 = vmax.f32 %v5175_v0, %v4484_v31  ;;  %v4486_v9 = vmax.f32 %v3229_v56, 0.0  ;;  %v5566_v15 = vmax.f32 %v4798_v59, %v4994_v8  ;;  %v3905_v38 = vpop.f32.mrb[142].mxu1  ;;  %v3904_v17 = vadd.f32 %v3903_v2, %v15932_v25  ;;  %v4800_v0 = vld [vmem:[#allocation2 + $0x90] sm:$0xff] }
 0x43d   : > { %v3234_v42 = vpop.f32.mrb[143].mxu0  ;;  %v4487_v43 = vmax.f32 %v3231_v14, 0.0  ;;  %v3233_v60 = vadd.f32 %v3232_v51, %v15933_v1  ;;  %v3907_v12 = vpop.f32.mrb[143].mxu1  ;;  %5173 = vmax.xlane.f32.xlu0 %v5172_v47  ;;  %v3906_v4 = vadd.f32 %v3905_v38, %v15933_v1  ;;  %v4488_v52 = vmax.f32 %v3902_v29, 0.0  ;;  %v11256_v29 = vld [vmem:[%s15765_s5 + $0x1b8] sm:$0xff]  }
 0x43e   : > { %v4999_v41 = vpop.xlane.xlu1 %4998  ;;  %v5177_v46 = vmax.f32 %v5176_v18, %v4485_v22  ;;  %5695 = vst.msk [vmem:[#allocation2 + $0x80] sm:$0xff] %vm5678_vm2, %v5566_v15  ;;  %v3235_v19 = vadd.f32 %v3234_v42, %v15933_v1  ;;  %3497 = vmatmul.mubr.bf16.gmra.mrb[248].mxu0 %v11255_v54  ;;  %v3908_v26 = vadd.f32 %v3907_v12, %v15933_v1  ;;  %v4489_v49 = vmax.f32 %v3904_v17, 0.0  ;;  %v4801_v18 = vld [vmem:[#allocation2 + $0x98] sm:$0xff] }
 0x43f   : > { %v5567_v36 = vmax.f32 %v4799_v33, %v4999_v41  ;;  %v5180_v37 = vmax.f32 %v4486_v9, %v4487_v43  ;;  %v4490_v16 = vmax.f32 %v3233_v60, 0.0  ;;  %4170 = vmatmul.mubr.bf16.gmra.mrb[248].mxu1 %v11255_v54  ;;  %3506 = vmatprep.mubr.bf16.mxu0 %v15864_v53  ;;  %v4492_v25 = vmax.f32 %v3906_v4, 0.0  ;;  %v15935_v12 = vld [vmem:[#allocation29_spill] sm:$0xff] }
 0x440   : > { %v4491_v10 = vmax.f32 %v3235_v19, 0.0  ;;  %5178 = vmax.xlane.f32.xlu1 %v5177_v46  ;;  %4179 = vmatprep.mubr.bf16.mxu1 %v15864_v53  ;;  %v4493_v9 = vmax.f32 %v3908_v26, 0.0 }
 0x441   : > { %5696 = vst.msk [vmem:[#allocation2 + $0x88] sm:$0xff] %vm5678_vm2, %v5567_v36  ;;  %v5181_v23 = vmax.f32 %v5180_v37, %v4488_v52  ;;  %v3238_v59 = vpop.f32.mrb[144].mxu0 }
 0x442   : > { %v3911_v31 = vpop.f32.mrb[144].mxu1  ;;  %v5185_v56 = vmax.f32 %v4490_v16, %v4491_v10  ;;  %v3239_v2 = vadd.f32 %v3238_v59, %v15934_v34  ;;  %v3240_v54 = vpop.f32.mrb[145].mxu0 }
 0x443   : > { %v3913_v47 = vpop.f32.mrb[145].mxu1  ;;  %v5182_v14 = vmax.f32 %v5181_v23, %v4489_v49  ;;  %v3912_v8 = vadd.f32 %v3911_v31, %v15934_v34  ;;  %v3241_v51 = vadd.f32 %v3240_v54, %v15934_v34  ;;  %v5004_v33 = vpop.xlane.xlu0 %5003  ;;  %v15936_v54 = vld [vmem:[#allocation32_spill] sm:$0xff] }
 0x444   : > { %v3242_v22 = vpop.f32.mrb[146].mxu0  ;;  %v5186_v15 = vmax.f32 %v5185_v56, %v4492_v25  ;;  %v4494_v38 = vmax.f32 %v3239_v2, 0.0  ;;  %v5568_v42 = vmax.f32 %v4800_v0, %v5004_v33  ;;  %v3915_v43 = vpop.f32.mrb[146].mxu1  ;;  %v3914_v60 = vadd.f32 %v3913_v47, %v15934_v34  ;;  %v4802_v56 = vld [vmem:[#allocation2 + $0xa0] sm:$0xff] }
 0x445   : > { %v3244_v17 = vpop.f32.mrb[147].mxu0  ;;  %v4495_v1 = vmax.f32 %v3241_v51, 0.0  ;;  %v3243_v41 = vadd.f32 %v3242_v22, %v15935_v12  ;;  %v3917_v46 = vpop.f32.mrb[147].mxu1  ;;  %5183 = vmax.xlane.f32.xlu0 %v5182_v14  ;;  %v3916_v36 = vadd.f32 %v3915_v43, %v15935_v12  ;;  %v4496_v16 = vmax.f32 %v3912_v8, 0.0  ;;  %v11257_v8 = vld [vmem:[%s15765_s5 + $0x1c0] sm:$0xff]  }
 0x446   : > { %v5009_v4 = vpop.xlane.xlu1 %5008  ;;  %v5187_v19 = vmax.f32 %v5186_v15, %v4493_v9  ;;  %5697 = vst.msk [vmem:[#allocation2 + $0x90] sm:$0xff] %vm5678_vm2, %v5568_v42  ;;  %v3245_v52 = vadd.f32 %v3244_v17, %v15935_v12  ;;  %3507 = vmatmul.mubr.bf16.gmra.mrb[252].mxu0 %v11256_v29  ;;  %v3918_v23 = vadd.f32 %v3917_v46, %v15935_v12  ;;  %v4497_v59 = vmax.f32 %v3914_v60, 0.0  ;;  %v4803_v15 = vld [vmem:[#allocation2 + $0xa8] sm:$0xff] }
 0x447   : > { %v5569_v37 = vmax.f32 %v4801_v18, %v5009_v4  ;;  %v5190_v10 = vmax.f32 %v4494_v38, %v4495_v1  ;;  %v4498_v26 = vmax.f32 %v3243_v41, 0.0  ;;  %4180 = vmatmul.mubr.bf16.gmra.mrb[252].mxu1 %v11256_v29  ;;  %3516 = vmatprep.mubr.bf16.mxu0 %v15864_v53  ;;  %v4500_v34 = vmax.f32 %v3916_v36, 0.0  ;;  %v15937_v46 = vld [vmem:[#allocation31_spill] sm:$0xff] }
 0x448   : > { %v4499_v49 = vmax.f32 %v3245_v52, 0.0  ;;  %5188 = vmax.xlane.f32.xlu1 %v5187_v19  ;;  %4189 = vmatprep.mubr.bf16.mxu1 %v15864_v53  ;;  %v4501_v38 = vmax.f32 %v3918_v23, 0.0 }
 0x449   : > { %5698 = vst.msk [vmem:[#allocation2 + $0x98] sm:$0xff] %vm5678_vm2, %v5569_v37  ;;  %v5191_v31 = vmax.f32 %v5190_v10, %v4496_v16  ;;  %v3248_v0 = vpop.f32.mrb[148].mxu0 }
 0x44a   : > { %v3921_v25 = vpop.f32.mrb[148].mxu1  ;;  %v5195_v2 = vmax.f32 %v4498_v26, %v4499_v49  ;;  %v3249_v47 = vadd.f32 %v3248_v0, %v15936_v54  ;;  %v3250_v29 = vpop.f32.mrb[149].mxu0 }
 0x44b   : > { %v3923_v14 = vpop.f32.mrb[149].mxu1  ;;  %v5192_v51 = vmax.f32 %v5191_v31, %v4497_v59  ;;  %v3922_v33 = vadd.f32 %v3921_v25, %v15936_v54  ;;  %v3251_v22 = vadd.f32 %v3250_v29, %v15936_v54  ;;  %v5014_v18 = vpop.xlane.xlu0 %5013  ;;  %v15938_v29 = vld [vmem:[#allocation34_spill] sm:$0xff] }
 0x44c   : > { %v3252_v9 = vpop.f32.mrb[150].mxu0  ;;  %v5196_v42 = vmax.f32 %v5195_v2, %v4500_v34  ;;  %v4502_v43 = vmax.f32 %v3249_v47, 0.0  ;;  %v5570_v17 = vmax.f32 %v4802_v56, %v5014_v18  ;;  %v3925_v1 = vpop.f32.mrb[150].mxu1  ;;  %v3924_v41 = vadd.f32 %v3923_v14, %v15936_v54  ;;  %v4804_v2 = vld [vmem:[#allocation2 + $0xb0] sm:$0xff] }
 0x44d   : > { %v3254_v60 = vpop.f32.mrb[151].mxu0  ;;  %v4503_v12 = vmax.f32 %v3251_v22, 0.0  ;;  %v3253_v4 = vadd.f32 %v3252_v9, %v15937_v46  ;;  %v3927_v19 = vpop.f32.mrb[151].mxu1  ;;  %5193 = vmax.xlane.f32.xlu0 %v5192_v51  ;;  %v3926_v37 = vadd.f32 %v3925_v1, %v15937_v46  ;;  %v4504_v26 = vmax.f32 %v3922_v33, 0.0  ;;  %v11258_v33 = vld [vmem:[%s15765_s5 + $0x1c8] sm:$0xff]  }
 0x44e   : > { %v5019_v36 = vpop.xlane.xlu1 %5018  ;;  %v5197_v52 = vmax.f32 %v5196_v42, %v4501_v38  ;;  %5699 = vst.msk [vmem:[#allocation2 + $0xa0] sm:$0xff] %vm5678_vm2, %v5570_v17  ;;  %v3255_v16 = vadd.f32 %v3254_v60, %v15937_v46  ;;  %3517 = vmatmul.mubr.bf16.gmra.mrb[0].mxu0 %v11257_v8  ;;  %v3928_v31 = vadd.f32 %v3927_v19, %v15937_v46  ;;  %v4505_v0 = vmax.f32 %v3924_v41, 0.0  ;;  %v4805_v42 = vld [vmem:[#allocation2 + $0xb8] sm:$0xff] }
 0x44f   : > { %v5571_v10 = vmax.f32 %v4803_v15, %v5019_v36  ;;  %v5200_v49 = vmax.f32 %v4502_v43, %v4503_v12  ;;  %v4506_v23 = vmax.f32 %v3253_v4, 0.0  ;;  %4190 = vmatmul.mubr.bf16.gmra.mrb[0].mxu1 %v11257_v8  ;;  %3526 = vmatprep.mubr.bf16.mxu0 %v15864_v53  ;;  %v4508_v54 = vmax.f32 %v3926_v37, 0.0  ;;  %v15939_v19 = vld [vmem:[#allocation33_spill] sm:$0xff] }
 0x450   : > { %v4507_v59 = vmax.f32 %v3255_v16, 0.0  ;;  %5198 = vmax.xlane.f32.xlu1 %v5197_v52  ;;  %4199 = vmatprep.mubr.bf16.mxu1 %v15864_v53  ;;  %v4509_v43 = vmax.f32 %v3928_v31, 0.0 }
 0x451   : > { %5700 = vst.msk [vmem:[#allocation2 + $0xa8] sm:$0xff] %vm5678_vm2, %v5571_v10  ;;  %v5201_v25 = vmax.f32 %v5200_v49, %v4504_v26  ;;  %v3258_v56 = vpop.f32.mrb[152].mxu0 }
 0x452   : > { %v3931_v34 = vpop.f32.mrb[152].mxu1  ;;  %v5205_v47 = vmax.f32 %v4506_v23, %v4507_v59  ;;  %v3259_v14 = vadd.f32 %v3258_v56, %v15938_v29  ;;  %v3260_v8 = vpop.f32.mrb[153].mxu0 }
 0x453   : > { %v3933_v51 = vpop.f32.mrb[153].mxu1  ;;  %v5202_v22 = vmax.f32 %v5201_v25, %v4505_v0  ;;  %v3932_v18 = vadd.f32 %v3931_v34, %v15938_v29  ;;  %v3261_v9 = vadd.f32 %v3260_v8, %v15938_v29  ;;  %v5024_v15 = vpop.xlane.xlu0 %5023  ;;  %v15940_v8 = vld [vmem:[#allocation36_spill] sm:$0xff] }
 0x454   : > { %v3262_v38 = vpop.f32.mrb[154].mxu0  ;;  %v5206_v17 = vmax.f32 %v5205_v47, %v4508_v54  ;;  %v4510_v1 = vmax.f32 %v3259_v14, 0.0  ;;  %v5572_v60 = vmax.f32 %v4804_v2, %v5024_v15  ;;  %v3935_v12 = vpop.f32.mrb[154].mxu1  ;;  %v3934_v4 = vadd.f32 %v3933_v51, %v15938_v29  ;;  %v4806_v47 = vld [vmem:[#allocation2 + $0xc0] sm:$0xff] }
 0x455   : > { %v3264_v41 = vpop.f32.mrb[155].mxu0  ;;  %v4511_v46 = vmax.f32 %v3261_v9, 0.0  ;;  %v3263_v36 = vadd.f32 %v3262_v38, %v15939_v19  ;;  %v3937_v52 = vpop.f32.mrb[155].mxu1  ;;  %5203 = vmax.xlane.f32.xlu0 %v5202_v22  ;;  %v3936_v10 = vadd.f32 %v3935_v12, %v15939_v19  ;;  %v4512_v23 = vmax.f32 %v3932_v18, 0.0  ;;  %v11259_v18 = vld [vmem:[%s15765_s5 + $0x1d0] sm:$0xff]  }
 0x456   : > { %v5029_v37 = vpop.xlane.xlu1 %5028  ;;  %v5207_v16 = vmax.f32 %v5206_v17, %v4509_v43  ;;  %5701 = vst.msk [vmem:[#allocation2 + $0xb0] sm:$0xff] %vm5678_vm2, %v5572_v60  ;;  %v3265_v26 = vadd.f32 %v3264_v41, %v15939_v19  ;;  %3527 = vmatmul.mubr.bf16.gmra.mrb[4].mxu0 %v11258_v33  ;;  %v3938_v25 = vadd.f32 %v3937_v52, %v15939_v19  ;;  %v4513_v56 = vmax.f32 %v3934_v4, 0.0  ;;  %v4807_v17 = vld [vmem:[#allocation2 + $0xc8] sm:$0xff] }
 0x457   : > { %v5573_v49 = vmax.f32 %v4805_v42, %v5029_v37  ;;  %v5210_v59 = vmax.f32 %v4510_v1, %v4511_v46  ;;  %v4514_v31 = vmax.f32 %v3263_v36, 0.0  ;;  %4200 = vmatmul.mubr.bf16.gmra.mrb[4].mxu1 %v11258_v33  ;;  %3536 = vmatprep.mubr.bf16.mxu0 %v15864_v53  ;;  %v4516_v29 = vmax.f32 %v3936_v10, 0.0  ;;  %v15941_v52 = vld [vmem:[#allocation35_spill] sm:$0xff] }
 0x458   : > { %v4515_v0 = vmax.f32 %v3265_v26, 0.0  ;;  %5208 = vmax.xlane.f32.xlu1 %v5207_v16  ;;  %4209 = vmatprep.mubr.bf16.mxu1 %v15864_v53  ;;  %v4517_v1 = vmax.f32 %v3938_v25, 0.0 }
 0x459   : > { %5702 = vst.msk [vmem:[#allocation2 + $0xb8] sm:$0xff] %vm5678_vm2, %v5573_v49  ;;  %v5211_v34 = vmax.f32 %v5210_v59, %v4512_v23  ;;  %v3268_v2 = vpop.f32.mrb[156].mxu0 }
 0x45a   : > { %v3941_v54 = vpop.f32.mrb[156].mxu1  ;;  %v5215_v14 = vmax.f32 %v4514_v31, %v4515_v0  ;;  %v3269_v51 = vadd.f32 %v3268_v2, %v15940_v8  ;;  %v3270_v33 = vpop.f32.mrb[157].mxu0 }
 0x45b   : > { %v3943_v22 = vpop.f32.mrb[157].mxu1  ;;  %v5212_v9 = vmax.f32 %v5211_v34, %v4513_v56  ;;  %v3942_v15 = vadd.f32 %v3941_v54, %v15940_v8  ;;  %v3271_v38 = vadd.f32 %v3270_v33, %v15940_v8  ;;  %v5034_v42 = vpop.xlane.xlu0 %5033  ;;  %v15942_v33 = vld [vmem:[#allocation38_spill] sm:$0xff] }
 0x45c   : > { %v3272_v43 = vpop.f32.mrb[158].mxu0  ;;  %v5216_v60 = vmax.f32 %v5215_v14, %v4516_v29  ;;  %v4518_v12 = vmax.f32 %v3269_v51, 0.0  ;;  %v5574_v41 = vmax.f32 %v4806_v47, %v5034_v42  ;;  %v3945_v46 = vpop.f32.mrb[158].mxu1  ;;  %v3944_v36 = vadd.f32 %v3943_v22, %v15940_v8  ;;  %v4808_v14 = vld [vmem:[#allocation2 + $0xd0] sm:$0xff] }
 0x45d   : > { %v3274_v4 = vpop.f32.mrb[159].mxu0  ;;  %v4519_v19 = vmax.f32 %v3271_v38, 0.0  ;;  %v3273_v37 = vadd.f32 %v3272_v43, %v15941_v52  ;;  %v3947_v16 = vpop.f32.mrb[159].mxu1  ;;  %5213 = vmax.xlane.f32.xlu0 %v5212_v9  ;;  %v3946_v49 = vadd.f32 %v3945_v46, %v15941_v52  ;;  %v4520_v31 = vmax.f32 %v3942_v15, 0.0  ;;  %v11260_v15 = vld [vmem:[%s15765_s5 + $0x1d8] sm:$0xff]  }
 0x45e   : > { %v5039_v10 = vpop.xlane.xlu1 %5038  ;;  %v5217_v26 = vmax.f32 %v5216_v60, %v4517_v1  ;;  %5703 = vst.msk [vmem:[#allocation2 + $0xc0] sm:$0xff] %vm5678_vm2, %v5574_v41  ;;  %v3275_v23 = vadd.f32 %v3274_v4, %v15941_v52  ;;  %3537 = vmatmul.mubr.bf16.gmra.mrb[8].mxu0 %v11259_v18  ;;  %v3948_v34 = vadd.f32 %v3947_v16, %v15941_v52  ;;  %v4521_v2 = vmax.f32 %v3944_v36, 0.0  ;;  %v4809_v60 = vld [vmem:[#allocation2 + $0xd8] sm:$0xff] }
 0x45f   : > { %v5575_v59 = vmax.f32 %v4807_v17, %v5039_v10  ;;  %v5220_v0 = vmax.f32 %v4518_v12, %v4519_v19  ;;  %v4522_v25 = vmax.f32 %v3273_v37, 0.0  ;;  %4210 = vmatmul.mubr.bf16.gmra.mrb[8].mxu1 %v11259_v18  ;;  %3546 = vmatprep.mubr.bf16.mxu0 %v15864_v53  ;;  %v4524_v8 = vmax.f32 %v3946_v49, 0.0  ;;  %v15943_v16 = vld [vmem:[#allocation37_spill] sm:$0xff] }
 0x460   : > { %v4523_v56 = vmax.f32 %v3275_v23, 0.0  ;;  %5218 = vmax.xlane.f32.xlu1 %v5217_v26  ;;  %4219 = vmatprep.mubr.bf16.mxu1 %v15864_v53  ;;  %v4525_v12 = vmax.f32 %v3948_v34, 0.0 }
 0x461   : > { %5704 = vst.msk [vmem:[#allocation2 + $0xc8] sm:$0xff] %vm5678_vm2, %v5575_v59  ;;  %v5221_v54 = vmax.f32 %v5220_v0, %v4520_v31  ;;  %v3278_v47 = vpop.f32.mrb[160].mxu0 }
 0x462   : > { %v3951_v29 = vpop.f32.mrb[160].mxu1  ;;  %v5225_v51 = vmax.f32 %v4522_v25, %v4523_v56  ;;  %v3279_v22 = vadd.f32 %v3278_v47, %v15942_v33  ;;  %v3280_v18 = vpop.f32.mrb[161].mxu0 }
 0x463   : > { %v3953_v9 = vpop.f32.mrb[161].mxu1  ;;  %v5222_v38 = vmax.f32 %v5221_v54, %v4521_v2  ;;  %v3952_v42 = vadd.f32 %v3951_v29, %v15942_v33  ;;  %v3281_v43 = vadd.f32 %v3280_v18, %v15942_v33  ;;  %v5044_v17 = vpop.xlane.xlu0 %5043  ;;  %v15944_v18 = vld [vmem:[#allocation40_spill] sm:$0xff] }
 0x464   : > { %v3282_v1 = vpop.f32.mrb[162].mxu0  ;;  %v5226_v41 = vmax.f32 %v5225_v51, %v4524_v8  ;;  %v4526_v46 = vmax.f32 %v3279_v22, 0.0  ;;  %v5576_v4 = vmax.f32 %v4808_v14, %v5044_v17  ;;  %v3955_v19 = vpop.f32.mrb[162].mxu1  ;;  %v3954_v37 = vadd.f32 %v3953_v9, %v15942_v33  ;;  %v4810_v51 = vld [vmem:[#allocation2 + $0xe0] sm:$0xff] }
 0x465   : > { %v3284_v36 = vpop.f32.mrb[163].mxu0  ;;  %v4527_v52 = vmax.f32 %v3281_v43, 0.0  ;;  %v3283_v10 = vadd.f32 %v3282_v1, %v15943_v16  ;;  %v3957_v26 = vpop.f32.mrb[163].mxu1  ;;  %5223 = vmax.xlane.f32.xlu0 %v5222_v38  ;;  %v3956_v59 = vadd.f32 %v3955_v19, %v15943_v16  ;;  %v4528_v25 = vmax.f32 %v3952_v42, 0.0  ;;  %v11261_v42 = vld [vmem:[%s15765_s5 + $0x1e0] sm:$0xff]  }
 0x466   : > { %v5049_v49 = vpop.xlane.xlu1 %5048  ;;  %v5227_v23 = vmax.f32 %v5226_v41, %v4525_v12  ;;  %5705 = vst.msk [vmem:[#allocation2 + $0xd0] sm:$0xff] %vm5678_vm2, %v5576_v4  ;;  %v3285_v31 = vadd.f32 %v3284_v36, %v15943_v16  ;;  %3547 = vmatmul.mubr.bf16.gmra.mrb[12].mxu0 %v11260_v15  ;;  %v3958_v54 = vadd.f32 %v3957_v26, %v15943_v16  ;;  %v4529_v47 = vmax.f32 %v3954_v37, 0.0  ;;  %v4811_v41 = vld [vmem:[#allocation2 + $0xe8] sm:$0xff] }
 0x467   : > { %v5577_v0 = vmax.f32 %v4809_v60, %v5049_v49  ;;  %v5230_v56 = vmax.f32 %v4526_v46, %v4527_v52  ;;  %v4530_v34 = vmax.f32 %v3283_v10, 0.0  ;;  %4220 = vmatmul.mubr.bf16.gmra.mrb[12].mxu1 %v11260_v15  ;;  %3556 = vmatprep.mubr.bf16.mxu0 %v15864_v53  ;;  %v4532_v33 = vmax.f32 %v3956_v59, 0.0  ;;  %v15945_v26 = vld [vmem:[#allocation39_spill] sm:$0xff] }
 0x468   : > { %v4531_v2 = vmax.f32 %v3285_v31, 0.0  ;;  %5228 = vmax.xlane.f32.xlu1 %v5227_v23  ;;  %4229 = vmatprep.mubr.bf16.mxu1 %v15864_v53  ;;  %v4533_v46 = vmax.f32 %v3958_v54, 0.0 }
 0x469   : > { %5706 = vst.msk [vmem:[#allocation2 + $0xd8] sm:$0xff] %vm5678_vm2, %v5577_v0  ;;  %v5231_v29 = vmax.f32 %v5230_v56, %v4528_v25  ;;  %v3288_v14 = vpop.f32.mrb[164].mxu0 }
 0x46a   : > { %v3961_v8 = vpop.f32.mrb[164].mxu1  ;;  %v5235_v22 = vmax.f32 %v4530_v34, %v4531_v2  ;;  %v3289_v9 = vadd.f32 %v3288_v14, %v15944_v18  ;;  %v3290_v15 = vpop.f32.mrb[165].mxu0 }
 0x46b   : > { %v3963_v38 = vpop.f32.mrb[165].mxu1  ;;  %v5232_v43 = vmax.f32 %v5231_v29, %v4529_v47  ;;  %v3962_v17 = vadd.f32 %v3961_v8, %v15944_v18  ;;  %v3291_v1 = vadd.f32 %v3290_v15, %v15944_v18  ;;  %v5054_v60 = vpop.xlane.xlu0 %5053  ;;  %v15946_v15 = vld [vmem:[#allocation42_spill] sm:$0xff] }
 0x46c   : > { %v3292_v12 = vpop.f32.mrb[166].mxu0  ;;  %v5236_v4 = vmax.f32 %v5235_v22, %v4532_v33  ;;  %v4534_v19 = vmax.f32 %v3289_v9, 0.0  ;;  %v5578_v36 = vmax.f32 %v4810_v51, %v5054_v60  ;;  %v3965_v52 = vpop.f32.mrb[166].mxu1  ;;  %v3964_v10 = vadd.f32 %v3963_v38, %v15944_v18  ;;  %v4812_v22 = vld [vmem:[#allocation2 + $0xf0] sm:$0xff] }
 0x46d   : > { %v3294_v37 = vpop.f32.mrb[167].mxu0  ;;  %v4535_v16 = vmax.f32 %v3291_v1, 0.0  ;;  %v3293_v49 = vadd.f32 %v3292_v12, %v15945_v26  ;;  %v3967_v23 = vpop.f32.mrb[167].mxu1  ;;  %5233 = vmax.xlane.f32.xlu0 %v5232_v43  ;;  %v3966_v0 = vadd.f32 %v3965_v52, %v15945_v26  ;;  %v4536_v34 = vmax.f32 %v3962_v17, 0.0  ;;  %v11262_v17 = vld [vmem:[%s15765_s5 + $0x1e8] sm:$0xff]  }
 0x46e   : > { %v5059_v59 = vpop.xlane.xlu1 %5058  ;;  %v5237_v31 = vmax.f32 %v5236_v4, %v4533_v46  ;;  %5707 = vst.msk [vmem:[#allocation2 + $0xe0] sm:$0xff] %vm5678_vm2, %v5578_v36  ;;  %v3295_v25 = vadd.f32 %v3294_v37, %v15945_v26  ;;  %3557 = vmatmul.mubr.bf16.gmra.mrb[16].mxu0 %v11261_v42  ;;  %v3968_v29 = vadd.f32 %v3967_v23, %v15945_v26  ;;  %v4537_v14 = vmax.f32 %v3964_v10, 0.0  ;;  %v4813_v4 = vld [vmem:[#allocation2 + $0xf8] sm:$0xff] }
 0x46f   : > { %v5579_v56 = vmax.f32 %v4811_v41, %v5059_v59  ;;  %v5240_v2 = vmax.f32 %v4534_v19, %v4535_v16  ;;  %v4538_v54 = vmax.f32 %v3293_v49, 0.0  ;;  %4230 = vmatmul.mubr.bf16.gmra.mrb[16].mxu1 %v11261_v42  ;;  %3566 = vmatprep.mubr.bf16.mxu0 %v15864_v53  ;;  %v4540_v18 = vmax.f32 %v3966_v0, 0.0  ;;  %v15947_v23 = vld [vmem:[#allocation41_spill] sm:$0xff] }
 0x470   : > { %v4539_v47 = vmax.f32 %v3295_v25, 0.0  ;;  %5238 = vmax.xlane.f32.xlu1 %v5237_v31  ;;  %4239 = vmatprep.mubr.bf16.mxu1 %v15864_v53  ;;  %v4541_v19 = vmax.f32 %v3968_v29, 0.0 }
 0x471   : > { %5708 = vst.msk [vmem:[#allocation2 + $0xe8] sm:$0xff] %vm5678_vm2, %v5579_v56  ;;  %v5241_v8 = vmax.f32 %v5240_v2, %v4536_v34  ;;  %v3298_v51 = vpop.f32.mrb[168].mxu0 }
 0x472   : > { %v3971_v33 = vpop.f32.mrb[168].mxu1  ;;  %v5245_v9 = vmax.f32 %v4538_v54, %v4539_v47  ;;  %v3299_v38 = vadd.f32 %v3298_v51, %v15946_v15  ;;  %v3300_v42 = vpop.f32.mrb[169].mxu0 }
 0x473   : > { %v3973_v43 = vpop.f32.mrb[169].mxu1  ;;  %v5242_v1 = vmax.f32 %v5241_v8, %v4537_v14  ;;  %v3972_v60 = vadd.f32 %v3971_v33, %v15946_v15  ;;  %v3301_v12 = vadd.f32 %v3300_v42, %v15946_v15  ;;  %v5064_v41 = vpop.xlane.xlu0 %5063  ;;  %v15948_v42 = vld [vmem:[#allocation44_spill] sm:$0xff] }
 0x474   : > { %v3302_v46 = vpop.f32.mrb[170].mxu0  ;;  %v5246_v36 = vmax.f32 %v5245_v9, %v4540_v18  ;;  %v4542_v52 = vmax.f32 %v3299_v38, 0.0  ;;  %v5580_v37 = vmax.f32 %v4812_v22, %v5064_v41  ;;  %v3975_v16 = vpop.f32.mrb[170].mxu1  ;;  %v3974_v49 = vadd.f32 %v3973_v43, %v15946_v15  ;;  %v4814_v9 = vld [vmem:[#allocation2 + $0x100] sm:$0xff] }
 0x475   : > { %v3304_v10 = vpop.f32.mrb[171].mxu0  ;;  %v4543_v26 = vmax.f32 %v3301_v12, 0.0  ;;  %v3303_v59 = vadd.f32 %v3302_v46, %v15947_v23  ;;  %v3977_v31 = vpop.f32.mrb[171].mxu1  ;;  %5243 = vmax.xlane.f32.xlu0 %v5242_v1  ;;  %v3976_v56 = vadd.f32 %v3975_v16, %v15947_v23  ;;  %v4544_v54 = vmax.f32 %v3972_v60, 0.0  ;;  %v11263_v60 = vld [vmem:[%s15765_s5 + $0x1f0] sm:$0xff]  }
 0x476   : > { %v5069_v0 = vpop.xlane.xlu1 %5068  ;;  %v5247_v25 = vmax.f32 %v5246_v36, %v4541_v19  ;;  %5709 = vst.msk [vmem:[#allocation2 + $0xf0] sm:$0xff] %vm5678_vm2, %v5580_v37  ;;  %v3305_v34 = vadd.f32 %v3304_v10, %v15947_v23  ;;  %3567 = vmatmul.mubr.bf16.gmra.mrb[20].mxu0 %v11262_v17  ;;  %v3978_v8 = vadd.f32 %v3977_v31, %v15947_v23  ;;  %v4545_v51 = vmax.f32 %v3974_v49, 0.0  ;;  %v4815_v36 = vld [vmem:[#allocation2 + $0x108] sm:$0xff] }
 0x477   : > { %v5581_v2 = vmax.f32 %v4813_v4, %v5069_v0  ;;  %v5250_v47 = vmax.f32 %v4542_v52, %v4543_v26  ;;  %v4546_v29 = vmax.f32 %v3303_v59, 0.0  ;;  %4240 = vmatmul.mubr.bf16.gmra.mrb[20].mxu1 %v11262_v17  ;;  %3576 = vmatprep.mubr.bf16.mxu0 %v15864_v53  ;;  %v4548_v15 = vmax.f32 %v3976_v56, 0.0  ;;  %v15949_v31 = vld [vmem:[#allocation43_spill] sm:$0xff] }
 0x478   : > { %v4547_v14 = vmax.f32 %v3305_v34, 0.0  ;;  %5248 = vmax.xlane.f32.xlu1 %v5247_v25  ;;  %4249 = vmatprep.mubr.bf16.mxu1 %v15864_v53  ;;  %v4549_v52 = vmax.f32 %v3978_v8, 0.0 }
 0x479   : > { %5710 = vst.msk [vmem:[#allocation2 + $0xf8] sm:$0xff] %vm5678_vm2, %v5581_v2  ;;  %v5251_v33 = vmax.f32 %v5250_v47, %v4544_v54  ;;  %v3308_v22 = vpop.f32.mrb[172].mxu0 }
 0x47a   : > { %v3981_v18 = vpop.f32.mrb[172].mxu1  ;;  %v5255_v38 = vmax.f32 %v4546_v29, %v4547_v14  ;;  %v3309_v43 = vadd.f32 %v3308_v22, %v15948_v42  ;;  %v3310_v17 = vpop.f32.mrb[173].mxu0 }
 0x47b   : > { %v3983_v1 = vpop.f32.mrb[173].mxu1  ;;  %v5252_v12 = vmax.f32 %v5251_v33, %v4545_v51  ;;  %v3982_v41 = vadd.f32 %v3981_v18, %v15948_v42  ;;  %v3311_v46 = vadd.f32 %v3310_v17, %v15948_v42  ;;  %v5074_v4 = vpop.xlane.xlu0 %5073  ;;  %v15950_v17 = vld [vmem:[#allocation46_spill] sm:$0xff] }
 0x47c   : > { %v3312_v19 = vpop.f32.mrb[174].mxu0  ;;  %v5256_v37 = vmax.f32 %v5255_v38, %v4548_v15  ;;  %v4550_v16 = vmax.f32 %v3309_v43, 0.0  ;;  %v5582_v10 = vmax.f32 %v4814_v9, %v5074_v4  ;;  %v3985_v26 = vpop.f32.mrb[174].mxu1  ;;  %v3984_v59 = vadd.f32 %v3983_v1, %v15948_v42  ;;  %v4816_v38 = vld [vmem:[#allocation2 + $0x110] sm:$0xff] }
 0x47d   : > { %v3314_v49 = vpop.f32.mrb[175].mxu0  ;;  %v4551_v23 = vmax.f32 %v3311_v46, 0.0  ;;  %v3313_v0 = vadd.f32 %v3312_v19, %v15949_v31  ;;  %v3987_v25 = vpop.f32.mrb[175].mxu1  ;;  %5253 = vmax.xlane.f32.xlu0 %v5252_v12  ;;  %v3986_v2 = vadd.f32 %v3985_v26, %v15949_v31  ;;  %v4552_v29 = vmax.f32 %v3982_v41, 0.0  ;;  %v11264_v41 = vld [vmem:[%s15765_s5 + $0x1f8] sm:$0xff]  }
 0x47e   : > { %v5079_v56 = vpop.xlane.xlu1 %5078  ;;  %v5257_v34 = vmax.f32 %v5256_v37, %v4549_v52  ;;  %5711 = vst.msk [vmem:[#allocation2 + $0x100] sm:$0xff] %vm5678_vm2, %v5582_v10  ;;  %v3315_v54 = vadd.f32 %v3314_v49, %v15949_v31  ;;  %3577 = vmatmul.mubr.bf16.gmra.mrb[24].mxu0 %v11263_v60  ;;  %v3988_v33 = vadd.f32 %v3987_v25, %v15949_v31  ;;  %v4553_v22 = vmax.f32 %v3984_v59, 0.0  ;;  %v4817_v52 = vld [vmem:[#allocation2 + $0x118] sm:$0xff] }
 0x47f   : > { %v5583_v47 = vmax.f32 %v4815_v36, %v5079_v56  ;;  %v5260_v14 = vmax.f32 %v4550_v16, %v4551_v23  ;;  %v4554_v8 = vmax.f32 %v3313_v0, 0.0  ;;  %4250 = vmatmul.mubr.bf16.gmra.mrb[24].mxu1 %v11263_v60  ;;  %3586 = vmatprep.mubr.bf16.mxu0 %v15864_v53  ;;  %v4556_v42 = vmax.f32 %v3986_v2, 0.0  ;;  %v15951_v0 = vld [vmem:[#allocation45_spill] sm:$0xff] }
 0x480   : > { %v4555_v51 = vmax.f32 %v3315_v54, 0.0  ;;  %5258 = vmax.xlane.f32.xlu1 %v5257_v34  ;;  %4259 = vmatprep.mubr.bf16.mxu1 %v15864_v53  ;;  %v4557_v37 = vmax.f32 %v3988_v33, 0.0 }
 0x481   : > { %5712 = vst.msk [vmem:[#allocation2 + $0x108] sm:$0xff] %vm5678_vm2, %v5583_v47  ;;  %v5261_v18 = vmax.f32 %v5260_v14, %v4552_v29  ;;  %v3318_v9 = vpop.f32.mrb[176].mxu0 }
 0x482   : > { %v3991_v15 = vpop.f32.mrb[176].mxu1  ;;  %v5265_v43 = vmax.f32 %v4554_v8, %v4555_v51  ;;  %v3319_v1 = vadd.f32 %v3318_v9, %v15950_v17  ;;  %v3320_v60 = vpop.f32.mrb[177].mxu0 }
 0x483   : > { %v3993_v12 = vpop.f32.mrb[177].mxu1  ;;  %v5262_v46 = vmax.f32 %v5261_v18, %v4553_v22  ;;  %v3992_v4 = vadd.f32 %v3991_v15, %v15950_v17  ;;  %v3321_v53 = vadd.f32 %v3320_v60, %v15950_v17  ;;  %v5084_v19 = vpop.xlane.xlu0 %5083 }
 0x484   : > { %v3322_v36 = vpop.f32.mrb[178].mxu0  ;;  %v5266_v16 = vmax.f32 %v5265_v43, %v4556_v42  ;;  %v4558_v10 = vmax.f32 %v3319_v1, 0.0  ;;  %v5584_v26 = vmax.f32 %v4816_v38, %v5084_v19  ;;  %v3995_v49 = vpop.f32.mrb[178].mxu1  ;;  %v3994_v31 = vadd.f32 %v3993_v12, %v15950_v17  ;;  %v4818_v42 = vld [vmem:[#allocation2 + $0x120] sm:$0xff]  ;;  %v15952_v1 = vld [vmem:[#allocation48_spill] sm:$0xff] }
 0x485   : > { %v3324_v23 = vpop.f32.mrb[179].mxu0  ;;  %v4559_v59 = vmax.f32 %v3321_v53, 0.0  ;;  %v3323_v25 = vadd.f32 %v3322_v36, %v15951_v0  ;;  %v3997_v56 = vpop.f32.mrb[179].mxu1  ;;  %5263 = vmax.xlane.f32.xlu0 %v5262_v46  ;;  %v3996_v54 = vadd.f32 %v3995_v49, %v15951_v0  ;;  %v4560_v14 = vmax.f32 %v3992_v4, 0.0 }
 0x486   : > { %v5089_v34 = vpop.xlane.xlu1 %5088  ;;  %v5267_v2 = vmax.f32 %v5266_v16, %v4557_v37  ;;  %5713 = vst.msk [vmem:[#allocation2 + $0x110] sm:$0xff] %vm5678_vm2, %v5584_v26  ;;  %v3325_v47 = vadd.f32 %v3324_v23, %v15951_v0  ;;  %3587 = vmatmul.mubr.bf16.gmra.mrb[28].mxu0 %v11264_v41  ;;  %v3998_v22 = vadd.f32 %v3997_v56, %v15951_v0  ;;  %v4561_v18 = vmax.f32 %v3994_v31, 0.0  ;;  %v15953_v0 = vld [vmem:[#allocation47_spill] sm:$0xff] }
 0x487   : > { %v5585_v29 = vmax.f32 %v4817_v52, %v5089_v34  ;;  %v5270_v8 = vmax.f32 %v4558_v10, %v4559_v59  ;;  %v4562_v51 = vmax.f32 %v3323_v25, 0.0  ;;  %4260 = vmatmul.mubr.bf16.gmra.mrb[28].mxu1 %v11264_v41  ;;  %v4564_v43 = vmax.f32 %v3996_v54, 0.0  ;;  %v4819_v52 = vld [vmem:[#allocation2 + $0x128] sm:$0xff] }
 0x488   : > { %v4563_v33 = vmax.f32 %v3325_v47, 0.0  ;;  %5268 = vmax.xlane.f32.xlu1 %v5267_v2  ;;  %v4565_v37 = vmax.f32 %v3998_v22, 0.0 }
 0x489   : > { %5714 = vst.msk [vmem:[#allocation2 + $0x118] sm:$0xff] %vm5678_vm2, %v5585_v29  ;;  %v5271_v9 = vmax.f32 %v5270_v8, %v4560_v14  ;;  %v3328_v15 = vpop.f32.mrb[180].mxu0 }
 0x48a   : > { %v4001_v38 = vpop.f32.mrb[180].mxu1  ;;  %v5275_v17 = vmax.f32 %v4562_v51, %v4563_v33  ;;  %v3329_v60 = vadd.f32 %v3328_v15, %v15952_v1  ;;  %v3330_v12 = vpop.f32.mrb[181].mxu0 }
 0x48b   : > { %v4003_v46 = vpop.f32.mrb[181].mxu1  ;;  %v5272_v4 = vmax.f32 %v5271_v9, %v4561_v18  ;;  %v4002_v41 = vadd.f32 %v4001_v38, %v15952_v1  ;;  %v3331_v53 = vadd.f32 %v3330_v12, %v15952_v1  ;;  %v5094_v19 = vpop.xlane.xlu0 %5093 }
 0x48c   : > { %v3332_v36 = vpop.f32.mrb[182].mxu0  ;;  %v5276_v16 = vmax.f32 %v5275_v17, %v4564_v43  ;;  %v4566_v10 = vmax.f32 %v3329_v60, 0.0  ;;  %v5586_v26 = vmax.f32 %v4818_v42, %v5094_v19  ;;  %v4005_v49 = vpop.f32.mrb[182].mxu1  ;;  %v4004_v31 = vadd.f32 %v4003_v46, %v15952_v1  ;;  %v4820_v42 = vld [vmem:[#allocation2 + $0x130] sm:$0xff]  ;;  %v15954_v1 = vld [vmem:[#allocation50_spill] sm:$0xff] }
 0x48d   : > { %v3334_v23 = vpop.f32.mrb[183].mxu0  ;;  %v4567_v59 = vmax.f32 %v3331_v53, 0.0  ;;  %v3333_v25 = vadd.f32 %v3332_v36, %v15953_v0  ;;  %v4007_v56 = vpop.f32.mrb[183].mxu1  ;;  %5273 = vmax.xlane.f32.xlu0 %v5272_v4  ;;  %v4006_v54 = vadd.f32 %v4005_v49, %v15953_v0  ;;  %v4568_v14 = vmax.f32 %v4002_v41, 0.0 }
 0x48e   : > { %v5099_v34 = vpop.xlane.xlu1 %5098  ;;  %v5277_v2 = vmax.f32 %v5276_v16, %v4565_v37  ;;  %5715 = vst.msk [vmem:[#allocation2 + $0x120] sm:$0xff] %vm5678_vm2, %v5586_v26  ;;  %v3335_v47 = vadd.f32 %v3334_v23, %v15953_v0  ;;  %v4008_v22 = vadd.f32 %v4007_v56, %v15953_v0  ;;  %v4569_v18 = vmax.f32 %v4004_v31, 0.0  ;;  %v15955_v0 = vld [vmem:[#allocation49_spill] sm:$0xff] }
 0x48f   : > { %v5587_v29 = vmax.f32 %v4819_v52, %v5099_v34  ;;  %v5280_v8 = vmax.f32 %v4566_v10, %v4567_v59  ;;  %v4570_v51 = vmax.f32 %v3333_v25, 0.0  ;;  %v4572_v43 = vmax.f32 %v4006_v54, 0.0  ;;  %v4821_v52 = vld [vmem:[#allocation2 + $0x138] sm:$0xff] }
 0x490   : > { %v4571_v33 = vmax.f32 %v3335_v47, 0.0  ;;  %5278 = vmax.xlane.f32.xlu1 %v5277_v2  ;;  %v4573_v37 = vmax.f32 %v4008_v22, 0.0 }
 0x491   : > { %5716 = vst.msk [vmem:[#allocation2 + $0x128] sm:$0xff] %vm5678_vm2, %v5587_v29  ;;  %v5281_v9 = vmax.f32 %v5280_v8, %v4568_v14  ;;  %v3338_v15 = vpop.f32.mrb[184].mxu0 }
 0x492   : > { %v4011_v38 = vpop.f32.mrb[184].mxu1  ;;  %v5285_v17 = vmax.f32 %v4570_v51, %v4571_v33  ;;  %v3339_v60 = vadd.f32 %v3338_v15, %v15954_v1  ;;  %v3340_v12 = vpop.f32.mrb[185].mxu0 }
 0x493   : > { %v4013_v46 = vpop.f32.mrb[185].mxu1  ;;  %v5282_v4 = vmax.f32 %v5281_v9, %v4569_v18  ;;  %v4012_v41 = vadd.f32 %v4011_v38, %v15954_v1  ;;  %v3341_v53 = vadd.f32 %v3340_v12, %v15954_v1  ;;  %v5104_v19 = vpop.xlane.xlu0 %5103 }
 0x494   : > { %v3342_v36 = vpop.f32.mrb[186].mxu0  ;;  %v5286_v16 = vmax.f32 %v5285_v17, %v4572_v43  ;;  %v4574_v10 = vmax.f32 %v3339_v60, 0.0  ;;  %v5588_v26 = vmax.f32 %v4820_v42, %v5104_v19  ;;  %v4015_v49 = vpop.f32.mrb[186].mxu1  ;;  %v4014_v31 = vadd.f32 %v4013_v46, %v15954_v1  ;;  %v4822_v42 = vld [vmem:[#allocation2 + $0x140] sm:$0xff]  ;;  %v15956_v1 = vld [vmem:[#allocation52_spill] sm:$0xff] }
 0x495   : > { %v3344_v23 = vpop.f32.mrb[187].mxu0  ;;  %v4575_v59 = vmax.f32 %v3341_v53, 0.0  ;;  %v3343_v25 = vadd.f32 %v3342_v36, %v15955_v0  ;;  %v4017_v56 = vpop.f32.mrb[187].mxu1  ;;  %5283 = vmax.xlane.f32.xlu0 %v5282_v4  ;;  %v4016_v54 = vadd.f32 %v4015_v49, %v15955_v0  ;;  %v4576_v14 = vmax.f32 %v4012_v41, 0.0 }
 0x496   : > { %v5109_v34 = vpop.xlane.xlu1 %5108  ;;  %v5287_v2 = vmax.f32 %v5286_v16, %v4573_v37  ;;  %5717 = vst.msk [vmem:[#allocation2 + $0x130] sm:$0xff] %vm5678_vm2, %v5588_v26  ;;  %v3345_v47 = vadd.f32 %v3344_v23, %v15955_v0  ;;  %v4018_v22 = vadd.f32 %v4017_v56, %v15955_v0  ;;  %v4577_v18 = vmax.f32 %v4014_v31, 0.0  ;;  %v15957_v0 = vld [vmem:[#allocation51_spill] sm:$0xff] }
 0x497   : > { %v5589_v29 = vmax.f32 %v4821_v52, %v5109_v34  ;;  %v5290_v8 = vmax.f32 %v4574_v10, %v4575_v59  ;;  %v4578_v51 = vmax.f32 %v3343_v25, 0.0  ;;  %v4580_v43 = vmax.f32 %v4016_v54, 0.0  ;;  %v4823_v52 = vld [vmem:[#allocation2 + $0x148] sm:$0xff] }
 0x498   : > { %v4579_v33 = vmax.f32 %v3345_v47, 0.0  ;;  %5288 = vmax.xlane.f32.xlu1 %v5287_v2  ;;  %v4581_v37 = vmax.f32 %v4018_v22, 0.0 }
 0x499   : > { %5718 = vst.msk [vmem:[#allocation2 + $0x138] sm:$0xff] %vm5678_vm2, %v5589_v29  ;;  %v5291_v9 = vmax.f32 %v5290_v8, %v4576_v14  ;;  %v3348_v15 = vpop.f32.mrb[188].mxu0 }
 0x49a   : > { %v4021_v38 = vpop.f32.mrb[188].mxu1  ;;  %v5295_v17 = vmax.f32 %v4578_v51, %v4579_v33  ;;  %v3349_v60 = vadd.f32 %v3348_v15, %v15956_v1  ;;  %v3350_v12 = vpop.f32.mrb[189].mxu0 }
 0x49b   : > { %v4023_v46 = vpop.f32.mrb[189].mxu1  ;;  %v5292_v4 = vmax.f32 %v5291_v9, %v4577_v18  ;;  %v4022_v41 = vadd.f32 %v4021_v38, %v15956_v1  ;;  %v3351_v53 = vadd.f32 %v3350_v12, %v15956_v1  ;;  %v5114_v19 = vpop.xlane.xlu0 %5113 }
 0x49c   : > { %v3352_v36 = vpop.f32.mrb[190].mxu0  ;;  %v5296_v16 = vmax.f32 %v5295_v17, %v4580_v43  ;;  %v4582_v10 = vmax.f32 %v3349_v60, 0.0  ;;  %v5590_v26 = vmax.f32 %v4822_v42, %v5114_v19  ;;  %v4025_v49 = vpop.f32.mrb[190].mxu1  ;;  %v4024_v31 = vadd.f32 %v4023_v46, %v15956_v1  ;;  %v4824_v42 = vld [vmem:[#allocation2 + $0x150] sm:$0xff]  ;;  %v15958_v1 = vld [vmem:[#allocation54_spill] sm:$0xff] }
 0x49d   : > { %v3354_v23 = vpop.f32.mrb[191].mxu0  ;;  %v4583_v59 = vmax.f32 %v3351_v53, 0.0  ;;  %v3353_v25 = vadd.f32 %v3352_v36, %v15957_v0  ;;  %v4027_v56 = vpop.f32.mrb[191].mxu1  ;;  %5293 = vmax.xlane.f32.xlu0 %v5292_v4  ;;  %v4026_v54 = vadd.f32 %v4025_v49, %v15957_v0  ;;  %v4584_v14 = vmax.f32 %v4022_v41, 0.0 }
 0x49e   : > { %v5119_v34 = vpop.xlane.xlu1 %5118  ;;  %v5297_v2 = vmax.f32 %v5296_v16, %v4581_v37  ;;  %5719 = vst.msk [vmem:[#allocation2 + $0x140] sm:$0xff] %vm5678_vm2, %v5590_v26  ;;  %v3355_v47 = vadd.f32 %v3354_v23, %v15957_v0  ;;  %v4028_v22 = vadd.f32 %v4027_v56, %v15957_v0  ;;  %v4585_v18 = vmax.f32 %v4024_v31, 0.0  ;;  %v15959_v0 = vld [vmem:[#allocation53_spill] sm:$0xff] }
 0x49f   : > { %v5591_v29 = vmax.f32 %v4823_v52, %v5119_v34  ;;  %v5300_v8 = vmax.f32 %v4582_v10, %v4583_v59  ;;  %v4586_v51 = vmax.f32 %v3353_v25, 0.0  ;;  %v4588_v43 = vmax.f32 %v4026_v54, 0.0  ;;  %v4825_v52 = vld [vmem:[#allocation2 + $0x158] sm:$0xff] }
 0x4a0   : > { %v4587_v33 = vmax.f32 %v3355_v47, 0.0  ;;  %5298 = vmax.xlane.f32.xlu1 %v5297_v2  ;;  %v4589_v37 = vmax.f32 %v4028_v22, 0.0 }
 0x4a1   : > { %5720 = vst.msk [vmem:[#allocation2 + $0x148] sm:$0xff] %vm5678_vm2, %v5591_v29  ;;  %v5301_v9 = vmax.f32 %v5300_v8, %v4584_v14  ;;  %v3358_v15 = vpop.f32.mrb[192].mxu0 }
 0x4a2   : > { %v4031_v38 = vpop.f32.mrb[192].mxu1  ;;  %v5305_v17 = vmax.f32 %v4586_v51, %v4587_v33  ;;  %v3359_v60 = vadd.f32 %v3358_v15, %v15958_v1  ;;  %v3360_v12 = vpop.f32.mrb[193].mxu0 }
 0x4a3   : > { %v4033_v46 = vpop.f32.mrb[193].mxu1  ;;  %v5302_v4 = vmax.f32 %v5301_v9, %v4585_v18  ;;  %v4032_v41 = vadd.f32 %v4031_v38, %v15958_v1  ;;  %v3361_v53 = vadd.f32 %v3360_v12, %v15958_v1  ;;  %v5124_v19 = vpop.xlane.xlu0 %5123 }
 0x4a4   : > { %v3362_v36 = vpop.f32.mrb[194].mxu0  ;;  %v5306_v16 = vmax.f32 %v5305_v17, %v4588_v43  ;;  %v4590_v10 = vmax.f32 %v3359_v60, 0.0  ;;  %v5592_v26 = vmax.f32 %v4824_v42, %v5124_v19  ;;  %v4035_v49 = vpop.f32.mrb[194].mxu1  ;;  %v4034_v31 = vadd.f32 %v4033_v46, %v15958_v1  ;;  %v4826_v42 = vld [vmem:[#allocation2 + $0x160] sm:$0xff]  ;;  %v15960_v1 = vld [vmem:[#allocation56_spill] sm:$0xff] }
 0x4a5   : > { %v3364_v23 = vpop.f32.mrb[195].mxu0  ;;  %v4591_v59 = vmax.f32 %v3361_v53, 0.0  ;;  %v3363_v25 = vadd.f32 %v3362_v36, %v15959_v0  ;;  %v4037_v56 = vpop.f32.mrb[195].mxu1  ;;  %5303 = vmax.xlane.f32.xlu0 %v5302_v4  ;;  %v4036_v54 = vadd.f32 %v4035_v49, %v15959_v0  ;;  %v4592_v14 = vmax.f32 %v4032_v41, 0.0 }
 0x4a6   : > { %v5129_v34 = vpop.xlane.xlu1 %5128  ;;  %v5307_v2 = vmax.f32 %v5306_v16, %v4589_v37  ;;  %5721 = vst.msk [vmem:[#allocation2 + $0x150] sm:$0xff] %vm5678_vm2, %v5592_v26  ;;  %v3365_v47 = vadd.f32 %v3364_v23, %v15959_v0  ;;  %v4038_v22 = vadd.f32 %v4037_v56, %v15959_v0  ;;  %v4593_v18 = vmax.f32 %v4034_v31, 0.0  ;;  %v15961_v0 = vld [vmem:[#allocation55_spill] sm:$0xff] }
 0x4a7   : > { %v5593_v29 = vmax.f32 %v4825_v52, %v5129_v34  ;;  %v5310_v8 = vmax.f32 %v4590_v10, %v4591_v59  ;;  %v4594_v51 = vmax.f32 %v3363_v25, 0.0  ;;  %v4596_v43 = vmax.f32 %v4036_v54, 0.0  ;;  %v4827_v52 = vld [vmem:[#allocation2 + $0x168] sm:$0xff] }
 0x4a8   : > { %v4595_v33 = vmax.f32 %v3365_v47, 0.0  ;;  %5308 = vmax.xlane.f32.xlu1 %v5307_v2  ;;  %v4597_v37 = vmax.f32 %v4038_v22, 0.0 }
 0x4a9   : > { %5722 = vst.msk [vmem:[#allocation2 + $0x158] sm:$0xff] %vm5678_vm2, %v5593_v29  ;;  %v5311_v9 = vmax.f32 %v5310_v8, %v4592_v14  ;;  %v3368_v15 = vpop.f32.mrb[196].mxu0 }
 0x4aa   : > { %v4041_v38 = vpop.f32.mrb[196].mxu1  ;;  %v5315_v17 = vmax.f32 %v4594_v51, %v4595_v33  ;;  %v3369_v60 = vadd.f32 %v3368_v15, %v15960_v1  ;;  %v3370_v12 = vpop.f32.mrb[197].mxu0 }
 0x4ab   : > { %v4043_v46 = vpop.f32.mrb[197].mxu1  ;;  %v5312_v4 = vmax.f32 %v5311_v9, %v4593_v18  ;;  %v4042_v41 = vadd.f32 %v4041_v38, %v15960_v1  ;;  %v3371_v53 = vadd.f32 %v3370_v12, %v15960_v1  ;;  %v5134_v19 = vpop.xlane.xlu0 %5133 }
 0x4ac   : > { %v3372_v36 = vpop.f32.mrb[198].mxu0  ;;  %v5316_v16 = vmax.f32 %v5315_v17, %v4596_v43  ;;  %v4598_v10 = vmax.f32 %v3369_v60, 0.0  ;;  %v5594_v26 = vmax.f32 %v4826_v42, %v5134_v19  ;;  %v4045_v49 = vpop.f32.mrb[198].mxu1  ;;  %v4044_v31 = vadd.f32 %v4043_v46, %v15960_v1  ;;  %v4828_v42 = vld [vmem:[#allocation2 + $0x170] sm:$0xff]  ;;  %v15962_v1 = vld [vmem:[#allocation58_spill] sm:$0xff] }
 0x4ad   : > { %v3374_v23 = vpop.f32.mrb[199].mxu0  ;;  %v4599_v59 = vmax.f32 %v3371_v53, 0.0  ;;  %v3373_v25 = vadd.f32 %v3372_v36, %v15961_v0  ;;  %v4047_v56 = vpop.f32.mrb[199].mxu1  ;;  %5313 = vmax.xlane.f32.xlu0 %v5312_v4  ;;  %v4046_v54 = vadd.f32 %v4045_v49, %v15961_v0  ;;  %v4600_v14 = vmax.f32 %v4042_v41, 0.0 }
 0x4ae   : > { %v5139_v34 = vpop.xlane.xlu1 %5138  ;;  %v5317_v2 = vmax.f32 %v5316_v16, %v4597_v37  ;;  %5723 = vst.msk [vmem:[#allocation2 + $0x160] sm:$0xff] %vm5678_vm2, %v5594_v26  ;;  %v3375_v47 = vadd.f32 %v3374_v23, %v15961_v0  ;;  %v4048_v22 = vadd.f32 %v4047_v56, %v15961_v0  ;;  %v4601_v18 = vmax.f32 %v4044_v31, 0.0  ;;  %v15963_v0 = vld [vmem:[#allocation57_spill] sm:$0xff] }
 0x4af   : > { %v5595_v29 = vmax.f32 %v4827_v52, %v5139_v34  ;;  %v5320_v8 = vmax.f32 %v4598_v10, %v4599_v59  ;;  %v4602_v51 = vmax.f32 %v3373_v25, 0.0  ;;  %v4604_v43 = vmax.f32 %v4046_v54, 0.0  ;;  %v4829_v52 = vld [vmem:[#allocation2 + $0x178] sm:$0xff] }
 0x4b0   : > { %v4603_v33 = vmax.f32 %v3375_v47, 0.0  ;;  %5318 = vmax.xlane.f32.xlu1 %v5317_v2  ;;  %v4605_v37 = vmax.f32 %v4048_v22, 0.0 }
 0x4b1   : > { %5724 = vst.msk [vmem:[#allocation2 + $0x168] sm:$0xff] %vm5678_vm2, %v5595_v29  ;;  %v5321_v9 = vmax.f32 %v5320_v8, %v4600_v14  ;;  %v3378_v15 = vpop.f32.mrb[200].mxu0 }
 0x4b2   : > { %v4051_v38 = vpop.f32.mrb[200].mxu1  ;;  %v5325_v17 = vmax.f32 %v4602_v51, %v4603_v33  ;;  %v3379_v60 = vadd.f32 %v3378_v15, %v15962_v1  ;;  %v3380_v12 = vpop.f32.mrb[201].mxu0 }
 0x4b3   : > { %v4053_v46 = vpop.f32.mrb[201].mxu1  ;;  %v5322_v4 = vmax.f32 %v5321_v9, %v4601_v18  ;;  %v4052_v41 = vadd.f32 %v4051_v38, %v15962_v1  ;;  %v3381_v53 = vadd.f32 %v3380_v12, %v15962_v1  ;;  %v5144_v19 = vpop.xlane.xlu0 %5143 }
 0x4b4   : > { %v3382_v36 = vpop.f32.mrb[202].mxu0  ;;  %v5326_v16 = vmax.f32 %v5325_v17, %v4604_v43  ;;  %v4606_v10 = vmax.f32 %v3379_v60, 0.0  ;;  %v5596_v26 = vmax.f32 %v4828_v42, %v5144_v19  ;;  %v4055_v49 = vpop.f32.mrb[202].mxu1  ;;  %v4054_v31 = vadd.f32 %v4053_v46, %v15962_v1  ;;  %v4830_v42 = vld [vmem:[#allocation2 + $0x180] sm:$0xff]  ;;  %v15964_v1 = vld [vmem:[#allocation60_spill] sm:$0xff] }
 0x4b5   : > { %v3384_v23 = vpop.f32.mrb[203].mxu0  ;;  %v4607_v59 = vmax.f32 %v3381_v53, 0.0  ;;  %v3383_v25 = vadd.f32 %v3382_v36, %v15963_v0  ;;  %v4057_v56 = vpop.f32.mrb[203].mxu1  ;;  %5323 = vmax.xlane.f32.xlu0 %v5322_v4  ;;  %v4056_v54 = vadd.f32 %v4055_v49, %v15963_v0  ;;  %v4608_v14 = vmax.f32 %v4052_v41, 0.0 }
 0x4b6   : > { %v5149_v34 = vpop.xlane.xlu1 %5148  ;;  %v5327_v2 = vmax.f32 %v5326_v16, %v4605_v37  ;;  %5725 = vst.msk [vmem:[#allocation2 + $0x170] sm:$0xff] %vm5678_vm2, %v5596_v26  ;;  %v3385_v47 = vadd.f32 %v3384_v23, %v15963_v0  ;;  %v4058_v22 = vadd.f32 %v4057_v56, %v15963_v0  ;;  %v4609_v18 = vmax.f32 %v4054_v31, 0.0  ;;  %v15965_v0 = vld [vmem:[#allocation59_spill] sm:$0xff] }
 0x4b7   : > { %v5597_v29 = vmax.f32 %v4829_v52, %v5149_v34  ;;  %v5330_v8 = vmax.f32 %v4606_v10, %v4607_v59  ;;  %v4610_v51 = vmax.f32 %v3383_v25, 0.0  ;;  %v4612_v43 = vmax.f32 %v4056_v54, 0.0  ;;  %v4831_v52 = vld [vmem:[#allocation2 + $0x188] sm:$0xff] }
 0x4b8   : > { %v4611_v33 = vmax.f32 %v3385_v47, 0.0  ;;  %5328 = vmax.xlane.f32.xlu1 %v5327_v2  ;;  %v4613_v37 = vmax.f32 %v4058_v22, 0.0 }
 0x4b9   : > { %5726 = vst.msk [vmem:[#allocation2 + $0x178] sm:$0xff] %vm5678_vm2, %v5597_v29  ;;  %v5331_v9 = vmax.f32 %v5330_v8, %v4608_v14  ;;  %v3388_v15 = vpop.f32.mrb[204].mxu0 }
 0x4ba   : > { %v4061_v38 = vpop.f32.mrb[204].mxu1  ;;  %v5335_v17 = vmax.f32 %v4610_v51, %v4611_v33  ;;  %v3389_v60 = vadd.f32 %v3388_v15, %v15964_v1  ;;  %v3390_v12 = vpop.f32.mrb[205].mxu0 }
 0x4bb   : > { %v4063_v46 = vpop.f32.mrb[205].mxu1  ;;  %v5332_v4 = vmax.f32 %v5331_v9, %v4609_v18  ;;  %v4062_v41 = vadd.f32 %v4061_v38, %v15964_v1  ;;  %v3391_v53 = vadd.f32 %v3390_v12, %v15964_v1  ;;  %v5154_v19 = vpop.xlane.xlu0 %5153 }
 0x4bc   : > { %v3392_v36 = vpop.f32.mrb[206].mxu0  ;;  %v5336_v16 = vmax.f32 %v5335_v17, %v4612_v43  ;;  %v4614_v10 = vmax.f32 %v3389_v60, 0.0  ;;  %v5598_v26 = vmax.f32 %v4830_v42, %v5154_v19  ;;  %v4065_v49 = vpop.f32.mrb[206].mxu1  ;;  %v4064_v31 = vadd.f32 %v4063_v46, %v15964_v1  ;;  %v4832_v42 = vld [vmem:[#allocation2 + $0x190] sm:$0xff]  ;;  %v15966_v1 = vld [vmem:[#allocation62_spill] sm:$0xff] }
 0x4bd   : > { %v3394_v23 = vpop.f32.mrb[207].mxu0  ;;  %v4615_v59 = vmax.f32 %v3391_v53, 0.0  ;;  %v3393_v25 = vadd.f32 %v3392_v36, %v15965_v0  ;;  %v4067_v56 = vpop.f32.mrb[207].mxu1  ;;  %5333 = vmax.xlane.f32.xlu0 %v5332_v4  ;;  %v4066_v54 = vadd.f32 %v4065_v49, %v15965_v0  ;;  %v4616_v14 = vmax.f32 %v4062_v41, 0.0 }
 0x4be   : > { %v5159_v34 = vpop.xlane.xlu1 %5158  ;;  %v5337_v2 = vmax.f32 %v5336_v16, %v4613_v37  ;;  %5727 = vst.msk [vmem:[#allocation2 + $0x180] sm:$0xff] %vm5678_vm2, %v5598_v26  ;;  %v3395_v47 = vadd.f32 %v3394_v23, %v15965_v0  ;;  %v4068_v22 = vadd.f32 %v4067_v56, %v15965_v0  ;;  %v4617_v18 = vmax.f32 %v4064_v31, 0.0  ;;  %v15967_v0 = vld [vmem:[#allocation61_spill] sm:$0xff] }
 0x4bf   : > { %v5599_v29 = vmax.f32 %v4831_v52, %v5159_v34  ;;  %v5340_v8 = vmax.f32 %v4614_v10, %v4615_v59  ;;  %v4618_v51 = vmax.f32 %v3393_v25, 0.0  ;;  %v4620_v43 = vmax.f32 %v4066_v54, 0.0  ;;  %v4833_v52 = vld [vmem:[#allocation2 + $0x198] sm:$0xff] }
 0x4c0   : > { %v4619_v33 = vmax.f32 %v3395_v47, 0.0  ;;  %5338 = vmax.xlane.f32.xlu1 %v5337_v2  ;;  %v4621_v37 = vmax.f32 %v4068_v22, 0.0 }
 0x4c1   : > { %5728 = vst.msk [vmem:[#allocation2 + $0x188] sm:$0xff] %vm5678_vm2, %v5599_v29  ;;  %v5341_v9 = vmax.f32 %v5340_v8, %v4616_v14  ;;  %v3398_v15 = vpop.f32.mrb[208].mxu0 }
 0x4c2   : > { %v4071_v38 = vpop.f32.mrb[208].mxu1  ;;  %v5345_v17 = vmax.f32 %v4618_v51, %v4619_v33  ;;  %v3399_v60 = vadd.f32 %v3398_v15, %v15966_v1  ;;  %v3400_v12 = vpop.f32.mrb[209].mxu0 }
 0x4c3   : > { %v4073_v46 = vpop.f32.mrb[209].mxu1  ;;  %v5342_v4 = vmax.f32 %v5341_v9, %v4617_v18  ;;  %v4072_v41 = vadd.f32 %v4071_v38, %v15966_v1  ;;  %v3401_v53 = vadd.f32 %v3400_v12, %v15966_v1  ;;  %v5164_v19 = vpop.xlane.xlu0 %5163 }
 0x4c4   : > { %v3402_v36 = vpop.f32.mrb[210].mxu0  ;;  %v5346_v16 = vmax.f32 %v5345_v17, %v4620_v43  ;;  %v4622_v10 = vmax.f32 %v3399_v60, 0.0  ;;  %v5600_v26 = vmax.f32 %v4832_v42, %v5164_v19  ;;  %v4075_v49 = vpop.f32.mrb[210].mxu1  ;;  %v4074_v31 = vadd.f32 %v4073_v46, %v15966_v1  ;;  %v4834_v42 = vld [vmem:[#allocation2 + $0x1a0] sm:$0xff]  ;;  %v15968_v1 = vld [vmem:[#allocation64_spill] sm:$0xff] }
 0x4c5   : > { %v3404_v23 = vpop.f32.mrb[211].mxu0  ;;  %v4623_v59 = vmax.f32 %v3401_v53, 0.0  ;;  %v3403_v25 = vadd.f32 %v3402_v36, %v15967_v0  ;;  %v4077_v56 = vpop.f32.mrb[211].mxu1  ;;  %5343 = vmax.xlane.f32.xlu0 %v5342_v4  ;;  %v4076_v54 = vadd.f32 %v4075_v49, %v15967_v0  ;;  %v4624_v14 = vmax.f32 %v4072_v41, 0.0 }
 0x4c6   : > { %v5169_v34 = vpop.xlane.xlu1 %5168  ;;  %v5347_v2 = vmax.f32 %v5346_v16, %v4621_v37  ;;  %5729 = vst.msk [vmem:[#allocation2 + $0x190] sm:$0xff] %vm5678_vm2, %v5600_v26  ;;  %v3405_v47 = vadd.f32 %v3404_v23, %v15967_v0  ;;  %v4078_v22 = vadd.f32 %v4077_v56, %v15967_v0  ;;  %v4625_v18 = vmax.f32 %v4074_v31, 0.0  ;;  %v15969_v0 = vld [vmem:[#allocation63_spill] sm:$0xff] }
 0x4c7   : > { %v5601_v29 = vmax.f32 %v4833_v52, %v5169_v34  ;;  %v5350_v8 = vmax.f32 %v4622_v10, %v4623_v59  ;;  %v4626_v51 = vmax.f32 %v3403_v25, 0.0  ;;  %v4628_v43 = vmax.f32 %v4076_v54, 0.0  ;;  %v4835_v52 = vld [vmem:[#allocation2 + $0x1a8] sm:$0xff] }
 0x4c8   : > { %v4627_v33 = vmax.f32 %v3405_v47, 0.0  ;;  %5348 = vmax.xlane.f32.xlu1 %v5347_v2  ;;  %v4629_v37 = vmax.f32 %v4078_v22, 0.0 }
 0x4c9   : > { %5730 = vst.msk [vmem:[#allocation2 + $0x198] sm:$0xff] %vm5678_vm2, %v5601_v29  ;;  %v5351_v9 = vmax.f32 %v5350_v8, %v4624_v14  ;;  %v3408_v15 = vpop.f32.mrb[212].mxu0 }
 0x4ca   : > { %v4081_v38 = vpop.f32.mrb[212].mxu1  ;;  %v5355_v17 = vmax.f32 %v4626_v51, %v4627_v33  ;;  %v3409_v60 = vadd.f32 %v3408_v15, %v15968_v1  ;;  %v3410_v12 = vpop.f32.mrb[213].mxu0 }
 0x4cb   : > { %v4083_v46 = vpop.f32.mrb[213].mxu1  ;;  %v5352_v4 = vmax.f32 %v5351_v9, %v4625_v18  ;;  %v4082_v41 = vadd.f32 %v4081_v38, %v15968_v1  ;;  %v3411_v53 = vadd.f32 %v3410_v12, %v15968_v1  ;;  %v5174_v19 = vpop.xlane.xlu0 %5173 }
 0x4cc   : > { %v3412_v36 = vpop.f32.mrb[214].mxu0  ;;  %v5356_v16 = vmax.f32 %v5355_v17, %v4628_v43  ;;  %v4630_v10 = vmax.f32 %v3409_v60, 0.0  ;;  %v5602_v26 = vmax.f32 %v4834_v42, %v5174_v19  ;;  %v4085_v49 = vpop.f32.mrb[214].mxu1  ;;  %v4084_v31 = vadd.f32 %v4083_v46, %v15968_v1  ;;  %v4836_v42 = vld [vmem:[#allocation2 + $0x1b0] sm:$0xff] }
 0x4cd   : > { %v3414_v23 = vpop.f32.mrb[215].mxu0  ;;  %v4631_v59 = vmax.f32 %v3411_v53, 0.0  ;;  %v3413_v25 = vadd.f32 %v3412_v36, %v15969_v0  ;;  %v4087_v56 = vpop.f32.mrb[215].mxu1  ;;  %5353 = vmax.xlane.f32.xlu0 %v5352_v4  ;;  %v4086_v54 = vadd.f32 %v4085_v49, %v15969_v0  ;;  %v4632_v14 = vmax.f32 %v4082_v41, 0.0  ;;  %v4837_v36 = vld [vmem:[#allocation2 + $0x1b8] sm:$0xff] }
 0x4ce   : > { %v5179_v34 = vpop.xlane.xlu1 %5178  ;;  %v5357_v2 = vmax.f32 %v5356_v16, %v4629_v37  ;;  %5731 = vst.msk [vmem:[#allocation2 + $0x1a0] sm:$0xff] %vm5678_vm2, %v5602_v26  ;;  %v3415_v47 = vadd.f32 %v3414_v23, %v15969_v0  ;;  %v4088_v22 = vadd.f32 %v4087_v56, %v15969_v0  ;;  %v4633_v18 = vmax.f32 %v4084_v31, 0.0 }
 0x4cf   : > { %v5603_v29 = vmax.f32 %v4835_v52, %v5179_v34  ;;  %v5360_v8 = vmax.f32 %v4630_v10, %v4631_v59  ;;  %v4634_v51 = vmax.f32 %v3413_v25, 0.0  ;;  %v4636_v43 = vmax.f32 %v4086_v54, 0.0 }
 0x4d0   : > { %v4635_v33 = vmax.f32 %v3415_v47, 0.0  ;;  %5358 = vmax.xlane.f32.xlu1 %v5357_v2  ;;  %v4637_v52 = vmax.f32 %v4088_v22, 0.0 }
 0x4d1   : > { %5732 = vst.msk [vmem:[#allocation2 + $0x1a8] sm:$0xff] %vm5678_vm2, %v5603_v29  ;;  %v5361_v9 = vmax.f32 %v5360_v8, %v4632_v14  ;;  %v3418_v15 = vpop.f32.mrb[216].mxu0 }
 0x4d2   : > { %v4091_v38 = vpop.f32.mrb[216].mxu1  ;;  %v5365_v17 = vmax.f32 %v4634_v51, %v4635_v33  ;;  %v3419_v1 = vadd.f32 %v3418_v15, %v13228_v35  ;;  %v3420_v60 = vpop.f32.mrb[217].mxu0 }
 0x4d3   : > { %v4093_v12 = vpop.f32.mrb[217].mxu1  ;;  %v5362_v46 = vmax.f32 %v5361_v9, %v4633_v18  ;;  %v4092_v4 = vadd.f32 %v4091_v38, %v13228_v35  ;;  %v3421_v41 = vadd.f32 %v3420_v60, %v13228_v35  ;;  %v5184_v53 = vpop.xlane.xlu0 %5183  ;;  %v4838_v18 = vld [vmem:[#allocation2 + $0x1c0] sm:$0xff] }
 0x4d4   : > { %v3422_v19 = vpop.f32.mrb[218].mxu0  ;;  %v5366_v37 = vmax.f32 %v5365_v17, %v4636_v43  ;;  %v4638_v16 = vmax.f32 %v3419_v1, 0.0  ;;  %v5604_v10 = vmax.f32 %v4836_v42, %v5184_v53  ;;  %v4095_v26 = vpop.f32.mrb[218].mxu1  ;;  %v4094_v59 = vadd.f32 %v4093_v12, %v13228_v35 }
 0x4d5   : > { %v3424_v49 = vpop.f32.mrb[219].mxu0  ;;  %v4639_v23 = vmax.f32 %v3421_v41, 0.0  ;;  %v3423_v31 = vadd.f32 %v3422_v19, %v13226_v55  ;;  %v4097_v0 = vpop.f32.mrb[219].mxu1  ;;  %5363 = vmax.xlane.f32.xlu0 %v5362_v46  ;;  %v4096_v34 = vadd.f32 %v4095_v26, %v13226_v55  ;;  %v4640_v47 = vmax.f32 %v4092_v4, 0.0 }
 0x4d6   : > { %v5189_v25 = vpop.xlane.xlu1 %5188  ;;  %v5367_v56 = vmax.f32 %v5366_v37, %v4637_v52  ;;  %5733 = vst.msk [vmem:[#allocation2 + $0x1b0] sm:$0xff] %vm5678_vm2, %v5604_v10  ;;  %v3425_v2 = vadd.f32 %v3424_v49, %v13226_v55  ;;  %v4098_v51 = vadd.f32 %v4097_v0, %v13226_v55  ;;  %v4641_v35 = vmax.f32 %v4094_v59, 0.0  ;;  %v4839_v52 = vld [vmem:[#allocation2 + $0x1c8] sm:$0xff] }
 0x4d7   : > { %v5605_v54 = vmax.f32 %v4837_v36, %v5189_v25  ;;  %v5370_v29 = vmax.f32 %v4638_v16, %v4639_v23  ;;  %v4642_v14 = vmax.f32 %v3423_v31, 0.0  ;;  %v4644_v9 = vmax.f32 %v4096_v34, 0.0 }
 0x4d8   : > { %v4643_v8 = vmax.f32 %v3425_v2, 0.0  ;;  %5368 = vmax.xlane.f32.xlu1 %v5367_v56  ;;  %v4645_v46 = vmax.f32 %v4098_v51, 0.0 }
 0x4d9   : > { %5734 = vst.msk [vmem:[#allocation2 + $0x1b8] sm:$0xff] %vm5678_vm2, %v5605_v54  ;;  %v5371_v33 = vmax.f32 %v5370_v29, %v4640_v47  ;;  %v3428_v22 = vpop.f32.mrb[220].mxu0 }
 0x4da   : > { %v5375_v15 = vmax.f32 %v4642_v14, %v4643_v8  ;;  %v3429_v38 = vadd.f32 %v3428_v22, %v13245_v24  ;;  %v4101_v42 = vpop.f32.mrb[220].mxu1  ;;  %v3430_v43 = vpop.f32.mrb[221].mxu0  ;;  %v4840_v8 = vld [vmem:[#allocation2 + $0x1d0] sm:$0xff] }
 0x4db   : > { %v5372_v17 = vmax.f32 %v5371_v33, %v4641_v35  ;;  %v4102_v1 = vadd.f32 %v4101_v42, %v13245_v24  ;;  %v3431_v60 = vadd.f32 %v3430_v43, %v13245_v24  ;;  %v4103_v12 = vpop.f32.mrb[221].mxu1  ;;  %v5194_v55 = vpop.xlane.xlu0 %5193 }
 0x4dc   : > { %v5376_v4 = vmax.f32 %v5375_v15, %v4644_v9  ;;  %v4646_v41 = vmax.f32 %v3429_v38, 0.0  ;;  %v5606_v53 = vmax.f32 %v4838_v18, %v5194_v55  ;;  %v3432_v19 = vpop.f32.mrb[222].mxu0  ;;  %v4105_v36 = vpop.f32.mrb[222].mxu1  ;;  %v4104_v16 = vadd.f32 %v4103_v12, %v13245_v24 }
 0x4dd   : > { %v4647_v37 = vmax.f32 %v3431_v60, 0.0  ;;  %v3433_v10 = vadd.f32 %v3432_v19, %v13243_v48  ;;  %v3434_v26 = vpop.f32.mrb[223].mxu0  ;;  %v4107_v49 = vpop.f32.mrb[223].mxu1  ;;  %5373 = vmax.xlane.f32.xlu0 %v5372_v17  ;;  %v4106_v59 = vadd.f32 %v4105_v36, %v13243_v48  ;;  %v4648_v25 = vmax.f32 %v4102_v1, 0.0 }
 0x4de   : > { %v5377_v23 = vmax.f32 %v5376_v4, %v4645_v46  ;;  %5735 = vst.msk [vmem:[#allocation2 + $0x1c0] sm:$0xff] %vm5678_vm2, %v5606_v53  ;;  %v3435_v31 = vadd.f32 %v3434_v26, %v13243_v48  ;;  %v5199_v0 = vpop.xlane.xlu1 %5198  ;;  %v4108_v24 = vadd.f32 %v4107_v49, %v13243_v48  ;;  %v4649_v47 = vmax.f32 %v4104_v16, 0.0  ;;  %v4841_v46 = vld [vmem:[#allocation2 + $0x1d8] sm:$0xff] }
 0x4df   : > { %v5380_v56 = vmax.f32 %v4646_v41, %v4647_v37  ;;  %v4650_v34 = vmax.f32 %v3433_v10, 0.0  ;;  %v5607_v2 = vmax.f32 %v4839_v52, %v5199_v0  ;;  %v4652_v51 = vmax.f32 %v4106_v59, 0.0 }
 0x4e0   : > { %v4651_v54 = vmax.f32 %v3435_v31, 0.0  ;;  %5378 = vmax.xlane.f32.xlu1 %v5377_v23  ;;  %v4653_v43 = vmax.f32 %v4108_v24, 0.0 }
 0x4e1   : > { %v5381_v29 = vmax.f32 %v5380_v56, %v4648_v25  ;;  %5736 = vst.msk [vmem:[#allocation2 + $0x1c8] sm:$0xff] %vm5678_vm2, %v5607_v2  ;;  %v3438_v14 = vpop.f32.mrb[224].mxu0 }
 0x4e2   : > { %v5385_v35 = vmax.f32 %v4650_v34, %v4651_v54  ;;  %v3439_v33 = vadd.f32 %v3438_v14, %v13262_v6  ;;  %v4111_v22 = vpop.f32.mrb[224].mxu1  ;;  %v3440_v18 = vpop.f32.mrb[225].mxu0  ;;  %v4842_v34 = vld [vmem:[#allocation2 + $0x1e0] sm:$0xff] }
 0x4e3   : > { %v5382_v9 = vmax.f32 %v5381_v29, %v4649_v47  ;;  %v4112_v15 = vadd.f32 %v4111_v22, %v13262_v6  ;;  %v3441_v38 = vadd.f32 %v3440_v18, %v13262_v6  ;;  %v4113_v42 = vpop.f32.mrb[225].mxu1  ;;  %v5204_v48 = vpop.xlane.xlu0 %5203 }
 0x4e4   : > { %v5386_v17 = vmax.f32 %v5385_v35, %v4652_v51  ;;  %v4654_v1 = vmax.f32 %v3439_v33, 0.0  ;;  %v5608_v60 = vmax.f32 %v4840_v8, %v5204_v48  ;;  %v3442_v12 = vpop.f32.mrb[226].mxu0  ;;  %v4115_v55 = vpop.f32.mrb[226].mxu1  ;;  %v4114_v41 = vadd.f32 %v4113_v42, %v13262_v6  ;;  %v4843_v42 = vld [vmem:[#allocation2 + $0x1e8] sm:$0xff] }
 0x4e5   : > { %v4655_v4 = vmax.f32 %v3441_v38, 0.0  ;;  %v3443_v53 = vadd.f32 %v3442_v12, %v13260_v39  ;;  %v3444_v19 = vpop.f32.mrb[227].mxu0  ;;  %v4117_v36 = vpop.f32.mrb[227].mxu1  ;;  %5383 = vmax.xlane.f32.xlu0 %v5382_v9  ;;  %v4116_v37 = vadd.f32 %v4115_v55, %v13260_v39  ;;  %v4656_v26 = vmax.f32 %v4112_v15, 0.0 }
 0x4e6   : > { %v5387_v52 = vmax.f32 %v5386_v17, %v4653_v43  ;;  %5737 = vst.msk [vmem:[#allocation2 + $0x1d0] sm:$0xff] %vm5678_vm2, %v5608_v60  ;;  %v3445_v16 = vadd.f32 %v3444_v19, %v13260_v39  ;;  %v5209_v10 = vpop.xlane.xlu1 %5208  ;;  %v4118_v6 = vadd.f32 %v4117_v36, %v13260_v39  ;;  %v4657_v0 = vmax.f32 %v4114_v41, 0.0 }
 0x4e7   : > { %v5390_v49 = vmax.f32 %v4654_v1, %v4655_v4  ;;  %v4658_v23 = vmax.f32 %v3443_v53, 0.0  ;;  %v5609_v59 = vmax.f32 %v4841_v46, %v5209_v10  ;;  %v4660_v2 = vmax.f32 %v4116_v37, 0.0 }
 0x4e8   : > { %v4659_v31 = vmax.f32 %v3445_v16, 0.0  ;;  %5388 = vmax.xlane.f32.xlu1 %v5387_v52  ;;  %v4661_v33 = vmax.f32 %v4118_v6, 0.0 }
 0x4e9   : > { %v5391_v25 = vmax.f32 %v5390_v49, %v4656_v26  ;;  %5738 = vst.msk [vmem:[#allocation2 + $0x1d8] sm:$0xff] %vm5678_vm2, %v5609_v59  ;;  %v3448_v56 = vpop.f32.mrb[228].mxu0  ;;  %v4844_v26 = vld [vmem:[#allocation2 + $0x1f0] sm:$0xff] }
 0x4ea   : > { %v5395_v54 = vmax.f32 %v4658_v23, %v4659_v31  ;;  %v3449_v24 = vadd.f32 %v3448_v56, %v13279_v40  ;;  %v4121_v47 = vpop.f32.mrb[228].mxu1  ;;  %v3450_v29 = vpop.f32.mrb[229].mxu0 }
 0x4eb   : > { %v5392_v14 = vmax.f32 %v5391_v25, %v4657_v0  ;;  %v4122_v8 = vadd.f32 %v4121_v47, %v13279_v40  ;;  %v3451_v51 = vadd.f32 %v3450_v29, %v13279_v40  ;;  %v4123_v35 = vpop.f32.mrb[229].mxu1  ;;  %v5214_v39 = vpop.xlane.xlu0 %5213 }
 0x4ec   : > { %v5396_v22 = vmax.f32 %v5395_v54, %v4660_v2  ;;  %v4662_v18 = vmax.f32 %v3449_v24, 0.0  ;;  %v5610_v9 = vmax.f32 %v4842_v34, %v5214_v39  ;;  %v3452_v15 = vpop.f32.mrb[230].mxu0  ;;  %v4125_v38 = vpop.f32.mrb[230].mxu1  ;;  %v4124_v43 = vadd.f32 %v4123_v35, %v13279_v40 }
 0x4ed   : > { %v4663_v48 = vmax.f32 %v3451_v51, 0.0  ;;  %v3453_v17 = vadd.f32 %v3452_v15, %v13277_v57  ;;  %v3454_v1 = vpop.f32.mrb[231].mxu0  ;;  %v4127_v60 = vpop.f32.mrb[231].mxu1  ;;  %5393 = vmax.xlane.f32.xlu0 %v5392_v14  ;;  %v4126_v55 = vadd.f32 %v4125_v38, %v13277_v57  ;;  %v4664_v41 = vmax.f32 %v4122_v8, 0.0  ;;  %v4845_v8 = vld [vmem:[#allocation2 + $0x1f8] sm:$0xff] }
 0x4ee   : > { %v5397_v12 = vmax.f32 %v5396_v22, %v4661_v33  ;;  %5739 = vst.msk [vmem:[#allocation2 + $0x1e0] sm:$0xff] %vm5678_vm2, %v5610_v9  ;;  %v3455_v46 = vadd.f32 %v3454_v1, %v13277_v57  ;;  %v5219_v4 = vpop.xlane.xlu1 %5218  ;;  %v4128_v40 = vadd.f32 %v4127_v60, %v13277_v57  ;;  %v4665_v37 = vmax.f32 %v4124_v43, 0.0 }
 0x4ef   : > { %v5400_v53 = vmax.f32 %v4662_v18, %v4663_v48  ;;  %v4666_v19 = vmax.f32 %v3453_v17, 0.0  ;;  %v5611_v36 = vmax.f32 %v4843_v42, %v5219_v4  ;;  %v4668_v49 = vmax.f32 %v4126_v55, 0.0 }
 0x4f0   : > { %v4667_v52 = vmax.f32 %v3455_v46, 0.0  ;;  %5398 = vmax.xlane.f32.xlu1 %v5397_v12  ;;  %v4669_v2 = vmax.f32 %v4128_v40, 0.0  ;;  %v4846_v46 = vld [vmem:[#allocation2 + $0x200] sm:$0xff] }
 0x4f1   : > { %v5401_v16 = vmax.f32 %v5400_v53, %v4664_v41  ;;  %5740 = vst.msk [vmem:[#allocation2 + $0x1e8] sm:$0xff] %vm5678_vm2, %v5611_v36  ;;  %v3458_v10 = vpop.f32.mrb[232].mxu0 }
 0x4f2   : > { %v5405_v23 = vmax.f32 %v4666_v19, %v4667_v52  ;;  %v3459_v59 = vadd.f32 %v3458_v10, %v13296_v13  ;;  %v4131_v31 = vpop.f32.mrb[232].mxu1  ;;  %v3460_v6 = vpop.f32.mrb[233].mxu0 }
 0x4f3   : > { %v5402_v0 = vmax.f32 %v5401_v16, %v4665_v37  ;;  %v4132_v25 = vadd.f32 %v4131_v31, %v13296_v13  ;;  %v3461_v56 = vadd.f32 %v3460_v6, %v13296_v13  ;;  %v4133_v34 = vpop.f32.mrb[233].mxu1  ;;  %v5224_v57 = vpop.xlane.xlu0 %5223  ;;  %v4847_v6 = vld [vmem:[#allocation2 + $0x208] sm:$0xff] }
 0x4f4   : > { %v5406_v54 = vmax.f32 %v5405_v23, %v4668_v49  ;;  %v4670_v24 = vmax.f32 %v3459_v59, 0.0  ;;  %v5612_v47 = vmax.f32 %v4844_v26, %v5224_v57  ;;  %v3462_v29 = vpop.f32.mrb[234].mxu0  ;;  %v4135_v14 = vpop.f32.mrb[234].mxu1  ;;  %v4134_v35 = vadd.f32 %v4133_v34, %v13296_v13 }
 0x4f5   : > { %v4671_v51 = vmax.f32 %v3461_v56, 0.0  ;;  %v3463_v39 = vadd.f32 %v3462_v29, %v13294_v62  ;;  %v3464_v33 = vpop.f32.mrb[235].mxu0  ;;  %v4137_v22 = vpop.f32.mrb[235].mxu1  ;;  %5403 = vmax.xlane.f32.xlu0 %v5402_v0  ;;  %v4136_v9 = vadd.f32 %v4135_v14, %v13294_v62  ;;  %v4672_v42 = vmax.f32 %v4132_v25, 0.0 }
 0x4f6   : > { %v5407_v18 = vmax.f32 %v5406_v54, %v4669_v2  ;;  %5741 = vst.msk [vmem:[#allocation2 + $0x1f0] sm:$0xff] %vm5678_vm2, %v5612_v47  ;;  %v3465_v15 = vadd.f32 %v3464_v33, %v13294_v62  ;;  %v5229_v38 = vpop.xlane.xlu1 %5228  ;;  %v4138_v13 = vadd.f32 %v4137_v22, %v13294_v62  ;;  %v4673_v60 = vmax.f32 %v4134_v35, 0.0 }
 0x4f7   : > { %v5410_v48 = vmax.f32 %v4670_v24, %v4671_v51  ;;  %v4674_v43 = vmax.f32 %v3463_v39, 0.0  ;;  %v5613_v17 = vmax.f32 %v4845_v8, %v5229_v38  ;;  %v4676_v4 = vmax.f32 %v4136_v9, 0.0 }
 0x4f8   : > { %v4675_v1 = vmax.f32 %v3465_v15, 0.0  ;;  %5408 = vmax.xlane.f32.xlu1 %v5407_v18  ;;  %v4677_v10 = vmax.f32 %v4138_v13, 0.0  ;;  %v4848_v18 = vld [vmem:[#allocation2 + $0x210] sm:$0xff] }
 0x4f9   : > { %v5411_v12 = vmax.f32 %v5410_v48, %v4672_v42  ;;  %5742 = vst.msk [vmem:[#allocation2 + $0x1f8] sm:$0xff] %vm5678_vm2, %v5613_v17  ;;  %v3468_v55 = vpop.f32.mrb[236].mxu0 }
 0x4fa   : > { %v5415_v41 = vmax.f32 %v4674_v43, %v4675_v1  ;;  %v3469_v53 = vadd.f32 %v3468_v55, %v13313_v7  ;;  %v4141_v19 = vpop.f32.mrb[236].mxu1  ;;  %v3470_v36 = vpop.f32.mrb[237].mxu0 }
 0x4fb   : > { %v5412_v52 = vmax.f32 %v5411_v12, %v4673_v60  ;;  %v4142_v40 = vadd.f32 %v4141_v19, %v13313_v7  ;;  %v3471_v37 = vadd.f32 %v3470_v36, %v13313_v7  ;;  %v4143_v16 = vpop.f32.mrb[237].mxu1  ;;  %v5234_v62 = vpop.xlane.xlu0 %5233 }
 0x4fc   : > { %v5416_v26 = vmax.f32 %v5415_v41, %v4676_v4  ;;  %v4678_v49 = vmax.f32 %v3469_v53, 0.0  ;;  %v5614_v23 = vmax.f32 %v4846_v46, %v5234_v62  ;;  %v3472_v59 = vpop.f32.mrb[238].mxu0  ;;  %v4145_v31 = vpop.f32.mrb[238].mxu1  ;;  %v4144_v25 = vadd.f32 %v4143_v16, %v13313_v7  ;;  %v4849_v53 = vld [vmem:[#allocation2 + $0x218] sm:$0xff] }
 0x4fd   : > { %v4679_v0 = vmax.f32 %v3471_v37, 0.0  ;;  %v3473_v56 = vadd.f32 %v3472_v59, %v13311_v63  ;;  %v3474_v34 = vpop.f32.mrb[239].mxu0  ;;  %v4147_v57 = vpop.f32.mrb[239].mxu1  ;;  %5413 = vmax.xlane.f32.xlu0 %v5412_v52  ;;  %v4146_v54 = vadd.f32 %v4145_v31, %v13311_v63  ;;  %v4680_v29 = vmax.f32 %v4142_v40, 0.0 }
 0x4fe   : > { %v5417_v2 = vmax.f32 %v5416_v26, %v4677_v10  ;;  %5743 = vst.msk [vmem:[#allocation2 + $0x200] sm:$0xff] %vm5678_vm2, %v5614_v23  ;;  %v3475_v24 = vadd.f32 %v3474_v34, %v13311_v63  ;;  %v5239_v47 = vpop.xlane.xlu1 %5238  ;;  %v4148_v7 = vadd.f32 %v4147_v57, %v13311_v63  ;;  %v4681_v39 = vmax.f32 %v4144_v25, 0.0  ;;  %v4850_v34 = vld [vmem:[#allocation2 + $0x220] sm:$0xff] }
 0x4ff   : > { %v5420_v14 = vmax.f32 %v4678_v49, %v4679_v0  ;;  %v4682_v8 = vmax.f32 %v3473_v56, 0.0  ;;  %v5615_v51 = vmax.f32 %v4847_v6, %v5239_v47  ;;  %v4684_v9 = vmax.f32 %v4146_v54, 0.0 }
 0x500   : > { %v4683_v35 = vmax.f32 %v3475_v24, 0.0  ;;  %5418 = vmax.xlane.f32.xlu1 %v5417_v2  ;;  %v4685_v60 = vmax.f32 %v4148_v7, 0.0 }
 0x501   : > { %v5421_v33 = vmax.f32 %v5420_v14, %v4680_v29  ;;  %5744 = vst.msk [vmem:[#allocation2 + $0x208] sm:$0xff] %vm5678_vm2, %v5615_v51  ;;  %v3478_v22 = vpop.f32.mrb[240].mxu0 }
 0x502   : > { %v5425_v15 = vmax.f32 %v4682_v8, %v4683_v35  ;;  %v3479_v38 = vadd.f32 %v3478_v22, %v13330_v44  ;;  %v4151_v42 = vpop.f32.mrb[240].mxu1  ;;  %v3480_v48 = vpop.f32.mrb[241].mxu0 }
 0x503   : > { %v5422_v43 = vmax.f32 %v5421_v33, %v4681_v39  ;;  %v4152_v17 = vadd.f32 %v4151_v42, %v13330_v44  ;;  %v3481_v1 = vadd.f32 %v3480_v48, %v13330_v44  ;;  %v4153_v13 = vpop.f32.mrb[241].mxu1  ;;  %v5244_v63 = vpop.xlane.xlu0 %5243 }
 0x504   : > { %v5426_v12 = vmax.f32 %v5425_v15, %v4684_v9  ;;  %v4686_v55 = vmax.f32 %v3479_v38, 0.0  ;;  %v5616_v46 = vmax.f32 %v4848_v18, %v5244_v63  ;;  %v3482_v4 = vpop.f32.mrb[242].mxu0  ;;  %v4155_v41 = vpop.f32.mrb[242].mxu1  ;;  %v4154_v36 = vadd.f32 %v4153_v13, %v13330_v44  ;;  %v4851_v9 = vld [vmem:[#allocation2 + $0x228] sm:$0xff] }
 0x505   : > { %v4687_v19 = vmax.f32 %v3481_v1, 0.0  ;;  %v3483_v52 = vadd.f32 %v3482_v4, %v13328_v20  ;;  %v3484_v40 = vpop.f32.mrb[243].mxu0  ;;  %v4157_v37 = vpop.f32.mrb[243].mxu1  ;;  %5423 = vmax.xlane.f32.xlu0 %v5422_v43  ;;  %v4156_v62 = vadd.f32 %v4155_v41, %v13328_v20  ;;  %v4688_v49 = vmax.f32 %v4152_v17, 0.0 }
 0x506   : > { %v5427_v16 = vmax.f32 %v5426_v12, %v4685_v60  ;;  %5745 = vst.msk [vmem:[#allocation2 + $0x210] sm:$0xff] %vm5678_vm2, %v5616_v46  ;;  %v3485_v10 = vadd.f32 %v3484_v40, %v13328_v20  ;;  %v5249_v26 = vpop.xlane.xlu1 %5248  ;;  %v4158_v44 = vadd.f32 %v4157_v37, %v13328_v20  ;;  %v4689_v0 = vmax.f32 %v4154_v36, 0.0  ;;  %v4852_v36 = vld [vmem:[#allocation2 + $0x230] sm:$0xff] }
 0x507   : > { %v5430_v23 = vmax.f32 %v4686_v55, %v4687_v19  ;;  %v4690_v59 = vmax.f32 %v3483_v52, 0.0  ;;  %v5617_v31 = vmax.f32 %v4849_v53, %v5249_v26  ;;  %v4692_v57 = vmax.f32 %v4156_v62, 0.0 }
 0x508   : > { %v4691_v6 = vmax.f32 %v3485_v10, 0.0  ;;  %5428 = vmax.xlane.f32.xlu1 %v5427_v16  ;;  %v4693_v35 = vmax.f32 %v4158_v44, 0.0 }
 0x509   : > { %v5431_v25 = vmax.f32 %v5430_v23, %v4688_v49  ;;  %5746 = vst.msk [vmem:[#allocation2 + $0x218] sm:$0xff] %vm5678_vm2, %v5617_v31  ;;  %v3488_v56 = vpop.f32.mrb[244].mxu0 }
 0x50a   : > { %v5435_v2 = vmax.f32 %v4690_v59, %v4691_v6  ;;  %v3489_v54 = vadd.f32 %v3488_v56, %v13347_v3  ;;  %v4161_v24 = vpop.f32.mrb[244].mxu1  ;;  %v3490_v47 = vpop.f32.mrb[245].mxu0  ;;  %v4853_v56 = vld [vmem:[#allocation2 + $0x238] sm:$0xff] }
 0x50b   : > { %v5432_v29 = vmax.f32 %v5431_v25, %v4689_v0  ;;  %v4162_v14 = vadd.f32 %v4161_v24, %v13347_v3  ;;  %v3491_v8 = vadd.f32 %v3490_v47, %v13347_v3  ;;  %v4163_v51 = vpop.f32.mrb[245].mxu1  ;;  %v5254_v20 = vpop.xlane.xlu0 %5253 }
 0x50c   : > { %v5436_v7 = vmax.f32 %v5435_v2, %v4692_v57  ;;  %v4694_v39 = vmax.f32 %v3489_v54, 0.0  ;;  %v5618_v33 = vmax.f32 %v4850_v34, %v5254_v20  ;;  %v3492_v22 = vpop.f32.mrb[246].mxu0  ;;  %v4165_v18 = vpop.f32.mrb[246].mxu1  ;;  %v4164_v38 = vadd.f32 %v4163_v51, %v13347_v3 }
 0x50d   : > { %v4695_v15 = vmax.f32 %v3491_v8, 0.0  ;;  %v3493_v42 = vadd.f32 %v3492_v22, %v13345_v5  ;;  %v3494_v48 = vpop.f32.mrb[247].mxu0  ;;  %v4167_v43 = vpop.f32.mrb[247].mxu1  ;;  %5433 = vmax.xlane.f32.xlu0 %v5432_v29  ;;  %v4166_v1 = vadd.f32 %v4165_v18, %v13345_v5  ;;  %v4696_v60 = vmax.f32 %v4162_v14, 0.0 }
 0x50e   : > { %v5437_v17 = vmax.f32 %v5436_v7, %v4693_v35  ;;  %5747 = vst.msk [vmem:[#allocation2 + $0x220] sm:$0xff] %vm5678_vm2, %v5618_v33  ;;  %v3495_v13 = vadd.f32 %v3494_v48, %v13345_v5  ;;  %v5259_v63 = vpop.xlane.xlu1 %5258  ;;  %v4168_v3 = vadd.f32 %v4167_v43, %v13345_v5  ;;  %v4697_v41 = vmax.f32 %v4164_v38, 0.0 }
 0x50f   : > { %v5440_v12 = vmax.f32 %v4694_v39, %v4695_v15  ;;  %v4698_v55 = vmax.f32 %v3493_v42, 0.0  ;;  %v5619_v46 = vmax.f32 %v4851_v9, %v5259_v63  ;;  %v4700_v52 = vmax.f32 %v4166_v1, 0.0  ;;  %v4854_v9 = vld [vmem:[#allocation2 + $0x240] sm:$0xff] }
 0x510   : > { %v4699_v4 = vmax.f32 %v3495_v13, 0.0  ;;  %5438 = vmax.xlane.f32.xlu1 %v5437_v17  ;;  %v4701_v59 = vmax.f32 %v4168_v3, 0.0 }
 0x511   : > { %v5441_v53 = vmax.f32 %v5440_v12, %v4696_v60  ;;  %5748 = vst.msk [vmem:[#allocation2 + $0x228] sm:$0xff] %vm5678_vm2, %v5619_v46  ;;  %v3498_v19 = vpop.f32.mrb[248].mxu0 }
 0x512   : > { %v5445_v40 = vmax.f32 %v4698_v55, %v4699_v4  ;;  %v3499_v37 = vadd.f32 %v3498_v19, %v13364_v21  ;;  %v4171_v16 = vpop.f32.mrb[248].mxu1  ;;  %v3500_v62 = vpop.f32.mrb[249].mxu0 }
 0x513   : > { %v5442_v10 = vmax.f32 %v5441_v53, %v4697_v41  ;;  %v4172_v26 = vadd.f32 %v4171_v16, %v13364_v21  ;;  %v3501_v49 = vadd.f32 %v3500_v62, %v13364_v21  ;;  %v4173_v23 = vpop.f32.mrb[249].mxu1  ;;  %v5264_v5 = vpop.xlane.xlu0 %5263  ;;  %v4855_v41 = vld [vmem:[#allocation2 + $0x248] sm:$0xff] }
 0x514   : > { %v5446_v31 = vmax.f32 %v5445_v40, %v4700_v52  ;;  %v4702_v6 = vmax.f32 %v3499_v37, 0.0  ;;  %v5620_v44 = vmax.f32 %v4852_v36, %v5264_v5  ;;  %v3502_v0 = vpop.f32.mrb[250].mxu0  ;;  %v4175_v25 = vpop.f32.mrb[250].mxu1  ;;  %v4174_v57 = vadd.f32 %v4173_v23, %v13364_v21  ;;  %v15970_v36 = vld [vmem:[#allocation65_spill] sm:$0xff] }
 0x515   : > { %v4703_v34 = vmax.f32 %v3501_v49, 0.0  ;;  %v3503_v2 = vadd.f32 %v3502_v0, %v13362_v61  ;;  %v3504_v54 = vpop.f32.mrb[251].mxu0  ;;  %v4177_v24 = vpop.f32.mrb[251].mxu1  ;;  %5443 = vmax.xlane.f32.xlu0 %v5442_v10  ;;  %v4176_v29 = vadd.f32 %v4175_v25, %v13362_v61  ;;  %v4704_v51 = vmax.f32 %v4172_v26, 0.0  ;;  %v4856_v25 = vld [vmem:[#allocation2 + $0x250] sm:$0xff] }
 0x516   : > { %v5447_v47 = vmax.f32 %v5446_v31, %v4701_v59  ;;  %5749 = vst.msk [vmem:[#allocation2 + $0x230] sm:$0xff] %vm5678_vm2, %v5620_v44  ;;  %v3505_v14 = vadd.f32 %v3504_v54, %v13362_v61  ;;  %v5269_v8 = vpop.xlane.xlu1 %5268  ;;  %v4178_v21 = vadd.f32 %v4177_v24, %v13362_v61  ;;  %v4705_v33 = vmax.f32 %v4174_v57, 0.0  ;;  %v15971_v57 = vld [vmem:[#allocation66_spill] sm:$0xff] }
 0x517   : > { %v5450_v20 = vmax.f32 %v4702_v6, %v4703_v34  ;;  %v4706_v35 = vmax.f32 %v3503_v2, 0.0  ;;  %v5621_v7 = vmax.f32 %v4853_v56, %v5269_v8  ;;  %v4708_v15 = vmax.f32 %v4176_v29, 0.0 }
 0x518   : > { %v4707_v39 = vmax.f32 %v3505_v14, 0.0  ;;  %5448 = vmax.xlane.f32.xlu1 %v5447_v47  ;;  %v4709_v60 = vmax.f32 %v4178_v21, 0.0 }
 0x519   : > { %v5451_v22 = vmax.f32 %v5450_v20, %v4704_v51  ;;  %5750 = vst.msk [vmem:[#allocation2 + $0x238] sm:$0xff] %vm5678_vm2, %v5621_v7  ;;  %v3508_v18 = vpop.f32.mrb[252].mxu0 }
 0x51a   : > { %v5455_v38 = vmax.f32 %v4706_v35, %v4707_v39  ;;  %v3509_v42 = vadd.f32 %v3508_v18, %v13381_v30  ;;  %v4181_v48 = vpop.f32.mrb[252].mxu1  ;;  %v3510_v43 = vpop.f32.mrb[253].mxu0 }
 0x51b   : > { %v5452_v17 = vmax.f32 %v5451_v22, %v4705_v33  ;;  %v4182_v1 = vadd.f32 %v4181_v48, %v13381_v30  ;;  %v3511_v13 = vadd.f32 %v3510_v43, %v13381_v30  ;;  %v4183_v63 = vpop.f32.mrb[253].mxu1  ;;  %v5274_v61 = vpop.xlane.xlu0 %5273  ;;  %v4857_v22 = vld [vmem:[#allocation2 + $0x258] sm:$0xff] }
 0x51c   : > { %v5456_v12 = vmax.f32 %v5455_v38, %v4708_v15  ;;  %v4710_v55 = vmax.f32 %v3509_v42, 0.0  ;;  %v5622_v46 = vmax.f32 %v4854_v9, %v5274_v61  ;;  %v3512_v4 = vpop.f32.mrb[254].mxu0  ;;  %v4185_v3 = vpop.f32.mrb[254].mxu1  ;;  %v4184_v19 = vadd.f32 %v4183_v63, %v13381_v30  ;;  %v15972_v15 = vld [vmem:[#allocation14_spill] sm:$0xff] }
 0x51d   : > { %v4711_v53 = vmax.f32 %v3511_v13, 0.0  ;;  %v3513_v52 = vadd.f32 %v3512_v4, %v15970_v36  ;;  %v3514_v40 = vpop.f32.mrb[255].mxu0  ;;  %v4187_v37 = vpop.f32.mrb[255].mxu1  ;;  %5453 = vmax.xlane.f32.xlu0 %v5452_v17  ;;  %v4186_v62 = vadd.f32 %v4185_v3, %v15970_v36  ;;  %v4712_v49 = vmax.f32 %v4182_v1, 0.0 }
 0x51e   : > { %v5457_v16 = vmax.f32 %v5456_v12, %v4709_v60  ;;  %5751 = vst.msk [vmem:[#allocation2 + $0x240] sm:$0xff] %vm5678_vm2, %v5622_v46  ;;  %v3515_v10 = vadd.f32 %v3514_v40, %v15970_v36  ;;  %v5279_v26 = vpop.xlane.xlu1 %5278  ;;  %v4188_v30 = vadd.f32 %v4187_v37, %v15970_v36  ;;  %v4713_v6 = vmax.f32 %v4184_v19, 0.0 }
 0x51f   : > { %v5460_v23 = vmax.f32 %v4710_v55, %v4711_v53  ;;  %v4714_v5 = vmax.f32 %v3513_v52, 0.0  ;;  %v5623_v59 = vmax.f32 %v4855_v41, %v5279_v26  ;;  %v4716_v56 = vmax.f32 %v4186_v62, 0.0  ;;  %v4858_v53 = vld [vmem:[#allocation2 + $0x260] sm:$0xff]  ;;  %v15973_v52 = vld [vmem:[#allocation15_spill] sm:$0xff] }
 0x520   : > { %v4715_v31 = vmax.f32 %v3515_v10, 0.0  ;;  %5458 = vmax.xlane.f32.xlu1 %v5457_v16  ;;  %v4717_v20 = vmax.f32 %v4188_v30, 0.0 }
 0x521   : > { %v5461_v44 = vmax.f32 %v5460_v23, %v4712_v49  ;;  %5752 = vst.msk [vmem:[#allocation2 + $0x248] sm:$0xff] %vm5678_vm2, %v5623_v59  ;;  %v3518_v0 = vpop.f32.mrb[0].mxu0 }
 0x522   : > { %v5465_v34 = vmax.f32 %v4714_v5, %v4715_v31  ;;  %v3519_v2 = vadd.f32 %v3518_v0, %v15971_v57  ;;  %v4191_v54 = vpop.f32.mrb[0].mxu1  ;;  %v3520_v24 = vpop.f32.mrb[1].mxu0  ;;  %v4859_v0 = vld [vmem:[#allocation2 + $0x268] sm:$0xff] }
 0x523   : > { %v5462_v47 = vmax.f32 %v5461_v44, %v4713_v6  ;;  %v4192_v29 = vadd.f32 %v4191_v54, %v15971_v57  ;;  %v3521_v14 = vadd.f32 %v3520_v24, %v15971_v57  ;;  %v4193_v8 = vpop.f32.mrb[1].mxu1  ;;  %v5284_v51 = vpop.xlane.xlu0 %5283 }
 0x524   : > { %v5466_v35 = vmax.f32 %v5465_v34, %v4716_v56  ;;  %v4718_v7 = vmax.f32 %v3519_v2, 0.0  ;;  %v5624_v39 = vmax.f32 %v4856_v25, %v5284_v51  ;;  %v3522_v21 = vpop.f32.mrb[2].mxu0  ;;  %v4195_v33 = vpop.f32.mrb[2].mxu1  ;;  %v4194_v9 = vadd.f32 %v4193_v8, %v15971_v57  ;;  %v15974_v34 = vld [vmem:[#allocation18_spill] sm:$0xff] }
 0x525   : > { %v4719_v18 = vmax.f32 %v3521_v14, 0.0  ;;  %v3523_v38 = vadd.f32 %v3522_v21, %v15972_v15  ;;  %v3524_v42 = vpop.f32.mrb[3].mxu0  ;;  %v4197_v48 = vpop.f32.mrb[3].mxu1  ;;  %5463 = vmax.xlane.f32.xlu0 %v5462_v47  ;;  %v4196_v17 = vadd.f32 %v4195_v33, %v15972_v15  ;;  %v4720_v63 = vmax.f32 %v4192_v29, 0.0 }
 0x526   : > { %v5467_v43 = vmax.f32 %v5466_v35, %v4717_v20  ;;  %5753 = vst.msk [vmem:[#allocation2 + $0x250] sm:$0xff] %vm5678_vm2, %v5624_v39  ;;  %v3525_v1 = vadd.f32 %v3524_v42, %v15972_v15  ;;  %v5289_v13 = vpop.xlane.xlu1 %5288  ;;  %v4198_v46 = vadd.f32 %v4197_v48, %v15972_v15  ;;  %v4721_v4 = vmax.f32 %v4194_v9, 0.0 }
 0x527   : > { %v5470_v61 = vmax.f32 %v4718_v7, %v4719_v18  ;;  %v4722_v60 = vmax.f32 %v3523_v38, 0.0  ;;  %v5625_v12 = vmax.f32 %v4857_v22, %v5289_v13  ;;  %v4724_v19 = vmax.f32 %v4196_v17, 0.0  ;;  %v4860_v18 = vld [vmem:[#allocation2 + $0x270] sm:$0xff] }
 0x528   : > { %v4723_v55 = vmax.f32 %v3525_v1, 0.0  ;;  %5468 = vmax.xlane.f32.xlu1 %v5467_v43  ;;  %v4725_v5 = vmax.f32 %v4198_v46, 0.0  ;;  %v15975_v38 = vld [vmem:[#allocation16_spill] sm:$0xff] }
 0x529   : > { %v5471_v3 = vmax.f32 %v5470_v61, %v4720_v63  ;;  %5754 = vst.msk [vmem:[#allocation2 + $0x258] sm:$0xff] %vm5678_vm2, %v5625_v12  ;;  %v3528_v41 = vpop.f32.mrb[4].mxu0 }
 0x52a   : > { %v5475_v36 = vmax.f32 %v4722_v60, %v4723_v55  ;;  %v3529_v40 = vadd.f32 %v3528_v41, %v15973_v52  ;;  %v4201_v37 = vpop.f32.mrb[4].mxu1  ;;  %v3530_v16 = vpop.f32.mrb[5].mxu0  ;;  %v4861_v41 = vld [vmem:[#allocation2 + $0x278] sm:$0xff] }
 0x52b   : > { %v5472_v62 = vmax.f32 %v5471_v3, %v4721_v4  ;;  %v4202_v10 = vadd.f32 %v4201_v37, %v15973_v52  ;;  %v3531_v26 = vadd.f32 %v3530_v16, %v15973_v52  ;;  %v4203_v49 = vpop.f32.mrb[5].mxu1  ;;  %v5294_v23 = vpop.xlane.xlu0 %5293 }
 0x52c   : > { %v5476_v59 = vmax.f32 %v5475_v36, %v4724_v19  ;;  %v4726_v31 = vmax.f32 %v3529_v40, 0.0  ;;  %v5626_v30 = vmax.f32 %v4858_v53, %v5294_v23  ;;  %v3532_v6 = vpop.f32.mrb[6].mxu0  ;;  %v4205_v44 = vpop.f32.mrb[6].mxu1  ;;  %v4204_v56 = vadd.f32 %v4203_v49, %v15973_v52  ;;  %v15976_v36 = vld [vmem:[#allocation19_spill] sm:$0xff] }
 0x52d   : > { %v4727_v25 = vmax.f32 %v3531_v26, 0.0  ;;  %v3533_v57 = vadd.f32 %v3532_v6, %v15974_v34  ;;  %v3534_v2 = vpop.f32.mrb[7].mxu0  ;;  %v4207_v54 = vpop.f32.mrb[7].mxu1  ;;  %5473 = vmax.xlane.f32.xlu0 %v5472_v62  ;;  %v4206_v47 = vadd.f32 %v4205_v44, %v15974_v34  ;;  %v4728_v8 = vmax.f32 %v4202_v10, 0.0 }
 0x52e   : > { %v5477_v24 = vmax.f32 %v5476_v59, %v4725_v5  ;;  %5755 = vst.msk [vmem:[#allocation2 + $0x260] sm:$0xff] %vm5678_vm2, %v5626_v30  ;;  %v3535_v29 = vadd.f32 %v3534_v2, %v15974_v34  ;;  %v5299_v14 = vpop.xlane.xlu1 %5298  ;;  %v4208_v39 = vadd.f32 %v4207_v54, %v15974_v34  ;;  %v4729_v21 = vmax.f32 %v4204_v56, 0.0 }
 0x52f   : > { %v5480_v51 = vmax.f32 %v4726_v31, %v4727_v25  ;;  %v4730_v20 = vmax.f32 %v3533_v57, 0.0  ;;  %v5627_v35 = vmax.f32 %v4859_v0, %v5299_v14  ;;  %v4732_v9 = vmax.f32 %v4206_v47, 0.0  ;;  %v4862_v25 = vld [vmem:[#allocation2 + $0x280] sm:$0xff] }
 0x530   : > { %v4731_v7 = vmax.f32 %v3535_v29, 0.0  ;;  %5478 = vmax.xlane.f32.xlu1 %v5477_v24  ;;  %v4733_v60 = vmax.f32 %v4208_v39, 0.0 }
 0x531   : > { %v5481_v33 = vmax.f32 %v5480_v51, %v4728_v8  ;;  %5756 = vst.msk [vmem:[#allocation2 + $0x268] sm:$0xff] %vm5678_vm2, %v5627_v35  ;;  %v3538_v22 = vpop.f32.mrb[8].mxu0 }
 0x532   : > { %v5485_v15 = vmax.f32 %v4730_v20, %v4731_v7  ;;  %v3539_v42 = vadd.f32 %v3538_v22, %v15975_v38  ;;  %v4211_v48 = vpop.f32.mrb[8].mxu1  ;;  %v3540_v43 = vpop.f32.mrb[9].mxu0 }
 0x533   : > { %v5482_v17 = vmax.f32 %v5481_v33, %v4729_v21  ;;  %v4212_v1 = vadd.f32 %v4211_v48, %v15975_v38  ;;  %v3541_v13 = vadd.f32 %v3540_v43, %v15975_v38  ;;  %v4213_v63 = vpop.f32.mrb[9].mxu1  ;;  %v5304_v61 = vpop.xlane.xlu0 %5303  ;;  %v4863_v33 = vld [vmem:[#allocation2 + $0x288] sm:$0xff] }
 0x534   : > { %v5486_v12 = vmax.f32 %v5485_v15, %v4732_v9  ;;  %v4734_v55 = vmax.f32 %v3539_v42, 0.0  ;;  %v5628_v46 = vmax.f32 %v4860_v18, %v5304_v61  ;;  %v3542_v4 = vpop.f32.mrb[10].mxu0  ;;  %v4215_v3 = vpop.f32.mrb[10].mxu1  ;;  %v4214_v19 = vadd.f32 %v4213_v63, %v15975_v38 }
 0x535   : > { %v4735_v53 = vmax.f32 %v3541_v13, 0.0  ;;  %v3543_v52 = vadd.f32 %v3542_v4, %v15976_v36  ;;  %v3544_v40 = vpop.f32.mrb[11].mxu0  ;;  %v4217_v37 = vpop.f32.mrb[11].mxu1  ;;  %5483 = vmax.xlane.f32.xlu0 %v5482_v17  ;;  %v4216_v62 = vadd.f32 %v4215_v3, %v15976_v36  ;;  %v4736_v49 = vmax.f32 %v4212_v1, 0.0  ;;  %v4864_v4 = vld [vmem:[#allocation2 + $0x290] sm:$0xff] }
 0x536   : > { %v5487_v16 = vmax.f32 %v5486_v12, %v4733_v60  ;;  %5757 = vst.msk [vmem:[#allocation2 + $0x270] sm:$0xff] %vm5678_vm2, %v5628_v46  ;;  %v3545_v10 = vadd.f32 %v3544_v40, %v15976_v36  ;;  %v5309_v26 = vpop.xlane.xlu1 %5308  ;;  %v4218_v30 = vadd.f32 %v4217_v37, %v15976_v36  ;;  %v4737_v6 = vmax.f32 %v4214_v19, 0.0 }
 0x537   : > { %v5490_v23 = vmax.f32 %v4734_v55, %v4735_v53  ;;  %v4738_v5 = vmax.f32 %v3543_v52, 0.0  ;;  %v5629_v59 = vmax.f32 %v4861_v41, %v5309_v26  ;;  %v4740_v56 = vmax.f32 %v4216_v62, 0.0 }
 0x538   : > { %v4739_v31 = vmax.f32 %v3545_v10, 0.0  ;;  %5488 = vmax.xlane.f32.xlu1 %v5487_v16  ;;  %v4741_v51 = vmax.f32 %v4218_v30, 0.0 }
 0x539   : > { %v5491_v44 = vmax.f32 %v5490_v23, %v4736_v49  ;;  %5758 = vst.msk [vmem:[#allocation2 + $0x278] sm:$0xff] %vm5678_vm2, %v5629_v59  ;;  %v3548_v0 = vpop.f32.mrb[12].mxu0  ;;  %v4865_v59 = vld [vmem:[#allocation2 + $0x298] sm:$0xff] }
 0x53a   : > { %v5495_v34 = vmax.f32 %v4738_v5, %v4739_v31  ;;  %v3549_v57 = vadd.f32 %v3548_v0, %v13449_v27  ;;  %v4221_v2 = vpop.f32.mrb[12].mxu1  ;;  %v3550_v54 = vpop.f32.mrb[13].mxu0 }
 0x53b   : > { %v5492_v24 = vmax.f32 %v5491_v44, %v4737_v6  ;;  %v4222_v47 = vadd.f32 %v4221_v2, %v13449_v27  ;;  %v3551_v29 = vadd.f32 %v3550_v54, %v13449_v27  ;;  %v4223_v14 = vpop.f32.mrb[13].mxu1  ;;  %v5314_v8 = vpop.xlane.xlu0 %5313 }
 0x53c   : > { %v5496_v20 = vmax.f32 %v5495_v34, %v4740_v56  ;;  %v4742_v35 = vmax.f32 %v3549_v57, 0.0  ;;  %v5630_v7 = vmax.f32 %v4862_v25, %v5314_v8  ;;  %v3552_v39 = vpop.f32.mrb[14].mxu0  ;;  %v4225_v21 = vpop.f32.mrb[14].mxu1  ;;  %v4224_v18 = vadd.f32 %v4223_v14, %v13449_v27 }
 0x53d   : > { %v4743_v22 = vmax.f32 %v3551_v29, 0.0  ;;  %v3553_v9 = vadd.f32 %v3552_v39, %v13447_v28  ;;  %v3554_v15 = vpop.f32.mrb[15].mxu0  ;;  %v4227_v38 = vpop.f32.mrb[15].mxu1  ;;  %5493 = vmax.xlane.f32.xlu0 %v5492_v24  ;;  %v4226_v48 = vadd.f32 %v4225_v21, %v13447_v28  ;;  %v4744_v1 = vmax.f32 %v4222_v47, 0.0 }
 0x53e   : > { %v5497_v42 = vmax.f32 %v5496_v20, %v4741_v51  ;;  %5759 = vst.msk [vmem:[#allocation2 + $0x280] sm:$0xff] %vm5678_vm2, %v5630_v7  ;;  %v3555_v43 = vadd.f32 %v3554_v15, %v13447_v28  ;;  %v5319_v17 = vpop.xlane.xlu1 %5318  ;;  %v4228_v27 = vadd.f32 %v4227_v38, %v13447_v28  ;;  %v4745_v12 = vmax.f32 %v4224_v18, 0.0  ;;  %v4866_v20 = vld [vmem:[#allocation2 + $0x2a0] sm:$0xff] }
 0x53f   : > { %v5500_v13 = vmax.f32 %v4742_v35, %v4743_v22  ;;  %v4746_v63 = vmax.f32 %v3553_v9, 0.0  ;;  %v5631_v61 = vmax.f32 %v4863_v33, %v5319_v17  ;;  %v4748_v3 = vmax.f32 %v4226_v48, 0.0 }
 0x540   : > { %v4747_v60 = vmax.f32 %v3555_v43, 0.0  ;;  %5498 = vmax.xlane.f32.xlu1 %v5497_v42  ;;  %v4749_v62 = vmax.f32 %v4228_v27, 0.0 }
 0x541   : > { %v5501_v55 = vmax.f32 %v5500_v13, %v4744_v1  ;;  %5760 = vst.msk [vmem:[#allocation2 + $0x288] sm:$0xff] %vm5678_vm2, %v5631_v61  ;;  %v3558_v46 = vpop.f32.mrb[16].mxu0  ;;  %v4867_v13 = vld [vmem:[#allocation2 + $0x2a8] sm:$0xff] }
 0x542   : > { %v5505_v41 = vmax.f32 %v4746_v63, %v4747_v60  ;;  %v3559_v53 = vadd.f32 %v3558_v46, %v13466_v58  ;;  %v4231_v19 = vpop.f32.mrb[16].mxu1  ;;  %v3560_v36 = vpop.f32.mrb[17].mxu0 }
 0x543   : > { %v5502_v52 = vmax.f32 %v5501_v55, %v4745_v12  ;;  %v4232_v40 = vadd.f32 %v4231_v19, %v13466_v58  ;;  %v3561_v37 = vadd.f32 %v3560_v36, %v13466_v58  ;;  %v4233_v16 = vpop.f32.mrb[17].mxu1  ;;  %v5324_v28 = vpop.xlane.xlu0 %5323 }
 0x544   : > { %v5506_v10 = vmax.f32 %v5505_v41, %v4748_v3  ;;  %v4750_v26 = vmax.f32 %v3559_v53, 0.0  ;;  %v5632_v49 = vmax.f32 %v4864_v4, %v5324_v28  ;;  %v3562_v23 = vpop.f32.mrb[18].mxu0  ;;  %v4235_v5 = vpop.f32.mrb[18].mxu1  ;;  %v4234_v30 = vadd.f32 %v4233_v16, %v13466_v58  ;;  %v4868_v28 = vld [vmem:[#allocation2 + $0x2b0] sm:$0xff] }
 0x545   : > { %v4751_v31 = vmax.f32 %v3561_v37, 0.0  ;;  %v3563_v6 = vadd.f32 %v3562_v23, %v13464_v11  ;;  %v3564_v44 = vpop.f32.mrb[19].mxu0  ;;  %v4237_v0 = vpop.f32.mrb[19].mxu1  ;;  %5503 = vmax.xlane.f32.xlu0 %v5502_v52  ;;  %v4236_v56 = vadd.f32 %v4235_v5, %v13464_v11  ;;  %v4752_v2 = vmax.f32 %v4232_v40, 0.0 }
 0x546   : > { %v5507_v25 = vmax.f32 %v5506_v10, %v4749_v62  ;;  %5761 = vst.msk [vmem:[#allocation2 + $0x290] sm:$0xff] %vm5678_vm2, %v5632_v49  ;;  %v3565_v34 = vadd.f32 %v3564_v44, %v13464_v11  ;;  %v5329_v57 = vpop.xlane.xlu1 %5328  ;;  %v4238_v58 = vadd.f32 %v4237_v0, %v13464_v11  ;;  %v4753_v14 = vmax.f32 %v4234_v30, 0.0 }
 0x547   : > { %v5510_v54 = vmax.f32 %v4750_v26, %v4751_v31  ;;  %v4754_v24 = vmax.f32 %v3563_v6, 0.0  ;;  %v5633_v47 = vmax.f32 %v4865_v59, %v5329_v57  ;;  %v4756_v35 = vmax.f32 %v4236_v56, 0.0  ;;  %v4869_v57 = vld [vmem:[#allocation2 + $0x2b8] sm:$0xff] }
 0x548   : > { %v4755_v29 = vmax.f32 %v3565_v34, 0.0  ;;  %5508 = vmax.xlane.f32.xlu1 %v5507_v25  ;;  %v4757_v38 = vmax.f32 %v4238_v58, 0.0 }
 0x549   : > { %v5511_v8 = vmax.f32 %v5510_v54, %v4752_v2  ;;  %5762 = vst.msk [vmem:[#allocation2 + $0x298] sm:$0xff] %vm5678_vm2, %v5633_v47  ;;  %v3568_v51 = vpop.f32.mrb[20].mxu0 }
 0x54a   : > { %v5515_v7 = vmax.f32 %v4754_v24, %v4755_v29  ;;  %v3569_v39 = vadd.f32 %v3568_v51, %v13483_v32  ;;  %v4241_v21 = vpop.f32.mrb[20].mxu1  ;;  %v3570_v33 = vpop.f32.mrb[21].mxu0  ;;  %v15977_v24 = vld [vmem:[#allocation20_spill] sm:$0xff] }
 0x54b   : > { %v5512_v22 = vmax.f32 %v5511_v8, %v4753_v14  ;;  %v4242_v18 = vadd.f32 %v4241_v21, %v13483_v32  ;;  %v3571_v9 = vadd.f32 %v3570_v33, %v13483_v32  ;;  %v4243_v15 = vpop.f32.mrb[21].mxu1  ;;  %v5334_v11 = vpop.xlane.xlu0 %5333 }
 0x54c   : > { %v5516_v42 = vmax.f32 %v5515_v7, %v4756_v35  ;;  %v4758_v48 = vmax.f32 %v3569_v39, 0.0  ;;  %v5634_v43 = vmax.f32 %v4866_v20, %v5334_v11  ;;  %v3572_v17 = vpop.f32.mrb[22].mxu0  ;;  %v4245_v1 = vpop.f32.mrb[22].mxu1  ;;  %v4244_v61 = vadd.f32 %v4243_v15, %v13483_v32  ;;  %v4870_v15 = vld [vmem:[#allocation2 + $0x2c0] sm:$0xff] }
 0x54d   : > { %v4759_v63 = vmax.f32 %v3571_v9, 0.0  ;;  %v3573_v60 = vadd.f32 %v3572_v17, %v13481_v50  ;;  %v3574_v27 = vpop.f32.mrb[23].mxu0  ;;  %v4247_v12 = vpop.f32.mrb[23].mxu1  ;;  %5513 = vmax.xlane.f32.xlu0 %v5512_v22  ;;  %v4246_v46 = vadd.f32 %v4245_v1, %v13481_v50  ;;  %v4760_v41 = vmax.f32 %v4242_v18, 0.0 }
 0x54e   : > { %v5517_v55 = vmax.f32 %v5516_v42, %v4757_v38  ;;  %5763 = vst.msk [vmem:[#allocation2 + $0x2a0] sm:$0xff] %vm5678_vm2, %v5634_v43  ;;  %v3575_v4 = vadd.f32 %v3574_v27, %v13481_v50  ;;  %v5339_v3 = vpop.xlane.xlu1 %5338  ;;  %v4248_v32 = vadd.f32 %v4247_v12, %v13481_v50  ;;  %v4761_v40 = vmax.f32 %v4244_v61, 0.0  ;;  %v15978_v42 = vld [vmem:[#allocation17_spill] sm:$0xff] }
 0x54f   : > { %v5520_v53 = vmax.f32 %v4758_v48, %v4759_v63  ;;  %v4762_v19 = vmax.f32 %v3573_v60, 0.0  ;;  %v5635_v36 = vmax.f32 %v4867_v13, %v5339_v3  ;;  %v4764_v62 = vmax.f32 %v4246_v46, 0.0 }
 0x550   : > { %v4763_v52 = vmax.f32 %v3575_v4, 0.0  ;;  %5518 = vmax.xlane.f32.xlu1 %v5517_v55  ;;  %v4765_v6 = vmax.f32 %v4248_v32, 0.0 }
 0x551   : > { %v5521_v37 = vmax.f32 %v5520_v53, %v4760_v41  ;;  %5764 = vst.msk [vmem:[#allocation2 + $0x2a8] sm:$0xff] %vm5678_vm2, %v5635_v36  ;;  %v3578_v16 = vpop.f32.mrb[24].mxu0  ;;  %v4871_v41 = vld [vmem:[#allocation2 + $0x2c8] sm:$0xff] }
 0x552   : > { %v5525_v10 = vmax.f32 %v4762_v19, %v4763_v52  ;;  %v3579_v26 = vadd.f32 %v3578_v16, %v13500_v45  ;;  %v4251_v49 = vpop.f32.mrb[24].mxu1  ;;  %v3580_v23 = vpop.f32.mrb[25].mxu0  ;;  %v15979_v36 = vld [vmem:[#allocation67_spill] sm:$0xff] }
 0x553   : > { %v5522_v5 = vmax.f32 %v5521_v37, %v4761_v40  ;;  %v4252_v59 = vadd.f32 %v4251_v49, %v13500_v45  ;;  %v3581_v31 = vadd.f32 %v3580_v23, %v13500_v45  ;;  %v4253_v30 = vpop.f32.mrb[25].mxu1  ;;  %v5344_v50 = vpop.xlane.xlu0 %5343 }
 0x554   : > { %v5526_v44 = vmax.f32 %v5525_v10, %v4764_v62  ;;  %v4766_v0 = vmax.f32 %v3579_v26, 0.0  ;;  %v5636_v25 = vmax.f32 %v4868_v28, %v5344_v50  ;;  %v3582_v56 = vpop.f32.mrb[26].mxu0  ;;  %v4255_v34 = vpop.f32.mrb[26].mxu1  ;;  %v4254_v54 = vadd.f32 %v4253_v30, %v13500_v45 }
 0x555   : > { %v4767_v2 = vmax.f32 %v3581_v31, 0.0  ;;  %v3583_v47 = vadd.f32 %v3582_v56, %v15977_v24  ;;  %v3584_v29 = vpop.f32.mrb[27].mxu0  ;;  %v4257_v58 = vpop.f32.mrb[27].mxu1  ;;  %5523 = vmax.xlane.f32.xlu0 %v5522_v5  ;;  %v4256_v8 = vadd.f32 %v4255_v34, %v15977_v24  ;;  %v4768_v35 = vmax.f32 %v4252_v59, 0.0  ;;  %v4872_v31 = vld [vmem:[#allocation2 + $0x2d0] sm:$0xff]  ;;  %v4873_v34 = vld [vmem:[#allocation2 + $0x2d8] sm:$0xff] }
 0x556   : > { %v5527_v14 = vmax.f32 %v5526_v44, %v4765_v6  ;;  %5765 = vst.msk [vmem:[#allocation2 + $0x2b0] sm:$0xff] %vm5678_vm2, %v5636_v25  ;;  %v3585_v51 = vadd.f32 %v3584_v29, %v15977_v24  ;;  %v5349_v20 = vpop.xlane.xlu1 %5348  ;;  %v4258_v45 = vadd.f32 %v4257_v58, %v15977_v24  ;;  %v4769_v22 = vmax.f32 %v4254_v54, 0.0  ;;  %v4874_v29 = vld [vmem:[#allocation2 + $0x2e0] sm:$0xff] }
 0x557   : > { %v5530_v7 = vmax.f32 %v4766_v0, %v4767_v2  ;;  %v4770_v39 = vmax.f32 %v3583_v47, 0.0  ;;  %v5637_v21 = vmax.f32 %v4869_v57, %v5349_v20  ;;  %v4772_v11 = vmax.f32 %v4256_v8, 0.0  ;;  %v4875_v8 = vld [vmem:[#allocation2 + $0x2e8] sm:$0xff] }
 0x558   : > { %v4771_v33 = vmax.f32 %v3585_v51, 0.0  ;;  %5528 = vmax.xlane.f32.xlu1 %v5527_v14  ;;  %v4773_v27 = vmax.f32 %v4258_v45, 0.0 }
 0x559   : > { %v5531_v18 = vmax.f32 %v5530_v7, %v4768_v35  ;;  %5766 = vst.msk [vmem:[#allocation2 + $0x2b8] sm:$0xff] %vm5678_vm2, %v5637_v21  ;;  %v3588_v9 = vpop.f32.mrb[28].mxu0  ;;  %v4876_v35 = vld [vmem:[#allocation2 + $0x2f0] sm:$0xff]  ;;  %v4877_v21 = vld [vmem:[#allocation2 + $0x2f8] sm:$0xff] }
 0x55a   : > { %v5535_v38 = vmax.f32 %v4770_v39, %v4771_v33  ;;  %v3589_v48 = vadd.f32 %v3588_v9, %v15978_v42  ;;  %v4261_v43 = vpop.f32.mrb[28].mxu1  ;;  %v3590_v17 = vpop.f32.mrb[29].mxu0 }
 0x55b   : > { %v5532_v1 = vmax.f32 %v5531_v18, %v4769_v22  ;;  %v4262_v13 = vadd.f32 %v4261_v43, %v15978_v42  ;;  %v3591_v63 = vadd.f32 %v3590_v17, %v15978_v42  ;;  %v4263_v61 = vpop.f32.mrb[29].mxu1  ;;  %v5354_v60 = vpop.xlane.xlu0 %5353  ;;  %v4878_v22 = vld [vmem:[#allocation2 + $0x300] sm:$0xff]  ;;  %v4881_v17 = vld [vmem:[#allocation2 + $0x318] sm:$0xff] }
 0x55c   : > { %v5536_v12 = vmax.f32 %v5535_v38, %v4772_v11  ;;  %v4774_v55 = vmax.f32 %v3589_v48, 0.0  ;;  %v5638_v46 = vmax.f32 %v4870_v15, %v5354_v60  ;;  %v3592_v4 = vpop.f32.mrb[30].mxu0  ;;  %v4265_v3 = vpop.f32.mrb[30].mxu1  ;;  %v4264_v19 = vadd.f32 %v4263_v61, %v15978_v42  ;;  %v4879_v15 = vld [vmem:[#allocation2 + $0x308] sm:$0xff]  ;;  %v4880_v42 = vld [vmem:[#allocation2 + $0x310] sm:$0xff] }
 0x55d   : > { %v4775_v53 = vmax.f32 %v3591_v63, 0.0  ;;  %v3593_v52 = vadd.f32 %v3592_v4, %v15979_v36  ;;  %v3594_v32 = vpop.f32.mrb[31].mxu0  ;;  %v4267_v40 = vpop.f32.mrb[31].mxu1  ;;  %5533 = vmax.xlane.f32.xlu0 %v5532_v1  ;;  %v4266_v16 = vadd.f32 %v4265_v3, %v15979_v36  ;;  %v4776_v10 = vmax.f32 %v4262_v13, 0.0  ;;  %v4882_v63 = vld [vmem:[#allocation2 + $0x320] sm:$0xff] }
 0x55e   : > { %v5537_v37 = vmax.f32 %v5536_v12, %v4773_v27  ;;  %5767 = vst.msk [vmem:[#allocation2 + $0x2c0] sm:$0xff] %vm5678_vm2, %v5638_v46  ;;  %v3595_v28 = vadd.f32 %v3594_v32, %v15979_v36  ;;  %v5359_v62 = vpop.xlane.xlu1 %5358  ;;  %v4268_v59 = vadd.f32 %v4267_v40, %v15979_v36  ;;  %v4777_v30 = vmax.f32 %v4264_v19, 0.0  ;;  %v4883_v27 = vld [vmem:[#allocation2 + $0x328] sm:$0xff]  ;;  %v4884_v46 = vld [vmem:[#allocation2 + $0x330] sm:$0xff]  ;;  %v4886_v36 = vld [vmem:[#allocation2 + $0x340] sm:$0xff] }
 0x55f   : > { %v5540_v26 = vmax.f32 %v4774_v55, %v4775_v53  ;;  %v4778_v49 = vmax.f32 %v3593_v52, 0.0  ;;  %v5639_v23 = vmax.f32 %v4871_v41, %v5359_v62  ;;  %v4780_v6 = vmax.f32 %v4266_v16, 0.0  ;;  %v4885_v41 = vld [vmem:[#allocation2 + $0x338] sm:$0xff]  ;;  %v4887_v40 = vld [vmem:[#allocation2 + $0x348] sm:$0xff] }
 0x560   : > { %v4779_v5 = vmax.f32 %v3595_v28, 0.0  ;;  %5538 = vmax.xlane.f32.xlu1 %v5537_v37  ;;  %v4781_v57 = vmax.f32 %v4268_v59, 0.0  ;;  %v4888_v28 = vld [vmem:[#allocation2 + $0x350] sm:$0xff] }
 0x561   : > { %v5541_v50 = vmax.f32 %v5540_v26, %v4776_v10  ;;  %5768 = vst.msk [vmem:[#allocation2 + $0x2c8] sm:$0xff] %vm5678_vm2, %v5639_v23  ;;  %v4889_v26 = vld [vmem:[#allocation2 + $0x358] sm:$0xff] }
 0x562   : > { %v5545_v44 = vmax.f32 %v4778_v49, %v4779_v5  ;;  %v5364_v0 = vpop.xlane.xlu0 %5363  ;;  %v4890_v5 = vld [vmem:[#allocation2 + $0x360] sm:$0xff] }
 0x563   : > { %v5542_v25 = vmax.f32 %v5541_v50, %v4777_v30  ;;  %v5640_v56 = vmax.f32 %v4872_v31, %v5364_v0  ;;  %v4891_v30 = vld [vmem:[#allocation2 + $0x368] sm:$0xff] }
 0x564   : > { %v5546_v2 = vmax.f32 %v5545_v44, %v4780_v6  ;;  %v4892_v44 = vld [vmem:[#allocation2 + $0x370] sm:$0xff] }
 0x565   : > { %5769 = vst.msk [vmem:[#allocation2 + $0x2d0] sm:$0xff] %vm5678_vm2, %v5640_v56  ;;  %v5369_v54 = vpop.xlane.xlu1 %5368  ;;  %5543 = vmax.xlane.f32.xlu0 %v5542_v25  ;;  %v4893_v56 = vld [vmem:[#allocation2 + $0x378] sm:$0xff] }
 0x566   : > { %v5547_v24 = vmax.f32 %v5546_v2, %v4781_v57  ;;  %v5641_v47 = vmax.f32 %v4873_v34, %v5369_v54  ;;  %v4894_v2 = vld [vmem:[#allocation2 + $0x380] sm:$0xff] }
 0x568   : > { %5770 = vst.msk [vmem:[#allocation2 + $0x2d8] sm:$0xff] %vm5678_vm2, %v5641_v47  ;;  %5548 = vmax.xlane.f32.xlu1 %v5547_v24  ;;  %v4895_v47 = vld [vmem:[#allocation2 + $0x388] sm:$0xff] }
 0x56a   : > { %v5374_v58 = vpop.xlane.xlu0 %5373 }
 0x56b   : > { %v5642_v14 = vmax.f32 %v4874_v29, %v5374_v58 }
 0x56d   : > { %5771 = vst.msk [vmem:[#allocation2 + $0x2e0] sm:$0xff] %vm5678_vm2, %v5642_v14  ;;  %v5379_v51 = vpop.xlane.xlu1 %5378  ;;  %v4896_v14 = vld [vmem:[#allocation2 + $0x390] sm:$0xff] }
 0x56e   : > { %v5643_v20 = vmax.f32 %v4875_v8, %v5379_v51 }
 0x570   : > { %5772 = vst.msk [vmem:[#allocation2 + $0x2e8] sm:$0xff] %vm5678_vm2, %v5643_v20  ;;  %v4897_v20 = vld [vmem:[#allocation2 + $0x398] sm:$0xff] }
 0x572   : > { %v5384_v7 = vpop.xlane.xlu0 %5383 }
 0x573   : > { %v5644_v39 = vmax.f32 %v4876_v35, %v5384_v7 }
 0x575   : > { %5773 = vst.msk [vmem:[#allocation2 + $0x2f0] sm:$0xff] %vm5678_vm2, %v5644_v39  ;;  %v5389_v33 = vpop.xlane.xlu1 %5388  ;;  %v4898_v39 = vld [vmem:[#allocation2 + $0x3a0] sm:$0xff] }
 0x576   : > { %v5645_v45 = vmax.f32 %v4877_v21, %v5389_v33 }
 0x578   : > { %5774 = vst.msk [vmem:[#allocation2 + $0x2f8] sm:$0xff] %vm5678_vm2, %v5645_v45  ;;  %v4899_v45 = vld [vmem:[#allocation2 + $0x3a8] sm:$0xff] }
 0x57a   : > { %v5394_v18 = vpop.xlane.xlu0 %5393 }
 0x57b   : > { %v5646_v9 = vmax.f32 %v4878_v22, %v5394_v18 }
 0x57d   : > { %5775 = vst.msk [vmem:[#allocation2 + $0x300] sm:$0xff] %vm5678_vm2, %v5646_v9  ;;  %v5399_v11 = vpop.xlane.xlu1 %5398  ;;  %v4900_v9 = vld [vmem:[#allocation2 + $0x3b0] sm:$0xff] }
 0x57e   : > { %v5647_v38 = vmax.f32 %v4879_v15, %v5399_v11 }
 0x580   : > { %5776 = vst.msk [vmem:[#allocation2 + $0x308] sm:$0xff] %vm5678_vm2, %v5647_v38  ;;  %v4901_v38 = vld [vmem:[#allocation2 + $0x3b8] sm:$0xff] }
 0x582   : > { %v5404_v48 = vpop.xlane.xlu0 %5403 }
 0x583   : > { %v5648_v43 = vmax.f32 %v4880_v42, %v5404_v48 }
 0x585   : > { %5777 = vst.msk [vmem:[#allocation2 + $0x310] sm:$0xff] %vm5678_vm2, %v5648_v43  ;;  %v5409_v1 = vpop.xlane.xlu1 %5408  ;;  %v4902_v43 = vld [vmem:[#allocation2 + $0x3c0] sm:$0xff] }
 0x586   : > { %v5649_v13 = vmax.f32 %v4881_v17, %v5409_v1 }
 0x588   : > { %5778 = vst.msk [vmem:[#allocation2 + $0x318] sm:$0xff] %vm5678_vm2, %v5649_v13  ;;  %v4903_v13 = vld [vmem:[#allocation2 + $0x3c8] sm:$0xff] }
 0x58a   : > { %v5414_v61 = vpop.xlane.xlu0 %5413 }
 0x58b   : > { %v5650_v60 = vmax.f32 %v4882_v63, %v5414_v61 }
 0x58d   : > { %5779 = vst.msk [vmem:[#allocation2 + $0x320] sm:$0xff] %vm5678_vm2, %v5650_v60  ;;  %v5419_v12 = vpop.xlane.xlu1 %5418  ;;  %v4904_v60 = vld [vmem:[#allocation2 + $0x3d0] sm:$0xff] }
 0x58e   : > { %v5651_v55 = vmax.f32 %v4883_v27, %v5419_v12 }
 0x590   : > { %5780 = vst.msk [vmem:[#allocation2 + $0x328] sm:$0xff] %vm5678_vm2, %v5651_v55  ;;  %v4905_v55 = vld [vmem:[#allocation2 + $0x3d8] sm:$0xff] }
 0x592   : > { %v5424_v4 = vpop.xlane.xlu0 %5423 }
 0x593   : > { %v5652_v3 = vmax.f32 %v4884_v46, %v5424_v4 }
 0x595   : > { %5781 = vst.msk [vmem:[#allocation2 + $0x330] sm:$0xff] %vm5678_vm2, %v5652_v3  ;;  %v5429_v53 = vpop.xlane.xlu1 %5428  ;;  %v4906_v3 = vld [vmem:[#allocation2 + $0x3e0] sm:$0xff] }
 0x596   : > { %v5653_v19 = vmax.f32 %v4885_v41, %v5429_v53 }
 0x598   : > { %5782 = vst.msk [vmem:[#allocation2 + $0x338] sm:$0xff] %vm5678_vm2, %v5653_v19  ;;  %v4907_v19 = vld [vmem:[#allocation2 + $0x3e8] sm:$0xff] }
 0x59a   : > { %v5434_v52 = vpop.xlane.xlu0 %5433 }
 0x59b   : > { %v5654_v32 = vmax.f32 %v4886_v36, %v5434_v52 }
 0x59d   : > { %5783 = vst.msk [vmem:[#allocation2 + $0x340] sm:$0xff] %vm5678_vm2, %v5654_v32  ;;  %v5439_v37 = vpop.xlane.xlu1 %5438  ;;  %v4908_v32 = vld [vmem:[#allocation2 + $0x3f0] sm:$0xff] }
 0x59e   : > { %v5655_v16 = vmax.f32 %v4887_v40, %v5439_v37 }
 0x5a0   : > { %5784 = vst.msk [vmem:[#allocation2 + $0x348] sm:$0xff] %vm5678_vm2, %v5655_v16  ;;  %v4909_v16 = vld [vmem:[#allocation2 + $0x3f8] sm:$0xff] }
 0x5a2   : > { %v5444_v62 = vpop.xlane.xlu0 %5443 }
 0x5a3   : > { %v5656_v10 = vmax.f32 %v4888_v28, %v5444_v62 }
 0x5a5   : > { %5785 = vst.msk [vmem:[#allocation2 + $0x350] sm:$0xff] %vm5678_vm2, %v5656_v10  ;;  %v5449_v49 = vpop.xlane.xlu1 %5448 }
 0x5a6   : > { %v5657_v23 = vmax.f32 %v4889_v26, %v5449_v49 }
 0x5a8   : > { %5786 = vst.msk [vmem:[#allocation2 + $0x358] sm:$0xff] %vm5678_vm2, %v5657_v23 }
 0x5aa   : > { %v5454_v59 = vpop.xlane.xlu0 %5453 }
 0x5ab   : > { %v5658_v31 = vmax.f32 %v4890_v5, %v5454_v59 }
 0x5ad   : > { %5787 = vst.msk [vmem:[#allocation2 + $0x360] sm:$0xff] %vm5678_vm2, %v5658_v31  ;;  %v5459_v50 = vpop.xlane.xlu1 %5458 }
 0x5ae   : > { %v5659_v6 = vmax.f32 %v4891_v30, %v5459_v50 }
 0x5b0   : > { %5788 = vst.msk [vmem:[#allocation2 + $0x368] sm:$0xff] %vm5678_vm2, %v5659_v6 }
 0x5b2   : > { %v5464_v0 = vpop.xlane.xlu0 %5463 }
 0x5b3   : > { %v5660_v25 = vmax.f32 %v4892_v44, %v5464_v0 }
 0x5b5   : > { %5789 = vst.msk [vmem:[#allocation2 + $0x370] sm:$0xff] %vm5678_vm2, %v5660_v25  ;;  %v5469_v34 = vpop.xlane.xlu1 %5468 }
 0x5b6   : > { %v5661_v57 = vmax.f32 %v4893_v56, %v5469_v34 }
 0x5b8   : > { %5790 = vst.msk [vmem:[#allocation2 + $0x378] sm:$0xff] %vm5678_vm2, %v5661_v57 }
 0x5ba   : > { %v5474_v54 = vpop.xlane.xlu0 %5473 }
 0x5bb   : > { %v5662_v24 = vmax.f32 %v4894_v2, %v5474_v54 }
 0x5bd   : > { %5791 = vst.msk [vmem:[#allocation2 + $0x380] sm:$0xff] %vm5678_vm2, %v5662_v24  ;;  %v5479_v29 = vpop.xlane.xlu1 %5478 }
 0x5be   : > { %v5663_v58 = vmax.f32 %v4895_v47, %v5479_v29 }
 0x5c0   : > { %5792 = vst.msk [vmem:[#allocation2 + $0x388] sm:$0xff] %vm5678_vm2, %v5663_v58 }
 0x5c2   : > { %v5484_v8 = vpop.xlane.xlu0 %5483 }
 0x5c3   : > { %v5664_v51 = vmax.f32 %v4896_v14, %v5484_v8 }
 0x5c5   : > { %5793 = vst.msk [vmem:[#allocation2 + $0x390] sm:$0xff] %vm5678_vm2, %v5664_v51  ;;  %v5489_v35 = vpop.xlane.xlu1 %5488 }
 0x5c6   : > { %v5665_v7 = vmax.f32 %v4897_v20, %v5489_v35 }
 0x5c8   : > { %5794 = vst.msk [vmem:[#allocation2 + $0x398] sm:$0xff] %vm5678_vm2, %v5665_v7 }
 0x5ca   : > { %v5494_v21 = vpop.xlane.xlu0 %5493 }
 0x5cb   : > { %v5666_v33 = vmax.f32 %v4898_v39, %v5494_v21 }
 0x5cd   : > { %5795 = vst.msk [vmem:[#allocation2 + $0x3a0] sm:$0xff] %vm5678_vm2, %v5666_v33  ;;  %v5499_v22 = vpop.xlane.xlu1 %5498 }
 0x5ce   : > { %v5667_v18 = vmax.f32 %v4899_v45, %v5499_v22 }
 0x5d0   : > { %5796 = vst.msk [vmem:[#allocation2 + $0x3a8] sm:$0xff] %vm5678_vm2, %v5667_v18 }
 0x5d2   : > { %v5504_v15 = vpop.xlane.xlu0 %5503 }
 0x5d3   : > { %v5668_v11 = vmax.f32 %v4900_v9, %v5504_v15 }
 0x5d5   : > { %5797 = vst.msk [vmem:[#allocation2 + $0x3b0] sm:$0xff] %vm5678_vm2, %v5668_v11  ;;  %v5509_v42 = vpop.xlane.xlu1 %5508 }
 0x5d6   : > { %v5669_v48 = vmax.f32 %v4901_v38, %v5509_v42 }
 0x5d8   : > { %5798 = vst.msk [vmem:[#allocation2 + $0x3b8] sm:$0xff] %vm5678_vm2, %v5669_v48 }
 0x5da   : > { %v5514_v17 = vpop.xlane.xlu0 %5513 }
 0x5db   : > { %v5670_v1 = vmax.f32 %v4902_v43, %v5514_v17 }
 0x5dd   : > { %5799 = vst.msk [vmem:[#allocation2 + $0x3c0] sm:$0xff] %vm5678_vm2, %v5670_v1  ;;  %v5519_v63 = vpop.xlane.xlu1 %5518 }
 0x5de   : > { %v5671_v61 = vmax.f32 %v4903_v13, %v5519_v63 }
 0x5e0   : > { %5800 = vst.msk [vmem:[#allocation2 + $0x3c8] sm:$0xff] %vm5678_vm2, %v5671_v61 }
 0x5e2   : > { %v5524_v27 = vpop.xlane.xlu0 %5523 }
 0x5e3   : > { %v5672_v12 = vmax.f32 %v4904_v60, %v5524_v27 }
 0x5e5   : > { %5801 = vst.msk [vmem:[#allocation2 + $0x3d0] sm:$0xff] %vm5678_vm2, %v5672_v12  ;;  %v5529_v46 = vpop.xlane.xlu1 %5528 }
 0x5e6   : > { %v5673_v4 = vmax.f32 %v4905_v55, %v5529_v46 }
 0x5e8   : > { %5802 = vst.msk [vmem:[#allocation2 + $0x3d8] sm:$0xff] %vm5678_vm2, %v5673_v4 }
 0x5ea   : > { %v5534_v41 = vpop.xlane.xlu0 %5533 }
 0x5eb   : > { %v5674_v53 = vmax.f32 %v4906_v3, %v5534_v41 }
 0x5ed   : > { %5803 = vst.msk [vmem:[#allocation2 + $0x3e0] sm:$0xff] %vm5678_vm2, %v5674_v53  ;;  %v5539_v36 = vpop.xlane.xlu1 %5538 }
 0x5ee   : > { %v5675_v52 = vmax.f32 %v4907_v19, %v5539_v36 }
 0x5f0   : > { %5804 = vst.msk [vmem:[#allocation2 + $0x3e8] sm:$0xff] %vm5678_vm2, %v5675_v52 }
 0x5f2   : > { %v5544_v40 = vpop.xlane.xlu0 %5543  ;;  %5810 = sbr.rel (%p10064_p10) target bundleno = 3106 (0xc22), region = 88 }
 0x5f3   : > { %v5676_v37 = vmax.f32 %v4908_v32, %v5544_v40 }
 0x5f5   : > { %5805 = vst.msk [vmem:[#allocation2 + $0x3f0] sm:$0xff] %vm5678_vm2, %v5676_v37  ;;  %v5549_v28 = vpop.xlane.xlu1 %5548 }
 0x5f6   : > { %v5677_v62 = vmax.f32 %v4909_v16, %v5549_v28 }
 0x5f8   : > { %5806 = vst.msk [vmem:[#allocation2 + $0x3f8] sm:$0xff] %vm5678_vm2, %v5677_v62 }
 0x5f9   : > { %v5843_v10 = vld [vmem:[#allocation2 + $0x100] sm:$0xff]  ;;  %v5844_v26 = vld [vmem:[#allocation2 + $0x108] sm:$0xff]  ;;  %v5845_v49 = vld [vmem:[#allocation2 + $0x110] sm:$0xff]  ;;  %v11499_v23 = vmov 0   ;;  %s16012_s10 = sld [smem:[#allocation84_spill]]  ;;  %s16013_s14 = sld [smem:[#allocation85_spill]] }
 0x5fa   : > { %7892 = vmatprep.subr.bf16.mxu0 %v11499_v23  ;;  %v14098_v5 = vpack.c.bf16 %v5844_v26, %v5843_v10  ;;  %v5846_v59 = vld [vmem:[#allocation2 + $0x118] sm:$0xff]  ;;  %7603 = vmatprep.subr.bf16.mxu1 %v11499_v23  ;;  %v5847_v30 = vld [vmem:[#allocation2 + $0x120] sm:$0xff]  ;;  %v5848_v50 = vld [vmem:[#allocation2 + $0x128] sm:$0xff] }
 0x5fb   : > { %v14102_v31 = vpack.c.bf16 %v5846_v59, %v5845_v49  ;;  %v14106_v6 = vpack.c.bf16 %v5848_v50, %v5847_v30  ;;  %v5849_v44 = vld [vmem:[#allocation2 + $0x130] sm:$0xff]  ;;  %v5850_v0 = vld [vmem:[#allocation2 + $0x138] sm:$0xff]  ;;  %v14112_v25 = vld [vmem:[%s15767_s7 + $0x8] sm:$0xff] }
 0x5fc   : > { %7893 = vmatpush1.bf16.msra.mxu0 %v14098_v5  ;;  %v14115_v56 = vpack.c.bf16 %v5850_v0, %v5849_v44  ;;  %v14120_v34 = vld [vmem:[%s15767_s7 + $0x28] sm:$0xff]  ;;  %v5851_v57 = vld [vmem:[#allocation2 + $0x140] sm:$0xff]  ;;  %v5853_v47 = vld [vmem:[#allocation2 + $0x150] sm:$0xff] }
 0x5fd   : > { %7894 = vmatprep.subr.bf16.mxu0 %v11499_v23  ;;  %v5852_v2 = vld [vmem:[#allocation2 + $0x148] sm:$0xff]  ;;  %v10068_v54 = vcombine.high %v14112_v25, %v14120_v34  ;;  %v5854_v29 = vld [vmem:[#allocation2 + $0x158] sm:$0xff]  ;;  %v5855_v14 = vld [vmem:[#allocation2 + $0x160] sm:$0xff]  ;;  %v10067_v36 = vcombine.low %v14112_v25, %v14120_v34 }
 0x5fe   : > { %v14126_v24 = vpack.c.bf16 %v5852_v2, %v5851_v57  ;;  %v14130_v58 = vpack.c.bf16 %v5854_v29, %v5853_v47  ;;  %v5856_v8 = vld [vmem:[#allocation2 + $0x168] sm:$0xff]  ;;  %v5857_v51 = vld [vmem:[#allocation2 + $0x170] sm:$0xff]  ;;  %v5858_v20 = vld [vmem:[#allocation2 + $0x178] sm:$0xff] }
 0x5ff   : > { %7924 = vmatprep.mubr.bf16.mxu0 %v10068_v54  ;;  %v14134_v35 = vpack.c.bf16 %v5856_v8, %v5855_v14  ;;  %v5859_v7 = vld [vmem:[#allocation2 + $0x180] sm:$0xff]  ;;  %v14138_v39 = vpack.c.bf16 %v5858_v20, %v5857_v51  ;;  %v5860_v21 = vld [vmem:[#allocation2 + $0x188] sm:$0xff]  ;;  %v5861_v33 = vld [vmem:[#allocation2 + $0x190] sm:$0xff] }
 0x600   : > { %7895 = vmatpush1.bf16.msra.mxu0 %v14102_v31  ;;  %v5862_v45 = vld [vmem:[#allocation2 + $0x198] sm:$0xff]  ;;  %v14142_v22 = vpack.c.bf16 %v5860_v21, %v5859_v7  ;;  %v5863_v18 = vld [vmem:[#allocation2 + $0x1a0] sm:$0xff]  ;;  %v5864_v15 = vld [vmem:[#allocation2 + $0x1a8] sm:$0xff] }
 0x601   : > { %7896 = vmatprep.subr.bf16.mxu0 %v11499_v23  ;;  %v14146_v9 = vpack.c.bf16 %v5862_v45, %v5861_v33  ;;  %v5865_v11 = vld [vmem:[#allocation2 + $0x1b0] sm:$0xff]  ;;  %v5866_v38 = vld [vmem:[#allocation2 + $0x1b8] sm:$0xff]  ;;  %v14150_v42 = vpack.c.bf16 %v5864_v15, %v5863_v18  ;;  %v5867_v48 = vld [vmem:[#allocation2 + $0x1c0] sm:$0xff] }
 0x602   : > { %v14154_v43 = vpack.c.bf16 %v5866_v38, %v5865_v11  ;;  %v5868_v17 = vld [vmem:[#allocation2 + $0x1c8] sm:$0xff]  ;;  %v5869_v1 = vld [vmem:[#allocation2 + $0x1d0] sm:$0xff]  ;;  %v5870_v13 = vld [vmem:[#allocation2 + $0x1d8] sm:$0xff] }
 0x603   : > { %v14158_v63 = vpack.c.bf16 %v5868_v17, %v5867_v48  ;;  %v14162_v61 = vpack.c.bf16 %v5870_v13, %v5869_v1  ;;  %v5871_v60 = vld [vmem:[#allocation2 + $0x1e0] sm:$0xff]  ;;  %v5872_v27 = vld [vmem:[#allocation2 + $0x1e8] sm:$0xff]  ;;  %v5873_v55 = vld [vmem:[#allocation2 + $0x1f0] sm:$0xff] }
 0x604   : > { %7897 = vmatpush1.bf16.msra.mxu0 %v14106_v6  ;;  %v14166_v12 = vpack.c.bf16 %v5872_v27, %v5871_v60  ;;  %v5874_v46 = vld [vmem:[#allocation2 + $0x1f8] sm:$0xff]  ;;  %v6012_v3 = vld [vmem:[%s15767_s7 + $0x48] sm:$0xff]  ;;  %v5875_v53 = vld [vmem:[#allocation2 + $0x200] sm:$0xff] }
 0x605   : > { %7898 = vmatprep.subr.bf16.mxu0 %v11499_v23  ;;  %v14170_v4 = vpack.c.bf16 %v5874_v46, %v5873_v55  ;;  %v6016_v41 = vld [vmem:[%s15767_s7 + $0x68] sm:$0xff]  ;;  %v5877_v40 = vld [vmem:[#allocation2 + $0x210] sm:$0xff]  ;;  %v5878_v37 = vld [vmem:[#allocation2 + $0x218] sm:$0xff] }
 0x606   : > { %v5876_v19 = vld [vmem:[#allocation2 + $0x208] sm:$0xff]  ;;  %v10076_v52 = vcombine.high %v6012_v3, %v6016_v41  ;;  %v5972_v28 = vpack.c.bf16 %v5878_v37, %v5877_v40  ;;  %v5879_v10 = vld [vmem:[#allocation2 + $0x220] sm:$0xff]  ;;  %v10075_v49 = vcombine.low %v6012_v3, %v6016_v41  ;;  %v5881_v50 = vld [vmem:[#allocation2 + $0x230] sm:$0xff] }
 0x607   : > { %v5971_v32 = vpack.c.bf16 %v5876_v19, %v5875_v53  ;;  %v6020_v16 = vld [vmem:[%s15767_s7 + $0x88] sm:$0xff]  ;;  %v5882_v44 = vld [vmem:[#allocation2 + $0x238] sm:$0xff]  ;;  %v5883_v57 = vld [vmem:[#allocation2 + $0x240] sm:$0xff] }
 0x608   : > { %7899 = vmatpush1.bf16.msra.mxu0 %v14115_v56  ;;  %v6024_v62 = vld [vmem:[%s15767_s7 + $0xa8] sm:$0xff]  ;;  %v5974_v25 = vpack.c.bf16 %v5882_v44, %v5881_v50  ;;  %v5885_v14 = vld [vmem:[#allocation2 + $0x250] sm:$0xff]  ;;  %v5886_v8 = vld [vmem:[#allocation2 + $0x258] sm:$0xff] }
 0x609   : > { %7900 = vmatprep.subr.bf16.mxu0 %v11499_v23  ;;  %v5880_v26 = vld [vmem:[#allocation2 + $0x228] sm:$0xff]  ;;  %v10084_v59 = vcombine.high %v6020_v16, %v6024_v62  ;;  %v10083_v54 = vcombine.low %v6020_v16, %v6024_v62  ;;  %v5976_v20 = vpack.c.bf16 %v5886_v8, %v5885_v14  ;;  %v5887_v21 = vld [vmem:[#allocation2 + $0x260] sm:$0xff]  ;;  %v5889_v11 = vld [vmem:[#allocation2 + $0x270] sm:$0xff] }
 0x60a   : > { %v5973_v30 = vpack.c.bf16 %v5880_v26, %v5879_v10  ;;  %v6028_v0 = vld [vmem:[%s15767_s7 + $0xc8] sm:$0xff]  ;;  %v5890_v38 = vld [vmem:[#allocation2 + $0x278] sm:$0xff]  ;;  %v5811_v48 = vld [vmem:[#allocation2] sm:$0xff] }
 0x60b   : > { %v6032_v34 = vld [vmem:[%s15767_s7 + $0xe8] sm:$0xff]  ;;  %v5978_v60 = vpack.c.bf16 %v5890_v38, %v5889_v11  ;;  %v5891_v27 = vld [vmem:[#allocation2 + $0x280] sm:$0xff]  ;;  %v5813_v3 = vld [vmem:[#allocation2 + $0x10] sm:$0xff] }
 0x60c   : > { %7901 = vmatpush1.bf16.msra.mxu0 %v14126_v24  ;;  %v5884_v2 = vld [vmem:[#allocation2 + $0x248] sm:$0xff]  ;;  %v10092_v47 = vcombine.high %v6028_v0, %v6032_v34  ;;  %v10091_v45 = vcombine.low %v6028_v0, %v6032_v34  ;;  %v5814_v41 = vld [vmem:[#allocation2 + $0x18] sm:$0xff]  ;;  %v5815_v37 = vld [vmem:[#allocation2 + $0x20] sm:$0xff] }
 0x60d   : > { %7902 = vmatprep.subr.bf16.mxu0 %v11499_v23  ;;  %v5975_v29 = vpack.c.bf16 %v5884_v2, %v5883_v57  ;;  %v6036_v51 = vld [vmem:[%s15767_s7 + $0x108] sm:$0xff]  ;;  %v5940_v53 = vpack.c.bf16 %v5814_v41, %v5813_v3  ;;  %v5894_v40 = vld [vmem:[#allocation2 + $0x298] sm:$0xff]  ;;  %v5817_v26 = vld [vmem:[#allocation2 + $0x30] sm:$0xff] }
 0x60e   : > { %v6040_v7 = vld [vmem:[%s15767_s7 + $0x128] sm:$0xff]  ;;  %v5897_v57 = vld [vmem:[#allocation2 + $0x2b0] sm:$0xff]  ;;  %v5898_v2 = vld [vmem:[#allocation2 + $0x2b8] sm:$0xff] }
 0x60f   : > { %v5888_v33 = vld [vmem:[#allocation2 + $0x268] sm:$0xff]  ;;  %v10100_v18 = vcombine.high %v6036_v51, %v6040_v7  ;;  %v10099_v19 = vcombine.low %v6036_v51, %v6040_v7  ;;  %v5982_v14 = vpack.c.bf16 %v5898_v2, %v5897_v57  ;;  %v5821_v51 = vld [vmem:[#allocation2 + $0x50] sm:$0xff]  ;;  %v5903_v41 = vld [vmem:[#allocation2 + $0x2e0] sm:$0xff] }
 0x610   : > { %7903 = vmatpush1.bf16.msra.mxu0 %v14130_v58  ;;  %v5977_v15 = vpack.c.bf16 %v5888_v33, %v5887_v21  ;;  %v5812_v17 = vld [vmem:[#allocation2 + $0x8] sm:$0xff]  ;;  %v5899_v21 = vld [vmem:[#allocation2 + $0x2c0] sm:$0xff]  ;;  %v5901_v38 = vld [vmem:[#allocation2 + $0x2d0] sm:$0xff] }
 0x611   : > { %7904 = vmatprep.subr.bf16.mxu0 %v11499_v23  ;;  %v6044_v1 = vld [vmem:[%s15767_s7 + $0x148] sm:$0xff]  ;;  %v5939_v55 = vpack.c.bf16 %v5812_v17, %v5811_v48  ;;  %v5902_v48 = vld [vmem:[#allocation2 + $0x2d8] sm:$0xff]  ;;  %v5823_v17 = vld [vmem:[#allocation2 + $0x60] sm:$0xff] }
 0x612   : > { %v6048_v13 = vld [vmem:[%s15767_s7 + $0x168] sm:$0xff]  ;;  %v5833_v2 = vld [vmem:[#allocation2 + $0xb0] sm:$0xff] }
 0x613   : > { %v5892_v46 = vld [vmem:[#allocation2 + $0x288] sm:$0xff]  ;;  %7604 = vmatpush1.bf16.msra.mxu1 %v5939_v55  ;;  %v10107_v0 = vcombine.low %v6044_v1, %v6048_v13  ;;  %v5825_v55 = vld [vmem:[#allocation2 + $0x70] sm:$0xff] }
 0x614   : > { %7905 = vmatpush1.bf16.msra.mxu0 %v14134_v35  ;;  %7605 = vmatprep.subr.bf16.mxu1 %v11499_v23  ;;  %v5816_v16 = vld [vmem:[#allocation2 + $0x28] sm:$0xff] }
 0x615   : > { %7906 = vmatprep.subr.bf16.mxu0 %v11499_v23  ;;  %v5941_v10 = vpack.c.bf16 %v5816_v16, %v5815_v37  ;;  %v5896_v50 = vld [vmem:[#allocation2 + $0x2a8] sm:$0xff]  ;;  %v5906_v37 = vld [vmem:[#allocation2 + $0x2f8] sm:$0xff]  ;;  %v5827_v16 = vld [vmem:[#allocation2 + $0x80] sm:$0xff] }
 0x616   : > { %v6064_v7 = vld [vmem:[%s15767_s7 + $0x1e8] sm:$0xff] }
 0x617   : > { %7606 = vmatpush1.bf16.msra.mxu1 %v5940_v53  ;;  %v5900_v33 = vld [vmem:[#allocation2 + $0x2c8] sm:$0xff] }
 0x618   : > { %7907 = vmatpush1.bf16.msra.mxu0 %v14138_v39  ;;  %7607 = vmatprep.subr.bf16.mxu1 %v11499_v23  ;;  %v5983_v11 = vpack.c.bf16 %v5900_v33, %v5899_v21  ;;  %v6072_v3 = vld [vmem:[%s15767_s7 + $0x228] sm:$0xff]  ;;  %v5837_v33 = vld [vmem:[#allocation2 + $0xd0] sm:$0xff] }
 0x619   : > { %7908 = vmatprep.subr.bf16.mxu0 %v11499_v23  ;;  %v5904_v53 = vld [vmem:[#allocation2 + $0x2e8] sm:$0xff] }
 0x61b   : > { %7608 = vmatpush1.bf16.msra.mxu1 %v5941_v10 }
 0x61c   : > { %7909 = vmatpush1.bf16.msra.mxu0 %v14142_v22  ;;  %7609 = vmatprep.subr.bf16.mxu1 %v11499_v23 }
 0x61d   : > { %7910 = vmatprep.subr.bf16.mxu0 %v11499_v23 }
 0x620   : > { %7911 = vmatpush1.bf16.msra.mxu0 %v14146_v9 }
 0x621   : > { %7912 = vmatprep.subr.bf16.mxu0 %v11499_v23 }
 0x624   : > { %7913 = vmatpush1.bf16.msra.mxu0 %v14150_v42 }
 0x625   : > { %7914 = vmatprep.subr.bf16.mxu0 %v11499_v23 }
 0x628   : > { %7915 = vmatpush1.bf16.msra.mxu0 %v14154_v43 }
 0x629   : > { %7916 = vmatprep.subr.bf16.mxu0 %v11499_v23 }
 0x62c   : > { %7917 = vmatpush1.bf16.msra.mxu0 %v14158_v63 }
 0x62d   : > { %7918 = vmatprep.subr.bf16.mxu0 %v11499_v23 }
 0x630   : > { %7919 = vmatpush1.bf16.msra.mxu0 %v14162_v61 }
 0x631   : > { %7920 = vmatprep.subr.bf16.mxu0 %v11499_v23 }
 0x634   : > { %7921 = vmatpush1.bf16.msra.mxu0 %v14166_v12 }
 0x635   : > { %7922 = vmatprep.subr.bf16.mxu0 %v11499_v23 }
 0x638   : > { %7923 = vmatpush1.bf16.msra.mxu0 %v14170_v4 }
 0x639   : > { %8181 = vmatprep.subr.bf16.mxu0 %v11499_v23 }
 0x63b   : > { %7925 = vmatmul.mubr.bf16.vlgmr.msra.gmra.mrb[0].mxu0 %v10067_v36  ;;  %v10108_v36 = vcombine.high %v6044_v1, %v6048_v13  ;;  %v5824_v1 = vld [vmem:[#allocation2 + $0x68] sm:$0xff] }
 0x63c   : > { %7932 = vmatprep.mubr.bf16.mxu0 %v10076_v52  ;;  %8182 = vmatpush1.bf16.msra.mxu0 %v5971_v32  ;;  %v5979_v52 = vpack.c.bf16 %v5892_v46, %v5891_v27  ;;  %v5893_v32 = vld [vmem:[#allocation2 + $0x290] sm:$0xff]  ;;  %v6068_v13 = vld [vmem:[%s15767_s7 + $0x208] sm:$0xff]  ;;  %v5945_v27 = vpack.c.bf16 %v5824_v1, %v5823_v17  ;;  %v5826_v46 = vld [vmem:[#allocation2 + $0x78] sm:$0xff] }
 0x63d   : > { %8183 = vmatprep.subr.bf16.mxu0 %v11499_v23  ;;  %v5980_v62 = vpack.c.bf16 %v5894_v40, %v5893_v32  ;;  %v5985_v32 = vpack.c.bf16 %v5904_v53, %v5903_v41  ;;  %v5905_v40 = vld [vmem:[#allocation2 + $0x2f0] sm:$0xff]  ;;  %v5839_v17 = vld [vmem:[#allocation2 + $0xe0] sm:$0xff]  ;;  %v5840_v1 = vld [vmem:[#allocation2 + $0xe8] sm:$0xff] }
 0x640   : > { %8184 = vmatpush1.bf16.msra.mxu0 %v5972_v28  ;;  %v6052_v28 = vld [vmem:[%s15767_s7 + $0x188] sm:$0xff] }
 0x641   : > { %8185 = vmatprep.subr.bf16.mxu0 %v11499_v23 }
 0x643   : > { %7933 = vmatmul.mubr.bf16.gmra.mrb[4].mxu0 %v10075_v49  ;;  %v5818_v49 = vld [vmem:[#allocation2 + $0x38] sm:$0xff] }
 0x644   : > { %7940 = vmatprep.mubr.bf16.mxu0 %v10084_v59  ;;  %8186 = vmatpush1.bf16.msra.mxu0 %v5973_v30  ;;  %v6056_v59 = vld [vmem:[%s15767_s7 + $0x1a8] sm:$0xff]  ;;  %v5895_v30 = vld [vmem:[#allocation2 + $0x2a0] sm:$0xff]  ;;  %v5942_v44 = vpack.c.bf16 %v5818_v49, %v5817_v26  ;;  %v5829_v26 = vld [vmem:[#allocation2 + $0x90] sm:$0xff] }
 0x645   : > { %8187 = vmatprep.subr.bf16.mxu0 %v11499_v23  ;;  %v5981_v34 = vpack.c.bf16 %v5896_v50, %v5895_v30  ;;  %v5830_v49 = vld [vmem:[#allocation2 + $0x98] sm:$0xff]  ;;  %v6080_v30 = vld [vmem:[%s15767_s7 + $0x268] sm:$0xff] }
 0x646   : > { %7610 = vmatpush1.bf16.msra.mxu1 %v5942_v44  ;;  %v5948_v50 = vpack.c.bf16 %v5830_v49, %v5829_v26  ;;  %v10131_v44 = vcombine.low %v6068_v13, %v6072_v3 }
 0x647   : > { %7611 = vmatprep.subr.bf16.mxu1 %v11499_v23 }
 0x648   : > { %8188 = vmatpush1.bf16.msra.mxu0 %v5974_v25  ;;  %v10116_v25 = vcombine.high %v6052_v28, %v6056_v59 }
 0x649   : > { %8189 = vmatprep.subr.bf16.mxu0 %v11499_v23 }
 0x64b   : > { %7941 = vmatmul.mubr.bf16.gmra.mrb[8].mxu0 %v10083_v54  ;;  %v5819_v54 = vld [vmem:[#allocation2 + $0x40] sm:$0xff] }
 0x64c   : > { %7948 = vmatprep.mubr.bf16.mxu0 %v10092_v47  ;;  %8190 = vmatpush1.bf16.msra.mxu0 %v5975_v29  ;;  %v5820_v47 = vld [vmem:[#allocation2 + $0x48] sm:$0xff] }
 0x64d   : > { %8191 = vmatprep.subr.bf16.mxu0 %v11499_v23  ;;  %v6060_v29 = vld [vmem:[%s15767_s7 + $0x1c8] sm:$0xff]  ;;  %v5943_v8 = vpack.c.bf16 %v5820_v47, %v5819_v54  ;;  %v5834_v54 = vld [vmem:[#allocation2 + $0xb8] sm:$0xff] }
 0x64e   : > { %v6084_v47 = vld [vmem:[%s15767_s7 + $0x288] sm:$0xff] }
 0x64f   : > { %7612 = vmatpush1.bf16.msra.mxu1 %v5943_v8 }
 0x650   : > { %8192 = vmatpush1.bf16.msra.mxu0 %v5976_v20  ;;  %v5822_v20 = vld [vmem:[#allocation2 + $0x58] sm:$0xff]  ;;  %7613 = vmatprep.subr.bf16.mxu1 %v11499_v23 }
 0x651   : > { %8193 = vmatprep.subr.bf16.mxu0 %v11499_v23 }
 0x653   : > { %7949 = vmatmul.mubr.bf16.gmra.mrb[12].mxu0 %v10091_v45  ;;  %v5944_v45 = vpack.c.bf16 %v5822_v20, %v5821_v51  ;;  %v5835_v20 = vld [vmem:[#allocation2 + $0xc0] sm:$0xff] }
 0x654   : > { %7956 = vmatprep.mubr.bf16.mxu0 %v10100_v18  ;;  %8194 = vmatpush1.bf16.msra.mxu0 %v5977_v15  ;;  %v10115_v18 = vcombine.low %v6052_v28, %v6056_v59  ;;  %v10124_v15 = vcombine.high %v6060_v29, %v6064_v7  ;;  %v5828_v28 = vld [vmem:[#allocation2 + $0x88] sm:$0xff] }
 0x655   : > { %8195 = vmatprep.subr.bf16.mxu0 %v11499_v23  ;;  %7614 = vmatpush1.bf16.msra.mxu1 %v5944_v45  ;;  %v5947_v10 = vpack.c.bf16 %v5828_v28, %v5827_v16  ;;  %v6076_v59 = vld [vmem:[%s15767_s7 + $0x248] sm:$0xff]  ;;  %v5838_v45 = vld [vmem:[#allocation2 + $0xd8] sm:$0xff] }
 0x656   : > { %7615 = vmatprep.subr.bf16.mxu1 %v11499_v23  ;;  %v10139_v8 = vcombine.low %v6076_v59, %v6080_v30 }
 0x658   : > { %8196 = vmatpush1.bf16.msra.mxu0 %v5978_v60  ;;  %v5984_v60 = vpack.c.bf16 %v5902_v48, %v5901_v38 }
 0x659   : > { %8197 = vmatprep.subr.bf16.mxu0 %v11499_v23  ;;  %7616 = vmatpush1.bf16.msra.mxu1 %v5945_v27  ;;  %v5842_v27 = vld [vmem:[#allocation2 + $0xf8] sm:$0xff] }
 0x65a   : > { %7617 = vmatprep.subr.bf16.mxu1 %v11499_v23 }
 0x65b   : > { %7957 = vmatmul.mubr.bf16.gmra.mrb[16].mxu0 %v10099_v19  ;;  %v5946_v19 = vpack.c.bf16 %v5826_v46, %v5825_v55  ;;  %v6100_v55 = vld [vmem:[%s15767_s7 + $0x308] sm:$0xff] }
 0x65c   : > { %7964 = vmatprep.mubr.bf16.mxu0 %v10108_v36  ;;  %8198 = vmatpush1.bf16.msra.mxu0 %v5979_v52  ;;  %v10123_v36 = vcombine.low %v6060_v29, %v6064_v7  ;;  %v10132_v52 = vcombine.high %v6068_v13, %v6072_v3  ;;  %v6088_v29 = vld [vmem:[%s15767_s7 + $0x2a8] sm:$0xff]  ;;  %v5953_v13 = vpack.c.bf16 %v5840_v1, %v5839_v17 }
 0x65d   : > { %8199 = vmatprep.subr.bf16.mxu0 %v11499_v23  ;;  %7618 = vmatpush1.bf16.msra.mxu1 %v5946_v19  ;;  %v10148_v51 = vcombine.high %v6084_v47, %v6088_v29  ;;  %v5836_v7 = vld [vmem:[#allocation2 + $0xc8] sm:$0xff]  ;;  %v10147_v38 = vcombine.low %v6084_v47, %v6088_v29  ;;  %v6003_v19 = vld [vmem:[%s15767_s7] sm:$0xff] }
 0x65e   : > { %7619 = vmatprep.subr.bf16.mxu1 %v11499_v23  ;;  %v5951_v21 = vpack.c.bf16 %v5836_v7, %v5835_v20  ;;  %v6104_v46 = vld [vmem:[%s15767_s7 + $0x328] sm:$0xff]  ;;  %v6039_v20 = vld [vmem:[%s15767_s7 + $0x120] sm:$0xff] }
 0x65f   : > { %v10164_v53 = vcombine.high %v6100_v55, %v6104_v46  ;;  %v10163_v16 = vcombine.low %v6100_v55, %v6104_v46  ;;  %v6160_v55 = vld [vmem:[%s15767_s7 + $0x4e8] sm:$0xff] }
 0x660   : > { %8200 = vmatpush1.bf16.msra.mxu0 %v5980_v62  ;;  %v5986_v62 = vpack.c.bf16 %v5906_v37, %v5905_v40  ;;  %v6108_v40 = vld [vmem:[%s15767_s7 + $0x348] sm:$0xff] }
 0x661   : > { %8201 = vmatprep.subr.bf16.mxu0 %v11499_v23  ;;  %7620 = vmatpush1.bf16.msra.mxu1 %v5947_v10  ;;  %v6112_v37 = vld [vmem:[%s15767_s7 + $0x368] sm:$0xff]  ;;  %v6015_v10 = vld [vmem:[%s15767_s7 + $0x60] sm:$0xff] }
 0x662   : > { %7621 = vmatprep.subr.bf16.mxu1 %v11499_v23  ;;  %v10172_v28 = vcombine.high %v6108_v40, %v6112_v37 }
 0x663   : > { %7965 = vmatmul.mubr.bf16.gmra.mrb[20].mxu0 %v10107_v0  ;;  %v10140_v0 = vcombine.high %v6076_v59, %v6080_v30  ;;  %v6120_v59 = vld [vmem:[%s15767_s7 + $0x3a8] sm:$0xff]  ;;  %v10171_v30 = vcombine.low %v6108_v40, %v6112_v37  ;;  %v6071_v40 = vld [vmem:[%s15767_s7 + $0x220] sm:$0xff] }
 0x664   : > { %7972 = vmatprep.mubr.bf16.mxu0 %v10116_v25  ;;  %8202 = vmatpush1.bf16.msra.mxu0 %v5981_v34  ;;  %v5831_v25 = vld [vmem:[#allocation2 + $0xa0] sm:$0xff]  ;;  %v5832_v34 = vld [vmem:[#allocation2 + $0xa8] sm:$0xff] }
 0x665   : > { %8203 = vmatprep.subr.bf16.mxu0 %v11499_v23  ;;  %7622 = vmatpush1.bf16.msra.mxu1 %v5948_v50  ;;  %v5949_v57 = vpack.c.bf16 %v5832_v34, %v5831_v25  ;;  %v6128_v34 = vld [vmem:[%s15767_s7 + $0x3e8] sm:$0xff] }
 0x666   : > { %7623 = vmatprep.subr.bf16.mxu1 %v11499_v23 }
 0x668   : > { %8204 = vmatpush1.bf16.msra.mxu0 %v5982_v14  ;;  %v5950_v14 = vpack.c.bf16 %v5834_v54, %v5833_v2  ;;  %v6031_v54 = vld [vmem:[%s15767_s7 + $0xe0] sm:$0xff] }
 0x669   : > { %8205 = vmatprep.subr.bf16.mxu0 %v11499_v23  ;;  %7624 = vmatpush1.bf16.msra.mxu1 %v5949_v57 }
 0x66a   : > { %7625 = vmatprep.subr.bf16.mxu1 %v11499_v23 }
 0x66b   : > { %7973 = vmatmul.mubr.bf16.gmra.mrb[24].mxu0 %v10115_v18  ;;  %v6092_v18 = vld [vmem:[%s15767_s7 + $0x2c8] sm:$0xff] }
 0x66c   : > { %7980 = vmatprep.mubr.bf16.mxu0 %v10124_v15  ;;  %8206 = vmatpush1.bf16.msra.mxu0 %v5983_v11  ;;  %v6096_v15 = vld [vmem:[%s15767_s7 + $0x2e8] sm:$0xff]  ;;  %v5952_v11 = vpack.c.bf16 %v5838_v45, %v5837_v33 }
 0x66d   : > { %8207 = vmatprep.subr.bf16.mxu0 %v11499_v23  ;;  %7626 = vmatpush1.bf16.msra.mxu1 %v5950_v14  ;;  %v10156_v48 = vcombine.high %v6092_v18, %v6096_v15  ;;  %v10155_v41 = vcombine.low %v6092_v18, %v6096_v15  ;;  %v6136_v14 = vld [vmem:[%s15767_s7 + $0x428] sm:$0xff]  ;;  %v6047_v15 = vld [vmem:[%s15767_s7 + $0x160] sm:$0xff] }
 0x66e   : > { %7627 = vmatprep.subr.bf16.mxu1 %v11499_v23  ;;  %v6144_v33 = vld [vmem:[%s15767_s7 + $0x468] sm:$0xff] }
 0x670   : > { %8208 = vmatpush1.bf16.msra.mxu0 %v5984_v60  ;;  %v5841_v60 = vld [vmem:[#allocation2 + $0xf0] sm:$0xff] }
 0x671   : > { %8209 = vmatprep.subr.bf16.mxu0 %v11499_v23  ;;  %7628 = vmatpush1.bf16.msra.mxu1 %v5951_v21  ;;  %v5954_v3 = vpack.c.bf16 %v5842_v27, %v5841_v60 }
 0x672   : > { %7629 = vmatprep.subr.bf16.mxu1 %v11499_v23 }
 0x673   : > { %7981 = vmatmul.mubr.bf16.gmra.mrb[28].mxu0 %v10123_v36  ;;  %v6007_v36 = vld [vmem:[%s15767_s7 + $0x20] sm:$0xff] }
 0x674   : > { %7988 = vmatprep.mubr.bf16.mxu0 %v10132_v52  ;;  %8210 = vmatpush1.bf16.msra.mxu0 %v5985_v32  ;;  %v10065_v52 = vcombine.low %v6003_v19, %v6007_v36  ;;  %v10066_v32 = vcombine.high %v6003_v19, %v6007_v36  ;;  %v6009_v36 = vld [vmem:[%s15767_s7 + $0x30] sm:$0xff] }
 0x675   : > { %8211 = vmatprep.subr.bf16.mxu0 %v11499_v23  ;;  %7630 = vmatpush1.bf16.msra.mxu1 %v5952_v11 }
 0x676   : > { %7631 = vmatprep.subr.bf16.mxu1 %v11499_v23  ;;  %7635 = vmatprep.mubr.bf16.mxu1 %v10066_v32 }
 0x678   : > { %8212 = vmatpush1.bf16.msra.mxu0 %v5986_v62  ;;  %v6011_v62 = vld [vmem:[%s15767_s7 + $0x40] sm:$0xff] }
 0x679   : > { %8470 = vmatprep.subr.bf16.mxu0 %v11499_v23  ;;  %7632 = vmatpush1.bf16.msra.mxu1 %v5953_v13  ;;  %v10074_v26 = vcombine.high %v6011_v62, %v6015_v10  ;;  %v10073_v49 = vcombine.low %v6011_v62, %v6015_v10  ;;  %v6055_v13 = vld [vmem:[%s15767_s7 + $0x1a0] sm:$0xff]  ;;  %v5908_v10 = vld [vmem:[#allocation2 + $0x308] sm:$0xff] }
 0x67a   : > { %7633 = vmatprep.subr.bf16.mxu1 %v11499_v23  ;;  %v5907_v62 = vld [vmem:[#allocation2 + $0x300] sm:$0xff] }
 0x67b   : > { %7989 = vmatmul.mubr.bf16.gmra.mrb[32].mxu0 %v10131_v44  ;;  %v6023_v44 = vld [vmem:[%s15767_s7 + $0xa0] sm:$0xff] }
 0x67c   : > { %7996 = vmatprep.mubr.bf16.mxu0 %v10140_v0 }
 0x67d   : > { %7634 = vmatpush1.bf16.msra.mxu1 %v5954_v3 }
 0x67e   : > { %10692 = vmatprep.subr.bf16.mxu1 %v11499_v23 }
 0x680   : > { %7636 = vmatmul.mubr.bf16.vlgmr.msra.gmra.mrb[0].mxu1 %v10065_v52 }
 0x681   : > { %10708 = vmatpush1.bf16.msra.mxu1 %v14098_v5  ;;  %v6116_v5 = vld [vmem:[%s15767_s7 + $0x388] sm:$0xff]  ;;  %7643 = vmatprep.mubr.bf16.mxu1 %v10074_v26 }
 0x682   : > { %10693 = vmatprep.subr.bf16.mxu1 %v11499_v23  ;;  %v10180_v50 = vcombine.high %v6116_v5, %v6120_v59  ;;  %v10179_v57 = vcombine.low %v6116_v5, %v6120_v59  ;;  %v5987_v5 = vpack.c.bf16 %v5908_v10, %v5907_v62  ;;  %v5909_v59 = vld [vmem:[#allocation2 + $0x310] sm:$0xff]  ;;  %v6115_v62 = vld [vmem:[%s15767_s7 + $0x380] sm:$0xff] }
 0x683   : > { %7997 = vmatmul.mubr.bf16.gmra.mrb[36].mxu0 %v10139_v8  ;;  %v6119_v10 = vld [vmem:[%s15767_s7 + $0x3a0] sm:$0xff] }
 0x684   : > { %8004 = vmatprep.mubr.bf16.mxu0 %v10148_v51 }
 0x685   : > { %10709 = vmatpush1.bf16.msra.mxu1 %v14102_v31  ;;  %v6019_v31 = vld [vmem:[%s15767_s7 + $0x80] sm:$0xff] }
 0x686   : > { %10694 = vmatprep.subr.bf16.mxu1 %v11499_v23  ;;  %v10082_v0 = vcombine.high %v6019_v31, %v6023_v44  ;;  %v10081_v25 = vcombine.low %v6019_v31, %v6023_v44 }
 0x688   : > { %7644 = vmatmul.mubr.bf16.gmra.mrb[4].mxu1 %v10073_v49 }
 0x689   : > { %10710 = vmatpush1.bf16.msra.mxu1 %v14106_v6  ;;  %v6124_v6 = vld [vmem:[%s15767_s7 + $0x3c8] sm:$0xff]  ;;  %7651 = vmatprep.mubr.bf16.mxu1 %v10082_v0  ;;  %v6021_v0 = vld [vmem:[%s15767_s7 + $0x90] sm:$0xff] }
 0x68a   : > { %10695 = vmatprep.subr.bf16.mxu1 %v11499_v23  ;;  %v10188_v2 = vcombine.high %v6124_v6, %v6128_v34  ;;  %v10187_v8 = vcombine.low %v6124_v6, %v6128_v34  ;;  %v6025_v6 = vld [vmem:[%s15767_s7 + $0xb0] sm:$0xff]  ;;  %v5911_v34 = vld [vmem:[#allocation2 + $0x320] sm:$0xff] }
 0x68b   : > { %8005 = vmatmul.mubr.bf16.gmra.mrb[40].mxu0 %v10147_v38 }
 0x68c   : > { %8012 = vmatprep.mubr.bf16.mxu0 %v10156_v48  ;;  %v6152_v48 = vld [vmem:[%s15767_s7 + $0x4a8] sm:$0xff] }
 0x68d   : > { %10711 = vmatpush1.bf16.msra.mxu1 %v14115_v56  ;;  %v6027_v56 = vld [vmem:[%s15767_s7 + $0xc0] sm:$0xff] }
 0x68e   : > { %10696 = vmatprep.subr.bf16.mxu1 %v11499_v23  ;;  %v10090_v47 = vcombine.high %v6027_v56, %v6031_v54  ;;  %v10089_v29 = vcombine.low %v6027_v56, %v6031_v54  ;;  %v10086_v56 = vcombine.high %v6021_v0, %v6025_v6 }
 0x690   : > { %7652 = vmatmul.mubr.bf16.gmra.mrb[8].mxu1 %v10081_v25 }
 0x691   : > { %10712 = vmatpush1.bf16.msra.mxu1 %v14126_v24  ;;  %v6132_v24 = vld [vmem:[%s15767_s7 + $0x408] sm:$0xff]  ;;  %7659 = vmatprep.mubr.bf16.mxu1 %v10090_v47  ;;  %v5913_v47 = vld [vmem:[#allocation2 + $0x330] sm:$0xff] }
 0x692   : > { %10697 = vmatprep.subr.bf16.mxu1 %v11499_v23  ;;  %v10196_v51 = vcombine.high %v6132_v24, %v6136_v14  ;;  %v10195_v45 = vcombine.low %v6132_v24, %v6136_v14  ;;  %v6083_v24 = vld [vmem:[%s15767_s7 + $0x280] sm:$0xff] }
 0x693   : > { %8013 = vmatmul.mubr.bf16.gmra.mrb[44].mxu0 %v10155_v41  ;;  %v6063_v41 = vld [vmem:[%s15767_s7 + $0x1e0] sm:$0xff] }
 0x694   : > { %8020 = vmatprep.mubr.bf16.mxu0 %v10164_v53  ;;  %v6087_v14 = vld [vmem:[%s15767_s7 + $0x2a0] sm:$0xff] }
 0x695   : > { %10713 = vmatpush1.bf16.msra.mxu1 %v14130_v58  ;;  %v6035_v58 = vld [vmem:[%s15767_s7 + $0x100] sm:$0xff] }
 0x696   : > { %10698 = vmatprep.subr.bf16.mxu1 %v11499_v23  ;;  %v10098_v7 = vcombine.high %v6035_v58, %v6039_v20  ;;  %v10097_v21 = vcombine.low %v6035_v58, %v6039_v20  ;;  %v6029_v58 = vld [vmem:[%s15767_s7 + $0xd0] sm:$0xff] }
 0x698   : > { %7660 = vmatmul.mubr.bf16.gmra.mrb[12].mxu1 %v10089_v29  ;;  %v5914_v29 = vld [vmem:[#allocation2 + $0x338] sm:$0xff] }
 0x699   : > { %10714 = vmatpush1.bf16.msra.mxu1 %v14134_v35  ;;  %v6140_v35 = vld [vmem:[%s15767_s7 + $0x448] sm:$0xff]  ;;  %7667 = vmatprep.mubr.bf16.mxu1 %v10098_v7  ;;  %v5990_v20 = vpack.c.bf16 %v5914_v29, %v5913_v47  ;;  %v6033_v7 = vld [vmem:[%s15767_s7 + $0xf0] sm:$0xff]  ;;  %v6131_v47 = vld [vmem:[%s15767_s7 + $0x400] sm:$0xff] }
 0x69a   : > { %10699 = vmatprep.subr.bf16.mxu1 %v11499_v23  ;;  %v10204_v18 = vcombine.high %v6140_v35, %v6144_v33  ;;  %v10203_v17 = vcombine.low %v6140_v35, %v6144_v33  ;;  %v5916_v35 = vld [vmem:[#allocation2 + $0x348] sm:$0xff]  ;;  %v10085_v33 = vcombine.low %v6021_v0, %v6025_v6  ;;  %v5922_v6 = vld [vmem:[#allocation2 + $0x378] sm:$0xff]  ;;  %v6135_v29 = vld [vmem:[%s15767_s7 + $0x420] sm:$0xff] }
 0x69b   : > { %8021 = vmatmul.mubr.bf16.gmra.mrb[48].mxu0 %v10163_v16 }
 0x69c   : > { %8028 = vmatprep.mubr.bf16.mxu0 %v10172_v28  ;;  %v6017_v28 = vld [vmem:[%s15767_s7 + $0x70] sm:$0xff] }
 0x69d   : > { %10715 = vmatpush1.bf16.msra.mxu1 %v14138_v39  ;;  %v6043_v39 = vld [vmem:[%s15767_s7 + $0x140] sm:$0xff] }
 0x69e   : > { %10700 = vmatprep.subr.bf16.mxu1 %v11499_v23  ;;  %v10106_v11 = vcombine.high %v6043_v39, %v6047_v15  ;;  %v10105_v38 = vcombine.low %v6043_v39, %v6047_v15  ;;  %v6091_v39 = vld [vmem:[%s15767_s7 + $0x2c0] sm:$0xff] }
 0x69f   : > { %v6095_v15 = vld [vmem:[%s15767_s7 + $0x2e0] sm:$0xff] }
 0x6a0   : > { %7668 = vmatmul.mubr.bf16.gmra.mrb[16].mxu1 %v10097_v21  ;;  %v5915_v21 = vld [vmem:[#allocation2 + $0x340] sm:$0xff] }
 0x6a1   : > { %10716 = vmatpush1.bf16.msra.mxu1 %v14142_v22  ;;  %v6148_v22 = vld [vmem:[%s15767_s7 + $0x488] sm:$0xff]  ;;  %7675 = vmatprep.mubr.bf16.mxu1 %v10106_v11  ;;  %v10154_v11 = vcombine.high %v6091_v39, %v6095_v15 }
 0x6a2   : > { %10701 = vmatprep.subr.bf16.mxu1 %v11499_v23  ;;  %v10212_v1 = vcombine.high %v6148_v22, %v6152_v48  ;;  %v10211_v46 = vcombine.low %v6148_v22, %v6152_v48  ;;  %v5917_v22 = vld [vmem:[#allocation2 + $0x350] sm:$0xff]  ;;  %v5918_v48 = vld [vmem:[#allocation2 + $0x358] sm:$0xff] }
 0x6a3   : > { %8029 = vmatmul.mubr.bf16.gmra.mrb[52].mxu0 %v10171_v30  ;;  %v5910_v30 = vld [vmem:[#allocation2 + $0x318] sm:$0xff] }
 0x6a4   : > { %8036 = vmatprep.mubr.bf16.mxu0 %v10180_v50  ;;  %v6079_v50 = vld [vmem:[%s15767_s7 + $0x260] sm:$0xff]  ;;  %v5988_v25 = vpack.c.bf16 %v5910_v30, %v5909_v59  ;;  %v6065_v59 = vld [vmem:[%s15767_s7 + $0x1f0] sm:$0xff] }
 0x6a5   : > { %10717 = vmatpush1.bf16.msra.mxu1 %v14146_v9  ;;  %v6051_v9 = vld [vmem:[%s15767_s7 + $0x180] sm:$0xff] }
 0x6a6   : > { %10702 = vmatprep.subr.bf16.mxu1 %v11499_v23  ;;  %v10114_v60 = vcombine.high %v6051_v9, %v6055_v13  ;;  %v10113_v27 = vcombine.low %v6051_v9, %v6055_v13  ;;  %v6041_v9 = vld [vmem:[%s15767_s7 + $0x130] sm:$0xff]  ;;  %v10093_v13 = vcombine.low %v6029_v58, %v6033_v7 }
 0x6a8   : > { %7676 = vmatmul.mubr.bf16.gmra.mrb[20].mxu1 %v10105_v38  ;;  %v10153_v38 = vcombine.low %v6091_v39, %v6095_v15  ;;  %v6085_v15 = vld [vmem:[%s15767_s7 + $0x290] sm:$0xff] }
 0x6a9   : > { %10718 = vmatpush1.bf16.msra.mxu1 %v14150_v42  ;;  %v6156_v42 = vld [vmem:[%s15767_s7 + $0x4c8] sm:$0xff]  ;;  %7683 = vmatprep.mubr.bf16.mxu1 %v10114_v60 }
 0x6aa   : > { %10703 = vmatprep.subr.bf16.mxu1 %v11499_v23  ;;  %v10220_v3 = vcombine.high %v6156_v42, %v6160_v55  ;;  %v10219_v52 = vcombine.low %v6156_v42, %v6160_v55  ;;  %v6103_v42 = vld [vmem:[%s15767_s7 + $0x320] sm:$0xff] }
 0x6ab   : > { %8037 = vmatmul.mubr.bf16.gmra.mrb[56].mxu0 %v10179_v57  ;;  %v5912_v57 = vld [vmem:[#allocation2 + $0x328] sm:$0xff] }
 0x6ac   : > { %8044 = vmatprep.mubr.bf16.mxu0 %v10188_v2  ;;  %v5989_v54 = vpack.c.bf16 %v5912_v57, %v5911_v34  ;;  %v6069_v57 = vld [vmem:[%s15767_s7 + $0x210] sm:$0xff] }
 0x6ad   : > { %10719 = vmatpush1.bf16.msra.mxu1 %v14154_v43  ;;  %v6059_v43 = vld [vmem:[%s15767_s7 + $0x1c0] sm:$0xff] }
 0x6ae   : > { %10704 = vmatprep.subr.bf16.mxu1 %v11499_v23  ;;  %v10122_v53 = vcombine.high %v6059_v43, %v6063_v41  ;;  %v10121_v19 = vcombine.low %v6059_v43, %v6063_v41  ;;  %v6049_v43 = vld [vmem:[%s15767_s7 + $0x170] sm:$0xff] }
 0x6b0   : > { %7684 = vmatmul.mubr.bf16.gmra.mrb[24].mxu1 %v10113_v27  ;;  %v6099_v27 = vld [vmem:[%s15767_s7 + $0x300] sm:$0xff] }
 0x6b1   : > { %10720 = vmatpush1.bf16.msra.mxu1 %v14158_v63  ;;  %v6005_v63 = vld [vmem:[%s15767_s7 + $0x10] sm:$0xff]  ;;  %7691 = vmatprep.mubr.bf16.mxu1 %v10122_v53  ;;  %v10162_v55 = vcombine.high %v6099_v27, %v6103_v42 }
 0x6b2   : > { %10705 = vmatprep.subr.bf16.mxu1 %v11499_v23  ;;  %v10070_v32 = vcombine.high %v6005_v63, %v6009_v36  ;;  %v10069_v26 = vcombine.low %v6005_v63, %v6009_v36  ;;  %v6111_v63 = vld [vmem:[%s15767_s7 + $0x360] sm:$0xff] }
 0x6b3   : > { %8045 = vmatmul.mubr.bf16.gmra.mrb[60].mxu0 %v10187_v8  ;;  %v10146_v8 = vcombine.high %v6083_v24, %v6087_v14 }
 0x6b4   : > { %8052 = vmatprep.mubr.bf16.mxu0 %v10196_v51  ;;  %v10145_v51 = vcombine.low %v6083_v24, %v6087_v14  ;;  %v10194_v24 = vcombine.high %v6131_v47, %v6135_v29  ;;  %v10193_v14 = vcombine.low %v6131_v47, %v6135_v29  ;;  %v6125_v29 = vld [vmem:[%s15767_s7 + $0x3d0] sm:$0xff] }
 0x6b5   : > { %10721 = vmatpush1.bf16.msra.mxu1 %v14162_v61  ;;  %v6067_v61 = vld [vmem:[%s15767_s7 + $0x200] sm:$0xff] }
 0x6b6   : > { %10706 = vmatprep.subr.bf16.mxu1 %v11499_v23  ;;  %v10130_v37 = vcombine.high %v6067_v61, %v6071_v40  ;;  %v10129_v16 = vcombine.low %v6067_v61, %v6071_v40  ;;  %v5920_v61 = vld [vmem:[#allocation2 + $0x368] sm:$0xff] }
 0x6b8   : > { %7692 = vmatmul.mubr.bf16.gmra.mrb[28].mxu1 %v10121_v19  ;;  %v6107_v19 = vld [vmem:[%s15767_s7 + $0x340] sm:$0xff] }
 0x6b9   : > { %10722 = vmatpush1.bf16.msra.mxu1 %v14166_v12  ;;  %v6013_v12 = vld [vmem:[%s15767_s7 + $0x50] sm:$0xff]  ;;  %7699 = vmatprep.mubr.bf16.mxu1 %v10130_v37  ;;  %v10170_v36 = vcombine.high %v6107_v19, %v6111_v63 }
 0x6ba   : > { %10707 = vmatprep.subr.bf16.mxu1 %v11499_v23  ;;  %v10078_v49 = vcombine.high %v6013_v12, %v6017_v28  ;;  %v10077_v2 = vcombine.low %v6013_v12, %v6017_v28  ;;  %v6053_v37 = vld [vmem:[%s15767_s7 + $0x190] sm:$0xff] }
 0x6bb   : > { %8053 = vmatmul.mubr.bf16.gmra.mrb[64].mxu0 %v10195_v45  ;;  %v10094_v45 = vcombine.high %v6029_v58, %v6033_v7  ;;  %v6139_v7 = vld [vmem:[%s15767_s7 + $0x440] sm:$0xff] }
 0x6bc   : > { %8060 = vmatprep.mubr.bf16.mxu0 %v10204_v18  ;;  %v5991_v18 = vpack.c.bf16 %v5916_v35, %v5915_v21  ;;  %v6143_v21 = vld [vmem:[%s15767_s7 + $0x460] sm:$0xff] }
 0x6bd   : > { %10723 = vmatpush1.bf16.msra.mxu1 %v14170_v4  ;;  %v6075_v4 = vld [vmem:[%s15767_s7 + $0x240] sm:$0xff]  ;;  %v10202_v35 = vcombine.high %v6139_v7, %v6143_v21 }
 0x6be   : > { %v10138_v31 = vcombine.high %v6075_v4, %v6079_v50  ;;  %v10137_v44 = vcombine.low %v6075_v4, %v6079_v50  ;;  %v6123_v50 = vld [vmem:[%s15767_s7 + $0x3c0] sm:$0xff] }
 0x6c0   : > { %7700 = vmatmul.mubr.bf16.gmra.mrb[32].mxu1 %v10129_v16  ;;  %v6057_v16 = vld [vmem:[%s15767_s7 + $0x1b0] sm:$0xff] }
 0x6c1   : > { %7707 = vmatprep.mubr.bf16.mxu1 %v10138_v31  ;;  %v10118_v28 = vcombine.high %v6053_v37, %v6057_v16  ;;  %v10117_v30 = vcombine.low %v6053_v37, %v6057_v16  ;;  %v6127_v31 = vld [vmem:[%s15767_s7 + $0x3e0] sm:$0xff] }
 0x6c2   : > { %v10185_v0 = vcombine.low %v6123_v50, %v6127_v31 }
 0x6c3   : > { %8061 = vmatmul.mubr.bf16.gmra.mrb[68].mxu0 %v10203_v17  ;;  %v5992_v17 = vpack.c.bf16 %v5918_v48, %v5917_v22  ;;  %v6147_v48 = vld [vmem:[%s15767_s7 + $0x480] sm:$0xff] }
 0x6c4   : > { %8068 = vmatprep.mubr.bf16.mxu0 %v10212_v1  ;;  %v6037_v1 = vld [vmem:[%s15767_s7 + $0x110] sm:$0xff] }
 0x6c5   : > { %v10102_v60 = vcombine.high %v6037_v1, %v6041_v9  ;;  %v10101_v41 = vcombine.low %v6037_v1, %v6041_v9 }
 0x6c8   : > { %7708 = vmatmul.mubr.bf16.gmra.mrb[36].mxu1 %v10137_v44  ;;  %v10186_v44 = vcombine.high %v6123_v50, %v6127_v31  ;;  %v6117_v31 = vld [vmem:[%s15767_s7 + $0x390] sm:$0xff] }
 0x6c9   : > { %7715 = vmatprep.mubr.bf16.mxu1 %v10146_v8  ;;  %v6077_v8 = vld [vmem:[%s15767_s7 + $0x250] sm:$0xff] }
 0x6cb   : > { %8069 = vmatmul.mubr.bf16.gmra.mrb[72].mxu0 %v10211_v46  ;;  %v10161_v46 = vcombine.low %v6099_v27, %v6103_v42 }
 0x6cc   : > { %8076 = vmatprep.mubr.bf16.mxu0 %v10220_v3  ;;  %v6045_v3 = vld [vmem:[%s15767_s7 + $0x150] sm:$0xff] }
 0x6cd   : > { %v10110_v53 = vcombine.high %v6045_v3, %v6049_v43  ;;  %v10109_v12 = vcombine.low %v6045_v3, %v6049_v43 }
 0x6d0   : > { %7716 = vmatmul.mubr.bf16.gmra.mrb[40].mxu1 %v10145_v51  ;;  %v6081_v51 = vld [vmem:[%s15767_s7 + $0x270] sm:$0xff] }
 0x6d1   : > { %7723 = vmatprep.mubr.bf16.mxu1 %v10154_v11  ;;  %v6089_v11 = vld [vmem:[%s15767_s7 + $0x2b0] sm:$0xff] }
 0x6d2   : > { %v10150_v22 = vcombine.high %v6085_v15, %v6089_v11  ;;  %v10149_v27 = vcombine.low %v6085_v15, %v6089_v11  ;;  %v6133_v15 = vld [vmem:[%s15767_s7 + $0x410] sm:$0xff] }
 0x6d3   : > { %8077 = vmatmul.mubr.bf16.gmra.mrb[76].mxu0 %v10219_v52  ;;  %v10169_v52 = vcombine.low %v6107_v19, %v6111_v63  ;;  %v6101_v63 = vld [vmem:[%s15767_s7 + $0x310] sm:$0xff] }
 0x6d4   : > { %8213 = vmatprep.mubr.bf16.mxu0 %v10070_v32  ;;  %v5919_v32 = vld [vmem:[#allocation2 + $0x360] sm:$0xff]  ;;  %v6137_v11 = vld [vmem:[%s15767_s7 + $0x430] sm:$0xff] }
 0x6d5   : > { %v5993_v40 = vpack.c.bf16 %v5920_v61, %v5919_v32  ;;  %v6163_v61 = vld [vmem:[%s15767_s7 + $0x500] sm:$0xff] }
 0x6d8   : > { %7724 = vmatmul.mubr.bf16.gmra.mrb[44].mxu1 %v10153_v38  ;;  %v10141_v38 = vcombine.low %v6077_v8, %v6081_v51 }
 0x6d9   : > { %7731 = vmatprep.mubr.bf16.mxu1 %v10162_v55  ;;  %v6155_v55 = vld [vmem:[%s15767_s7 + $0x4c0] sm:$0xff] }
 0x6db   : > { %8214 = vmatmul.mubr.bf16.vlgmr.msra.gmra.mrb[0].mxu0 %v10069_v26  ;;  %v10178_v26 = vcombine.high %v6115_v62, %v6119_v10 }
 0x6dc   : > { %8221 = vmatprep.mubr.bf16.mxu0 %v10078_v49  ;;  %8471 = vmatpush1.bf16.msra.mxu0 %v5987_v5  ;;  %v10177_v49 = vcombine.low %v6115_v62, %v6119_v10  ;;  %v6061_v5 = vld [vmem:[%s15767_s7 + $0x1d0] sm:$0xff] }
 0x6dd   : > { %8472 = vmatprep.subr.bf16.mxu0 %v11499_v23  ;;  %v10126_v4 = vcombine.high %v6061_v5, %v6065_v59 }
 0x6e0   : > { %8473 = vmatpush1.bf16.msra.mxu0 %v5988_v25  ;;  %7732 = vmatmul.mubr.bf16.gmra.mrb[48].mxu1 %v10161_v46  ;;  %v5921_v25 = vld [vmem:[#allocation2 + $0x370] sm:$0xff]  ;;  %v6159_v46 = vld [vmem:[%s15767_s7 + $0x4e0] sm:$0xff] }
 0x6e1   : > { %8474 = vmatprep.subr.bf16.mxu0 %v11499_v23  ;;  %7739 = vmatprep.mubr.bf16.mxu1 %v10170_v36  ;;  %v5994_v34 = vpack.c.bf16 %v5922_v6, %v5921_v25  ;;  %v10218_v3 = vcombine.high %v6155_v55, %v6159_v46  ;;  %v10217_v43 = vcombine.low %v6155_v55, %v6159_v46  ;;  %v6105_v36 = vld [vmem:[%s15767_s7 + $0x330] sm:$0xff]  ;;  %v6179_v6 = vld [vmem:[%s15767_s7 + $0x580] sm:$0xff]  ;;  %v5938_v55 = vld [vmem:[#allocation2 + $0x3f8] sm:$0xff] }
 0x6e2   : > { %v10166_v32 = vcombine.high %v6101_v63, %v6105_v36  ;;  %v10165_v62 = vcombine.low %v6101_v63, %v6105_v36  ;;  %v6207_v63 = vld [vmem:[%s15767_s7 + $0x660] sm:$0xff] }
 0x6e3   : > { %8222 = vmatmul.mubr.bf16.gmra.mrb[4].mxu0 %v10077_v2  ;;  %v6073_v2 = vld [vmem:[%s15767_s7 + $0x230] sm:$0xff] }
 0x6e4   : > { %8229 = vmatprep.mubr.bf16.mxu0 %v10086_v56  ;;  %8475 = vmatpush1.bf16.msra.mxu0 %v5989_v54  ;;  %v10125_v56 = vcombine.low %v6061_v5, %v6065_v59  ;;  %v10134_v54 = vcombine.high %v6069_v57, %v6073_v2  ;;  %v10133_v58 = vcombine.low %v6069_v57, %v6073_v2 }
 0x6e5   : > { %8476 = vmatprep.subr.bf16.mxu0 %v11499_v23 }
 0x6e8   : > { %8477 = vmatpush1.bf16.msra.mxu0 %v5990_v20  ;;  %7740 = vmatmul.mubr.bf16.gmra.mrb[52].mxu1 %v10169_v52  ;;  %v10142_v20 = vcombine.high %v6077_v8, %v6081_v51  ;;  %v5931_v51 = vld [vmem:[#allocation2 + $0x3c0] sm:$0xff] }
 0x6e9   : > { %8478 = vmatprep.subr.bf16.mxu0 %v11499_v23  ;;  %7747 = vmatprep.mubr.bf16.mxu1 %v10178_v26  ;;  %v6171_v26 = vld [vmem:[%s15767_s7 + $0x540] sm:$0xff] }
 0x6eb   : > { %8230 = vmatmul.mubr.bf16.gmra.mrb[8].mxu0 %v10085_v33  ;;  %v10201_v33 = vcombine.low %v6139_v7, %v6143_v21  ;;  %v6187_v7 = vld [vmem:[%s15767_s7 + $0x5c0] sm:$0xff] }
 0x6ec   : > { %8237 = vmatprep.mubr.bf16.mxu0 %v10094_v45  ;;  %8479 = vmatpush1.bf16.msra.mxu0 %v5991_v18  ;;  %v5923_v45 = vld [vmem:[#allocation2 + $0x380] sm:$0xff]  ;;  %v5924_v18 = vld [vmem:[#allocation2 + $0x388] sm:$0xff] }
 0x6ed   : > { %8480 = vmatprep.subr.bf16.mxu0 %v11499_v23  ;;  %v5995_v39 = vpack.c.bf16 %v5924_v18, %v5923_v45  ;;  %v6191_v21 = vld [vmem:[%s15767_s7 + $0x5e0] sm:$0xff]  ;;  %v5933_v45 = vld [vmem:[#allocation2 + $0x3d0] sm:$0xff]  ;;  %v5934_v18 = vld [vmem:[#allocation2 + $0x3d8] sm:$0xff] }
 0x6f0   : > { %8481 = vmatpush1.bf16.msra.mxu0 %v5992_v17  ;;  %7748 = vmatmul.mubr.bf16.gmra.mrb[56].mxu1 %v10177_v49  ;;  %v6151_v17 = vld [vmem:[%s15767_s7 + $0x4a0] sm:$0xff] }
 0x6f1   : > { %8482 = vmatprep.subr.bf16.mxu0 %v11499_v23  ;;  %7755 = vmatprep.mubr.bf16.mxu1 %v10186_v44  ;;  %v10210_v1 = vcombine.high %v6147_v48, %v6151_v17  ;;  %v10209_v9 = vcombine.low %v6147_v48, %v6151_v17  ;;  %v6175_v49 = vld [vmem:[%s15767_s7 + $0x560] sm:$0xff]  ;;  %v6121_v44 = vld [vmem:[%s15767_s7 + $0x3b0] sm:$0xff]  ;;  %v5936_v17 = vld [vmem:[#allocation2 + $0x3e8] sm:$0xff] }
 0x6f2   : > { %v10234_v5 = vcombine.high %v6171_v26, %v6175_v49  ;;  %v10233_v59 = vcombine.low %v6171_v26, %v6175_v49  ;;  %v10182_v25 = vcombine.high %v6117_v31, %v6121_v44  ;;  %v5935_v48 = vld [vmem:[#allocation2 + $0x3e0] sm:$0xff] }
 0x6f3   : > { %8238 = vmatmul.mubr.bf16.gmra.mrb[12].mxu0 %v10093_v13  ;;  %v6093_v13 = vld [vmem:[%s15767_s7 + $0x2d0] sm:$0xff] }
 0x6f4   : > { %8245 = vmatprep.mubr.bf16.mxu0 %v10102_v60  ;;  %8483 = vmatpush1.bf16.msra.mxu0 %v5993_v40  ;;  %v6097_v60 = vld [vmem:[%s15767_s7 + $0x2f0] sm:$0xff]  ;;  %v6167_v40 = vld [vmem:[%s15767_s7 + $0x520] sm:$0xff] }
 0x6f5   : > { %8484 = vmatprep.subr.bf16.mxu0 %v11499_v23  ;;  %v10158_v42 = vcombine.high %v6093_v13, %v6097_v60  ;;  %v10157_v52 = vcombine.low %v6093_v13, %v6097_v60  ;;  %v10226_v37 = vcombine.high %v6163_v61, %v6167_v40  ;;  %v10225_v16 = vcombine.low %v6163_v61, %v6167_v40  ;;  %v6199_v13 = vld [vmem:[%s15767_s7 + $0x620] sm:$0xff] }
 0x6f8   : > { %7756 = vmatmul.mubr.bf16.gmra.mrb[60].mxu1 %v10185_v0  ;;  %8485 = vmatpush1.bf16.msra.mxu0 %v5994_v34  ;;  %v6183_v34 = vld [vmem:[%s15767_s7 + $0x5a0] sm:$0xff] }
 0x6f9   : > { %8486 = vmatprep.subr.bf16.mxu0 %v11499_v23  ;;  %7763 = vmatprep.mubr.bf16.mxu1 %v10194_v24  ;;  %v10242_v57 = vcombine.high %v6179_v6, %v6183_v34  ;;  %v10241_v2 = vcombine.low %v6179_v6, %v6183_v34  ;;  %v6129_v24 = vld [vmem:[%s15767_s7 + $0x3f0] sm:$0xff]  ;;  %v6231_v6 = vld [vmem:[%s15767_s7 + $0x720] sm:$0xff] }
 0x6fa   : > { %v10190_v8 = vcombine.high %v6125_v29, %v6129_v24 }
 0x6fb   : > { %8246 = vmatmul.mubr.bf16.gmra.mrb[16].mxu0 %v10101_v41  ;;  %v5925_v41 = vld [vmem:[#allocation2 + $0x390] sm:$0xff] }
 0x6fc   : > { %8253 = vmatprep.mubr.bf16.mxu0 %v10110_v53  ;;  %8487 = vmatpush1.bf16.msra.mxu0 %v5995_v39  ;;  %v5926_v53 = vld [vmem:[#allocation2 + $0x398] sm:$0xff]  ;;  %v6000_v39 = vpack.c.bf16 %v5934_v18, %v5933_v45  ;;  %v6189_v18 = vld [vmem:[%s15767_s7 + $0x5d0] sm:$0xff] }
 0x6fd   : > { %8488 = vmatprep.subr.bf16.mxu0 %v11499_v23  ;;  %v5996_v19 = vpack.c.bf16 %v5926_v53, %v5925_v41  ;;  %v10197_v41 = vcombine.low %v6133_v15, %v6137_v11 }
 0x700   : > { %7764 = vmatmul.mubr.bf16.gmra.mrb[64].mxu1 %v10193_v14  ;;  %8489 = vmatpush1.bf16.msra.mxu0 %v5996_v19  ;;  %v10181_v14 = vcombine.low %v6117_v31, %v6121_v44  ;;  %v6203_v19 = vld [vmem:[%s15767_s7 + $0x640] sm:$0xff]  ;;  %v6169_v31 = vld [vmem:[%s15767_s7 + $0x530] sm:$0xff] }
 0x701   : > { %7771 = vmatprep.mubr.bf16.mxu1 %v10202_v35  ;;  %8490 = vmatprep.subr.bf16.mxu0 %v11499_v23  ;;  %v10250_v35 = vcombine.high %v6187_v7, %v6191_v21  ;;  %v10266_v36 = vcombine.high %v6203_v19, %v6207_v63 }
 0x703   : > { %8254 = vmatmul.mubr.bf16.gmra.mrb[20].mxu0 %v10109_v12  ;;  %v6109_v12 = vld [vmem:[%s15767_s7 + $0x350] sm:$0xff] }
 0x704   : > { %8261 = vmatprep.mubr.bf16.mxu0 %v10118_v28  ;;  %v6113_v28 = vld [vmem:[%s15767_s7 + $0x370] sm:$0xff] }
 0x705   : > { %v10174_v10 = vcombine.high %v6109_v12, %v6113_v28  ;;  %v10173_v0 = vcombine.low %v6109_v12, %v6113_v28 }
 0x708   : > { %7772 = vmatmul.mubr.bf16.gmra.mrb[68].mxu1 %v10201_v33  ;;  %v10249_v33 = vcombine.low %v6187_v7, %v6191_v21  ;;  %v6243_v21 = vld [vmem:[%s15767_s7 + $0x780] sm:$0xff] }
 0x709   : > { %7779 = vmatprep.mubr.bf16.mxu1 %v10210_v1  ;;  %v6001_v1 = vpack.c.bf16 %v5936_v17, %v5935_v48 }
 0x70b   : > { %8262 = vmatmul.mubr.bf16.gmra.mrb[24].mxu0 %v10117_v30  ;;  %v5927_v30 = vld [vmem:[#allocation2 + $0x3a0] sm:$0xff] }
 0x70c   : > { %8269 = vmatprep.mubr.bf16.mxu0 %v10126_v4  ;;  %v5928_v4 = vld [vmem:[#allocation2 + $0x3a8] sm:$0xff] }
 0x70d   : > { %v5997_v50 = vpack.c.bf16 %v5928_v4, %v5927_v30 }
 0x70f   : > { %8491 = vmatpush1.bf16.msra.mxu0 %v5997_v50  ;;  %v6165_v50 = vld [vmem:[%s15767_s7 + $0x510] sm:$0xff] }
 0x710   : > { %7780 = vmatmul.mubr.bf16.gmra.mrb[72].mxu1 %v10209_v9  ;;  %8492 = vmatprep.subr.bf16.mxu0 %v11499_v23  ;;  %v6195_v9 = vld [vmem:[%s15767_s7 + $0x600] sm:$0xff] }
 0x711   : > { %7787 = vmatprep.mubr.bf16.mxu1 %v10218_v3  ;;  %v10258_v60 = vcombine.high %v6195_v9, %v6199_v13  ;;  %v6141_v3 = vld [vmem:[%s15767_s7 + $0x450] sm:$0xff] }
 0x713   : > { %8270 = vmatmul.mubr.bf16.gmra.mrb[28].mxu0 %v10125_v56  ;;  %v5929_v56 = vld [vmem:[#allocation2 + $0x3b0] sm:$0xff] }
 0x714   : > { %8277 = vmatprep.mubr.bf16.mxu0 %v10134_v54  ;;  %v5930_v54 = vld [vmem:[#allocation2 + $0x3b8] sm:$0xff] }
 0x715   : > { %v5998_v47 = vpack.c.bf16 %v5930_v54, %v5929_v56  ;;  %v6177_v56 = vld [vmem:[%s15767_s7 + $0x570] sm:$0xff]  ;;  %v10229_v54 = vcombine.low %v6165_v50, %v6169_v31 }
 0x717   : > { %8493 = vmatpush1.bf16.msra.mxu0 %v5998_v47 }
 0x718   : > { %7788 = vmatmul.mubr.bf16.gmra.mrb[76].mxu1 %v10217_v43  ;;  %8494 = vmatprep.subr.bf16.mxu0 %v11499_v23  ;;  %v6145_v43 = vld [vmem:[%s15767_s7 + $0x470] sm:$0xff] }
 0x719   : > { %7795 = vmatprep.mubr.bf16.mxu1 %v10226_v37  ;;  %v10206_v53 = vcombine.high %v6141_v3, %v6145_v43  ;;  %v10205_v61 = vcombine.low %v6141_v3, %v6145_v43  ;;  %v6211_v37 = vld [vmem:[%s15767_s7 + $0x680] sm:$0xff]  ;;  %v6205_v3 = vld [vmem:[%s15767_s7 + $0x650] sm:$0xff] }
 0x71a   : > { %v6209_v43 = vld [vmem:[%s15767_s7 + $0x670] sm:$0xff] }
 0x71b   : > { %8278 = vmatmul.mubr.bf16.gmra.mrb[32].mxu0 %v10133_v58  ;;  %v5932_v58 = vld [vmem:[#allocation2 + $0x3c8] sm:$0xff] }
 0x71c   : > { %8285 = vmatprep.mubr.bf16.mxu0 %v10142_v20  ;;  %v5999_v20 = vpack.c.bf16 %v5932_v58, %v5931_v51  ;;  %v6181_v51 = vld [vmem:[%s15767_s7 + $0x590] sm:$0xff] }
 0x71d   : > { %v6185_v58 = vld [vmem:[%s15767_s7 + $0x5b0] sm:$0xff] }
 0x71e   : > { %8495 = vmatpush1.bf16.msra.mxu0 %v5999_v20  ;;  %v10246_v7 = vcombine.high %v6181_v51, %v6185_v58 }
 0x71f   : > { %8496 = vmatprep.subr.bf16.mxu0 %v11499_v23 }
 0x720   : > { %7796 = vmatmul.mubr.bf16.gmra.mrb[80].mxu1 %v10225_v16  ;;  %v6215_v16 = vld [vmem:[%s15767_s7 + $0x6a0] sm:$0xff] }
 0x721   : > { %7803 = vmatprep.mubr.bf16.mxu1 %v10234_v5  ;;  %v10274_v12 = vcombine.high %v6211_v37, %v6215_v16  ;;  %v10273_v28 = vcombine.low %v6211_v37, %v6215_v16  ;;  %v6219_v5 = vld [vmem:[%s15767_s7 + $0x6c0] sm:$0xff]  ;;  %v6180_v37 = vld [vmem:[%s15767_s7 + $0x588] sm:$0xff] }
 0x722   : > { %8497 = vmatpush1.bf16.msra.mxu0 %v6000_v39  ;;  %v6193_v39 = vld [vmem:[%s15767_s7 + $0x5f0] sm:$0xff]  ;;  %v6184_v16 = vld [vmem:[%s15767_s7 + $0x5a8] sm:$0xff] }
 0x723   : > { %8286 = vmatmul.mubr.bf16.gmra.mrb[36].mxu0 %v10141_v38  ;;  %v10189_v38 = vcombine.low %v6125_v29, %v6129_v24  ;;  %8498 = vmatprep.subr.bf16.mxu0 %v11499_v23  ;;  %v6235_v29 = vld [vmem:[%s15767_s7 + $0x740] sm:$0xff] }
 0x724   : > { %8293 = vmatprep.mubr.bf16.mxu0 %v10150_v22  ;;  %v10198_v22 = vcombine.high %v6133_v15, %v6137_v11  ;;  %v6239_v24 = vld [vmem:[%s15767_s7 + $0x760] sm:$0xff]  ;;  %v10245_v15 = vcombine.low %v6181_v51, %v6185_v58  ;;  %v10254_v11 = vcombine.high %v6189_v18, %v6193_v39  ;;  %v6245_v51 = vld [vmem:[%s15767_s7 + $0x790] sm:$0xff] }
 0x725   : > { %v6249_v58 = vld [vmem:[%s15767_s7 + $0x7b0] sm:$0xff] }
 0x726   : > { %8499 = vmatpush1.bf16.msra.mxu0 %v6001_v1  ;;  %v6197_v1 = vld [vmem:[%s15767_s7 + $0x610] sm:$0xff] }
 0x727   : > { %8500 = vmatprep.subr.bf16.mxu0 %v11499_v23  ;;  %v6149_v23 = vld [vmem:[%s15767_s7 + $0x490] sm:$0xff] }
 0x728   : > { %7804 = vmatmul.mubr.bf16.gmra.mrb[84].mxu1 %v10233_v59  ;;  %v6223_v59 = vld [vmem:[%s15767_s7 + $0x6e0] sm:$0xff] }
 0x729   : > { %7811 = vmatprep.mubr.bf16.mxu1 %v10242_v57  ;;  %v10282_v30 = vcombine.high %v6219_v5, %v6223_v59  ;;  %v10281_v4 = vcombine.low %v6219_v5, %v6223_v59  ;;  %v6188_v5 = vld [vmem:[%s15767_s7 + $0x5c8] sm:$0xff] }
 0x72a   : > { %v6192_v59 = vld [vmem:[%s15767_s7 + $0x5e8] sm:$0xff] }
 0x72b   : > { %8294 = vmatmul.mubr.bf16.gmra.mrb[40].mxu0 %v10149_v27  ;;  %v10257_v27 = vcombine.low %v6195_v9, %v6199_v13  ;;  %v6201_v9 = vld [vmem:[%s15767_s7 + $0x630] sm:$0xff]  ;;  %v10253_v13 = vcombine.low %v6189_v18, %v6193_v39 }
 0x72c   : > { %8301 = vmatprep.mubr.bf16.mxu0 %v10158_v42  ;;  %v5937_v42 = vld [vmem:[#allocation2 + $0x3f0] sm:$0xff] }
 0x72d   : > { %v6002_v46 = vpack.c.bf16 %v5938_v55, %v5937_v42  ;;  %v6168_v42 = vld [vmem:[%s15767_s7 + $0x528] sm:$0xff] }
 0x72f   : > { %8501 = vmatpush1.bf16.msra.mxu0 %v6002_v46 }
 0x730   : > { %7812 = vmatmul.mubr.bf16.gmra.mrb[88].mxu1 %v10241_v2  ;;  %v6173_v2 = vld [vmem:[%s15767_s7 + $0x550] sm:$0xff] }
 0x731   : > { %7819 = vmatprep.mubr.bf16.mxu1 %v10250_v35  ;;  %v10238_v47 = vcombine.high %v6173_v2, %v6177_v56  ;;  %v10237_v20 = vcombine.low %v6173_v2, %v6177_v56  ;;  %v6247_v35 = vld [vmem:[%s15767_s7 + $0x7a0] sm:$0xff]  ;;  %v6237_v2 = vld [vmem:[%s15767_s7 + $0x750] sm:$0xff] }
 0x732   : > { %v10305_v45 = vcombine.low %v6243_v21, %v6247_v35  ;;  %v6241_v56 = vld [vmem:[%s15767_s7 + $0x770] sm:$0xff] }
 0x733   : > { %8302 = vmatmul.mubr.bf16.gmra.mrb[44].mxu0 %v10157_v52  ;;  %v10265_v52 = vcombine.low %v6203_v19, %v6207_v63  ;;  %v6172_v19 = vld [vmem:[%s15767_s7 + $0x548] sm:$0xff] }
 0x734   : > { %8309 = vmatprep.mubr.bf16.mxu0 %v10166_v32  ;;  %v6153_v32 = vld [vmem:[%s15767_s7 + $0x4b0] sm:$0xff]  ;;  %v6176_v63 = vld [vmem:[%s15767_s7 + $0x568] sm:$0xff] }
 0x735   : > { %v10214_v40 = vcombine.high %v6149_v23, %v6153_v32  ;;  %v10213_v26 = vcombine.low %v6149_v23, %v6153_v32  ;;  %v6213_v23 = vld [vmem:[%s15767_s7 + $0x690] sm:$0xff] }
 0x736   : > { %v6217_v32 = vld [vmem:[%s15767_s7 + $0x6b0] sm:$0xff] }
 0x738   : > { %7820 = vmatmul.mubr.bf16.gmra.mrb[92].mxu1 %v10249_v33  ;;  %v10306_v33 = vcombine.high %v6243_v21, %v6247_v35  ;;  %v6212_v21 = vld [vmem:[%s15767_s7 + $0x688] sm:$0xff] }
 0x739   : > { %7827 = vmatprep.mubr.bf16.mxu1 %v10258_v60  ;;  %v10262_v60 = vcombine.high %v6197_v1, %v6201_v9  ;;  %v6216_v35 = vld [vmem:[%s15767_s7 + $0x6a8] sm:$0xff] }
 0x73b   : > { %8310 = vmatmul.mubr.bf16.gmra.mrb[48].mxu0 %v10165_v62  ;;  %v6157_v62 = vld [vmem:[%s15767_s7 + $0x4d0] sm:$0xff] }
 0x73c   : > { %8317 = vmatprep.mubr.bf16.mxu0 %v10174_v10  ;;  %v6161_v10 = vld [vmem:[%s15767_s7 + $0x4f0] sm:$0xff] }
 0x73d   : > { %v10222_v49 = vcombine.high %v6157_v62, %v6161_v10  ;;  %v10221_v44 = vcombine.low %v6157_v62, %v6161_v10  ;;  %v6221_v62 = vld [vmem:[%s15767_s7 + $0x6d0] sm:$0xff] }
 0x73e   : > { %v6225_v10 = vld [vmem:[%s15767_s7 + $0x6f0] sm:$0xff] }
 0x740   : > { %7828 = vmatmul.mubr.bf16.gmra.mrb[96].mxu1 %v10257_v27  ;;  %v6164_v27 = vld [vmem:[%s15767_s7 + $0x508] sm:$0xff] }
 0x741   : > { %7835 = vmatprep.mubr.bf16.mxu1 %v10266_v36  ;;  %v10227_v55 = vcombine.low %v6164_v27, %v6168_v42  ;;  %v10228_v46 = vcombine.high %v6164_v27, %v6168_v42  ;;  %v10236_v36 = vcombine.high %v6172_v19, %v6176_v63 }
 0x743   : > { %8318 = vmatmul.mubr.bf16.gmra.mrb[52].mxu0 %v10173_v0  ;;  %v10230_v0 = vcombine.high %v6165_v50, %v6169_v31  ;;  %v6229_v50 = vld [vmem:[%s15767_s7 + $0x710] sm:$0xff] }
 0x744   : > { %8325 = vmatprep.mubr.bf16.mxu0 %v10182_v25  ;;  %v6227_v25 = vld [vmem:[%s15767_s7 + $0x700] sm:$0xff]  ;;  %v6233_v31 = vld [vmem:[%s15767_s7 + $0x730] sm:$0xff] }
 0x745   : > { %v10290_v34 = vcombine.high %v6227_v25, %v6231_v6  ;;  %v10289_v57 = vcombine.low %v6227_v25, %v6231_v6  ;;  %v6196_v25 = vld [vmem:[%s15767_s7 + $0x608] sm:$0xff] }
 0x746   : > { %v6200_v6 = vld [vmem:[%s15767_s7 + $0x628] sm:$0xff] }
 0x748   : > { %7836 = vmatmul.mubr.bf16.gmra.mrb[100].mxu1 %v10265_v52  ;;  %v10235_v52 = vcombine.low %v6172_v19, %v6176_v63  ;;  %v6228_v19 = vld [vmem:[%s15767_s7 + $0x708] sm:$0xff] }
 0x749   : > { %7843 = vmatprep.mubr.bf16.mxu1 %v10274_v12  ;;  %v10244_v12 = vcombine.high %v6180_v37, %v6184_v16  ;;  %v6232_v63 = vld [vmem:[%s15767_s7 + $0x728] sm:$0xff] }
 0x74b   : > { %8326 = vmatmul.mubr.bf16.gmra.mrb[56].mxu0 %v10181_v14  ;;  %v10298_v14 = vcombine.high %v6235_v29, %v6239_v24 }
 0x74c   : > { %8333 = vmatprep.mubr.bf16.mxu0 %v10190_v8  ;;  %v10297_v8 = vcombine.low %v6235_v29, %v6239_v24  ;;  %v6204_v29 = vld [vmem:[%s15767_s7 + $0x648] sm:$0xff] }
 0x74d   : > { %v6208_v24 = vld [vmem:[%s15767_s7 + $0x668] sm:$0xff] }
 0x750   : > { %7844 = vmatmul.mubr.bf16.gmra.mrb[104].mxu1 %v10273_v28  ;;  %v10243_v28 = vcombine.low %v6180_v37, %v6184_v16 }
 0x751   : > { %7851 = vmatprep.mubr.bf16.mxu1 %v10282_v30  ;;  %v10252_v30 = vcombine.high %v6188_v5, %v6192_v59 }
 0x753   : > { %8334 = vmatmul.mubr.bf16.gmra.mrb[60].mxu0 %v10189_v38  ;;  %v6251_v38 = vld [vmem:[%s15767_s7 + $0x7c0] sm:$0xff]  ;;  %v14789_v18 = vpop.f32.mrb[0].mxu1 }
 0x754   : > { %8341 = vmatprep.mubr.bf16.mxu0 %v10198_v22  ;;  %v6255_v22 = vld [vmem:[%s15767_s7 + $0x7e0] sm:$0xff]  ;;  %v7639_v39 = vpop.f32.mrb[1].mxu1 }
 0x755   : > { %v10314_v48 = vcombine.high %v6251_v38, %v6255_v22  ;;  %v10313_v17 = vcombine.low %v6251_v38, %v6255_v22  ;;  %v14797_v38 = vpop.f32.mrb[2].mxu1 }
 0x756   : > { %v7642_v22 = vpop.f32.mrb[3].mxu1 }
 0x758   : > { %7852 = vmatmul.mubr.bf16.gmra.mrb[108].mxu1 %v10281_v4  ;;  %v10251_v4 = vcombine.low %v6188_v5, %v6192_v59 }
 0x759   : > { %7859 = vmatprep.mubr.bf16.mxu1 %v10290_v34  ;;  %v10260_v34 = vcombine.high %v6196_v25, %v6200_v6 }
 0x75b   : > { %8342 = vmatmul.mubr.bf16.gmra.mrb[64].mxu0 %v10197_v41  ;;  %v10261_v41 = vcombine.low %v6197_v1, %v6201_v9  ;;  %v6220_v1 = vld [vmem:[%s15767_s7 + $0x6c8] sm:$0xff]  ;;  %v14805_v27 = vpop.f32.mrb[4].mxu1 }
 0x75c   : > { %8349 = vmatprep.mubr.bf16.mxu0 %v10206_v53  ;;  %v10270_v53 = vcombine.high %v6205_v3, %v6209_v43  ;;  %v6224_v9 = vld [vmem:[%s15767_s7 + $0x6e8] sm:$0xff]  ;;  %v7647_v42 = vpop.f32.mrb[5].mxu1 }
 0x760   : > { %7860 = vmatmul.mubr.bf16.gmra.mrb[112].mxu1 %v10289_v57  ;;  %v10259_v57 = vcombine.low %v6196_v25, %v6200_v6  ;;  %v6244_v25 = vld [vmem:[%s15767_s7 + $0x788] sm:$0xff] }
 0x761   : > { %7867 = vmatprep.mubr.bf16.mxu1 %v10298_v14  ;;  %v10268_v14 = vcombine.high %v6204_v29, %v6208_v24  ;;  %v6248_v6 = vld [vmem:[%s15767_s7 + $0x7a8] sm:$0xff] }
 0x763   : > { %8350 = vmatmul.mubr.bf16.gmra.mrb[68].mxu0 %v10205_v61  ;;  %v10269_v61 = vcombine.low %v6205_v3, %v6209_v43  ;;  %v14813_v3 = vpop.f32.mrb[6].mxu1 }
 0x764   : > { %8357 = vmatprep.mubr.bf16.mxu0 %v10214_v40  ;;  %v10278_v40 = vcombine.high %v6213_v23, %v6217_v32  ;;  %v7650_v43 = vpop.f32.mrb[7].mxu1 }
 0x768   : > { %7868 = vmatmul.mubr.bf16.gmra.mrb[116].mxu1 %v10297_v8  ;;  %v10267_v8 = vcombine.low %v6204_v29, %v6208_v24 }
 0x769   : > { %7875 = vmatprep.mubr.bf16.mxu1 %v10306_v33  ;;  %v10276_v33 = vcombine.high %v6212_v21, %v6216_v35 }
 0x76b   : > { %8358 = vmatmul.mubr.bf16.gmra.mrb[72].mxu0 %v10213_v26  ;;  %v10277_v26 = vcombine.low %v6213_v23, %v6217_v32  ;;  %v14821_v23 = vpop.f32.mrb[8].mxu1 }
 0x76c   : > { %8365 = vmatprep.mubr.bf16.mxu0 %v10222_v49  ;;  %v10286_v49 = vcombine.high %v6221_v62, %v6225_v10  ;;  %v7655_v32 = vpop.f32.mrb[9].mxu1 }
 0x76d   : > { %v14829_v37 = vpop.f32.mrb[10].mxu1 }
 0x76e   : > { %v7658_v16 = vpop.f32.mrb[11].mxu1 }
 0x76f   : > { %v14837_v5 = vpop.f32.mrb[12].mxu1  ;;  %v6066_v16 = vld [vmem:[%s15767_s7 + $0x1f8] sm:$0xff] }
 0x770   : > { %7876 = vmatmul.mubr.bf16.gmra.mrb[120].mxu1 %v10305_v45  ;;  %v10275_v45 = vcombine.low %v6212_v21, %v6216_v35  ;;  %v7663_v59 = vpop.f32.mrb[13].mxu1 }
 0x771   : > { %7883 = vmatprep.mubr.bf16.mxu1 %v10314_v48  ;;  %v10309_v48 = vcombine.low %v6245_v51, %v6249_v58  ;;  %v6070_v59 = vld [vmem:[%s15767_s7 + $0x218] sm:$0xff] }
 0x773   : > { %8366 = vmatmul.mubr.bf16.gmra.mrb[76].mxu0 %v10221_v44  ;;  %v10285_v44 = vcombine.low %v6221_v62, %v6225_v10  ;;  %v6236_v62 = vld [vmem:[%s15767_s7 + $0x748] sm:$0xff] }
 0x774   : > { %8373 = vmatprep.mubr.bf16.mxu0 %v10230_v0  ;;  %v10294_v0 = vcombine.high %v6229_v50, %v6233_v31  ;;  %v6240_v10 = vld [vmem:[%s15767_s7 + $0x768] sm:$0xff] }
 0x778   : > { %7884 = vmatmul.mubr.bf16.gmra.mrb[124].mxu1 %v10313_v17 }
 0x779   : > { %8084 = vmatprep.mubr.bf16.mxu1 %v10228_v46  ;;  %v6010_v46 = vld [vmem:[%s15767_s7 + $0x38] sm:$0xff] }
 0x77b   : > { %8374 = vmatmul.mubr.bf16.gmra.mrb[80].mxu0 %v10229_v54  ;;  %v10293_v54 = vcombine.low %v6229_v50, %v6233_v31  ;;  %v14845_v50 = vpop.f32.mrb[14].mxu1 }
 0x77c   : > { %8381 = vmatprep.mubr.bf16.mxu0 %v10238_v47  ;;  %v10302_v47 = vcombine.high %v6237_v2, %v6241_v56  ;;  %v7666_v31 = vpop.f32.mrb[15].mxu1 }
 0x780   : > { %8085 = vmatmul.mubr.bf16.vlgmr.msra.gmra.mrb[80].mxu1 %v10227_v55  ;;  %v6006_v55 = vld [vmem:[%s15767_s7 + $0x18] sm:$0xff] }
 0x781   : > { %8092 = vmatprep.mubr.bf16.mxu1 %v10236_v36  ;;  %v10292_v36 = vcombine.high %v6228_v19, %v6232_v63 }
 0x783   : > { %8382 = vmatmul.mubr.bf16.gmra.mrb[84].mxu0 %v10237_v20  ;;  %v10301_v20 = vcombine.low %v6237_v2, %v6241_v56  ;;  %v14853_v2 = vpop.f32.mrb[16].mxu1 }
 0x784   : > { %8389 = vmatprep.mubr.bf16.mxu0 %v10246_v7  ;;  %v10310_v7 = vcombine.high %v6245_v51, %v6249_v58  ;;  %v7671_v56 = vpop.f32.mrb[17].mxu1  ;;  %v6252_v51 = vld [vmem:[%s15767_s7 + $0x7c8] sm:$0xff] }
 0x785   : > { %v14861_v29 = vpop.f32.mrb[18].mxu1  ;;  %v6256_v58 = vld [vmem:[%s15767_s7 + $0x7e8] sm:$0xff] }
 0x786   : > { %v7674_v24 = vpop.f32.mrb[19].mxu1 }
 0x787   : > { %v14869_v21 = vpop.f32.mrb[20].mxu1 }
 0x788   : > { %8093 = vmatmul.mubr.bf16.gmra.mrb[84].mxu1 %v10235_v52  ;;  %v10291_v52 = vcombine.low %v6228_v19, %v6232_v63  ;;  %v7679_v35 = vpop.f32.mrb[21].mxu1 }
 0x789   : > { %8100 = vmatprep.mubr.bf16.mxu1 %v10244_v12  ;;  %v10071_v12 = vcombine.low %v6006_v55, %v6010_v46  ;;  %v14877_v39 = vpop.f32.mrb[22].mxu1 }
 0x78b   : > { %8390 = vmatmul.mubr.bf16.gmra.mrb[88].mxu0 %v10245_v15  ;;  %v6253_v15 = vld [vmem:[%s15767_s7 + $0x7d0] sm:$0xff] }
 0x78c   : > { %8397 = vmatprep.mubr.bf16.mxu0 %v10254_v11  ;;  %v6257_v11 = vld [vmem:[%s15767_s7 + $0x7f0] sm:$0xff] }
 0x78d   : > { %v10318_v17 = vcombine.high %v6253_v15, %v6257_v11 }
 0x790   : > { %8101 = vmatmul.mubr.bf16.gmra.mrb[88].mxu1 %v10243_v28 }
 0x791   : > { %8108 = vmatprep.mubr.bf16.mxu1 %v10252_v30  ;;  %v6022_v30 = vld [vmem:[%s15767_s7 + $0x98] sm:$0xff] }
 0x793   : > { %8398 = vmatmul.mubr.bf16.gmra.mrb[92].mxu0 %v10253_v13  ;;  %v10284_v13 = vcombine.high %v6220_v1, %v6224_v9 }
 0x794   : > { %8405 = vmatprep.mubr.bf16.mxu0 %v10262_v60  ;;  %v10283_v60 = vcombine.low %v6220_v1, %v6224_v9  ;;  %v6046_v1 = vld [vmem:[%s15767_s7 + $0x158] sm:$0xff] }
 0x795   : > { %v6050_v9 = vld [vmem:[%s15767_s7 + $0x178] sm:$0xff] }
 0x798   : > { %8109 = vmatmul.mubr.bf16.gmra.mrb[92].mxu1 %v10251_v4  ;;  %v6026_v4 = vld [vmem:[%s15767_s7 + $0xb8] sm:$0xff] }
 0x799   : > { %8116 = vmatprep.mubr.bf16.mxu1 %v10260_v34  ;;  %v10308_v34 = vcombine.high %v6244_v25, %v6248_v6 }
 0x79b   : > { %8406 = vmatmul.mubr.bf16.gmra.mrb[96].mxu0 %v10261_v41  ;;  %v10317_v41 = vcombine.low %v6253_v15, %v6257_v11  ;;  %v7682_v15 = vpop.f32.mrb[23].mxu1 }
 0x79c   : > { %8413 = vmatprep.mubr.bf16.mxu0 %v10270_v53  ;;  %v10072_v53 = vcombine.high %v6006_v55, %v6010_v46  ;;  %v10112_v55 = vcombine.high %v6046_v1, %v6050_v9 }
 0x7a0   : > { %8117 = vmatmul.mubr.bf16.gmra.mrb[96].mxu1 %v10259_v57  ;;  %v10307_v57 = vcombine.low %v6244_v25, %v6248_v6 }
 0x7a1   : > { %8124 = vmatprep.mubr.bf16.mxu1 %v10268_v14  ;;  %v10087_v14 = vcombine.low %v6022_v30, %v6026_v4 }
 0x7a3   : > { %8414 = vmatmul.mubr.bf16.gmra.mrb[100].mxu0 %v10269_v61  ;;  %v6014_v61 = vld [vmem:[%s15767_s7 + $0x58] sm:$0xff] }
 0x7a4   : > { %8421 = vmatprep.mubr.bf16.mxu0 %v10278_v40  ;;  %v6018_v40 = vld [vmem:[%s15767_s7 + $0x78] sm:$0xff] }
 0x7a5   : > { %v10080_v28 = vcombine.high %v6014_v61, %v6018_v40 }
 0x7a8   : > { %8125 = vmatmul.mubr.bf16.gmra.mrb[100].mxu1 %v10267_v8 }
 0x7a9   : > { %8132 = vmatprep.mubr.bf16.mxu1 %v10276_v33  ;;  %v6038_v33 = vld [vmem:[%s15767_s7 + $0x118] sm:$0xff] }
 0x7ab   : > { %8422 = vmatmul.mubr.bf16.gmra.mrb[104].mxu0 %v10277_v26  ;;  %v10300_v26 = vcombine.high %v6236_v62, %v6240_v10 }
 0x7ac   : > { %8429 = vmatprep.mubr.bf16.mxu0 %v10286_v49  ;;  %v10299_v49 = vcombine.low %v6236_v62, %v6240_v10 }
 0x7b0   : > { %8133 = vmatmul.mubr.bf16.gmra.mrb[104].mxu1 %v10275_v45  ;;  %v6042_v45 = vld [vmem:[%s15767_s7 + $0x138] sm:$0xff] }
 0x7b1   : > { %8140 = vmatprep.mubr.bf16.mxu1 %v10284_v13  ;;  %v10104_v22 = vcombine.high %v6038_v33, %v6042_v45  ;;  %v10103_v42 = vcombine.low %v6038_v33, %v6042_v45 }
 0x7b3   : > { %8430 = vmatmul.mubr.bf16.gmra.mrb[108].mxu0 %v10285_v44  ;;  %v10079_v44 = vcombine.low %v6014_v61, %v6018_v40  ;;  %v6062_v40 = vld [vmem:[%s15767_s7 + $0x1d8] sm:$0xff] }
 0x7b4   : > { %8437 = vmatprep.mubr.bf16.mxu0 %v10294_v0  ;;  %v10088_v0 = vcombine.high %v6022_v30, %v6026_v4  ;;  %v10128_v10 = vcombine.high %v6062_v40, %v6066_v16  ;;  %v6074_v30 = vld [vmem:[%s15767_s7 + $0x238] sm:$0xff] }
 0x7b8   : > { %8141 = vmatmul.mubr.bf16.gmra.mrb[108].mxu1 %v10283_v60 }
 0x7b9   : > { %8148 = vmatprep.mubr.bf16.mxu1 %v10292_v36  ;;  %v10111_v36 = vcombine.low %v6046_v1, %v6050_v9 }
 0x7bb   : > { %8438 = vmatmul.mubr.bf16.gmra.mrb[112].mxu0 %v10293_v54  ;;  %v6030_v54 = vld [vmem:[%s15767_s7 + $0xd8] sm:$0xff] }
 0x7bc   : > { %8445 = vmatprep.mubr.bf16.mxu0 %v10302_v47  ;;  %v6034_v47 = vld [vmem:[%s15767_s7 + $0xf8] sm:$0xff] }
 0x7bd   : > { %v10096_v8 = vcombine.high %v6030_v54, %v6034_v47  ;;  %v10095_v11 = vcombine.low %v6030_v54, %v6034_v47  ;;  %v10135_v47 = vcombine.low %v6070_v59, %v6074_v30 }
 0x7c0   : > { %8149 = vmatmul.mubr.bf16.gmra.mrb[112].mxu1 %v10291_v52 }
 0x7c1   : > { %8156 = vmatprep.mubr.bf16.mxu1 %v10300_v26 }
 0x7c3   : > { %8446 = vmatmul.mubr.bf16.gmra.mrb[116].mxu0 %v10301_v20  ;;  %v10316_v20 = vcombine.high %v6252_v51, %v6256_v58 }
 0x7c4   : > { %8453 = vmatprep.mubr.bf16.mxu0 %v10310_v7  ;;  %v10315_v7 = vcombine.low %v6252_v51, %v6256_v58  ;;  %v6086_v51 = vld [vmem:[%s15767_s7 + $0x298] sm:$0xff] }
 0x7c5   : > { %v6090_v58 = vld [vmem:[%s15767_s7 + $0x2b8] sm:$0xff] }
 0x7c6   : > { %v10152_v33 = vcombine.high %v6086_v51, %v6090_v58  ;;  %v10151_v9 = vcombine.low %v6086_v51, %v6090_v58 }
 0x7c8   : > { %8157 = vmatmul.mubr.bf16.gmra.mrb[116].mxu1 %v10299_v49 }
 0x7c9   : > { %8164 = vmatprep.mubr.bf16.mxu1 %v10308_v34  ;;  %v6078_v34 = vld [vmem:[%s15767_s7 + $0x258] sm:$0xff] }
 0x7cb   : > { %8454 = vmatmul.mubr.bf16.gmra.mrb[120].mxu0 %v10309_v48  ;;  %v14879_v48 = vpop.f32.mrb[24].mxu1 }
 0x7cc   : > { %8461 = vmatprep.mubr.bf16.mxu0 %v10318_v17  ;;  %v7687_v17 = vpop.f32.mrb[25].mxu1 }
 0x7cd   : > { %v14887_v13 = vpop.f32.mrb[26].mxu1 }
 0x7ce   : > { %v7690_v60 = vpop.f32.mrb[27].mxu1 }
 0x7cf   : > { %v14889_v46 = vpop.f32.mrb[28].mxu1 }
 0x7d0   : > { %8165 = vmatmul.mubr.bf16.gmra.mrb[120].mxu1 %v10307_v57  ;;  %v7695_v43 = vpop.f32.mrb[29].mxu1  ;;  %v6082_v57 = vld [vmem:[%s15767_s7 + $0x278] sm:$0xff] }
 0x7d1   : > { %8172 = vmatprep.mubr.bf16.mxu1 %v10316_v20  ;;  %v14897_v19 = vpop.f32.mrb[30].mxu1  ;;  %v10144_v24 = vcombine.high %v6078_v34, %v6082_v57  ;;  %v10143_v35 = vcombine.low %v6078_v34, %v6082_v57 }
 0x7d2   : > { %v7698_v63 = vpop.f32.mrb[31].mxu1 }
 0x7d3   : > { %8462 = vmatmul.mubr.bf16.gmra.mrb[124].mxu0 %v10317_v41  ;;  %v6054_v41 = vld [vmem:[%s15767_s7 + $0x198] sm:$0xff]  ;;  %v14899_v32 = vpop.f32.mrb[32].mxu1 }
 0x7d4   : > { %8502 = vmatprep.mubr.bf16.mxu0 %v10072_v53  ;;  %v6058_v53 = vld [vmem:[%s15767_s7 + $0x1b8] sm:$0xff]  ;;  %v7703_v61 = vpop.f32.mrb[33].mxu1 }
 0x7d5   : > { %v10120_v52 = vcombine.high %v6054_v41, %v6058_v53  ;;  %v10119_v62 = vcombine.low %v6054_v41, %v6058_v53  ;;  %v6110_v61 = vld [vmem:[%s15767_s7 + $0x358] sm:$0xff] }
 0x7d8   : > { %8173 = vmatmul.mubr.bf16.gmra.mrb[124].mxu1 %v10315_v7 }
 0x7db   : > { %8503 = vmatmul.mubr.bf16.vlgmr.msra.gmra.mrb[0].mxu0 %v10071_v12  ;;  %v14907_v12 = vpop.f32.mrb[34].mxu1 }
 0x7dc   : > { %8510 = vmatprep.mubr.bf16.mxu0 %v10080_v28  ;;  %v7706_v28 = vpop.f32.mrb[35].mxu1 }
 0x7dd   : > { %v14909_v26 = vpop.f32.mrb[36].mxu1 }
 0x7de   : > { %v7711_v49 = vpop.f32.mrb[37].mxu1 }
 0x7df   : > { %v14917_v4 = vpop.f32.mrb[38].mxu1 }
 0x7e0   : > { %v7714_v31 = vpop.f32.mrb[39].mxu1 }
 0x7e1   : > { %v14919_v25 = vpop.f32.mrb[40].mxu1  ;;  %v6122_v31 = vld [vmem:[%s15767_s7 + $0x3b8] sm:$0xff] }
 0x7e2   : > { %v7719_v6 = vpop.f32.mrb[41].mxu1 }
 0x7e3   : > { %8511 = vmatmul.mubr.bf16.gmra.mrb[4].mxu0 %v10079_v44  ;;  %v10127_v44 = vcombine.low %v6062_v40, %v6066_v16  ;;  %v14927_v56 = vpop.f32.mrb[42].mxu1  ;;  %v6114_v40 = vld [vmem:[%s15767_s7 + $0x378] sm:$0xff] }
 0x7e4   : > { %8518 = vmatprep.mubr.bf16.mxu0 %v10088_v0  ;;  %v10136_v0 = vcombine.high %v6070_v59, %v6074_v30  ;;  %v7722_v54 = vpop.f32.mrb[43].mxu1  ;;  %v10176_v28 = vcombine.high %v6110_v61, %v6114_v40  ;;  %v6118_v30 = vld [vmem:[%s15767_s7 + $0x398] sm:$0xff] }
 0x7eb   : > { %8519 = vmatmul.mubr.bf16.gmra.mrb[8].mxu0 %v10087_v14  ;;  %v14929_v14 = vpop.f32.mrb[44].mxu1 }
 0x7ec   : > { %8526 = vmatprep.mubr.bf16.mxu0 %v10096_v8  ;;  %v7727_v8 = vpop.f32.mrb[45].mxu1 }
 0x7ed   : > { %v14937_v20 = vpop.f32.mrb[46].mxu1  ;;  %v10183_v8 = vcombine.low %v6118_v30, %v6122_v31 }
 0x7ee   : > { %v7730_v7 = vpop.f32.mrb[47].mxu1 }
 0x7ef   : > { %v14939_v45 = vpop.f32.mrb[48].mxu1 }
 0x7f0   : > { %v7735_v15 = vpop.f32.mrb[49].mxu1 }
 0x7f1   : > { %v14947_v17 = vpop.f32.mrb[50].mxu1  ;;  %v6134_v15 = vld [vmem:[%s15767_s7 + $0x418] sm:$0xff] }
 0x7f2   : > { %v7738_v1 = vpop.f32.mrb[51].mxu1 }
 0x7f3   : > { %8527 = vmatmul.mubr.bf16.gmra.mrb[12].mxu0 %v10095_v11  ;;  %v6094_v11 = vld [vmem:[%s15767_s7 + $0x2d8] sm:$0xff]  ;;  %v14955_v53 = vpop.f32.mrb[52].mxu1 }
 0x7f4   : > { %8534 = vmatprep.mubr.bf16.mxu0 %v10104_v22  ;;  %v6098_v22 = vld [vmem:[%s15767_s7 + $0x2f8] sm:$0xff]  ;;  %v7743_v63 = vpop.f32.mrb[53].mxu1 }
 0x7f5   : > { %v10160_v60 = vcombine.high %v6094_v11, %v6098_v22  ;;  %v10159_v43 = vcombine.low %v6094_v11, %v6098_v22  ;;  %v6138_v11 = vld [vmem:[%s15767_s7 + $0x438] sm:$0xff] }
 0x7f6   : > { %v10200_v1 = vcombine.high %v6134_v15, %v6138_v11  ;;  %v10199_v63 = vcombine.low %v6134_v15, %v6138_v11 }
 0x7fb   : > { %8535 = vmatmul.mubr.bf16.gmra.mrb[16].mxu0 %v10103_v42  ;;  %v6102_v42 = vld [vmem:[%s15767_s7 + $0x318] sm:$0xff] }
 0x7fc   : > { %8542 = vmatprep.mubr.bf16.mxu0 %v10112_v55  ;;  %v6106_v55 = vld [vmem:[%s15767_s7 + $0x338] sm:$0xff] }
 0x7fd   : > { %v10168_v41 = vcombine.high %v6102_v42, %v6106_v55  ;;  %v10167_v16 = vcombine.low %v6102_v42, %v6106_v55 }
 0x803   : > { %8543 = vmatmul.mubr.bf16.gmra.mrb[20].mxu0 %v10111_v36  ;;  %v14957_v36 = vpop.f32.mrb[54].mxu1 }
 0x804   : > { %8550 = vmatprep.mubr.bf16.mxu0 %v10120_v52  ;;  %v7746_v52 = vpop.f32.mrb[55].mxu1 }
 0x80b   : > { %8551 = vmatmul.mubr.bf16.gmra.mrb[24].mxu0 %v10119_v62  ;;  %v14965_v62 = vpop.f32.mrb[56].mxu1 }
 0x80c   : > { %8558 = vmatprep.mubr.bf16.mxu0 %v10128_v10  ;;  %v7751_v10 = vpop.f32.mrb[57].mxu1 }
 0x80d   : > { %v14967_v49 = vpop.f32.mrb[58].mxu1  ;;  %v6150_v10 = vld [vmem:[%s15767_s7 + $0x498] sm:$0xff] }
 0x80e   : > { %v7754_v59 = vpop.f32.mrb[59].mxu1 }
 0x80f   : > { %v14975_v6 = vpop.f32.mrb[60].mxu1  ;;  %v6154_v59 = vld [vmem:[%s15767_s7 + $0x4b8] sm:$0xff] }
 0x810   : > { %v7759_v34 = vpop.f32.mrb[61].mxu1 }
 0x811   : > { %v14977_v57 = vpop.f32.mrb[62].mxu1 }
 0x812   : > { %v7762_v54 = vpop.f32.mrb[63].mxu1 }
 0x813   : > { %8559 = vmatmul.mubr.bf16.gmra.mrb[28].mxu0 %v10127_v44  ;;  %v10175_v44 = vcombine.low %v6110_v61, %v6114_v40  ;;  %v14985_v58 = vpop.f32.mrb[64].mxu1 }
 0x814   : > { %8566 = vmatprep.mubr.bf16.mxu0 %v10136_v0  ;;  %v10184_v0 = vcombine.high %v6118_v30, %v6122_v31  ;;  %v7767_v7 = vpop.f32.mrb[65].mxu1  ;;  %v10216_v31 = vcombine.high %v6150_v10, %v6154_v59 }
 0x81b   : > { %8567 = vmatmul.mubr.bf16.gmra.mrb[32].mxu0 %v10135_v47  ;;  %v6126_v47 = vld [vmem:[%s15767_s7 + $0x3d8] sm:$0xff] }
 0x81c   : > { %8574 = vmatprep.mubr.bf16.mxu0 %v10144_v24  ;;  %v6130_v24 = vld [vmem:[%s15767_s7 + $0x3f8] sm:$0xff] }
 0x81d   : > { %v10192_v51 = vcombine.high %v6126_v47, %v6130_v24  ;;  %v10191_v22 = vcombine.low %v6126_v47, %v6130_v24  ;;  %v6158_v47 = vld [vmem:[%s15767_s7 + $0x4d8] sm:$0xff] }
 0x81e   : > { %v6162_v24 = vld [vmem:[%s15767_s7 + $0x4f8] sm:$0xff] }
 0x823   : > { %8575 = vmatmul.mubr.bf16.gmra.mrb[36].mxu0 %v10143_v35  ;;  %v14987_v35 = vpop.f32.mrb[66].mxu1 }
 0x824   : > { %8582 = vmatprep.mubr.bf16.mxu0 %v10152_v33  ;;  %v7770_v33 = vpop.f32.mrb[67].mxu1 }
 0x82b   : > { %8583 = vmatmul.mubr.bf16.gmra.mrb[40].mxu0 %v10151_v9  ;;  %v14995_v9 = vpop.f32.mrb[68].mxu1 }
 0x82c   : > { %8590 = vmatprep.mubr.bf16.mxu0 %v10160_v60  ;;  %v7775_v60 = vpop.f32.mrb[69].mxu1 }
 0x82d   : > { %v14997_v42 = vpop.f32.mrb[70].mxu1  ;;  %v10223_v60 = vcombine.low %v6158_v47, %v6162_v24 }
 0x82e   : > { %v7778_v55 = vpop.f32.mrb[71].mxu1 }
 0x82f   : > { %v15005_v61 = vpop.f32.mrb[72].mxu1 }
 0x830   : > { %v7783_v40 = vpop.f32.mrb[73].mxu1 }
 0x831   : > { %v6174_v40 = vld [vmem:[%s15767_s7 + $0x558] sm:$0xff] }
 0x833   : > { %8591 = vmatmul.mubr.bf16.gmra.mrb[44].mxu0 %v10159_v43  ;;  %v6142_v43 = vld [vmem:[%s15767_s7 + $0x458] sm:$0xff] }
 0x834   : > { %8598 = vmatprep.mubr.bf16.mxu0 %v10168_v41  ;;  %v6146_v41 = vld [vmem:[%s15767_s7 + $0x478] sm:$0xff] }
 0x835   : > { %v10208_v52 = vcombine.high %v6142_v43, %v6146_v41  ;;  %v10207_v30 = vcombine.low %v6142_v43, %v6146_v41 }
 0x83b   : > { %8599 = vmatmul.mubr.bf16.gmra.mrb[48].mxu0 %v10167_v16  ;;  %v15007_v16 = vpop.f32.mrb[74].mxu1 }
 0x83c   : > { %8606 = vmatprep.mubr.bf16.mxu0 %v10176_v28  ;;  %v7786_v28 = vpop.f32.mrb[75].mxu1 }
 0x83d   : > { %v6178_v28 = vld [vmem:[%s15767_s7 + $0x578] sm:$0xff] }
 0x843   : > { %8607 = vmatmul.mubr.bf16.gmra.mrb[52].mxu0 %v10175_v44  ;;  %v15015_v44 = vpop.f32.mrb[76].mxu1 }
 0x844   : > { %8614 = vmatprep.mubr.bf16.mxu0 %v10184_v0  ;;  %v7791_v0 = vpop.f32.mrb[77].mxu1 }
 0x845   : > { %v15017_v34 = vpop.f32.mrb[78].mxu1 }
 0x846   : > { %v7794_v54 = vpop.f32.mrb[79].mxu1 }
 0x84b   : > { %8615 = vmatmul.mubr.bf16.gmra.mrb[56].mxu0 %v10183_v8  ;;  %v10215_v8 = vcombine.low %v6150_v10, %v6154_v59  ;;  %v10240_v59 = vcombine.high %v6174_v40, %v6178_v28 }
 0x84c   : > { %8622 = vmatprep.mubr.bf16.mxu0 %v10192_v51  ;;  %v10224_v51 = vcombine.high %v6158_v47, %v6162_v24  ;;  %v6182_v47 = vld [vmem:[%s15767_s7 + $0x598] sm:$0xff] }
 0x84d   : > { %v6186_v24 = vld [vmem:[%s15767_s7 + $0x5b8] sm:$0xff] }
 0x853   : > { %8623 = vmatmul.mubr.bf16.gmra.mrb[60].mxu0 %v10191_v22  ;;  %v15025_v7 = vpop.f32.mrb[80].mxu1  ;;  %v6166_v22 = vld [vmem:[%s15767_s7 + $0x518] sm:$0xff] }
 0x854   : > { %8630 = vmatprep.mubr.bf16.mxu0 %v10200_v1  ;;  %v8088_v33 = vpop.f32.mrb[81].mxu1  ;;  %v6170_v1 = vld [vmem:[%s15767_s7 + $0x538] sm:$0xff] }
 0x855   : > { %v15027_v15 = vpop.f32.mrb[82].mxu1  ;;  %v10232_v55 = vcombine.high %v6166_v22, %v6170_v1  ;;  %v10231_v10 = vcombine.low %v6166_v22, %v6170_v1 }
 0x856   : > { %v8091_v11 = vpop.f32.mrb[83].mxu1 }
 0x85b   : > { %8631 = vmatmul.mubr.bf16.gmra.mrb[64].mxu0 %v10199_v63  ;;  %v15035_v43 = vpop.f32.mrb[84].mxu1 }
 0x85c   : > { %8638 = vmatprep.mubr.bf16.mxu0 %v10208_v52  ;;  %v8096_v41 = vpop.f32.mrb[85].mxu1 }
 0x85d   : > { %v15037_v63 = vpop.f32.mrb[86].mxu1  ;;  %v10247_v41 = vcombine.low %v6182_v47, %v6186_v24 }
 0x85e   : > { %v8099_v52 = vpop.f32.mrb[87].mxu1 }
 0x863   : > { %8639 = vmatmul.mubr.bf16.gmra.mrb[68].mxu0 %v10207_v30  ;;  %v15045_v30 = vpop.f32.mrb[88].mxu1 }
 0x864   : > { %8646 = vmatprep.mubr.bf16.mxu0 %v10216_v31  ;;  %15980 = vst [vmem:[#allocation68_spill] sm:$0xff] %v15045_v30  ;;  %v8104_v31 = vpop.f32.mrb[89].mxu1 }
 0x865   : > { %v15047_v0 = vpop.f32.mrb[90].mxu1  ;;  %v6198_v31 = vld [vmem:[%s15767_s7 + $0x618] sm:$0xff] }
 0x866   : > { %15981 = vst [vmem:[#allocation69_spill] sm:$0xff] %v15047_v0  ;;  %v8107_v54 = vpop.f32.mrb[91].mxu1 }
 0x867   : > { %v6202_v54 = vld [vmem:[%s15767_s7 + $0x638] sm:$0xff] }
 0x86b   : > { %8647 = vmatmul.mubr.bf16.gmra.mrb[72].mxu0 %v10215_v8  ;;  %v10239_v8 = vcombine.low %v6174_v40, %v6178_v28  ;;  %v15055_v33 = vpop.f32.mrb[92].mxu1 }
 0x86c   : > { %8654 = vmatprep.mubr.bf16.mxu0 %v10224_v51  ;;  %v10248_v51 = vcombine.high %v6182_v47, %v6186_v24  ;;  %15982 = vst [vmem:[#allocation70_spill] sm:$0xff] %v15055_v33  ;;  %v8112_v11 = vpop.f32.mrb[93].mxu1 }
 0x86d   : > { %v15057_v22 = vpop.f32.mrb[94].mxu1 }
 0x86e   : > { %15983 = vst [vmem:[#allocation71_spill] sm:$0xff] %v15057_v22  ;;  %v8115_v1 = vpop.f32.mrb[95].mxu1 }
 0x873   : > { %8655 = vmatmul.mubr.bf16.gmra.mrb[76].mxu0 %v10223_v60  ;;  %v6190_v60 = vld [vmem:[%s15767_s7 + $0x5d8] sm:$0xff]  ;;  %v15065_v40 = vpop.f32.mrb[96].mxu1 }
 0x874   : > { %8662 = vmatprep.mubr.bf16.mxu0 %v10232_v55  ;;  %v6194_v55 = vld [vmem:[%s15767_s7 + $0x5f8] sm:$0xff]  ;;  %15984 = vst [vmem:[#allocation72_spill] sm:$0xff] %v15065_v40  ;;  %v8120_v28 = vpop.f32.mrb[97].mxu1 }
 0x875   : > { %v10256_v52 = vcombine.high %v6190_v60, %v6194_v55  ;;  %v10263_v28 = vcombine.low %v6198_v31, %v6202_v54 }
 0x87b   : > { %8663 = vmatmul.mubr.bf16.gmra.mrb[80].mxu0 %v10231_v10  ;;  %v15067_v10 = vpop.f32.mrb[98].mxu1 }
 0x87c   : > { %8670 = vmatprep.mubr.bf16.mxu0 %v10240_v59  ;;  %15985 = vst [vmem:[#allocation73_spill] sm:$0xff] %v15067_v10  ;;  %v8123_v59 = vpop.f32.mrb[99].mxu1 }
 0x87d   : > { %v15075_v47 = vpop.f32.mrb[100].mxu1 }
 0x87e   : > { %15986 = vst [vmem:[#allocation74_spill] sm:$0xff] %v15075_v47  ;;  %v8128_v24 = vpop.f32.mrb[101].mxu1 }
 0x87f   : > { %v15077_v11 = vpop.f32.mrb[102].mxu1 }
 0x880   : > { %15987 = vst [vmem:[#allocation75_spill] sm:$0xff] %v15077_v11  ;;  %v8131_v1 = vpop.f32.mrb[103].mxu1 }
 0x881   : > { %v6218_v1 = vld [vmem:[%s15767_s7 + $0x6b8] sm:$0xff] }
 0x883   : > { %8671 = vmatmul.mubr.bf16.gmra.mrb[84].mxu0 %v10239_v8  ;;  %v10255_v8 = vcombine.low %v6190_v60, %v6194_v55  ;;  %v15085_v60 = vpop.f32.mrb[104].mxu1 }
 0x884   : > { %8678 = vmatprep.mubr.bf16.mxu0 %v10248_v51  ;;  %v10264_v51 = vcombine.high %v6198_v31, %v6202_v54  ;;  %15988 = vst [vmem:[#allocation76_spill] sm:$0xff] %v15085_v60  ;;  %v8136_v55 = vpop.f32.mrb[105].mxu1 }
 0x885   : > { %v15087_v24 = vpop.f32.mrb[106].mxu1 }
 0x886   : > { %15989 = vst [vmem:[#allocation77_spill] sm:$0xff] %v15087_v24 }
 0x88b   : > { %8679 = vmatmul.mubr.bf16.gmra.mrb[88].mxu0 %v10247_v41  ;;  %v6206_v41 = vld [vmem:[%s15767_s7 + $0x658] sm:$0xff] }
 0x88c   : > { %8686 = vmatprep.mubr.bf16.mxu0 %v10256_v52  ;;  %v6210_v52 = vld [vmem:[%s15767_s7 + $0x678] sm:$0xff] }
 0x88d   : > { %v10272_v59 = vcombine.high %v6206_v41, %v6210_v52  ;;  %v10271_v11 = vcombine.low %v6206_v41, %v6210_v52 }
 0x893   : > { %8687 = vmatmul.mubr.bf16.gmra.mrb[92].mxu0 %v10255_v8  ;;  %v8139_v8 = vpop.f32.mrb[107].mxu1 }
 0x894   : > { %8694 = vmatprep.mubr.bf16.mxu0 %v10264_v51  ;;  %v6214_v51 = vld [vmem:[%s15767_s7 + $0x698] sm:$0xff]  ;;  %v15095_v31 = vpop.f32.mrb[108].mxu1 }
 0x895   : > { %v10280_v47 = vcombine.high %v6214_v51, %v6218_v1  ;;  %15990 = vst [vmem:[#allocation78_spill] sm:$0xff] %v15095_v31  ;;  %v8144_v54 = vpop.f32.mrb[109].mxu1  ;;  %v6226_v8 = vld [vmem:[%s15767_s7 + $0x6f8] sm:$0xff]  ;;  %v10279_v24 = vcombine.low %v6214_v51, %v6218_v1 }
 0x896   : > { %v15097_v55 = vpop.f32.mrb[110].mxu1  ;;  %v6260_v54 = vld [vmem:[%s15768_s8 + $0x8] sm:$0xff]  ;;  %v6230_v51 = vld [vmem:[%s15767_s7 + $0x718] sm:$0xff] }
 0x897   : > { %15991 = vst [vmem:[#allocation79_spill] sm:$0xff] %v15097_v55  ;;  %v6234_v1 = vld [vmem:[%s15767_s7 + $0x738] sm:$0xff] }
 0x898   : > { %v10296_v40 = vcombine.high %v6230_v51, %v6234_v1 }
 0x89b   : > { %8695 = vmatmul.mubr.bf16.gmra.mrb[96].mxu0 %v10263_v28  ;;  %v8147_v28 = vpop.f32.mrb[111].mxu1 }
 0x89c   : > { %8702 = vmatprep.mubr.bf16.mxu0 %v10272_v59  ;;  %v6222_v59 = vld [vmem:[%s15767_s7 + $0x6d8] sm:$0xff]  ;;  %v15105_v41 = vpop.f32.mrb[112].mxu1 }
 0x89d   : > { %v10288_v60 = vcombine.high %v6222_v59, %v6226_v8  ;;  %15992 = vst [vmem:[#allocation80_spill] sm:$0xff] %v15105_v41  ;;  %v8152_v52 = vpop.f32.mrb[113].mxu1  ;;  %v10287_v31 = vcombine.low %v6222_v59, %v6226_v8 }
 0x8a3   : > { %8703 = vmatmul.mubr.bf16.gmra.mrb[100].mxu0 %v10271_v11  ;;  %v6259_v11 = vld [vmem:[%s15768_s8] sm:$0xff] }
 0x8a4   : > { %8710 = vmatprep.mubr.bf16.mxu0 %v10280_v47  ;;  %v15110_v47 = vpop.f32.mrb[114].mxu1  ;;  %v7638_v55 = vadd.f32 %v14789_v18, %v6259_v11  ;;  %v6261_v11 = vld [vmem:[%s15768_s8 + $0x10] sm:$0xff] }
 0x8a5   : > { %15993 = vst [vmem:[#allocation81_spill] sm:$0xff] %v15110_v47  ;;  %v8155_v28 = vpop.f32.mrb[115].mxu1  ;;  %v7641_v47 = vadd.f32 %v14797_v38, %v6260_v54  ;;  %v6262_v38 = vld [vmem:[%s15768_s8 + $0x18] sm:$0xff]  ;;  %v7646_v59 = vadd.f32 %v14805_v27, %v6261_v11  ;;  %v6263_v27 = vld [vmem:[%s15768_s8 + $0x20] sm:$0xff] }
 0x8a6   : > { %v15123_v18 = vpop.f32.mrb[116].mxu1  ;;  %v7649_v54 = vadd.f32 %v14813_v3, %v6262_v38  ;;  %v6264_v3 = vld [vmem:[%s15768_s8 + $0x28] sm:$0xff]  ;;  %v7654_v38 = vadd.f32 %v14821_v23, %v6263_v27  ;;  %v6265_v23 = vld [vmem:[%s15768_s8 + $0x30] sm:$0xff] }
 0x8a7   : > { %v8160_v33 = vpop.f32.mrb[117].mxu1 }
 0x8a8   : > { %v6238_v33 = vld [vmem:[%s15767_s7 + $0x758] sm:$0xff] }
 0x8ab   : > { %8711 = vmatmul.mubr.bf16.gmra.mrb[104].mxu0 %v10279_v24 }
 0x8ac   : > { %8718 = vmatprep.mubr.bf16.mxu0 %v10288_v60  ;;  %v11267_v60 = vld [vmem:[#allocation3 + $0x4] ss:$16 sps:$4 sm:$0xff]  }
 0x8ad   : > { %9303 = vmatprep.mubr.bf16.mxu1 %v11267_v60 }
 0x8ae   : > { %v8504_v52 = vpop.f32.mrb[0].mxu0 }
 0x8af   : > { %v10725_v24 = vadd.f32 %v8504_v52, %v7638_v55  ;;  %v8506_v41 = vpop.f32.mrb[1].mxu0  ;;  %v15128_v55 = vpop.f32.mrb[118].mxu1  ;;  %v10295_v52 = vcombine.low %v6230_v51, %v6234_v1 }
 0x8b0   : > { %v8507_v10 = vpop.f32.mrb[2].mxu0  ;;  %15994 = vst [vmem:[#allocation82_spill] sm:$0xff] %v15128_v55 }
 0x8b1   : > { %v10727_v28 = vadd.f32 %v8507_v10, %v7641_v47  ;;  %v8509_v22 = vpop.f32.mrb[3].mxu0  ;;  %v8759_v0 = vmax.f32 %v10725_v24, 0.0  ;;  %v8163_v10 = vpop.f32.mrb[119].mxu1 }
 0x8b2   : > { %v15143_v60 = vpop.f32.mrb[120].mxu1 }
 0x8b3   : > { %v8760_v30 = vmax.f32 %v10727_v28, 0.0  ;;  %8719 = vmatmul.mubr.bf16.gmra.mrb[108].mxu0 %v10287_v31  ;;  %v6242_v31 = vld [vmem:[%s15767_s7 + $0x778] sm:$0xff]  ;;  %v8168_v28 = vpop.f32.mrb[121].mxu1 }
 0x8b4   : > { %8726 = vmatprep.mubr.bf16.mxu0 %v10296_v40  ;;  %v10304_v24 = vcombine.high %v6238_v33, %v6242_v31  ;;  %v15148_v55 = vpop.f32.mrb[122].mxu1 }
 0x8b5   : > { %v15133_v22 = vpack.c.bf16 %v8760_v30, %v8759_v0  ;;  %15995 = vst [vmem:[#allocation83_spill] sm:$0xff] %v15148_v55  ;;  %v8171_v51 = vpop.f32.mrb[123].mxu1 }
 0x8b6   : > { %v8512_v8 = vpop.f32.mrb[4].mxu0 }
 0x8b7   : > { %v10729_v41 = vadd.f32 %v8512_v8, %v7646_v59  ;;  %v8514_v47 = vpop.f32.mrb[5].mxu0  ;;  %v6246_v59 = vld [vmem:[%s15767_s7 + $0x798] sm:$0xff] }
 0x8b8   : > { %v8515_v40 = vpop.f32.mrb[6].mxu0  ;;  %v6250_v8 = vld [vmem:[%s15767_s7 + $0x7b8] sm:$0xff] }
 0x8b9   : > { %v10731_v30 = vadd.f32 %v8515_v40, %v7649_v54  ;;  %v8517_v0 = vpop.f32.mrb[7].mxu0  ;;  %v8761_v11 = vmax.f32 %v10729_v41, 0.0  ;;  %v10303_v40 = vcombine.low %v6238_v33, %v6242_v31 }
 0x8bb   : > { %v8762_v10 = vmax.f32 %v10731_v30, 0.0  ;;  %8727 = vmatmul.mubr.bf16.gmra.mrb[112].mxu0 %v10295_v52  ;;  %v7657_v52 = vadd.f32 %v14829_v37, %v6264_v3  ;;  %v10312_v30 = vcombine.high %v6246_v59, %v6250_v8  ;;  %v6266_v37 = vld [vmem:[%s15768_s8 + $0x38] sm:$0xff]  ;;  %v7662_v3 = vadd.f32 %v14837_v5, %v6265_v23  ;;  %v6267_v5 = vld [vmem:[%s15768_s8 + $0x40] sm:$0xff] }
 0x8bc   : > { %8734 = vmatprep.mubr.bf16.mxu0 %v10304_v24 }
 0x8bd   : > { %v15153_v1 = vpack.c.bf16 %v8762_v10, %v8761_v11  ;;  %v15163_v11 = vpop.f32.mrb[124].mxu1 }
 0x8be   : > { %v8520_v41 = vpop.f32.mrb[8].mxu0  ;;  %v8176_v27 = vpop.f32.mrb[125].mxu1 }
 0x8bf   : > { %v10733_v47 = vadd.f32 %v8520_v41, %v7654_v38  ;;  %v8522_v54 = vpop.f32.mrb[9].mxu0  ;;  %v15168_v55 = vpop.f32.mrb[126].mxu1  ;;  %v6254_v38 = vld [vmem:[%s15767_s7 + $0x7d8] sm:$0xff] }
 0x8c0   : > { %v8523_v24 = vpop.f32.mrb[10].mxu0  ;;  %v8179_v33 = vpop.f32.mrb[127].mxu1  ;;  %v6258_v41 = vld [vmem:[%s15767_s7 + $0x7f8] sm:$0xff] }
 0x8c1   : > { %v10735_v0 = vadd.f32 %v8523_v24, %v7657_v52  ;;  %v8525_v28 = vpop.f32.mrb[11].mxu0  ;;  %v8763_v10 = vmax.f32 %v10733_v47, 0.0  ;;  %v10311_v24 = vcombine.low %v6246_v59, %v6250_v8 }
 0x8c3   : > { %v8764_v51 = vmax.f32 %v10735_v0, 0.0  ;;  %8735 = vmatmul.mubr.bf16.gmra.mrb[116].mxu0 %v10303_v40  ;;  %v7665_v40 = vadd.f32 %v14845_v50, %v6266_v37  ;;  %v10320_v0 = vcombine.high %v6254_v38, %v6258_v41  ;;  %v7670_v50 = vadd.f32 %v14853_v2, %v6267_v5  ;;  %v6270_v2 = vld [vmem:[%s15768_s8 + $0x58] sm:$0xff] }
 0x8c4   : > { %8742 = vmatprep.mubr.bf16.mxu0 %v10312_v30  ;;  %v7681_v5 = vadd.f32 %v14877_v39, %v6270_v2 }
 0x8c5   : > { %v15173_v31 = vpack.c.bf16 %v8764_v51, %v8763_v10  ;;  %v6268_v51 = vld [vmem:[%s15768_s8 + $0x48] sm:$0xff] }
 0x8c6   : > { %v8528_v47 = vpop.f32.mrb[12].mxu0 }
 0x8c7   : > { %v10737_v54 = vadd.f32 %v8528_v47, %v7662_v3  ;;  %v8530_v52 = vpop.f32.mrb[13].mxu0  ;;  %v7673_v3 = vadd.f32 %v14861_v29, %v6268_v51  ;;  %v10319_v47 = vcombine.low %v6254_v38, %v6258_v41 }
 0x8c8   : > { %v8531_v30 = vpop.f32.mrb[14].mxu0 }
 0x8c9   : > { %v10739_v28 = vadd.f32 %v8531_v30, %v7665_v40  ;;  %v8533_v27 = vpop.f32.mrb[15].mxu0  ;;  %v8765_v23 = vmax.f32 %v10737_v54, 0.0 }
 0x8cb   : > { %v8766_v10 = vmax.f32 %v10739_v28, 0.0  ;;  %8743 = vmatmul.mubr.bf16.gmra.mrb[120].mxu0 %v10311_v24  ;;  %v6269_v24 = vld [vmem:[%s15768_s8 + $0x50] sm:$0xff] }
 0x8cc   : > { %8750 = vmatprep.mubr.bf16.mxu0 %v10320_v0  ;;  %v7678_v27 = vadd.f32 %v14869_v21, %v6269_v24 }
 0x8cd   : > { %v15189_v33 = vpack.c.bf16 %v8766_v10, %v8765_v23 }
 0x8ce   : > { %v8536_v59 = vpop.f32.mrb[16].mxu0 }
 0x8cf   : > { %v10741_v8 = vadd.f32 %v8536_v59, %v7670_v50  ;;  %v8538_v37 = vpop.f32.mrb[17].mxu0  ;;  %v6271_v50 = vld [vmem:[%s15768_s8 + $0x60] sm:$0xff] }
 0x8d0   : > { %v8539_v52 = vpop.f32.mrb[18].mxu0  ;;  %v6272_v37 = vld [vmem:[%s15768_s8 + $0x68] sm:$0xff]  ;;  %v7686_v21 = vadd.f32 %v14879_v48, %v6271_v50 }
 0x8d1   : > { %v10743_v40 = vadd.f32 %v8539_v52, %v7673_v3  ;;  %v8541_v54 = vpop.f32.mrb[19].mxu0  ;;  %v8767_v30 = vmax.f32 %v10741_v8, 0.0 }
 0x8d3   : > { %v8768_v28 = vmax.f32 %v10743_v40, 0.0  ;;  %8751 = vmatmul.mubr.bf16.gmra.mrb[124].mxu0 %v10319_v47  ;;  %v7689_v40 = vadd.f32 %v14887_v13, %v6272_v37 }
 0x8d5   : > { %v15199_v0 = vpack.c.bf16 %v8768_v28, %v8767_v30  ;;  %v6273_v28 = vld [vmem:[%s15768_s8 + $0x70] sm:$0xff] }
 0x8d6   : > { %v8544_v29 = vpop.f32.mrb[20].mxu0  ;;  %v7694_v48 = vadd.f32 %v14889_v46, %v6273_v28  ;;  %v6277_v28 = vld [vmem:[%s15768_s8 + $0x90] sm:$0xff] }
 0x8d7   : > { %v10745_v38 = vadd.f32 %v8544_v29, %v7678_v27  ;;  %v8546_v41 = vpop.f32.mrb[21].mxu0  ;;  %v6274_v29 = vld [vmem:[%s15768_s8 + $0x78] sm:$0xff] }
 0x8d8   : > { %v8547_v23 = vpop.f32.mrb[22].mxu0 }
 0x8d9   : > { %v10747_v10 = vadd.f32 %v8547_v23, %v7681_v5  ;;  %v8549_v51 = vpop.f32.mrb[23].mxu0  ;;  %v8769_v59 = vmax.f32 %v10745_v38, 0.0  ;;  %v7697_v23 = vadd.f32 %v14897_v19, %v6274_v29  ;;  %v7710_v29 = vadd.f32 %v14909_v26, %v6277_v28  ;;  %v6280_v26 = vld [vmem:[%s15768_s8 + $0xa8] sm:$0xff] }
 0x8db   : > { %v8770_v8 = vmax.f32 %v10747_v10, 0.0 }
 0x8dd   : > { %v15209_v3 = vpack.c.bf16 %v8770_v8, %v8769_v59  ;;  %v6275_v59 = vld [vmem:[%s15768_s8 + $0x80] sm:$0xff] }
 0x8de   : > { %v8552_v47 = vpop.f32.mrb[24].mxu0  ;;  %v7702_v46 = vadd.f32 %v14899_v32, %v6275_v59  ;;  %v6278_v32 = vld [vmem:[%s15768_s8 + $0x98] sm:$0xff] }
 0x8df   : > { %v10749_v52 = vadd.f32 %v8552_v47, %v7686_v21  ;;  %v8554_v39 = vpop.f32.mrb[25].mxu0  ;;  %v6276_v21 = vld [vmem:[%s15768_s8 + $0x88] sm:$0xff] }
 0x8e0   : > { %v8555_v54 = vpop.f32.mrb[26].mxu0  ;;  %v7705_v19 = vadd.f32 %v14907_v12, %v6276_v21  ;;  %v7713_v12 = vadd.f32 %v14917_v4, %v6278_v32 }
 0x8e1   : > { %v10751_v24 = vadd.f32 %v8555_v54, %v7689_v40  ;;  %v8557_v30 = vpop.f32.mrb[27].mxu0  ;;  %v8771_v2 = vmax.f32 %v10749_v52, 0.0 }
 0x8e3   : > { %v8772_v27 = vmax.f32 %v10751_v24, 0.0 }
 0x8e5   : > { %v15219_v38 = vpack.c.bf16 %v8772_v27, %v8771_v2 }
 0x8e6   : > { %v8560_v41 = vpop.f32.mrb[28].mxu0 }
 0x8e7   : > { %v10753_v5 = vadd.f32 %v8560_v41, %v7694_v48  ;;  %v8562_v13 = vpop.f32.mrb[29].mxu0 }
 0x8e8   : > { %v8563_v10 = vpop.f32.mrb[30].mxu0 }
 0x8e9   : > { %v10755_v51 = vadd.f32 %v8563_v10, %v7697_v23  ;;  %v8565_v50 = vpop.f32.mrb[31].mxu0  ;;  %v8773_v8 = vmax.f32 %v10753_v5, 0.0 }
 0x8ea   : > { %v6279_v50 = vld [vmem:[%s15768_s8 + $0xa0] sm:$0xff] }
 0x8eb   : > { %v8774_v37 = vmax.f32 %v10755_v51, 0.0  ;;  %v7718_v4 = vadd.f32 %v14919_v25, %v6279_v50  ;;  %v6282_v25 = vld [vmem:[%s15768_s8 + $0xb8] sm:$0xff] }
 0x8ed   : > { %v15230_v47 = vpack.c.bf16 %v8774_v37, %v8773_v8 }
 0x8ee   : > { %v8568_v52 = vpop.f32.mrb[32].mxu0 }
 0x8ef   : > { %v10757_v39 = vadd.f32 %v8568_v52, %v7702_v46  ;;  %v8570_v40 = vpop.f32.mrb[33].mxu0  ;;  %v7721_v46 = vadd.f32 %v14927_v56, %v6280_v26 }
 0x8f0   : > { %v8571_v54 = vpop.f32.mrb[34].mxu0 }
 0x8f1   : > { %v10759_v24 = vadd.f32 %v8571_v54, %v7705_v19  ;;  %v8573_v30 = vpop.f32.mrb[35].mxu0  ;;  %v8775_v2 = vmax.f32 %v10757_v39, 0.0  ;;  %v6281_v54 = vld [vmem:[%s15768_s8 + $0xb0] sm:$0xff] }
 0x8f2   : > { %v7726_v56 = vadd.f32 %v14929_v14, %v6281_v54  ;;  %v6284_v14 = vld [vmem:[%s15768_s8 + $0xc8] sm:$0xff] }
 0x8f3   : > { %v8776_v27 = vmax.f32 %v10759_v24, 0.0 }
 0x8f5   : > { %v8895_v48 = vpack.c.bf16 %v8776_v27, %v8775_v2  ;;  %v7729_v27 = vadd.f32 %v14937_v20, %v6282_v25 }
 0x8f6   : > { %v8576_v41 = vpop.f32.mrb[36].mxu0 }
 0x8f7   : > { %v10761_v5 = vadd.f32 %v8576_v41, %v7710_v29  ;;  %v8578_v13 = vpop.f32.mrb[37].mxu0  ;;  %10404 = vmatprep.subr.bf16.mxu1 %v8895_v48 }
 0x8f8   : > { %v8579_v23 = vpop.f32.mrb[38].mxu0  ;;  %10405 = vmatpush3.bf16.msra.mxu1 %v15133_v22 }
 0x8f9   : > { %v10763_v10 = vadd.f32 %v8579_v23, %v7713_v12  ;;  %v8581_v51 = vpop.f32.mrb[39].mxu0  ;;  %v8777_v59 = vmax.f32 %v10761_v5, 0.0  ;;  %v6283_v12 = vld [vmem:[%s15768_s8 + $0xc0] sm:$0xff] }
 0x8fa   : > { %v7734_v20 = vadd.f32 %v14939_v45, %v6283_v12  ;;  %v7737_v51 = vadd.f32 %v14947_v17, %v6284_v14  ;;  %v6286_v45 = vld [vmem:[%s15768_s8 + $0xd8] sm:$0xff] }
 0x8fb   : > { %v8778_v8 = vmax.f32 %v10763_v10, 0.0 }
 0x8fd   : > { %v8896_v37 = vpack.c.bf16 %v8778_v8, %v8777_v59 }
 0x8fe   : > { %v8584_v21 = vpop.f32.mrb[40].mxu0 }
 0x8ff   : > { %v10765_v52 = vadd.f32 %v8584_v21, %v7718_v4  ;;  %v8586_v22 = vpop.f32.mrb[41].mxu0  ;;  %10406 = vmatprep.subr.bf16.mxu1 %v8896_v37  ;;  %v6285_v4 = vld [vmem:[%s15768_s8 + $0xd0] sm:$0xff] }
 0x900   : > { %v8587_v19 = vpop.f32.mrb[42].mxu0  ;;  %10407 = vmatpush3.bf16.msra.mxu1 %v15153_v1  ;;  %v7742_v17 = vadd.f32 %v14955_v53, %v6285_v4  ;;  %v7745_v22 = vadd.f32 %v14957_v36, %v6286_v45  ;;  %v6288_v53 = vld [vmem:[%s15768_s8 + $0xe8] sm:$0xff] }
 0x901   : > { %v10767_v39 = vadd.f32 %v8587_v19, %v7721_v46  ;;  %v8589_v40 = vpop.f32.mrb[43].mxu0  ;;  %v8779_v24 = vmax.f32 %v10765_v52, 0.0 }
 0x903   : > { %v8780_v30 = vmax.f32 %v10767_v39, 0.0 }
 0x905   : > { %v8897_v28 = vpack.c.bf16 %v8780_v30, %v8779_v24  ;;  %v6287_v24 = vld [vmem:[%s15768_s8 + $0xe0] sm:$0xff] }
 0x906   : > { %v8592_v2 = vpop.f32.mrb[44].mxu0  ;;  %v7750_v36 = vadd.f32 %v14965_v62, %v6287_v24  ;;  %v6290_v62 = vld [vmem:[%s15768_s8 + $0xf8] sm:$0xff] }
 0x907   : > { %v10769_v32 = vadd.f32 %v8592_v2, %v7726_v56  ;;  %v8594_v1 = vpop.f32.mrb[45].mxu0  ;;  %10408 = vmatprep.subr.bf16.mxu1 %v8897_v28  ;;  %v7753_v2 = vadd.f32 %v14967_v49, %v6288_v53  ;;  %v7761_v14 = vadd.f32 %v14977_v57, %v6290_v62  ;;  %v11271_v53 = vld [vmem:[#allocation3 + $0x44] ss:$16 sps:$4 sm:$0xff]  }
 0x908   : > { %v8595_v29 = vpop.f32.mrb[46].mxu0  ;;  %10409 = vmatpush3.bf16.msra.mxu1 %v15173_v31  ;;  %v11274_v62 = vld [vmem:[#allocation3 + $0x64] ss:$16 sps:$4 sm:$0xff]  }
 0x909   : > { %v10771_v48 = vadd.f32 %v8595_v29, %v7729_v27  ;;  %v8597_v41 = vpop.f32.mrb[47].mxu0  ;;  %v8781_v5 = vmax.f32 %v10769_v32, 0.0 }
 0x90b   : > { %v8782_v13 = vmax.f32 %v10771_v48, 0.0  ;;  %v6289_v48 = vld [vmem:[%s15768_s8 + $0xf0] sm:$0xff] }
 0x90c   : > { %v7758_v49 = vadd.f32 %v14975_v6, %v6289_v48  ;;  %v6292_v6 = vld [vmem:[%s15768_s8 + $0x108] sm:$0xff] }
 0x90d   : > { %v8898_v23 = vpack.c.bf16 %v8782_v13, %v8781_v5  ;;  %v7769_v4 = vadd.f32 %v14987_v35, %v6292_v6  ;;  %v6294_v35 = vld [vmem:[%s15768_s8 + $0x118] sm:$0xff]  ;;  %v11277_v6 = vld [vmem:[#allocation3 + $0x84] ss:$16 sps:$4 sm:$0xff]  }
 0x90e   : > { %v8600_v10 = vpop.f32.mrb[48].mxu0 }
 0x90f   : > { %v10773_v50 = vadd.f32 %v8600_v10, %v7734_v20  ;;  %v8602_v31 = vpop.f32.mrb[49].mxu0  ;;  %10410 = vmatprep.subr.bf16.mxu1 %v8898_v23 }
 0x910   : > { %v8603_v59 = vpop.f32.mrb[50].mxu0  ;;  %10411 = vmatpush3.bf16.msra.mxu1 %v15189_v33 }
 0x911   : > { %v10775_v8 = vadd.f32 %v8603_v59, %v7737_v51  ;;  %v8605_v26 = vpop.f32.mrb[51].mxu0  ;;  %v8783_v37 = vmax.f32 %v10773_v50, 0.0  ;;  %v6291_v50 = vld [vmem:[%s15768_s8 + $0x100] sm:$0xff] }
 0x912   : > { %v7766_v57 = vadd.f32 %v14985_v58, %v6291_v50 }
 0x913   : > { %v8784_v21 = vmax.f32 %v10775_v8, 0.0 }
 0x915   : > { %v8899_v46 = vpack.c.bf16 %v8784_v21, %v8783_v37  ;;  %v11265_v21 = vld [vmem:[#allocation3] ss:$16 sps:$4 sm:$0xff]  }
 0x916   : > { %v8608_v52 = vpop.f32.mrb[52].mxu0 }
 0x917   : > { %v10777_v19 = vadd.f32 %v8608_v52, %v7742_v17  ;;  %v8610_v33 = vpop.f32.mrb[53].mxu0  ;;  %10412 = vmatprep.subr.bf16.mxu1 %v8899_v46  ;;  %v11268_v17 = vld [vmem:[#allocation3 + $0x24] ss:$16 sps:$4 sm:$0xff]  }
 0x918   : > { %v8611_v39 = vpop.f32.mrb[54].mxu0  ;;  %10413 = vmatpush3.bf16.msra.mxu1 %v15199_v0 }
 0x919   : > { %v10779_v40 = vadd.f32 %v8611_v39, %v7745_v22  ;;  %v8613_v54 = vpop.f32.mrb[55].mxu0  ;;  %v8785_v30 = vmax.f32 %v10777_v19, 0.0  ;;  %v6293_v22 = vld [vmem:[%s15768_s8 + $0x110] sm:$0xff] }
 0x91a   : > { %v7774_v33 = vadd.f32 %v14995_v9, %v6293_v22  ;;  %v6296_v9 = vld [vmem:[%s15768_s8 + $0x128] sm:$0xff] }
 0x91b   : > { %v8786_v25 = vmax.f32 %v10779_v40, 0.0  ;;  %v7777_v40 = vadd.f32 %v14997_v42, %v6294_v35 }
 0x91d   : > { %v8900_v56 = vpack.c.bf16 %v8786_v25, %v8785_v30  ;;  %v11270_v30 = vld [vmem:[#allocation3 + $0x20] ss:$16 sps:$4 sm:$0xff]  }
 0x91e   : > { %v8616_v28 = vpop.f32.mrb[56].mxu0 }
 0x91f   : > { %v10781_v27 = vadd.f32 %v8616_v28, %v7750_v36  ;;  %v8618_v0 = vpop.f32.mrb[57].mxu0  ;;  %10414 = vmatprep.subr.bf16.mxu1 %v8900_v56  ;;  %v6295_v28 = vld [vmem:[%s15768_s8 + $0x120] sm:$0xff] }
 0x920   : > { %v8619_v32 = vpop.f32.mrb[58].mxu0  ;;  %10415 = vmatpush3.bf16.msra.mxu1 %v15209_v3  ;;  %v7782_v42 = vadd.f32 %v15005_v61, %v6295_v28  ;;  %v6298_v61 = vld [vmem:[%s15768_s8 + $0x138] sm:$0xff]  ;;  %v11283_v28 = vld [vmem:[#allocation3 + $0xc4] ss:$16 sps:$4 sm:$0xff]  }
 0x921   : > { %v10783_v1 = vadd.f32 %v8619_v32, %v7753_v2  ;;  %v8621_v29 = vpop.f32.mrb[59].mxu0  ;;  %v8787_v41 = vmax.f32 %v10781_v27, 0.0 }
 0x923   : > { %v8788_v12 = vmax.f32 %v10783_v1, 0.0  ;;  %v7785_v1 = vadd.f32 %v15007_v16, %v6296_v9  ;;  %v6303_v9 = vld [vmem:[%s15768_s8 + $0x160] sm:$0xff] }
 0x925   : > { %v8901_v5 = vpack.c.bf16 %v8788_v12, %v8787_v41  ;;  %v11273_v41 = vld [vmem:[#allocation3 + $0x40] ss:$16 sps:$4 sm:$0xff]  }
 0x926   : > { %v8624_v13 = vpop.f32.mrb[60].mxu0 }
 0x927   : > { %v10785_v20 = vadd.f32 %v8624_v13, %v7758_v49  ;;  %v8626_v3 = vpop.f32.mrb[61].mxu0  ;;  %10416 = vmatprep.subr.bf16.mxu1 %v8901_v5  ;;  %v6297_v13 = vld [vmem:[%s15768_s8 + $0x130] sm:$0xff] }
 0x928   : > { %v8627_v23 = vpop.f32.mrb[62].mxu0  ;;  %10417 = vmatpush3.bf16.msra.mxu1 %v15219_v38  ;;  %v7790_v16 = vadd.f32 %v15015_v44, %v6297_v13  ;;  %v6300_v44 = vld [vmem:[%s15768_s8 + $0x148] sm:$0xff] }
 0x929   : > { %v10787_v10 = vadd.f32 %v8627_v23, %v7761_v14  ;;  %v8629_v51 = vpop.f32.mrb[63].mxu0  ;;  %v8789_v31 = vmax.f32 %v10785_v20, 0.0 }
 0x92b   : > { %v8790_v59 = vmax.f32 %v10787_v10, 0.0  ;;  %v7793_v10 = vadd.f32 %v15017_v34, %v6298_v61 }
 0x92d   : > { %v8902_v8 = vpack.c.bf16 %v8790_v59, %v8789_v31  ;;  %v11276_v31 = vld [vmem:[#allocation3 + $0x60] ss:$16 sps:$4 sm:$0xff]  }
 0x92e   : > { %v8632_v26 = vpop.f32.mrb[64].mxu0 }
 0x92f   : > { %v10789_v37 = vadd.f32 %v8632_v26, %v7766_v57  ;;  %v8634_v38 = vpop.f32.mrb[65].mxu0  ;;  %10418 = vmatprep.subr.bf16.mxu1 %v8902_v8  ;;  %v6299_v26 = vld [vmem:[%s15768_s8 + $0x140] sm:$0xff] }
 0x930   : > { %v8635_v45 = vpop.f32.mrb[66].mxu0  ;;  %10419 = vmatpush3.bf16.msra.mxu1 %v15230_v47  ;;  %v10804_v34 = vadd.f32 %v15025_v7, %v6299_v26  ;;  %v6302_v7 = vld [vmem:[%s15768_s8 + $0x158] sm:$0xff] }
 0x931   : > { %v10791_v46 = vadd.f32 %v8635_v45, %v7769_v4  ;;  %v8637_v52 = vpop.f32.mrb[67].mxu0  ;;  %v8791_v19 = vmax.f32 %v10789_v37, 0.0  ;;  %v10806_v45 = vadd.f32 %v15027_v15, %v6300_v44 }
 0x932   : > { %v11279_v52 = vld [vmem:[#allocation3 + $0x80] ss:$16 sps:$4 sm:$0xff]  }
 0x933   : > { %v8792_v58 = vmax.f32 %v10791_v46, 0.0  ;;  %9304 = vmatmul.mubr.bf16.vlgmr.msra.gmra.mrb[128].mxu1 %v11265_v21 }
 0x934   : > { %9311 = vmatprep.mubr.bf16.mxu1 %v11268_v17 }
 0x935   : > { %v15312_v39 = vpack.c.bf16 %v8792_v58, %v8791_v19  ;;  %v11280_v19 = vld [vmem:[#allocation3 + $0xa4] ss:$16 sps:$4 sm:$0xff]  }
 0x936   : > { %v8640_v47 = vpop.f32.mrb[68].mxu0 }
 0x937   : > { %v10793_v54 = vadd.f32 %v8640_v47, %v7774_v33  ;;  %v8642_v24 = vpop.f32.mrb[69].mxu0  ;;  %v6301_v33 = vld [vmem:[%s15768_s8 + $0x150] sm:$0xff] }
 0x938   : > { %v8643_v25 = vpop.f32.mrb[70].mxu0  ;;  %v10808_v15 = vadd.f32 %v15035_v43, %v6301_v33  ;;  %v6304_v43 = vld [vmem:[%s15768_s8 + $0x168] sm:$0xff] }
 0x939   : > { %v10795_v36 = vadd.f32 %v8643_v25, %v7777_v40  ;;  %v8645_v56 = vpop.f32.mrb[71].mxu0  ;;  %v8793_v2 = vmax.f32 %v10793_v54, 0.0 }
 0x93b   : > { %v8794_v27 = vmax.f32 %v10795_v36, 0.0  ;;  %9312 = vmatmul.mubr.bf16.gmra.mrb[132].mxu1 %v11270_v30  ;;  %v10810_v30 = vadd.f32 %v15037_v63, %v6302_v7  ;;  %v11282_v36 = vld [vmem:[#allocation3 + $0xa0] ss:$16 sps:$4 sm:$0xff]  }
 0x93c   : > { %9319 = vmatprep.mubr.bf16.mxu1 %v11271_v53  ;;  %v15996_v63 = vld [vmem:[#allocation68_spill] sm:$0xff] }
 0x93d   : > { %v15322_v0 = vpack.c.bf16 %v8794_v27, %v8793_v2 }
 0x93e   : > { %v8648_v32 = vpop.f32.mrb[72].mxu0 }
 0x93f   : > { %v10797_v29 = vadd.f32 %v8648_v32, %v7782_v42  ;;  %v8650_v48 = vpop.f32.mrb[73].mxu0 }
 0x940   : > { %v8651_v12 = vpop.f32.mrb[74].mxu0 }
 0x941   : > { %v10799_v49 = vadd.f32 %v8651_v12, %v7785_v1  ;;  %v8653_v5 = vpop.f32.mrb[75].mxu0  ;;  %v8795_v14 = vmax.f32 %v10797_v29, 0.0  ;;  %v10812_v1 = vadd.f32 %v15996_v63, %v6303_v9  ;;  %v16002_v9 = vld [vmem:[#allocation74_spill] sm:$0xff]  ;;  %v16003_v63 = vld [vmem:[#allocation75_spill] sm:$0xff] }
 0x942   : > { %v11285_v5 = vld [vmem:[#allocation3 + $0xc0] ss:$16 sps:$4 sm:$0xff]  }
 0x943   : > { %v8796_v20 = vmax.f32 %v10799_v49, 0.0  ;;  %9320 = vmatmul.mubr.bf16.gmra.mrb[136].mxu1 %v11273_v41  ;;  %v15997_v41 = vld [vmem:[#allocation69_spill] sm:$0xff] }
 0x944   : > { %9327 = vmatprep.mubr.bf16.mxu1 %v11274_v62  ;;  %v10814_v12 = vadd.f32 %v15997_v41, %v6304_v43 }
 0x945   : > { %v15332_v3 = vpack.c.bf16 %v8796_v20, %v8795_v14  ;;  %v11286_v14 = vld [vmem:[#allocation3 + $0xe4] ss:$16 sps:$4 sm:$0xff]  }
 0x946   : > { %v8656_v23 = vpop.f32.mrb[76].mxu0 }
 0x947   : > { %v10801_v51 = vadd.f32 %v8656_v23, %v7790_v16  ;;  %v8658_v50 = vpop.f32.mrb[77].mxu0  ;;  %v6305_v16 = vld [vmem:[%s15768_s8 + $0x170] sm:$0xff] }
 0x948   : > { %v8659_v59 = vpop.f32.mrb[78].mxu0  ;;  %v15998_v50 = vld [vmem:[#allocation70_spill] sm:$0xff] }
 0x949   : > { %v10803_v57 = vadd.f32 %v8659_v59, %v7793_v10  ;;  %v8661_v8 = vpop.f32.mrb[79].mxu0  ;;  %v8797_v4 = vmax.f32 %v10801_v51, 0.0  ;;  %v6306_v51 = vld [vmem:[%s15768_s8 + $0x178] sm:$0xff] }
 0x94b   : > { %v8798_v37 = vmax.f32 %v10803_v57, 0.0  ;;  %9328 = vmatmul.mubr.bf16.gmra.mrb[140].mxu1 %v11276_v31  ;;  %v10816_v31 = vadd.f32 %v15998_v50, %v6305_v16  ;;  %v15999_v57 = vld [vmem:[#allocation71_spill] sm:$0xff] }
 0x94c   : > { %9335 = vmatprep.mubr.bf16.mxu1 %v11277_v6  ;;  %v10818_v8 = vadd.f32 %v15999_v57, %v6306_v51  ;;  %v6312_v16 = vld [vmem:[%s15768_s8 + $0x1a8] sm:$0xff] }
 0x94d   : > { %v15342_v38 = vpack.c.bf16 %v8798_v37, %v8797_v4  ;;  %v11288_v37 = vld [vmem:[#allocation3 + $0xe0] ss:$16 sps:$4 sm:$0xff]  }
 0x94e   : > { %v8664_v21 = vpop.f32.mrb[80].mxu0 }
 0x94f   : > { %v10805_v17 = vadd.f32 %v10804_v34, %v8664_v21  ;;  %v8666_v46 = vpop.f32.mrb[81].mxu0  ;;  %v11289_v34 = vld [vmem:[#allocation3 + $0x104] ss:$16 sps:$4 sm:$0xff]  }
 0x950   : > { %v8667_v22 = vpop.f32.mrb[82].mxu0 }
 0x951   : > { %v10807_v58 = vadd.f32 %v10806_v45, %v8667_v22  ;;  %v8669_v35 = vpop.f32.mrb[83].mxu0  ;;  %v8799_v47 = vmax.f32 %v10805_v17, 0.0  ;;  %v6307_v17 = vld [vmem:[%s15768_s8 + $0x180] sm:$0xff]  ;;  %v6308_v22 = vld [vmem:[%s15768_s8 + $0x188] sm:$0xff] }
 0x953   : > { %v8800_v40 = vmax.f32 %v10807_v58, 0.0  ;;  %9336 = vmatmul.mubr.bf16.gmra.mrb[144].mxu1 %v11279_v52 }
 0x954   : > { %9343 = vmatprep.mubr.bf16.mxu1 %v11280_v19  ;;  %v16000_v19 = vld [vmem:[#allocation72_spill] sm:$0xff] }
 0x955   : > { %v15352_v54 = vpack.c.bf16 %v8800_v40, %v8799_v47  ;;  %v10820_v58 = vadd.f32 %v16000_v19, %v6307_v17  ;;  %v16001_v47 = vld [vmem:[#allocation73_spill] sm:$0xff] }
 0x956   : > { %v8672_v24 = vpop.f32.mrb[84].mxu0  ;;  %v10822_v40 = vadd.f32 %v16001_v47, %v6308_v22  ;;  %v6314_v17 = vld [vmem:[%s15768_s8 + $0x1b8] sm:$0xff] }
 0x957   : > { %v10809_v25 = vadd.f32 %v10808_v15, %v8672_v24  ;;  %v8674_v53 = vpop.f32.mrb[85].mxu0  ;;  %v11291_v24 = vld [vmem:[#allocation3 + $0x100] ss:$16 sps:$4 sm:$0xff]  }
 0x958   : > { %v8675_v56 = vpop.f32.mrb[86].mxu0 }
 0x959   : > { %v10811_v2 = vadd.f32 %v10810_v30, %v8675_v56  ;;  %v8677_v27 = vpop.f32.mrb[87].mxu0  ;;  %v8801_v42 = vmax.f32 %v10809_v25, 0.0  ;;  %v11292_v25 = vld [vmem:[#allocation3 + $0x124] ss:$16 sps:$4 sm:$0xff]  }
 0x95a   : > { %v6309_v56 = vld [vmem:[%s15768_s8 + $0x190] sm:$0xff]  ;;  %v6310_v27 = vld [vmem:[%s15768_s8 + $0x198] sm:$0xff] }
 0x95b   : > { %v8802_v32 = vmax.f32 %v10811_v2, 0.0  ;;  %9344 = vmatmul.mubr.bf16.gmra.mrb[148].mxu1 %v11282_v36 }
 0x95c   : > { %9351 = vmatprep.mubr.bf16.mxu1 %v11283_v28 }
 0x95d   : > { %v15362_v29 = vpack.c.bf16 %v8802_v32, %v8801_v42  ;;  %v10824_v42 = vadd.f32 %v16002_v9, %v6309_v56  ;;  %v6316_v56 = vld [vmem:[%s15768_s8 + $0x1c8] sm:$0xff] }
 0x95e   : > { %v8680_v48 = vpop.f32.mrb[88].mxu0 }
 0x95f   : > { %v10813_v62 = vadd.f32 %v10812_v1, %v8680_v48  ;;  %v8682_v49 = vpop.f32.mrb[89].mxu0  ;;  %v10826_v1 = vadd.f32 %v16003_v63, %v6310_v27  ;;  %v11303_v63 = vld [vmem:[#allocation3 + $0x180] ss:$16 sps:$4 sm:$0xff]  }
 0x960   : > { %v8683_v13 = vpop.f32.mrb[90].mxu0  ;;  %v11295_v49 = vld [vmem:[#allocation3 + $0x144] ss:$16 sps:$4 sm:$0xff]  }
 0x961   : > { %v10815_v20 = vadd.f32 %v10814_v12, %v8683_v13  ;;  %v8685_v61 = vpop.f32.mrb[91].mxu0  ;;  %v8803_v23 = vmax.f32 %v10813_v62, 0.0  ;;  %v11294_v12 = vld [vmem:[#allocation3 + $0x120] ss:$16 sps:$4 sm:$0xff]  }
 0x963   : > { %v8804_v10 = vmax.f32 %v10815_v20, 0.0  ;;  %9352 = vmatmul.mubr.bf16.gmra.mrb[152].mxu1 %v11285_v5 }
 0x964   : > { %9359 = vmatprep.mubr.bf16.mxu1 %v11286_v14  ;;  %v6311_v14 = vld [vmem:[%s15768_s8 + $0x1a0] sm:$0xff] }
 0x965   : > { %v15372_v59 = vpack.c.bf16 %v8804_v10, %v8803_v23  ;;  %v16004_v23 = vld [vmem:[#allocation76_spill] sm:$0xff] }
 0x966   : > { %v8688_v6 = vpop.f32.mrb[92].mxu0  ;;  %v10828_v10 = vadd.f32 %v16004_v23, %v6311_v14 }
 0x967   : > { %v10817_v26 = vadd.f32 %v10816_v31, %v8688_v6  ;;  %v8690_v4 = vpop.f32.mrb[93].mxu0 }
 0x968   : > { %v8691_v44 = vpop.f32.mrb[94].mxu0  ;;  %v11298_v4 = vld [vmem:[#allocation3 + $0x164] ss:$16 sps:$4 sm:$0xff]  }
 0x969   : > { %v10819_v21 = vadd.f32 %v10818_v8, %v8691_v44  ;;  %v8693_v45 = vpop.f32.mrb[95].mxu0  ;;  %v8805_v46 = vmax.f32 %v10817_v26, 0.0  ;;  %v11297_v8 = vld [vmem:[#allocation3 + $0x140] ss:$16 sps:$4 sm:$0xff]  }
 0x96b   : > { %v8806_v52 = vmax.f32 %v10819_v21, 0.0  ;;  %9360 = vmatmul.mubr.bf16.gmra.mrb[156].mxu1 %v11288_v37 }
 0x96c   : > { %9367 = vmatprep.mubr.bf16.mxu1 %v11289_v34  ;;  %v6313_v34 = vld [vmem:[%s15768_s8 + $0x1b0] sm:$0xff] }
 0x96d   : > { %v15382_v35 = vpack.c.bf16 %v8806_v52, %v8805_v46  ;;  %v16006_v46 = vld [vmem:[#allocation78_spill] sm:$0xff] }
 0x96e   : > { %v8696_v33 = vpop.f32.mrb[96].mxu0  ;;  %v10832_v52 = vadd.f32 %v16006_v46, %v6313_v34 }
 0x96f   : > { %v10821_v7 = vadd.f32 %v10820_v58, %v8696_v33  ;;  %v8698_v15 = vpop.f32.mrb[97].mxu0 }
 0x970   : > { %v8699_v30 = vpop.f32.mrb[98].mxu0  ;;  %v11301_v15 = vld [vmem:[#allocation3 + $0x184] ss:$16 sps:$4 sm:$0xff]  }
 0x971   : > { %v10823_v53 = vadd.f32 %v10822_v40, %v8699_v30  ;;  %v8701_v36 = vpop.f32.mrb[99].mxu0  ;;  %v8807_v28 = vmax.f32 %v10821_v7, 0.0  ;;  %v11300_v40 = vld [vmem:[#allocation3 + $0x160] ss:$16 sps:$4 sm:$0xff]  }
 0x973   : > { %v8808_v2 = vmax.f32 %v10823_v53, 0.0  ;;  %9368 = vmatmul.mubr.bf16.gmra.mrb[160].mxu1 %v11291_v24 }
 0x974   : > { %9375 = vmatprep.mubr.bf16.mxu1 %v11292_v25  ;;  %v6315_v25 = vld [vmem:[%s15768_s8 + $0x1c0] sm:$0xff] }
 0x975   : > { %v8911_v32 = vpack.c.bf16 %v8808_v2, %v8807_v28  ;;  %v16008_v28 = vld [vmem:[#allocation80_spill] sm:$0xff] }
 0x976   : > { %v8704_v43 = vpop.f32.mrb[100].mxu0  ;;  %v10836_v2 = vadd.f32 %v16008_v28, %v6315_v25 }
 0x977   : > { %v10825_v48 = vadd.f32 %v10824_v42, %v8704_v43  ;;  %v8706_v41 = vpop.f32.mrb[101].mxu0  ;;  %10516 = vmatprep.subr.bf16.mxu1 %v8911_v32 }
 0x978   : > { %v8707_v62 = vpop.f32.mrb[102].mxu0  ;;  %10517 = vmatpush3.bf16.msra.mxu1 %v15312_v39  ;;  %v16005_v39 = vld [vmem:[#allocation77_spill] sm:$0xff] }
 0x979   : > { %v10827_v5 = vadd.f32 %v10826_v1, %v8707_v62  ;;  %v8709_v13 = vpop.f32.mrb[103].mxu0  ;;  %v8809_v20 = vmax.f32 %v10825_v48, 0.0  ;;  %v10830_v31 = vadd.f32 %v16005_v39, %v6312_v16  ;;  %v11304_v48 = vld [vmem:[#allocation3 + $0x1a4] ss:$16 sps:$4 sm:$0xff]  }
 0x97a   : > { %v6317_v62 = vld [vmem:[%s15768_s8 + $0x1d0] sm:$0xff]  ;;  %v6318_v13 = vld [vmem:[%s15768_s8 + $0x1d8] sm:$0xff] }
 0x97b   : > { %v8810_v61 = vmax.f32 %v10827_v5, 0.0  ;;  %9376 = vmatmul.mubr.bf16.gmra.mrb[164].mxu1 %v11294_v12  ;;  %v10840_v14 = vadd.f32 %v15123_v18, %v6317_v62  ;;  %v11307_v39 = vld [vmem:[#allocation3 + $0x1c4] ss:$16 sps:$4 sm:$0xff]   ;;  %v11336_v62 = vld [vmem:[#allocation3 + $0xe8] ss:$16 sps:$4 sm:$0xff]  }
 0x97c   : > { %9383 = vmatprep.mubr.bf16.mxu1 %v11295_v49 }
 0x97d   : > { %v8912_v51 = vpack.c.bf16 %v8810_v61, %v8809_v20 }
 0x97e   : > { %v8712_v50 = vpop.f32.mrb[104].mxu0 }
 0x97f   : > { %v10829_v6 = vadd.f32 %v10828_v10, %v8712_v50  ;;  %v8714_v57 = vpop.f32.mrb[105].mxu0  ;;  %10518 = vmatprep.subr.bf16.mxu1 %v8912_v51  ;;  %v11306_v51 = vld [vmem:[#allocation3 + $0x1a0] ss:$16 sps:$4 sm:$0xff]  }
 0x980   : > { %v8715_v26 = vpop.f32.mrb[106].mxu0  ;;  %10519 = vmatpush3.bf16.msra.mxu1 %v15322_v0  ;;  %v16007_v0 = vld [vmem:[#allocation79_spill] sm:$0xff]  ;;  %v6319_v57 = vld [vmem:[%s15768_s8 + $0x1e0] sm:$0xff] }
 0x981   : > { %v10831_v37 = vadd.f32 %v10830_v31, %v8715_v26  ;;  %v8717_v44 = vpop.f32.mrb[107].mxu0  ;;  %v8811_v21 = vmax.f32 %v10829_v6, 0.0  ;;  %v10834_v58 = vadd.f32 %v16007_v0, %v6314_v17  ;;  %v6320_v26 = vld [vmem:[%s15768_s8 + $0x1e8] sm:$0xff]  ;;  %v11309_v17 = vld [vmem:[#allocation3 + $0x1c0] ss:$16 sps:$4 sm:$0xff]  }
 0x982   : > { %v6321_v0 = vld [vmem:[%s15768_s8 + $0x1f0] sm:$0xff] }
 0x983   : > { %v8812_v45 = vmax.f32 %v10831_v37, 0.0  ;;  %9384 = vmatmul.mubr.bf16.gmra.mrb[168].mxu1 %v11297_v8 }
 0x984   : > { %9391 = vmatprep.mubr.bf16.mxu1 %v11298_v4  ;;  %v10844_v4 = vadd.f32 %v15143_v60, %v6319_v57 }
 0x985   : > { %v8913_v22 = vpack.c.bf16 %v8812_v45, %v8811_v21 }
 0x986   : > { %v8720_v19 = vpop.f32.mrb[108].mxu0 }
 0x987   : > { %v10833_v33 = vadd.f32 %v10832_v52, %v8720_v19  ;;  %v8722_v47 = vpop.f32.mrb[109].mxu0  ;;  %10520 = vmatprep.subr.bf16.mxu1 %v8913_v22  ;;  %v11310_v52 = vld [vmem:[#allocation3 + $0x1e4] ss:$16 sps:$4 sm:$0xff]  }
 0x988   : > { %v8723_v7 = vpop.f32.mrb[110].mxu0  ;;  %10521 = vmatpush3.bf16.msra.mxu1 %v15332_v3  ;;  %v16009_v3 = vld [vmem:[#allocation81_spill] sm:$0xff]  ;;  %v10848_v47 = vadd.f32 %v15163_v11, %v6321_v0 }
 0x989   : > { %v10835_v24 = vadd.f32 %v10834_v58, %v8723_v7  ;;  %v8725_v30 = vpop.f32.mrb[111].mxu0  ;;  %v8813_v53 = vmax.f32 %v10833_v33, 0.0  ;;  %v10838_v42 = vadd.f32 %v16009_v3, %v6316_v56  ;;  %v6322_v33 = vld [vmem:[%s15768_s8 + $0x1f8] sm:$0xff] }
 0x98a   : > { %v11312_v30 = vld [vmem:[#allocation3 + $0x1e0] ss:$16 sps:$4 sm:$0xff]   ;;  %v11313_v11 = vld [vmem:[#allocation3 + $0x8] ss:$16 sps:$4 sm:$0xff]   ;;  %v11319_v3 = vld [vmem:[#allocation3 + $0x4c] ss:$16 sps:$4 sm:$0xff]  }
 0x98b   : > { %v8814_v36 = vmax.f32 %v10835_v24, 0.0  ;;  %9392 = vmatmul.mubr.bf16.gmra.mrb[172].mxu1 %v11300_v40 }
 0x98c   : > { %9399 = vmatprep.mubr.bf16.mxu1 %v11301_v15 }
 0x98d   : > { %v8914_v27 = vpack.c.bf16 %v8814_v36, %v8813_v53  ;;  %v11315_v53 = vld [vmem:[#allocation3 + $0xc] ss:$16 sps:$4 sm:$0xff]  }
 0x98e   : > { %v8728_v9 = vpop.f32.mrb[112].mxu0 }
 0x98f   : > { %v10837_v32 = vadd.f32 %v10836_v2, %v8728_v9  ;;  %v8730_v43 = vpop.f32.mrb[113].mxu0  ;;  %10522 = vmatprep.subr.bf16.mxu1 %v8914_v27  ;;  %v11318_v9 = vld [vmem:[#allocation3 + $0x28] ss:$16 sps:$4 sm:$0xff]  }
 0x990   : > { %v8731_v1 = vpop.f32.mrb[114].mxu0  ;;  %10523 = vmatpush3.bf16.msra.mxu1 %v15342_v38  ;;  %v16010_v38 = vld [vmem:[#allocation82_spill] sm:$0xff]  ;;  %v11325_v43 = vld [vmem:[#allocation3 + $0x8c] ss:$16 sps:$4 sm:$0xff]  }
 0x991   : > { %v10839_v41 = vadd.f32 %v10838_v42, %v8731_v1  ;;  %v8733_v12 = vpop.f32.mrb[115].mxu0  ;;  %v8815_v49 = vmax.f32 %v10837_v32, 0.0  ;;  %v10842_v16 = vadd.f32 %v16010_v38, %v6318_v13  ;;  %v11322_v42 = vld [vmem:[#allocation3 + $0x6c] ss:$16 sps:$4 sm:$0xff]   ;;  %v11324_v32 = vld [vmem:[#allocation3 + $0x68] ss:$16 sps:$4 sm:$0xff]  }
 0x992   : > { %v11328_v1 = vld [vmem:[#allocation3 + $0xac] ss:$16 sps:$4 sm:$0xff]  }
 0x993   : > { %v8816_v5 = vmax.f32 %v10839_v41, 0.0  ;;  %9400 = vmatmul.mubr.bf16.gmra.mrb[176].mxu1 %v11303_v63  ;;  %v11327_v63 = vld [vmem:[#allocation3 + $0x88] ss:$16 sps:$4 sm:$0xff]   ;;  %v11334_v12 = vld [vmem:[#allocation3 + $0xec] ss:$16 sps:$4 sm:$0xff]  }
 0x994   : > { %9407 = vmatprep.mubr.bf16.mxu1 %v11304_v48  ;;  %v11331_v48 = vld [vmem:[#allocation3 + $0xcc] ss:$16 sps:$4 sm:$0xff]   ;;  %v11333_v41 = vld [vmem:[#allocation3 + $0xc8] ss:$16 sps:$4 sm:$0xff]  }
 0x995   : > { %v8915_v20 = vpack.c.bf16 %v8816_v5, %v8815_v49  ;;  %v11337_v49 = vld [vmem:[#allocation3 + $0x10c] ss:$16 sps:$4 sm:$0xff]   ;;  %v11339_v5 = vld [vmem:[#allocation3 + $0x108] ss:$16 sps:$4 sm:$0xff]  }
 0x996   : > { %v8736_v61 = vpop.f32.mrb[116].mxu0  ;;  %v11340_v13 = vld [vmem:[#allocation3 + $0x12c] ss:$16 sps:$4 sm:$0xff]  }
 0x997   : > { %v10841_v23 = vadd.f32 %v10840_v14, %v8736_v61  ;;  %v8738_v10 = vpop.f32.mrb[117].mxu0  ;;  %10524 = vmatprep.subr.bf16.mxu1 %v8915_v20  ;;  %v11342_v14 = vld [vmem:[#allocation3 + $0x128] ss:$16 sps:$4 sm:$0xff]   ;;  %v11343_v20 = vld [vmem:[#allocation3 + $0x14c] ss:$16 sps:$4 sm:$0xff]  }
 0x998   : > { %v8739_v50 = vpop.f32.mrb[118].mxu0  ;;  %10525 = vmatpush3.bf16.msra.mxu1 %v15352_v54  ;;  %v16011_v54 = vld [vmem:[#allocation83_spill] sm:$0xff] }
 0x999   : > { %v10843_v31 = vadd.f32 %v10842_v16, %v8739_v50  ;;  %v8741_v6 = vpop.f32.mrb[119].mxu0  ;;  %v8817_v8 = vmax.f32 %v10841_v23, 0.0  ;;  %v10846_v34 = vadd.f32 %v16011_v54, %v6320_v26  ;;  %v11345_v61 = vld [vmem:[#allocation3 + $0x148] ss:$16 sps:$4 sm:$0xff]   ;;  %v11346_v38 = vld [vmem:[#allocation3 + $0x16c] ss:$16 sps:$4 sm:$0xff]  }
 0x99a   : > { %v11348_v10 = vld [vmem:[#allocation3 + $0x168] ss:$16 sps:$4 sm:$0xff]  }
 0x99b   : > { %v8818_v18 = vmax.f32 %v10843_v31, 0.0  ;;  %9408 = vmatmul.mubr.bf16.gmra.mrb[180].mxu1 %v11306_v51 }
 0x99c   : > { %9415 = vmatprep.mubr.bf16.mxu1 %v11307_v39  ;;  %v11349_v39 = vld [vmem:[#allocation3 + $0x18c] ss:$16 sps:$4 sm:$0xff]  }
 0x99d   : > { %v8916_v37 = vpack.c.bf16 %v8818_v18, %v8817_v8  ;;  %v11351_v18 = vld [vmem:[#allocation3 + $0x188] ss:$16 sps:$4 sm:$0xff]  }
 0x99e   : > { %v8744_v44 = vpop.f32.mrb[120].mxu0 }
 0x99f   : > { %v10845_v21 = vadd.f32 %v10844_v4, %v8744_v44  ;;  %v8746_v45 = vpop.f32.mrb[121].mxu0  ;;  %10526 = vmatprep.subr.bf16.mxu1 %v8916_v37  ;;  %v11352_v37 = vld [vmem:[#allocation3 + $0x1ac] ss:$16 sps:$4 sm:$0xff]  }
 0x9a0   : > { %v8747_v46 = vpop.f32.mrb[122].mxu0  ;;  %10527 = vmatpush3.bf16.msra.mxu1 %v15362_v29  ;;  %v10850_v29 = vadd.f32 %v15168_v55, %v6322_v33  ;;  %v11316_v55 = vld [vmem:[#allocation3 + $0x2c] ss:$16 sps:$4 sm:$0xff]   ;;  %v11354_v45 = vld [vmem:[#allocation3 + $0x1a8] ss:$16 sps:$4 sm:$0xff]  }
 0x9a1   : > { %v10847_v22 = vadd.f32 %v10846_v34, %v8747_v46  ;;  %v8749_v19 = vpop.f32.mrb[123].mxu0  ;;  %v8819_v58 = vmax.f32 %v10845_v21, 0.0 }
 0x9a3   : > { %v8820_v60 = vmax.f32 %v10847_v22, 0.0  ;;  %9416 = vmatmul.mubr.bf16.gmra.mrb[184].mxu1 %v11309_v17 }
 0x9a4   : > { %9423 = vmatprep.mubr.bf16.mxu1 %v11310_v52  ;;  %v11355_v52 = vld [vmem:[#allocation3 + $0x1cc] ss:$16 sps:$4 sm:$0xff]  }
 0x9a5   : > { %v8917_v40 = vpack.c.bf16 %v8820_v60, %v8819_v58  ;;  %v11357_v60 = vld [vmem:[#allocation3 + $0x1c8] ss:$16 sps:$4 sm:$0xff]  }
 0x9a6   : > { %v8752_v7 = vpop.f32.mrb[124].mxu0 }
 0x9a7   : > { %v10849_v15 = vadd.f32 %v10848_v47, %v8752_v7  ;;  %v8754_v24 = vpop.f32.mrb[125].mxu0  ;;  %10528 = vmatprep.subr.bf16.mxu1 %v8917_v40  ;;  %v11358_v40 = vld [vmem:[#allocation3 + $0x1ec] ss:$16 sps:$4 sm:$0xff]  }
 0x9a8   : > { %v8755_v25 = vpop.f32.mrb[126].mxu0  ;;  %10529 = vmatpush3.bf16.msra.mxu1 %v15372_v59  ;;  %v11321_v59 = vld [vmem:[#allocation3 + $0x48] ss:$16 sps:$4 sm:$0xff]  }
 0x9a9   : > { %v10851_v36 = vadd.f32 %v10850_v29, %v8755_v25  ;;  %v8757_v56 = vpop.f32.mrb[127].mxu0  ;;  %v8821_v28 = vmax.f32 %v10849_v15, 0.0 }
 0x9ab   : > { %v8822_v2 = vmax.f32 %v10851_v36, 0.0  ;;  %9424 = vmatmul.mubr.bf16.gmra.mrb[188].mxu1 %v11312_v30  ;;  %v11360_v30 = vld [vmem:[#allocation3 + $0x1e8] ss:$16 sps:$4 sm:$0xff]  }
 0x9ac   : > { %9464 = vmatprep.mubr.bf16.mxu1 %v11315_v53 }
 0x9ad   : > { %v8918_v27 = vpack.c.bf16 %v8822_v2, %v8821_v28 }
 0x9af   : > { %10530 = vmatprep.subr.bf16.mxu1 %v8918_v27 }
 0x9b0   : > { %10531 = vmatpush3.bf16.msra.mxu1 %v15382_v35  ;;  %v11330_v35 = vld [vmem:[#allocation3 + $0xa8] ss:$16 sps:$4 sm:$0xff]  }
 0x9b3   : > { %9465 = vmatmul.mubr.bf16.vlgmr.msra.gmra.mrb[192].mxu1 %v11313_v11 }
 0x9b4   : > { %9472 = vmatprep.mubr.bf16.mxu1 %v11316_v55 }
 0x9bb   : > { %9473 = vmatmul.mubr.bf16.gmra.mrb[196].mxu1 %v11318_v9 }
 0x9bc   : > { %9480 = vmatprep.mubr.bf16.mxu1 %v11319_v3 }
 0x9c3   : > { %9481 = vmatmul.mubr.bf16.gmra.mrb[200].mxu1 %v11321_v59 }
 0x9c4   : > { %9488 = vmatprep.mubr.bf16.mxu1 %v11322_v42 }
 0x9cb   : > { %9489 = vmatmul.mubr.bf16.gmra.mrb[204].mxu1 %v11324_v32 }
 0x9cc   : > { %9496 = vmatprep.mubr.bf16.mxu1 %v11325_v43 }
 0x9d3   : > { %9497 = vmatmul.mubr.bf16.gmra.mrb[208].mxu1 %v11327_v63 }
 0x9d4   : > { %9504 = vmatprep.mubr.bf16.mxu1 %v11328_v1 }
 0x9db   : > { %9505 = vmatmul.mubr.bf16.gmra.mrb[212].mxu1 %v11330_v35 }
 0x9dc   : > { %9512 = vmatprep.mubr.bf16.mxu1 %v11331_v48 }
 0x9e3   : > { %9513 = vmatmul.mubr.bf16.gmra.mrb[216].mxu1 %v11333_v41 }
 0x9e4   : > { %9520 = vmatprep.mubr.bf16.mxu1 %v11334_v12 }
 0x9eb   : > { %9521 = vmatmul.mubr.bf16.gmra.mrb[220].mxu1 %v11336_v62 }
 0x9ec   : > { %9528 = vmatprep.mubr.bf16.mxu1 %v11337_v49 }
 0x9f3   : > { %9529 = vmatmul.mubr.bf16.gmra.mrb[224].mxu1 %v11339_v5 }
 0x9f4   : > { %9536 = vmatprep.mubr.bf16.mxu1 %v11340_v13 }
 0x9fb   : > { %9537 = vmatmul.mubr.bf16.gmra.mrb[228].mxu1 %v11342_v14 }
 0x9fc   : > { %9544 = vmatprep.mubr.bf16.mxu1 %v11343_v20 }
 0xa03   : > { %9545 = vmatmul.mubr.bf16.gmra.mrb[232].mxu1 %v11345_v61 }
 0xa04   : > { %9552 = vmatprep.mubr.bf16.mxu1 %v11346_v38 }
 0xa06   : > { %v10420_v16 = vpop.f32.mrb[128].mxu1 }
 0xa07   : > { %v10421_v23 = vpop.f32.mrb[129].mxu1 }
 0xa08   : > { %v15449_v51 = vadd.f32 %v10421_v23, %v10420_v16  ;;  %v10423_v50 = vpop.f32.mrb[130].mxu1 }
 0xa09   : > { %v10424_v31 = vpop.f32.mrb[131].mxu1 }
 0xa0a   : > { %v15451_v6 = vadd.f32 %v10424_v31, %v10423_v50 }
 0xa0b   : > { %9553 = vmatmul.mubr.bf16.gmra.mrb[236].mxu1 %v11348_v10 }
 0xa0c   : > { %9560 = vmatprep.mubr.bf16.mxu1 %v11349_v39 }
 0xa0e   : > { %v10426_v57 = vpop.f32.mrb[132].mxu1 }
 0xa0f   : > { %v10427_v8 = vpop.f32.mrb[133].mxu1 }
 0xa10   : > { %v15453_v26 = vadd.f32 %v10427_v8, %v10426_v57  ;;  %v10429_v4 = vpop.f32.mrb[134].mxu1 }
 0xa11   : > { %v10430_v44 = vpop.f32.mrb[135].mxu1 }
 0xa12   : > { %v15455_v54 = vadd.f32 %v10430_v44, %v10429_v4 }
 0xa13   : > { %9561 = vmatmul.mubr.bf16.gmra.mrb[240].mxu1 %v11351_v18 }
 0xa14   : > { %9568 = vmatprep.mubr.bf16.mxu1 %v11352_v37 }
 0xa16   : > { %v10432_v34 = vpop.f32.mrb[136].mxu1 }
 0xa17   : > { %v10433_v21 = vpop.f32.mrb[137].mxu1 }
 0xa18   : > { %v15457_v17 = vadd.f32 %v10433_v21, %v10432_v34  ;;  %v10435_v46 = vpop.f32.mrb[138].mxu1 }
 0xa19   : > { %v10436_v22 = vpop.f32.mrb[139].mxu1 }
 0xa1a   : > { %v15459_v19 = vadd.f32 %v10436_v22, %v10435_v46 }
 0xa1b   : > { %9569 = vmatmul.mubr.bf16.gmra.mrb[244].mxu1 %v11354_v45 }
 0xa1c   : > { %9576 = vmatprep.mubr.bf16.mxu1 %v11355_v52 }
 0xa1e   : > { %v10438_v0 = vpop.f32.mrb[140].mxu1 }
 0xa1f   : > { %v10439_v58 = vpop.f32.mrb[141].mxu1 }
 0xa20   : > { %v15461_v33 = vadd.f32 %v10439_v58, %v10438_v0  ;;  %v10441_v47 = vpop.f32.mrb[142].mxu1 }
 0xa21   : > { %v10442_v7 = vpop.f32.mrb[143].mxu1 }
 0xa22   : > { %v15463_v29 = vadd.f32 %v10442_v7, %v10441_v47 }
 0xa23   : > { %9577 = vmatmul.mubr.bf16.gmra.mrb[248].mxu1 %v11357_v60 }
 0xa24   : > { %9584 = vmatprep.mubr.bf16.mxu1 %v11358_v40 }
 0xa26   : > { %v10444_v15 = vpop.f32.mrb[144].mxu1 }
 0xa27   : > { %v10445_v24 = vpop.f32.mrb[145].mxu1 }
 0xa28   : > { %v15465_v25 = vadd.f32 %v10445_v24, %v10444_v15  ;;  %v10447_v53 = vpop.f32.mrb[146].mxu1 }
 0xa29   : > { %v10448_v36 = vpop.f32.mrb[147].mxu1 }
 0xa2a   : > { %v15467_v56 = vadd.f32 %v10448_v36, %v10447_v53 }
 0xa2b   : > { %9585 = vmatmul.mubr.bf16.gmra.mrb[252].mxu1 %v11360_v30 }
 0xa2e   : > { %v10450_v28 = vpop.f32.mrb[148].mxu1 }
 0xa2f   : > { %v10451_v2 = vpop.f32.mrb[149].mxu1 }
 0xa30   : > { %v15469_v27 = vadd.f32 %v10451_v2, %v10450_v28  ;;  %v10453_v11 = vpop.f32.mrb[150].mxu1 }
 0xa31   : > { %v10454_v55 = vpop.f32.mrb[151].mxu1 }
 0xa32   : > { %v15471_v9 = vadd.f32 %v10454_v55, %v10453_v11 }
 0xa36   : > { %v10456_v3 = vpop.f32.mrb[152].mxu1 }
 0xa37   : > { %v10457_v59 = vpop.f32.mrb[153].mxu1 }
 0xa38   : > { %v15473_v42 = vadd.f32 %v10457_v59, %v10456_v3  ;;  %v10459_v32 = vpop.f32.mrb[154].mxu1 }
 0xa39   : > { %v10460_v43 = vpop.f32.mrb[155].mxu1 }
 0xa3a   : > { %v15475_v63 = vadd.f32 %v10460_v43, %v10459_v32 }
 0xa3e   : > { %v10462_v1 = vpop.f32.mrb[156].mxu1 }
 0xa3f   : > { %v10463_v35 = vpop.f32.mrb[157].mxu1 }
 0xa40   : > { %v15477_v48 = vadd.f32 %v10463_v35, %v10462_v1  ;;  %v10465_v41 = vpop.f32.mrb[158].mxu1 }
 0xa41   : > { %v10466_v12 = vpop.f32.mrb[159].mxu1 }
 0xa42   : > { %v15479_v62 = vadd.f32 %v10466_v12, %v10465_v41 }
 0xa46   : > { %v10468_v49 = vpop.f32.mrb[160].mxu1 }
 0xa47   : > { %v10469_v5 = vpop.f32.mrb[161].mxu1 }
 0xa48   : > { %v15481_v13 = vadd.f32 %v10469_v5, %v10468_v49  ;;  %v10471_v14 = vpop.f32.mrb[162].mxu1  ;;  %v8919_v49 = vld [vmem:[%s16012_s10] sm:$0xff] }
 0xa49   : > { %v10472_v20 = vpop.f32.mrb[163].mxu1 }
 0xa4a   : > { %v15483_v61 = vadd.f32 %v10472_v20, %v10471_v14  ;;  %v8920_v14 = vld [vmem:[%s16012_s10 + $0x8] sm:$0xff] }
 0xa4e   : > { %v10474_v38 = vpop.f32.mrb[164].mxu1 }
 0xa4f   : > { %v10475_v16 = vpop.f32.mrb[165].mxu1 }
 0xa50   : > { %v15485_v23 = vadd.f32 %v10475_v16, %v10474_v38  ;;  %v10477_v10 = vpop.f32.mrb[166].mxu1  ;;  %v9306_v38 = vadd.f32 %v15449_v51, %v8919_v49  ;;  %v8922_v51 = vld [vmem:[%s16012_s10 + $0x18] sm:$0xff] }
 0xa51   : > { %v10478_v50 = vpop.f32.mrb[167].mxu1 }
 0xa52   : > { %v15487_v39 = vadd.f32 %v10478_v50, %v10477_v10 }
 0xa56   : > { %v10480_v31 = vpop.f32.mrb[168].mxu1 }
 0xa57   : > { %v10481_v57 = vpop.f32.mrb[169].mxu1 }
 0xa58   : > { %v15489_v8 = vadd.f32 %v10481_v57, %v10480_v31  ;;  %v10483_v18 = vpop.f32.mrb[170].mxu1  ;;  %v9309_v31 = vadd.f32 %v15451_v6, %v8920_v14 }
 0xa59   : > { %v10484_v4 = vpop.f32.mrb[171].mxu1 }
 0xa5a   : > { %v15491_v37 = vadd.f32 %v10484_v4, %v10483_v18  ;;  %v11363_v4 = vld [vmem:[#allocation5 + $0x4] ss:$8 sps:$4 sm:$0xff]  }
 0xa5b   : > { %9785 = vmatprep.mubr.bf16.mxu1 %v11363_v4 }
 0xa5e   : > { %v10486_v44 = vpop.f32.mrb[172].mxu1 }
 0xa5f   : > { %v10487_v34 = vpop.f32.mrb[173].mxu1 }
 0xa60   : > { %v15493_v21 = vadd.f32 %v10487_v34, %v10486_v44  ;;  %v10489_v45 = vpop.f32.mrb[174].mxu1  ;;  %v8921_v34 = vld [vmem:[%s16012_s10 + $0x10] sm:$0xff] }
 0xa61   : > { %v10490_v46 = vpop.f32.mrb[175].mxu1 }
 0xa62   : > { %v15495_v52 = vadd.f32 %v10490_v46, %v10489_v45 }
 0xa66   : > { %v10492_v22 = vpop.f32.mrb[176].mxu1 }
 0xa67   : > { %v10493_v0 = vpop.f32.mrb[177].mxu1 }
 0xa68   : > { %v15497_v58 = vadd.f32 %v10493_v0, %v10492_v22  ;;  %v10495_v60 = vpop.f32.mrb[178].mxu1 }
 0xa69   : > { %v10496_v47 = vpop.f32.mrb[179].mxu1 }
 0xa6a   : > { %v15499_v40 = vadd.f32 %v10496_v47, %v10495_v60  ;;  %v9314_v60 = vadd.f32 %v15453_v26, %v8921_v34  ;;  %v8924_v26 = vld [vmem:[%s16012_s10 + $0x28] sm:$0xff] }
 0xa6e   : > { %v10498_v7 = vpop.f32.mrb[180].mxu1 }
 0xa6f   : > { %v10499_v15 = vpop.f32.mrb[181].mxu1 }
 0xa70   : > { %v15501_v24 = vadd.f32 %v10499_v15, %v10498_v7  ;;  %v10501_v30 = vpop.f32.mrb[182].mxu1 }
 0xa71   : > { %v10502_v53 = vpop.f32.mrb[183].mxu1 }
 0xa72   : > { %v15503_v36 = vadd.f32 %v10502_v53, %v10501_v30  ;;  %v9317_v30 = vadd.f32 %v15455_v54, %v8922_v51 }
 0xa76   : > { %v10504_v28 = vpop.f32.mrb[184].mxu1 }
 0xa77   : > { %v10505_v2 = vpop.f32.mrb[185].mxu1 }
 0xa78   : > { %v15505_v11 = vadd.f32 %v10505_v2, %v10504_v28  ;;  %v10507_v55 = vpop.f32.mrb[186].mxu1 }
 0xa79   : > { %v10508_v3 = vpop.f32.mrb[187].mxu1 }
 0xa7a   : > { %v15507_v59 = vadd.f32 %v10508_v3, %v10507_v55  ;;  %v8923_v55 = vld [vmem:[%s16012_s10 + $0x20] sm:$0xff] }
 0xa7e   : > { %v10510_v32 = vpop.f32.mrb[188].mxu1 }
 0xa7f   : > { %v10511_v43 = vpop.f32.mrb[189].mxu1 }
 0xa80   : > { %v15509_v1 = vadd.f32 %v10511_v43, %v10510_v32  ;;  %v10513_v35 = vpop.f32.mrb[190].mxu1 }
 0xa81   : > { %v10514_v41 = vpop.f32.mrb[191].mxu1 }
 0xa82   : > { %v15511_v12 = vadd.f32 %v10514_v41, %v10513_v35  ;;  %v9322_v41 = vadd.f32 %v15457_v17, %v8923_v55  ;;  %v8926_v17 = vld [vmem:[%s16012_s10 + $0x38] sm:$0xff] }
 0xa86   : > { %v10532_v5 = vpop.f32.mrb[192].mxu1 }
 0xa87   : > { %v10533_v20 = vpop.f32.mrb[193].mxu1 }
 0xa88   : > { %v10534_v16 = vadd.f32 %v10533_v20, %v10532_v5  ;;  %v10535_v10 = vpop.f32.mrb[194].mxu1  ;;  %v9325_v20 = vadd.f32 %v15459_v19, %v8924_v26 }
 0xa89   : > { %v10536_v50 = vpop.f32.mrb[195].mxu1 }
 0xa8a   : > { %v9467_v57 = vadd.f32 %v10534_v16, %v9306_v38  ;;  %v10537_v18 = vadd.f32 %v10536_v50, %v10535_v10  ;;  %v8925_v50 = vld [vmem:[%s16012_s10 + $0x30] sm:$0xff] }
 0xa8c   : > { %v9470_v44 = vadd.f32 %v10537_v18, %v9309_v31  ;;  %v9593_v45 = vmax.f32 %v9467_v57, 0.0 }
 0xa8e   : > { %v9594_v46 = vmax.f32 %v9470_v44, 0.0  ;;  %v10538_v22 = vpop.f32.mrb[196].mxu1  ;;  %v9330_v44 = vadd.f32 %v15461_v33, %v8925_v50  ;;  %v8928_v33 = vld [vmem:[%s16012_s10 + $0x48] sm:$0xff] }
 0xa8f   : > { %v10539_v0 = vpop.f32.mrb[197].mxu1 }
 0xa90   : > { %v15528_v6 = vpack.c.bf16 %v9594_v46, %v9593_v45  ;;  %v10540_v47 = vadd.f32 %v10539_v0, %v10538_v22  ;;  %v10541_v7 = vpop.f32.mrb[198].mxu1  ;;  %v9333_v22 = vadd.f32 %v15463_v29, %v8926_v17 }
 0xa91   : > { %v10542_v15 = vpop.f32.mrb[199].mxu1 }
 0xa92   : > { %v9475_v53 = vadd.f32 %v10540_v47, %v9314_v60  ;;  %v10543_v28 = vadd.f32 %v10542_v15, %v10541_v7  ;;  %v8927_v47 = vld [vmem:[%s16012_s10 + $0x40] sm:$0xff] }
 0xa94   : > { %v9478_v2 = vadd.f32 %v10543_v28, %v9317_v30  ;;  %v9595_v3 = vmax.f32 %v9475_v53, 0.0  ;;  %v9338_v28 = vadd.f32 %v15465_v25, %v8927_v47  ;;  %v8930_v25 = vld [vmem:[%s16012_s10 + $0x58] sm:$0xff] }
 0xa96   : > { %v9596_v32 = vmax.f32 %v9478_v2, 0.0  ;;  %v10544_v43 = vpop.f32.mrb[200].mxu1 }
 0xa97   : > { %v10545_v35 = vpop.f32.mrb[201].mxu1 }
 0xa98   : > { %v15538_v49 = vpack.c.bf16 %v9596_v32, %v9595_v3  ;;  %v10546_v54 = vadd.f32 %v10545_v35, %v10544_v43  ;;  %v10547_v5 = vpop.f32.mrb[202].mxu1  ;;  %v9341_v32 = vadd.f32 %v15467_v56, %v8928_v33  ;;  %v8933_v33 = vld [vmem:[%s16012_s10 + $0x70] sm:$0xff] }
 0xa99   : > { %v10548_v14 = vpop.f32.mrb[203].mxu1 }
 0xa9a   : > { %v9483_v38 = vadd.f32 %v10546_v54, %v9322_v41  ;;  %v10549_v16 = vadd.f32 %v10548_v14, %v10547_v5  ;;  %v8929_v41 = vld [vmem:[%s16012_s10 + $0x50] sm:$0xff] }
 0xa9c   : > { %v9486_v10 = vadd.f32 %v10549_v16, %v9325_v20  ;;  %v9597_v31 = vmax.f32 %v9483_v38, 0.0  ;;  %v9346_v38 = vadd.f32 %v15469_v27, %v8929_v41  ;;  %v8932_v27 = vld [vmem:[%s16012_s10 + $0x68] sm:$0xff] }
 0xa9d   : > { %v9357_v47 = vadd.f32 %v15475_v63, %v8932_v27 }
 0xa9e   : > { %v9598_v57 = vmax.f32 %v9486_v10, 0.0  ;;  %v10550_v18 = vpop.f32.mrb[204].mxu1 }
 0xa9f   : > { %v10551_v4 = vpop.f32.mrb[205].mxu1 }
 0xaa0   : > { %v15548_v34 = vpack.c.bf16 %v9598_v57, %v9597_v31  ;;  %v10552_v19 = vadd.f32 %v10551_v4, %v10550_v18  ;;  %v10553_v45 = vpop.f32.mrb[206].mxu1  ;;  %v9349_v31 = vadd.f32 %v15471_v9, %v8930_v25  ;;  %v8931_v4 = vld [vmem:[%s16012_s10 + $0x60] sm:$0xff] }
 0xaa1   : > { %v10554_v46 = vpop.f32.mrb[207].mxu1 }
 0xaa2   : > { %v9491_v51 = vadd.f32 %v10552_v19, %v9330_v44  ;;  %v10555_v0 = vadd.f32 %v10554_v46, %v10553_v45 }
 0xaa4   : > { %v9494_v60 = vadd.f32 %v10555_v0, %v9333_v22  ;;  %v9599_v7 = vmax.f32 %v9491_v51, 0.0  ;;  %v9354_v22 = vadd.f32 %v15473_v42, %v8931_v4  ;;  %v8934_v42 = vld [vmem:[%s16012_s10 + $0x78] sm:$0xff] }
 0xaa6   : > { %v9600_v15 = vmax.f32 %v9494_v60, 0.0  ;;  %v10556_v30 = vpop.f32.mrb[208].mxu1 }
 0xaa7   : > { %v10557_v53 = vpop.f32.mrb[209].mxu1 }
 0xaa8   : > { %v15558_v2 = vpack.c.bf16 %v9600_v15, %v9599_v7  ;;  %v10558_v29 = vadd.f32 %v10557_v53, %v10556_v30  ;;  %v10559_v55 = vpop.f32.mrb[210].mxu1 }
 0xaa9   : > { %v10560_v3 = vpop.f32.mrb[211].mxu1 }
 0xaaa   : > { %v9499_v43 = vadd.f32 %v10558_v29, %v9338_v28  ;;  %v10561_v26 = vadd.f32 %v10560_v3, %v10559_v55  ;;  %v9362_v3 = vadd.f32 %v15477_v48, %v8933_v33  ;;  %v8936_v48 = vld [vmem:[%s16012_s10 + $0x88] sm:$0xff] }
 0xaac   : > { %v9502_v35 = vadd.f32 %v10561_v26, %v9341_v32  ;;  %v9601_v54 = vmax.f32 %v9499_v43, 0.0 }
 0xaae   : > { %v9602_v5 = vmax.f32 %v9502_v35, 0.0  ;;  %v10562_v14 = vpop.f32.mrb[212].mxu1  ;;  %v9365_v35 = vadd.f32 %v15479_v62, %v8934_v42 }
 0xaaf   : > { %v10563_v20 = vpop.f32.mrb[213].mxu1 }
 0xab0   : > { %v15568_v16 = vpack.c.bf16 %v9602_v5, %v9601_v54  ;;  %v10564_v56 = vadd.f32 %v10563_v20, %v10562_v14  ;;  %v10565_v10 = vpop.f32.mrb[214].mxu1  ;;  %v8935_v14 = vld [vmem:[%s16012_s10 + $0x80] sm:$0xff] }
 0xab1   : > { %v10566_v50 = vpop.f32.mrb[215].mxu1 }
 0xab2   : > { %v9507_v57 = vadd.f32 %v10564_v56, %v9346_v38  ;;  %v10567_v18 = vadd.f32 %v10566_v50, %v10565_v10  ;;  %v9370_v10 = vadd.f32 %v15481_v13, %v8935_v14  ;;  %v8938_v13 = vld [vmem:[%s16012_s10 + $0x98] sm:$0xff] }
 0xab4   : > { %v9510_v17 = vadd.f32 %v10567_v18, %v9349_v31  ;;  %v9603_v44 = vmax.f32 %v9507_v57, 0.0  ;;  %v9373_v18 = vadd.f32 %v15483_v61, %v8936_v48 }
 0xab6   : > { %v9604_v19 = vmax.f32 %v9510_v17, 0.0  ;;  %v10568_v45 = vpop.f32.mrb[216].mxu1 }
 0xab7   : > { %v10569_v46 = vpop.f32.mrb[217].mxu1 }
 0xab8   : > { %v15578_v51 = vpack.c.bf16 %v9604_v19, %v9603_v44  ;;  %v10570_v9 = vadd.f32 %v10569_v46, %v10568_v45  ;;  %v10571_v0 = vpop.f32.mrb[218].mxu1  ;;  %v8937_v19 = vld [vmem:[%s16012_s10 + $0x90] sm:$0xff] }
 0xab9   : > { %v10572_v60 = vpop.f32.mrb[219].mxu1 }
 0xaba   : > { %v9515_v7 = vadd.f32 %v10570_v9, %v9354_v22  ;;  %v10573_v15 = vadd.f32 %v10572_v60, %v10571_v0  ;;  %v9378_v9 = vadd.f32 %v15485_v23, %v8937_v19  ;;  %v8940_v23 = vld [vmem:[%s16012_s10 + $0xa8] sm:$0xff] }
 0xabc   : > { %v9518_v30 = vadd.f32 %v10573_v15, %v9357_v47  ;;  %v9605_v53 = vmax.f32 %v9515_v7, 0.0  ;;  %v9381_v7 = vadd.f32 %v15487_v39, %v8938_v13 }
 0xabe   : > { %v9606_v28 = vmax.f32 %v9518_v30, 0.0  ;;  %v10574_v29 = vpop.f32.mrb[220].mxu1 }
 0xabf   : > { %v10575_v55 = vpop.f32.mrb[221].mxu1 }
 0xac0   : > { %v15588_v32 = vpack.c.bf16 %v9606_v28, %v9605_v53  ;;  %v10576_v63 = vadd.f32 %v10575_v55, %v10574_v29  ;;  %v10577_v43 = vpop.f32.mrb[222].mxu1  ;;  %v8939_v53 = vld [vmem:[%s16012_s10 + $0xa0] sm:$0xff] }
 0xac1   : > { %v10578_v26 = vpop.f32.mrb[223].mxu1  ;;  %v9386_v39 = vadd.f32 %v15489_v8, %v8939_v53  ;;  %v8942_v8 = vld [vmem:[%s16012_s10 + $0xb8] sm:$0xff] }
 0xac2   : > { %v9523_v41 = vadd.f32 %v10576_v63, %v9362_v3  ;;  %v10579_v54 = vadd.f32 %v10578_v26, %v10577_v43 }
 0xac4   : > { %v9526_v5 = vadd.f32 %v10579_v54, %v9365_v35  ;;  %v9607_v25 = vmax.f32 %v9523_v41, 0.0 }
 0xac6   : > { %v9608_v20 = vmax.f32 %v9526_v5, 0.0  ;;  %v10580_v38 = vpop.f32.mrb[224].mxu1  ;;  %v8941_v5 = vld [vmem:[%s16012_s10 + $0xb0] sm:$0xff] }
 0xac7   : > { %v10581_v56 = vpop.f32.mrb[225].mxu1 }
 0xac8   : > { %v15598_v50 = vpack.c.bf16 %v9608_v20, %v9607_v25  ;;  %v10582_v62 = vadd.f32 %v10581_v56, %v10580_v38  ;;  %v10583_v31 = vpop.f32.mrb[226].mxu1 }
 0xac9   : > { %v10584_v57 = vpop.f32.mrb[227].mxu1 }
 0xaca   : > { %v9531_v17 = vadd.f32 %v10582_v62, %v9370_v10  ;;  %v10585_v4 = vadd.f32 %v10584_v57, %v10583_v31 }
 0xacc   : > { %v9534_v44 = vadd.f32 %v10585_v4, %v9373_v18  ;;  %v9609_v45 = vmax.f32 %v9531_v17, 0.0  ;;  %v8943_v17 = vld [vmem:[%s16012_s10 + $0xc0] sm:$0xff] }
 0xace   : > { %v9610_v27 = vmax.f32 %v9534_v44, 0.0  ;;  %v10586_v46 = vpop.f32.mrb[228].mxu1 }
 0xacf   : > { %v10587_v22 = vpop.f32.mrb[229].mxu1 }
 0xad0   : > { %v10588_v0 = vadd.f32 %v10587_v22, %v10586_v46  ;;  %v10589_v60 = vpop.f32.mrb[230].mxu1  ;;  %v9649_v61 = vpack.c.bf16 %v9610_v27, %v9609_v45 }
 0xad1   : > { %v10590_v47 = vpop.f32.mrb[231].mxu1 }
 0xad2   : > { %v9539_v15 = vadd.f32 %v10588_v0, %v9378_v9  ;;  %v10591_v30 = vadd.f32 %v10590_v47, %v10589_v60  ;;  %10628 = vmatprep.subr.bf16.mxu1 %v9649_v61  ;;  %v8945_v61 = vld [vmem:[%s16012_s10 + $0xd0] sm:$0xff] }
 0xad3   : > { %10629 = vmatpush3.bf16.msra.mxu1 %v15528_v6  ;;  %v9389_v6 = vadd.f32 %v15491_v37, %v8940_v23  ;;  %v9394_v37 = vadd.f32 %v15493_v21, %v8941_v5  ;;  %v8944_v21 = vld [vmem:[%s16012_s10 + $0xc8] sm:$0xff] }
 0xad4   : > { %v9542_v33 = vadd.f32 %v10591_v30, %v9381_v7  ;;  %v9611_v28 = vmax.f32 %v9539_v15, 0.0 }
 0xad6   : > { %v9612_v29 = vmax.f32 %v9542_v33, 0.0  ;;  %v10592_v42 = vpop.f32.mrb[232].mxu1 }
 0xad7   : > { %v10593_v55 = vpop.f32.mrb[233].mxu1 }
 0xad8   : > { %v10594_v3 = vadd.f32 %v10593_v55, %v10592_v42  ;;  %v10595_v63 = vpop.f32.mrb[234].mxu1  ;;  %v9650_v43 = vpack.c.bf16 %v9612_v29, %v9611_v28 }
 0xad9   : > { %v10596_v26 = vpop.f32.mrb[235].mxu1 }
 0xada   : > { %v9547_v35 = vadd.f32 %v10594_v3, %v9386_v39  ;;  %v10597_v41 = vadd.f32 %v10596_v26, %v10595_v63  ;;  %10630 = vmatprep.subr.bf16.mxu1 %v9650_v43  ;;  %v8947_v39 = vld [vmem:[%s16012_s10 + $0xe0] sm:$0xff] }
 0xadb   : > { %10631 = vmatpush3.bf16.msra.mxu1 %v15538_v49  ;;  %v9397_v49 = vadd.f32 %v15495_v52, %v8942_v8  ;;  %v9402_v52 = vadd.f32 %v15497_v58, %v8943_v17  ;;  %v8946_v58 = vld [vmem:[%s16012_s10 + $0xd8] sm:$0xff] }
 0xadc   : > { %v9550_v54 = vadd.f32 %v10597_v41, %v9389_v6  ;;  %v9613_v14 = vmax.f32 %v9547_v35, 0.0 }
 0xade   : > { %v9614_v25 = vmax.f32 %v9550_v54, 0.0  ;;  %v10598_v20 = vpop.f32.mrb[236].mxu1 }
 0xadf   : > { %v10599_v38 = vpop.f32.mrb[237].mxu1 }
 0xae0   : > { %v10600_v48 = vadd.f32 %v10599_v38, %v10598_v20  ;;  %v10601_v56 = vpop.f32.mrb[238].mxu1  ;;  %v9651_v10 = vpack.c.bf16 %v9614_v25, %v9613_v14  ;;  %v8949_v20 = vld [vmem:[%s16012_s10 + $0xf0] sm:$0xff] }
 0xae1   : > { %v10602_v62 = vpop.f32.mrb[239].mxu1 }
 0xae2   : > { %v9555_v31 = vadd.f32 %v10600_v48, %v9394_v37  ;;  %v10603_v57 = vadd.f32 %v10602_v62, %v10601_v56  ;;  %10632 = vmatprep.subr.bf16.mxu1 %v9651_v10 }
 0xae3   : > { %10633 = vmatpush3.bf16.msra.mxu1 %v15548_v34  ;;  %v9405_v34 = vadd.f32 %v15499_v40, %v8944_v21  ;;  %v9410_v40 = vadd.f32 %v15501_v24, %v8945_v61  ;;  %v8948_v24 = vld [vmem:[%s16012_s10 + $0xe8] sm:$0xff]  ;;  %v11364_v21 = vld [vmem:[#allocation5 + $0x10] ss:$8 sps:$4 sm:$0xff]   ;;  %v9657_v61 = vld [vmem:[%s16013_s14] sm:$0xff] }
 0xae4   : > { %v9558_v18 = vadd.f32 %v10603_v57, %v9397_v49  ;;  %v9615_v4 = vmax.f32 %v9555_v31, 0.0 }
 0xae6   : > { %v9616_v44 = vmax.f32 %v9558_v18, 0.0  ;;  %v10604_v19 = vpop.f32.mrb[240].mxu1 }
 0xae7   : > { %v10605_v45 = vpop.f32.mrb[241].mxu1 }
 0xae8   : > { %v10606_v27 = vadd.f32 %v10605_v45, %v10604_v19  ;;  %v10607_v46 = vpop.f32.mrb[242].mxu1  ;;  %v9652_v13 = vpack.c.bf16 %v9616_v44, %v9615_v4  ;;  %v11361_v19 = vld [vmem:[#allocation5] ss:$8 sps:$4 sm:$0xff]   ;;  %v11369_v45 = vld [vmem:[#allocation5 + $0x24] ss:$8 sps:$4 sm:$0xff]  }
 0xae9   : > { %v10608_v22 = vpop.f32.mrb[243].mxu1 }
 0xaea   : > { %v9563_v9 = vadd.f32 %v10606_v27, %v9402_v52  ;;  %v10609_v0 = vadd.f32 %v10608_v22, %v10607_v46  ;;  %10634 = vmatprep.subr.bf16.mxu1 %v9652_v13  ;;  %v11372_v52 = vld [vmem:[#allocation5 + $0x34] ss:$8 sps:$4 sm:$0xff]   ;;  %v11375_v27 = vld [vmem:[#allocation5 + $0x44] ss:$8 sps:$4 sm:$0xff]   ;;  %v11373_v46 = vld [vmem:[#allocation5 + $0x40] ss:$8 sps:$4 sm:$0xff]  }
 0xaeb   : > { %10635 = vmatpush3.bf16.msra.mxu1 %v15558_v2  ;;  %v9413_v2 = vadd.f32 %v15503_v36, %v8946_v58  ;;  %v9418_v36 = vadd.f32 %v15505_v11, %v8947_v39  ;;  %v8950_v11 = vld [vmem:[%s16012_s10 + $0xf8] sm:$0xff]  ;;  %v11381_v22 = vld [vmem:[#allocation5 + $0x64] ss:$8 sps:$4 sm:$0xff]  }
 0xaec   : > { %v9566_v60 = vadd.f32 %v10609_v0, %v9405_v34  ;;  %v9617_v47 = vmax.f32 %v9563_v9, 0.0  ;;  %v11378_v13 = vld [vmem:[#allocation5 + $0x54] ss:$8 sps:$4 sm:$0xff]   ;;  %v11379_v34 = vld [vmem:[#allocation5 + $0x60] ss:$8 sps:$4 sm:$0xff]  }
 0xaed   : > { %v11384_v9 = vld [vmem:[#allocation5 + $0x74] ss:$8 sps:$4 sm:$0xff]   ;;  %v11382_v0 = vld [vmem:[#allocation5 + $0x70] ss:$8 sps:$4 sm:$0xff]   ;;  %v9658_v58 = vld [vmem:[%s16013_s14 + $0x8] sm:$0xff] }
 0xaee   : > { %v9618_v7 = vmax.f32 %v9566_v60, 0.0  ;;  %v10610_v15 = vpop.f32.mrb[244].mxu1 }
 0xaef   : > { %v10611_v30 = vpop.f32.mrb[245].mxu1 }
 0xaf0   : > { %v10612_v33 = vadd.f32 %v10611_v30, %v10610_v15  ;;  %v10613_v53 = vpop.f32.mrb[246].mxu1  ;;  %v9653_v28 = vpack.c.bf16 %v9618_v7, %v9617_v47 }
 0xaf1   : > { %v10614_v29 = vpop.f32.mrb[247].mxu1 }
 0xaf2   : > { %v9571_v42 = vadd.f32 %v10612_v33, %v9410_v40  ;;  %v10615_v23 = vadd.f32 %v10614_v29, %v10613_v53  ;;  %10636 = vmatprep.subr.bf16.mxu1 %v9653_v28  ;;  %v9659_v29 = vld [vmem:[%s16013_s14 + $0x10] sm:$0xff] }
 0xaf3   : > { %10637 = vmatpush3.bf16.msra.mxu1 %v15568_v16  ;;  %v9421_v16 = vadd.f32 %v15507_v59, %v8948_v24  ;;  %v9426_v59 = vadd.f32 %v15509_v1, %v8949_v20  ;;  %v11366_v1 = vld [vmem:[#allocation5 + $0x14] ss:$8 sps:$4 sm:$0xff]  }
 0xaf4   : > { %v9574_v55 = vadd.f32 %v10615_v23, %v9413_v2  ;;  %v9619_v3 = vmax.f32 %v9571_v42, 0.0  ;;  %v9663_v20 = vld [vmem:[%s16013_s14 + $0x30] sm:$0xff] }
 0xaf6   : > { %v9620_v63 = vmax.f32 %v9574_v55, 0.0  ;;  %v10616_v43 = vpop.f32.mrb[248].mxu1  ;;  %v9660_v55 = vld [vmem:[%s16013_s14 + $0x18] sm:$0xff] }
 0xaf7   : > { %v10617_v26 = vpop.f32.mrb[249].mxu1 }
 0xaf8   : > { %v10618_v6 = vadd.f32 %v10617_v26, %v10616_v43  ;;  %v10619_v35 = vpop.f32.mrb[250].mxu1  ;;  %v9654_v41 = vpack.c.bf16 %v9620_v63, %v9619_v3  ;;  %v9661_v26 = vld [vmem:[%s16013_s14 + $0x20] sm:$0xff] }
 0xaf9   : > { %v10620_v54 = vpop.f32.mrb[251].mxu1 }
 0xafa   : > { %v9579_v5 = vadd.f32 %v10618_v6, %v9418_v36  ;;  %v10621_v14 = vadd.f32 %v10620_v54, %v10619_v35  ;;  %10638 = vmatprep.subr.bf16.mxu1 %v9654_v41  ;;  %v9662_v41 = vld [vmem:[%s16013_s14 + $0x28] sm:$0xff] }
 0xafb   : > { %10639 = vmatpush3.bf16.msra.mxu1 %v15578_v51  ;;  %v9429_v51 = vadd.f32 %v15511_v12, %v8950_v11  ;;  %v11367_v12 = vld [vmem:[#allocation5 + $0x20] ss:$8 sps:$4 sm:$0xff]   ;;  %v9664_v11 = vld [vmem:[%s16013_s14 + $0x38] sm:$0xff] }
 0xafc   : > { %v9582_v25 = vadd.f32 %v10621_v14, %v9421_v16  ;;  %v9621_v8 = vmax.f32 %v9579_v5, 0.0 }
 0xafe   : > { %v9622_v38 = vmax.f32 %v9582_v25, 0.0  ;;  %v10622_v37 = vpop.f32.mrb[252].mxu1 }
 0xaff   : > { %v10623_v48 = vpop.f32.mrb[253].mxu1 }
 0xb00   : > { %v10624_v56 = vadd.f32 %v10623_v48, %v10622_v37  ;;  %v10625_v10 = vpop.f32.mrb[254].mxu1  ;;  %v9655_v62 = vpack.c.bf16 %v9622_v38, %v9621_v8 }
 0xb01   : > { %v10626_v49 = vpop.f32.mrb[255].mxu1 }
 0xb02   : > { %v9587_v31 = vadd.f32 %v10624_v56, %v9426_v59  ;;  %v10627_v57 = vadd.f32 %v10626_v49, %v10625_v10  ;;  %10640 = vmatprep.subr.bf16.mxu1 %v9655_v62  ;;  %v9665_v49 = vld [vmem:[%s16013_s14 + $0x40] sm:$0xff] }
 0xb03   : > { %10641 = vmatpush3.bf16.msra.mxu1 %v15588_v32  ;;  %v11370_v32 = vld [vmem:[#allocation5 + $0x30] ss:$8 sps:$4 sm:$0xff]  }
 0xb04   : > { %v9590_v18 = vadd.f32 %v10627_v57, %v9429_v51  ;;  %v9623_v17 = vmax.f32 %v9587_v31, 0.0 }
 0xb06   : > { %v9624_v4 = vmax.f32 %v9590_v18, 0.0  ;;  %v9666_v18 = vld [vmem:[%s16013_s14 + $0x48] sm:$0xff] }
 0xb08   : > { %v9656_v44 = vpack.c.bf16 %v9624_v4, %v9623_v17 }
 0xb0a   : > { %10642 = vmatprep.subr.bf16.mxu1 %v9656_v44 }
 0xb0b   : > { %10643 = vmatpush3.bf16.msra.mxu1 %v15598_v50  ;;  %v11376_v50 = vld [vmem:[#allocation5 + $0x50] ss:$8 sps:$4 sm:$0xff]  }
 0xb0e   : > { %9786 = vmatmul.mubr.bf16.vlgmr.msra.gmra.mrb[0].mxu1 %v11361_v19 }
 0xb0f   : > { %9793 = vmatprep.mubr.bf16.mxu1 %v11366_v1 }
 0xb16   : > { %9794 = vmatmul.mubr.bf16.gmra.mrb[4].mxu1 %v11364_v21  ;;  %v9667_v21 = vld [vmem:[%s16013_s14 + $0x50] sm:$0xff] }
 0xb17   : > { %9801 = vmatprep.mubr.bf16.mxu1 %v11369_v45 }
 0xb1e   : > { %9802 = vmatmul.mubr.bf16.gmra.mrb[8].mxu1 %v11367_v12 }
 0xb1f   : > { %9809 = vmatprep.mubr.bf16.mxu1 %v11372_v52 }
 0xb26   : > { %9810 = vmatmul.mubr.bf16.gmra.mrb[12].mxu1 %v11370_v32  ;;  %v9668_v32 = vld [vmem:[%s16013_s14 + $0x58] sm:$0xff] }
 0xb27   : > { %9817 = vmatprep.mubr.bf16.mxu1 %v11375_v27 }
 0xb2e   : > { %9818 = vmatmul.mubr.bf16.gmra.mrb[16].mxu1 %v11373_v46 }
 0xb2f   : > { %9825 = vmatprep.mubr.bf16.mxu1 %v11378_v13 }
 0xb36   : > { %9826 = vmatmul.mubr.bf16.gmra.mrb[20].mxu1 %v11376_v50 }
 0xb37   : > { %9833 = vmatprep.mubr.bf16.mxu1 %v11381_v22 }
 0xb3e   : > { %9834 = vmatmul.mubr.bf16.gmra.mrb[24].mxu1 %v11379_v34  ;;  %v9669_v34 = vld [vmem:[%s16013_s14 + $0x60] sm:$0xff] }
 0xb3f   : > { %9841 = vmatprep.mubr.bf16.mxu1 %v11384_v9 }
 0xb46   : > { %9842 = vmatmul.mubr.bf16.gmra.mrb[28].mxu1 %v11382_v0 }
 0xbe1   : > { %v10644_v60 = vpop.f32.mrb[0].mxu1 }
 0xbe2   : > { %v10645_v47 = vpop.f32.mrb[1].mxu1 }
 0xbe3   : > { %v10646_v7 = vadd.f32 %v10645_v47, %v10644_v60  ;;  %v10647_v15 = vpop.f32.mrb[2].mxu1 }
 0xbe4   : > { %v10648_v30 = vpop.f32.mrb[3].mxu1 }
 0xbe5   : > { %v9788_v40 = vadd.f32 %v10646_v7, %v9657_v61  ;;  %v10649_v33 = vadd.f32 %v10648_v30, %v10647_v15  ;;  %v9670_v61 = vld [vmem:[%s16013_s14 + $0x68] sm:$0xff] }
 0xbe7   : > { %9850 = vst.msk [vmem:[%s11679_s23] sm:$0xff] %vm5678_vm2, %v9788_v40  ;;  %v9791_v53 = vadd.f32 %v10649_v33, %v9658_v58  ;;  %v9671_v40 = vld [vmem:[%s16013_s14 + $0x70] sm:$0xff] }
 0xbe9   : > { %9851 = vst.msk [vmem:[%s11679_s23 + $0x8] sm:$0xff] %vm5678_vm2, %v9791_v53  ;;  %v10650_v28 = vpop.f32.mrb[4].mxu1 }
 0xbea   : > { %v10651_v2 = vpop.f32.mrb[5].mxu1 }
 0xbeb   : > { %v10652_v42 = vadd.f32 %v10651_v2, %v10650_v28  ;;  %v10653_v23 = vpop.f32.mrb[6].mxu1 }
 0xbec   : > { %v10654_v39 = vpop.f32.mrb[7].mxu1 }
 0xbed   : > { %v9796_v3 = vadd.f32 %v10652_v42, %v9659_v29  ;;  %v10655_v63 = vadd.f32 %v10654_v39, %v10653_v23  ;;  %v9672_v29 = vld [vmem:[%s16013_s14 + $0x78] sm:$0xff] }
 0xbef   : > { %9852 = vst.msk [vmem:[%s11679_s23 + $0x10] sm:$0xff] %vm5678_vm2, %v9796_v3  ;;  %v9799_v43 = vadd.f32 %v10655_v63, %v9660_v55 }
 0xbf1   : > { %9853 = vst.msk [vmem:[%s11679_s23 + $0x18] sm:$0xff] %vm5678_vm2, %v9799_v43  ;;  %v10656_v24 = vpop.f32.mrb[8].mxu1 }
 0xbf2   : > { %v10657_v36 = vpop.f32.mrb[9].mxu1 }
 0xbf3   : > { %v10658_v6 = vadd.f32 %v10657_v36, %v10656_v24  ;;  %v10659_v35 = vpop.f32.mrb[10].mxu1 }
 0xbf4   : > { %v10660_v54 = vpop.f32.mrb[11].mxu1 }
 0xbf5   : > { %v9804_v16 = vadd.f32 %v10658_v6, %v9661_v26  ;;  %v10661_v5 = vadd.f32 %v10660_v54, %v10659_v35 }
 0xbf7   : > { %9854 = vst.msk [vmem:[%s11679_s23 + $0x20] sm:$0xff] %vm5678_vm2, %v9804_v16  ;;  %v9807_v14 = vadd.f32 %v10661_v5, %v9662_v41 }
 0xbf9   : > { %9855 = vst.msk [vmem:[%s11679_s23 + $0x28] sm:$0xff] %vm5678_vm2, %v9807_v14  ;;  %v10662_v25 = vpop.f32.mrb[12].mxu1 }
 0xbfa   : > { %v10663_v8 = vpop.f32.mrb[13].mxu1 }
 0xbfb   : > { %v10664_v38 = vadd.f32 %v10663_v8, %v10662_v25  ;;  %v10665_v37 = vpop.f32.mrb[14].mxu1 }
 0xbfc   : > { %v10666_v48 = vpop.f32.mrb[15].mxu1 }
 0xbfd   : > { %v9812_v59 = vadd.f32 %v10664_v38, %v9663_v20  ;;  %v10667_v56 = vadd.f32 %v10666_v48, %v10665_v37 }
 0xbff   : > { %9856 = vst.msk [vmem:[%s11679_s23 + $0x30] sm:$0xff] %vm5678_vm2, %v9812_v59  ;;  %v9815_v10 = vadd.f32 %v10667_v56, %v9664_v11 }
 0xc01   : > { %9857 = vst.msk [vmem:[%s11679_s23 + $0x38] sm:$0xff] %vm5678_vm2, %v9815_v10  ;;  %v10668_v62 = vpop.f32.mrb[16].mxu1 }
 0xc02   : > { %v10669_v51 = vpop.f32.mrb[17].mxu1 }
 0xc03   : > { %v10670_v31 = vadd.f32 %v10669_v51, %v10668_v62  ;;  %v10671_v57 = vpop.f32.mrb[18].mxu1 }
 0xc04   : > { %v10672_v17 = vpop.f32.mrb[19].mxu1 }
 0xc05   : > { %v9820_v4 = vadd.f32 %v10670_v31, %v9665_v49  ;;  %v10673_v44 = vadd.f32 %v10672_v17, %v10671_v57 }
 0xc07   : > { %9858 = vst.msk [vmem:[%s11679_s23 + $0x40] sm:$0xff] %vm5678_vm2, %v9820_v4  ;;  %v9823_v19 = vadd.f32 %v10673_v44, %v9666_v18 }
 0xc09   : > { %9859 = vst.msk [vmem:[%s11679_s23 + $0x48] sm:$0xff] %vm5678_vm2, %v9823_v19  ;;  %v10674_v1 = vpop.f32.mrb[20].mxu1 }
 0xc0a   : > { %v10675_v45 = vpop.f32.mrb[21].mxu1 }
 0xc0b   : > { %v10676_v12 = vadd.f32 %v10675_v45, %v10674_v1  ;;  %v10677_v52 = vpop.f32.mrb[22].mxu1 }
 0xc0c   : > { %v10678_v27 = vpop.f32.mrb[23].mxu1 }
 0xc0d   : > { %v9828_v46 = vadd.f32 %v10676_v12, %v9667_v21  ;;  %v10679_v13 = vadd.f32 %v10678_v27, %v10677_v52 }
 0xc0f   : > { %9860 = vst.msk [vmem:[%s11679_s23 + $0x50] sm:$0xff] %vm5678_vm2, %v9828_v46  ;;  %v9831_v50 = vadd.f32 %v10679_v13, %v9668_v32 }
 0xc11   : > { %9861 = vst.msk [vmem:[%s11679_s23 + $0x58] sm:$0xff] %vm5678_vm2, %v9831_v50  ;;  %v10680_v22 = vpop.f32.mrb[24].mxu1 }
 0xc12   : > { %v10681_v9 = vpop.f32.mrb[25].mxu1 }
 0xc13   : > { %v10682_v0 = vadd.f32 %v10681_v9, %v10680_v22  ;;  %v10683_v60 = vpop.f32.mrb[26].mxu1 }
 0xc14   : > { %v10684_v47 = vpop.f32.mrb[27].mxu1 }
 0xc15   : > { %v9836_v7 = vadd.f32 %v10682_v0, %v9669_v34  ;;  %v10685_v15 = vadd.f32 %v10684_v47, %v10683_v60 }
 0xc17   : > { %9862 = vst.msk [vmem:[%s11679_s23 + $0x60] sm:$0xff] %vm5678_vm2, %v9836_v7  ;;  %v9839_v58 = vadd.f32 %v10685_v15, %v9670_v61 }
 0xc19   : > { %9863 = vst.msk [vmem:[%s11679_s23 + $0x68] sm:$0xff] %vm5678_vm2, %v9839_v58  ;;  %v10686_v30 = vpop.f32.mrb[28].mxu1 }
 0xc1a   : > { %v10687_v33 = vpop.f32.mrb[29].mxu1 }
 0xc1b   : > { %v10688_v53 = vadd.f32 %v10687_v33, %v10686_v30  ;;  %v10689_v28 = vpop.f32.mrb[30].mxu1 }
 0xc1c   : > { %v10690_v2 = vpop.f32.mrb[31].mxu1 }
 0xc1d   : > { %v9844_v42 = vadd.f32 %v10688_v53, %v9671_v40  ;;  %v10691_v23 = vadd.f32 %v10690_v2, %v10689_v28 }
 0xc1f   : > { %9864 = vst.msk [vmem:[%s11679_s23 + $0x70] sm:$0xff] %vm5678_vm2, %v9844_v42  ;;  %v9847_v55 = vadd.f32 %v10691_v23, %v9672_v29 }
 0xc21   : > { %9865 = vst.msk [vmem:[%s11679_s23 + $0x78] sm:$0xff] %vm5678_vm2, %v9847_v55 }
 0xc22 PF: > { %s16014_s17 = sld [smem:[#allocation11_spill]]  ;;  %s16015_s25 = sld [smem:[#allocation9_spill]] }
 0xc23   : > { %s16016_s26 = sld [smem:[#allocation10_spill]]  ;;  %s16017_s27 = sld [smem:[#allocation12_spill]] }
 0xc24   : > { %s16018_s28 = sld [smem:[#allocation13_spill]] }
 0xc28   : > { %s25_s29 = sadd.s32 1, %s16014_s17  }
 0xc29   : > { %p22_p11 = scmp.ge.s32.totalorder %s25_s29, 6  }
 0xc2b   :  { %24 = sbr.rel (!%p22_p11) target bundleno = 7 (0x7), region = 119 }
 0xc32   :  { %9887 = vsyncpa [#allocation4], 1 }
 0xc33   :  { %9889 = vsyncpa [#allocation4 + $0x1], 1 }
 0xc34   :  { %9890 = vsyncpa [#allocation6], 1 }

</bundles_post_ra>
